<compile_context>
chip_gen: v5e
topology: v5e:2x2
jax: 0.10.0
libtpu: 0.0.40
codegen_flags: <defaults>
</compile_context>

<pallas_src>
import functools

import jax
import jax.numpy as jnp
from jax import lax
from jax.experimental import pallas as pl
from jax.experimental.pallas import tpu as pltpu


# ----------------------------------------------------------------------------
# Pallas kernel: one batch element per grid step, channels-first layout (C, npad).
# ----------------------------------------------------------------------------
def _pola_encoder_kernel(x_ref, wbig_ref, w2_ref, pos_ref, segm_ref, masks_ref,
                         vec_ref, o_ref, *, C, cm, n_tokens, npad, width, ksize, eps):
    f32 = jnp.float32
    ch = C // 2
    kpad = ksize // 2

    x = x_ref[0]                                                        # (C, npad)

    # ---- stacked projections q | k | v(perm) | g(perm): one 4C-row MXU pass ----
    P = jnp.dot(wbig_ref[0:4 * C, :], x, preferred_element_type=f32)    # (4C, npad)
    q = P[0:C, :]
    k = P[C:2 * C, :] + pos_ref[...]
    vcat = P[2 * C:3 * C, :]        # v in (sim-half ; opp-half) permuted channel order
    g = P[3 * C:4 * C, :]           # gate, same permuted order

    # ---- polarity feature maps relu(+-t)**p: one exp/log pass per tensor ----
    pvec = vec_ref[0:C, :]                                              # (C, 1)

    def polarity(t):
        r = jnp.exp(pvec * jnp.log(jnp.maximum(jnp.abs(t), 1e-30)))
        return jnp.where(t > 0.0, r, 0.0), jnp.where(t < 0.0, r, 0.0)

    q_pos, q_neg = polarity(q)
    k_pos, k_neg = polarity(k)

    kcat = jnp.concatenate([k_pos, k_neg], axis=0)                      # (2C, npad)
    qcat = jnp.concatenate([q_pos, q_neg], axis=0)
    qcat_opp = jnp.concatenate([q_neg, q_pos], axis=0)

    # ---- per-head K^T V for both v-halves, one token-deep contraction ----
    inv_n = 1.0 / float(n_tokens)
    dim_tok = (((1,), (1,)), ((), ()))
    kv = lax.dot_general(vcat, kcat, dim_tok, preferred_element_type=f32)    # (C, 2C)
    kvm = kv * (segm_ref[...] * inv_n)

    # token means of the k feature maps on the MXU (padded columns are exact zeros)
    ones_tok = jnp.ones((1, npad), f32)
    mkvec = lax.dot_general(kcat, ones_tok, dim_tok,
                            preferred_element_type=f32) * inv_n              # (2C, 1)

    x_sim = jnp.dot(kvm[0:ch, :], qcat, preferred_element_type=f32)          # (C/2, npad)
    x_opp = jnp.dot(kvm[ch:, :], qcat_opp, preferred_element_type=f32)

    seg_half = segm_ref[0:ch, :]                                             # (C/2, 2C)
    den_sim = jnp.dot(seg_half, qcat * mkvec, preferred_element_type=f32) + 1e-6
    den_opp = jnp.dot(seg_half, qcat_opp * mkvec, preferred_element_type=f32) + 1e-6

    def recip(d):
        r = pl.reciprocal(d, approx=True)
        return r * (2.0 - d * r)                  # one Newton refinement

    attn = jnp.concatenate([x_sim * recip(den_sim), x_opp * recip(den_opp)],
                           axis=0)                # (C, npad), permuted channel order

    # ---- 5x5 depthwise conv on v: 25 lane rolls + edge masks, accumulated on VPU ----
    tap_base = 8 * C + cm
    dw = jnp.zeros((C, npad), f32)
    i = 0
    for dy in range(-kpad, kpad + 1):
        for dx in range(-kpad, kpad + 1):
            shift = (-(dy * width + dx)) % npad
            rolled = vcat if shift == 0 else pltpu.roll(vcat, shift, axis=1)
            coef = vec_ref[tap_base + i * C:tap_base + (i + 1) * C, :]       # (C, 1)
            m = masks_ref[i:i + 1, :]                                        # (1, npad)
            dw = dw + rolled * coef * m
            i += 1
    dwcb = vec_ref[C:2 * C, :]

    gated = (attn + dw + dwcb) * g

    # ---- output projection (columns permuted -> result back in original order) ----
    bproj = vec_ref[2 * C:3 * C, :]
    attn_out = jnp.dot(wbig_ref[4 * C:5 * C, :], gated,
                       preferred_element_type=f32) + bproj

    # ---- residual + channels-first LayerNorm + 1x1-conv MLP + residual + LN ----
    ones_c = jnp.ones((1, C), f32)
    inv_c = 1.0 / float(C)

    def cnorm(t, gam, bet):
        mu = jnp.dot(ones_c, t, preferred_element_type=f32) * inv_c
        ex2 = jnp.dot(ones_c, t * t, preferred_element_type=f32) * inv_c
        var = jnp.maximum(ex2 - mu * mu, 0.0)
        return (t - mu) * lax.rsqrt(var + eps) * gam + bet

    n1g = vec_ref[3 * C:4 * C, :]
    n1b = vec_ref[4 * C:5 * C, :]
    n2g = vec_ref[5 * C:6 * C, :]
    n2b = vec_ref[6 * C:7 * C, :]
    b2 = vec_ref[7 * C:8 * C, :]
    b1 = vec_ref[8 * C:8 * C + cm, :]

    s1 = cnorm(x + attn_out, n1g, n1b)                                        # (C, npad)
    h = jnp.dot(wbig_ref[5 * C:5 * C + cm, :], s1, preferred_element_type=f32) + b1
    h = 0.5 * h * (1.0 + jnp.tanh(0.7978845608028654 * (h + 0.044715 * h * h * h)))
    y = jnp.dot(w2_ref[...], h, preferred_element_type=f32) + b2
    out = cnorm(s1 + y, n2g, n2b)

    o_ref[0] = out.astype(o_ref.dtype)


# ----------------------------------------------------------------------------
# Wrapper: parameter folding (scales, permutation, stacking), pallas_call.
# ----------------------------------------------------------------------------
def pola_encoder_forward(src, params, *, num_heads, alpha=4, kernel_size=5):
    f32 = jnp.float32
    B, C, Hh, Ww = src.shape
    N = Hh * Ww
    hd = C // num_heads
    half = hd // 2
    ch = C // 2
    cm = params['fc1_w'].shape[0]
    npad = ((N + 127) // 128) * 128                    # lane-dense token count

    x = src.reshape(B, C, N).astype(f32)
    x = jnp.pad(x, ((0, 0), (0, 0), (0, npad - N)))    # padded columns exactly zero

    inv_scale = 1.0 / jax.nn.softplus(params['attn_scale'].reshape(C))
    wq = params['qg_w'][:C] * inv_scale[:, None]
    wg = params['qg_w'][C:]
    wk = params['kv_w'][:C] * inv_scale[:, None]
    wv = params['kv_w'][C:]

    # channel permutation: per head, first-half dims (sim), then second-half dims (opp)
    r = jnp.arange(ch)
    perm = jnp.concatenate([(r // half) * hd + (r % half),
                            (r // half) * hd + half + (r % half)])           # (C,)

    wcat = jnp.concatenate([wq, wk, wv[perm], wg[perm]], axis=0)             # (4C, C)
    w1 = params['fc1_w'].reshape(cm, C)
    w2 = params['fc2_w'].reshape(C, cm)
    wbig = jnp.concatenate([wcat, params['proj_w'][:, perm], w1], axis=0)    # (5C+cm, C)

    pos = params['pos_enc'].reshape(N, C).T * inv_scale[:, None]
    pos = jnp.pad(pos, ((0, 0), (0, npad - N)))                              # zeros in pad

    rows = jnp.arange(C)
    cols = jnp.arange(2 * C)
    segm = (((rows % ch) // half)[:, None] ==
            ((cols % C) // hd)[None, :]).astype(f32)                         # (C, 2C)

    # dwconv edge masks (one row per tap) + per-(permuted)channel tap coefficients
    kpad = kernel_size // 2
    tok = jnp.arange(npad)
    ty, tx = tok // Ww, tok % Ww
    kidx = perm % hd
    mask_rows, coef_chunks = [], []
    for dy in range(-kpad, kpad + 1):
        for dx in range(-kpad, kpad + 1):
            ok = ((tok < N) & (ty + dy >= 0) & (ty + dy < Hh)
                  & (tx + dx >= 0) & (tx + dx < Ww))
            mask_rows.append(ok.astype(f32))
            coef_chunks.append(params['dwc_w'][kidx, 0, dy + kpad, dx + kpad])
    masks = jnp.stack(mask_rows)                                             # (k*k, npad)

    pvec = (1.0 + alpha * jax.nn.sigmoid(params['power'])).reshape(C)
    vecs = jnp.concatenate(
        [pvec, params['dwc_b'][kidx], params['proj_b'],
         params['n1_g'], params['n1_b'], params['n2_g'], params['n2_b'],
         params['fc2_b'], params['fc1_b']] + coef_chunks).reshape(-1, 1)     # (8C+cm+25C, 1)

    kernel = functools.partial(_pola_encoder_kernel, C=C, cm=cm, n_tokens=N,
                               npad=npad, width=Ww, ksize=kernel_size, eps=1e-6)

    tok_spec = pl.BlockSpec((1, C, npad), lambda b: (b, 0, 0))

    def rep(a):
        return pl.BlockSpec(a.shape, lambda b: (0, 0))

    weights = [wbig, w2, pos, segm, masks, vecs]
    out = pl.pallas_call(
        kernel,
        out_shape=jax.ShapeDtypeStruct((B, C, npad), f32),
        grid_spec=pltpu.PrefetchScalarGridSpec(
            num_scalar_prefetch=0,
            grid=(B,),
            in_specs=[tok_spec] + [rep(w) for w in weights],
            out_specs=tok_spec,
        ),
        compiler_params=pltpu.CompilerParams(dimension_semantics=("parallel",)),
    )(x, *weights)

    return out[:, :, :N].reshape(B, C, Hh, Ww)


# ----------------------------------------------------------------------------
# Pure-JAX reference (faithful transcription of the PyTorch module).
# ----------------------------------------------------------------------------
def _cf_layernorm(t, w, b, eps=1e-6):
    u = jnp.mean(t, axis=1, keepdims=True)
    s = jnp.mean((t - u) ** 2, axis=1, keepdims=True)
    t = (t - u) / jnp.sqrt(s + eps)
    return w.reshape(1, -1, 1, 1) * t + b.reshape(1, -1, 1, 1)


def _gelu_tanh(x):
    return 0.5 * x * (1.0 + jnp.tanh(0.7978845608028654 * (x + 0.044715 * x ** 3)))


def pola_encoder_reference(src, params, *, num_heads, alpha=4, kernel_size=5):
    B, C, Hh, Ww = src.shape
    N = Hh * Ww
    hd = C // num_heads
    cm = params['fc1_w'].shape[0]
    x = src.reshape(B, C, N).transpose(0, 2, 1)                             # (B, N, C)

    qg = x @ params['qg_w'].T
    q, g = qg[..., :C], qg[..., C:]
    kvp = x @ params['kv_w'].T
    k, v = kvp[..., :C], kvp[..., C:]
    k = k + params['pos_enc']
    scale = jax.nn.softplus(params['attn_scale'])
    power = 1.0 + alpha * jax.nn.sigmoid(params['power'])
    q = q / scale
    k = k / scale
    q = q.reshape(B, N, num_heads, hd).transpose(0, 2, 1, 3)
    k = k.reshape(B, N, num_heads, hd).transpose(0, 2, 1, 3)
    v = v.reshape(B, N, num_heads, hd).transpose(0, 2, 1, 3)
    q_pos = jax.nn.relu(q) ** power
    q_neg = jax.nn.relu(-q) ** power
    k_pos = jax.nn.relu(k) ** power
    k_neg = jax.nn.relu(-k) ** power
    q_sim = jnp.concatenate([q_pos, q_neg], axis=-1)
    q_opp = jnp.concatenate([q_neg, q_pos], axis=-1)
    kf = jnp.concatenate([k_pos, k_neg], axis=-1)
    v1, v2 = jnp.split(v, 2, axis=-1)
    n = N
    kmean_t = jnp.swapaxes(jnp.mean(kf, axis=-2, keepdims=True), -2, -1)
    z = 1.0 / (q_sim @ kmean_t + 1e-6)
    kvm = (jnp.swapaxes(kf, -2, -1) * (n ** -0.5)) @ (v1 * (n ** -0.5))
    x_sim = (q_sim @ kvm) * z
    z = 1.0 / (q_opp @ kmean_t + 1e-6)
    kvm = (jnp.swapaxes(kf, -2, -1) * (n ** -0.5)) @ (v2 * (n ** -0.5))
    x_opp = (q_opp @ kvm) * z
    xa = jnp.concatenate([x_sim, x_opp], axis=-1)
    xa = xa.transpose(0, 2, 1, 3).reshape(B, N, C)

    vr = v.reshape(B * num_heads, Hh, Ww, hd).transpose(0, 3, 1, 2)
    pad = kernel_size // 2
    vc = lax.conv_general_dilated(vr, params['dwc_w'], (1, 1),
                                  ((pad, pad), (pad, pad)),
                                  dimension_numbers=('NCHW', 'OIHW', 'NCHW'),
                                  feature_group_count=hd)
    vc = vc + params['dwc_b'].reshape(1, hd, 1, 1)
    vd = vc.reshape(B, C, N).transpose(0, 2, 1)

    xa = (xa + vd) * g
    xa = xa @ params['proj_w'].T + params['proj_b']

    src2 = xa.transpose(0, 2, 1).reshape(B, C, Hh, Ww)
    s = src + src2
    s = _cf_layernorm(s, params['n1_g'], params['n1_b'])
    h = (jnp.einsum('oi,bihw->bohw', params['fc1_w'].reshape(cm, C), s)
         + params['fc1_b'].reshape(1, cm, 1, 1))
    h = _gelu_tanh(h)
    y = (jnp.einsum('oi,bihw->bohw', params['fc2_w'].reshape(C, cm), h)
         + params['fc2_b'].reshape(1, C, 1, 1))
    s = s + y
    return _cf_layernorm(s, params['n2_g'], params['n2_b'])


# ----------------------------------------------------------------------------
# Main
# ----------------------------------------------------------------------------
if __name__ == "__main__":
    # PolaLinearAttention inside the module hardcodes hw=(20, 20) -> H=W=20.
    B, C, Hh, Ww = 2, 32, 20, 20
    num_heads = 8
    hd = C // num_heads
    cm = 64
    N = Hh * Ww

    key = jax.random.PRNGKey(0)
    ks = jax.random.split(key, 20)
    f32 = jnp.float32

    def nrm(k, shape, s):
        return jax.random.normal(k, shape, dtype=f32) * s

    params = dict(
        qg_w=nrm(ks[0], (2 * C, C), 0.15),
        kv_w=nrm(ks[1], (2 * C, C), 0.15),
        proj_w=nrm(ks[2], (C, C), 0.15),
        proj_b=nrm(ks[3], (C,), 0.05),
        pos_enc=nrm(ks[4], (1, N, C), 0.2),
        attn_scale=nrm(ks[5], (1, 1, C), 0.3),
        power=nrm(ks[6], (1, num_heads, 1, hd), 0.3),
        dwc_w=nrm(ks[7], (hd, 1, 5, 5), 0.1),
        dwc_b=nrm(ks[8], (hd,), 0.05),
        n1_g=1.0 + nrm(ks[9], (C,), 0.1),
        n1_b=nrm(ks[10], (C,), 0.1),
        n2_g=1.0 + nrm(ks[11], (C,), 0.1),
        n2_b=nrm(ks[12], (C,), 0.1),
        fc1_w=nrm(ks[13], (cm, C, 1, 1), 0.15),
        fc1_b=nrm(ks[14], (cm,), 0.05),
        fc2_w=nrm(ks[15], (C, cm, 1, 1), 0.15),
        fc2_b=nrm(ks[16], (C,), 0.05),
    )

    src = jax.random.normal(ks[17], (B, C, Hh, Ww), dtype=f32)

    fwd = jax.jit(functools.partial(pola_encoder_forward, num_heads=num_heads))
    y = jax.block_until_ready(fwd(src, params))

    y_ref = jax.block_until_ready(
        pola_encoder_reference(src, params, num_heads=num_heads))

    assert y.shape == (B, C, Hh, Ww)
    assert bool(jnp.all(jnp.isfinite(y)))
    err = float(jnp.max(jnp.abs(y - y_ref)))
    assert jnp.allclose(y, y_ref, atol=5e-3, rtol=5e-3), err

    print("KERNEL_OK")
</pallas_src>

<mosaic_0001>
module attributes {stable_mosaic.version = 11 : i64} {
  func.func @_pola_encoder_kernel(%arg0: i32, %arg1: memref<1x32x512xf32, #tpu.memory_space<vmem>>, %arg2: memref<224x32xf32, #tpu.memory_space<vmem>>, %arg3: memref<32x64xf32, #tpu.memory_space<vmem>>, %arg4: memref<32x512xf32, #tpu.memory_space<vmem>>, %arg5: memref<32x64xf32, #tpu.memory_space<vmem>>, %arg6: memref<25x512xf32, #tpu.memory_space<vmem>>, %arg7: memref<1120x1xf32, #tpu.memory_space<vmem>>, %arg8: memref<1x32x512xf32, #tpu.memory_space<vmem>>) attributes {dimension_semantics = [#tpu.dimension_semantics<parallel>], iteration_bounds = array<i64: 2>, scalar_prefetch = 0 : i64, scratch_operands = 0 : i64, tpu.core_type = #tpu.core_type<tc>, window_params = [{transform_indices = @transform_0, window_bounds = array<i64: 1, 32, 512>}, {pipeline_mode = #tpu.pipeline_mode<synchronous>, transform_indices = @transform_1, window_bounds = array<i64: 224, 32>}, {pipeline_mode = #tpu.pipeline_mode<synchronous>, transform_indices = @transform_2, window_bounds = array<i64: 32, 64>}, {pipeline_mode = #tpu.pipeline_mode<synchronous>, transform_indices = @transform_3, window_bounds = array<i64: 32, 512>}, {pipeline_mode = #tpu.pipeline_mode<synchronous>, transform_indices = @transform_4, window_bounds = array<i64: 32, 64>}, {pipeline_mode = #tpu.pipeline_mode<synchronous>, transform_indices = @transform_5, window_bounds = array<i64: 25, 512>}, {pipeline_mode = #tpu.pipeline_mode<synchronous>, transform_indices = @transform_6, window_bounds = array<i64: 1120, 1>}, {transform_indices = @transform_7, window_bounds = array<i64: 1, 32, 512>}]} {
    %c0 = arith.constant 0 : index
    %c0_0 = arith.constant 0 : index
    %c0_1 = arith.constant 0 : index
    %0 = vector.load %arg1[%c0, %c0_0, %c0_1] : memref<1x32x512xf32, #tpu.memory_space<vmem>>, vector<1x32x512xf32>
    %1 = vector.shape_cast %0 : vector<1x32x512xf32> to vector<32x512xf32>
    %c0_2 = arith.constant 0 : index
    %c0_3 = arith.constant 0 : index
    %2 = vector.load %arg2[%c0_2, %c0_3] : memref<224x32xf32, #tpu.memory_space<vmem>>, vector<128x32xf32>
    %cst = arith.constant dense<0.000000e+00> : vector<128x512xf32>
    %3 = tpu.matmul %2, %1, %cst {dimension_numbers = #tpu.dot_dimension_numbers<[1], [0], [0], [1], [0, 0, 1, 1], [], []>} : vector<128x32xf32>, vector<32x512xf32>, vector<128x512xf32> -> vector<128x512xf32>
    %4 = vector.extract_strided_slice %3 {offsets = [0, 0], sizes = [32, 512], strides = [1, 1]} : vector<128x512xf32> to vector<32x512xf32>
    %5 = vector.extract_strided_slice %3 {offsets = [32, 0], sizes = [32, 512], strides = [1, 1]} : vector<128x512xf32> to vector<32x512xf32>
    %c0_4 = arith.constant 0 : index
    %c0_5 = arith.constant 0 : index
    %6 = vector.load %arg4[%c0_4, %c0_5] : memref<32x512xf32, #tpu.memory_space<vmem>>, vector<32x512xf32>
    %7 = arith.addf %5, %6 : vector<32x512xf32>
    %8 = vector.extract_strided_slice %3 {offsets = [64, 0], sizes = [32, 512], strides = [1, 1]} : vector<128x512xf32> to vector<32x512xf32>
    %9 = vector.extract_strided_slice %3 {offsets = [96, 0], sizes = [32, 512], strides = [1, 1]} : vector<128x512xf32> to vector<32x512xf32>
    %c0_6 = arith.constant 0 : index
    %c0_7 = arith.constant 0 : index
    %10 = vector.load %arg7[%c0_6, %c0_7] : memref<1120x1xf32, #tpu.memory_space<vmem>>, vector<32x1xf32>
    %11 = math.absf %4 : vector<32x512xf32>
    %cst_8 = arith.constant 1.000000e-30 : f32
    %12 = vector.broadcast %cst_8 : f32 to vector<32x512xf32>
    %13 = arith.maximumf %11, %12 : vector<32x512xf32>
    %14 = math.log %13 : vector<32x512xf32>
    %15 = vector.broadcast %10 : vector<32x1xf32> to vector<32x512xf32>
    %16 = arith.mulf %15, %14 : vector<32x512xf32>
    %17 = math.exp %16 : vector<32x512xf32>
    %cst_9 = arith.constant 0.000000e+00 : f32
    %18 = vector.broadcast %cst_9 : f32 to vector<32x512xf32>
    %19 = arith.cmpf ogt, %4, %18 : vector<32x512xf32>
    %cst_10 = arith.constant 0.000000e+00 : f32
    %20 = vector.broadcast %cst_10 : f32 to vector<32x512xf32>
    %21 = arith.select %19, %17, %20 : vector<32x512xi1>, vector<32x512xf32>
    %cst_11 = arith.constant 0.000000e+00 : f32
    %22 = vector.broadcast %cst_11 : f32 to vector<32x512xf32>
    %23 = arith.cmpf olt, %4, %22 : vector<32x512xf32>
    %cst_12 = arith.constant 0.000000e+00 : f32
    %24 = vector.broadcast %cst_12 : f32 to vector<32x512xf32>
    %25 = arith.select %23, %17, %24 : vector<32x512xi1>, vector<32x512xf32>
    %26 = math.absf %7 : vector<32x512xf32>
    %cst_13 = arith.constant 1.000000e-30 : f32
    %27 = vector.broadcast %cst_13 : f32 to vector<32x512xf32>
    %28 = arith.maximumf %26, %27 : vector<32x512xf32>
    %29 = math.log %28 : vector<32x512xf32>
    %30 = vector.broadcast %10 : vector<32x1xf32> to vector<32x512xf32>
    %31 = arith.mulf %30, %29 : vector<32x512xf32>
    %32 = math.exp %31 : vector<32x512xf32>
    %cst_14 = arith.constant 0.000000e+00 : f32
    %33 = vector.broadcast %cst_14 : f32 to vector<32x512xf32>
    %34 = arith.cmpf ogt, %7, %33 : vector<32x512xf32>
    %cst_15 = arith.constant 0.000000e+00 : f32
    %35 = vector.broadcast %cst_15 : f32 to vector<32x512xf32>
    %36 = arith.select %34, %32, %35 : vector<32x512xi1>, vector<32x512xf32>
    %cst_16 = arith.constant 0.000000e+00 : f32
    %37 = vector.broadcast %cst_16 : f32 to vector<32x512xf32>
    %38 = arith.cmpf olt, %7, %37 : vector<32x512xf32>
    %cst_17 = arith.constant 0.000000e+00 : f32
    %39 = vector.broadcast %cst_17 : f32 to vector<32x512xf32>
    %40 = arith.select %38, %32, %39 : vector<32x512xi1>, vector<32x512xf32>
    %41 = tpu.concatenate %36, %40 in 0 : vector<32x512xf32>, vector<32x512xf32> -> vector<64x512xf32>
    %42 = tpu.concatenate %21, %25 in 0 : vector<32x512xf32>, vector<32x512xf32> -> vector<64x512xf32>
    %43 = tpu.concatenate %25, %21 in 0 : vector<32x512xf32>, vector<32x512xf32> -> vector<64x512xf32>
    %cst_18 = arith.constant dense<0.000000e+00> : vector<32x64xf32>
    %44 = tpu.matmul %8, %41, %cst_18 {dimension_numbers = #tpu.dot_dimension_numbers<[1], [1], [0], [0], [0, 0, 1, 0], [], []>} : vector<32x512xf32>, vector<64x512xf32>, vector<32x64xf32> -> vector<32x64xf32>
    %c0_19 = arith.constant 0 : index
    %c0_20 = arith.constant 0 : index
    %45 = vector.load %arg5[%c0_19, %c0_20] : memref<32x64xf32, #tpu.memory_space<vmem>>, vector<32x64xf32>
    %cst_21 = arith.constant 2.500000e-03 : f32
    %46 = vector.broadcast %cst_21 : f32 to vector<32x64xf32>
    %47 = arith.mulf %45, %46 : vector<32x64xf32>
    %48 = arith.mulf %44, %47 : vector<32x64xf32>
    %cst_22 = arith.constant 1.000000e+00 : f32
    %49 = vector.broadcast %cst_22 : f32 to vector<1x512xf32>
    %cst_23 = arith.constant dense<0.000000e+00> : vector<64x1xf32>
    %50 = tpu.matmul %41, %49, %cst_23 {dimension_numbers = #tpu.dot_dimension_numbers<[1], [1], [0], [0], [0, 0, 1, 0], [], []>} : vector<64x512xf32>, vector<1x512xf32>, vector<64x1xf32> -> vector<64x1xf32>
    %cst_24 = arith.constant 2.500000e-03 : f32
    %51 = vector.broadcast %cst_24 : f32 to vector<64x1xf32>
    %52 = arith.mulf %50, %51 : vector<64x1xf32>
    %53 = vector.extract_strided_slice %48 {offsets = [0, 0], sizes = [16, 64], strides = [1, 1]} : vector<32x64xf32> to vector<16x64xf32>
    %cst_25 = arith.constant dense<0.000000e+00> : vector<16x512xf32>
    %54 = tpu.matmul %53, %42, %cst_25 {dimension_numbers = #tpu.dot_dimension_numbers<[1], [0], [0], [1], [0, 0, 1, 1], [], []>} : vector<16x64xf32>, vector<64x512xf32>, vector<16x512xf32> -> vector<16x512xf32>
    %55 = vector.extract_strided_slice %48 {offsets = [16, 0], sizes = [16, 64], strides = [1, 1]} : vector<32x64xf32> to vector<16x64xf32>
    %cst_26 = arith.constant dense<0.000000e+00> : vector<16x512xf32>
    %56 = tpu.matmul %55, %43, %cst_26 {dimension_numbers = #tpu.dot_dimension_numbers<[1], [0], [0], [1], [0, 0, 1, 1], [], []>} : vector<16x64xf32>, vector<64x512xf32>, vector<16x512xf32> -> vector<16x512xf32>
    %c0_27 = arith.constant 0 : index
    %c0_28 = arith.constant 0 : index
    %57 = vector.load %arg5[%c0_27, %c0_28] : memref<32x64xf32, #tpu.memory_space<vmem>>, vector<16x64xf32>
    %58 = vector.broadcast %52 : vector<64x1xf32> to vector<64x512xf32>
    %59 = arith.mulf %42, %58 : vector<64x512xf32>
    %cst_29 = arith.constant dense<0.000000e+00> : vector<16x512xf32>
    %60 = tpu.matmul %57, %59, %cst_29 {dimension_numbers = #tpu.dot_dimension_numbers<[1], [0], [0], [1], [0, 0, 1, 1], [], []>} : vector<16x64xf32>, vector<64x512xf32>, vector<16x512xf32> -> vector<16x512xf32>
    %cst_30 = arith.constant 9.99999997E-7 : f32
    %61 = vector.broadcast %cst_30 : f32 to vector<16x512xf32>
    %62 = arith.addf %60, %61 : vector<16x512xf32>
    %63 = vector.broadcast %52 : vector<64x1xf32> to vector<64x512xf32>
    %64 = arith.mulf %43, %63 : vector<64x512xf32>
    %cst_31 = arith.constant dense<0.000000e+00> : vector<16x512xf32>
    %65 = tpu.matmul %57, %64, %cst_31 {dimension_numbers = #tpu.dot_dimension_numbers<[1], [0], [0], [1], [0, 0, 1, 1], [], []>} : vector<16x64xf32>, vector<64x512xf32>, vector<16x512xf32> -> vector<16x512xf32>
    %cst_32 = arith.constant 9.99999997E-7 : f32
    %66 = vector.broadcast %cst_32 : f32 to vector<16x512xf32>
    %67 = arith.addf %65, %66 : vector<16x512xf32>
    %68 = tpu.reciprocal %62 {approx = true} : vector<16x512xf32> -> vector<16x512xf32>
    %69 = arith.mulf %62, %68 : vector<16x512xf32>
    %cst_33 = arith.constant 2.000000e+00 : f32
    %70 = vector.broadcast %cst_33 : f32 to vector<16x512xf32>
    %71 = arith.subf %70, %69 : vector<16x512xf32>
    %72 = arith.mulf %68, %71 : vector<16x512xf32>
    %73 = arith.mulf %54, %72 : vector<16x512xf32>
    %74 = tpu.reciprocal %67 {approx = true} : vector<16x512xf32> -> vector<16x512xf32>
    %75 = arith.mulf %67, %74 : vector<16x512xf32>
    %cst_34 = arith.constant 2.000000e+00 : f32
    %76 = vector.broadcast %cst_34 : f32 to vector<16x512xf32>
    %77 = arith.subf %76, %75 : vector<16x512xf32>
    %78 = arith.mulf %74, %77 : vector<16x512xf32>
    %79 = arith.mulf %56, %78 : vector<16x512xf32>
    %80 = tpu.concatenate %73, %79 in 0 : vector<16x512xf32>, vector<16x512xf32> -> vector<32x512xf32>
    %cst_35 = arith.constant 0.000000e+00 : f32
    %81 = vector.broadcast %cst_35 : f32 to vector<32x512xf32>
    %c42_i32 = arith.constant 42 : i32
    %82 = tpu.dynamic_rotate %8 by %c42_i32 dim 1 : vector<32x512xf32>, i32 -> vector<32x512xf32>
    %c320 = arith.constant 320 : index
    %c0_36 = arith.constant 0 : index
    %83 = vector.load %arg7[%c320, %c0_36] : memref<1120x1xf32, #tpu.memory_space<vmem>>, vector<32x1xf32>
    %c0_37 = arith.constant 0 : index
    %c0_38 = arith.constant 0 : index
    %84 = vector.load %arg6[%c0_37, %c0_38] : memref<25x512xf32, #tpu.memory_space<vmem>>, vector<1x512xf32>
    %85 = vector.broadcast %83 : vector<32x1xf32> to vector<32x512xf32>
    %86 = arith.mulf %82, %85 : vector<32x512xf32>
    %87 = vector.broadcast %84 : vector<1x512xf32> to vector<32x512xf32>
    %88 = arith.mulf %86, %87 : vector<32x512xf32>
    %89 = arith.addf %81, %88 : vector<32x512xf32>
    %c41_i32 = arith.constant 41 : i32
    %90 = tpu.dynamic_rotate %8 by %c41_i32 dim 1 : vector<32x512xf32>, i32 -> vector<32x512xf32>
    %c352 = arith.constant 352 : index
    %c0_39 = arith.constant 0 : index
    %91 = vector.load %arg7[%c352, %c0_39] : memref<1120x1xf32, #tpu.memory_space<vmem>>, vector<32x1xf32>
    %c1 = arith.constant 1 : index
    %c0_40 = arith.constant 0 : index
    %92 = vector.load %arg6[%c1, %c0_40] : memref<25x512xf32, #tpu.memory_space<vmem>>, vector<1x512xf32>
    %93 = vector.broadcast %91 : vector<32x1xf32> to vector<32x512xf32>
    %94 = arith.mulf %90, %93 : vector<32x512xf32>
    %95 = vector.broadcast %92 : vector<1x512xf32> to vector<32x512xf32>
    %96 = arith.mulf %94, %95 : vector<32x512xf32>
    %97 = arith.addf %89, %96 : vector<32x512xf32>
    %c40_i32 = arith.constant 40 : i32
    %98 = tpu.dynamic_rotate %8 by %c40_i32 dim 1 : vector<32x512xf32>, i32 -> vector<32x512xf32>
    %c384 = arith.constant 384 : index
    %c0_41 = arith.constant 0 : index
    %99 = vector.load %arg7[%c384, %c0_41] : memref<1120x1xf32, #tpu.memory_space<vmem>>, vector<32x1xf32>
    %c2 = arith.constant 2 : index
    %c0_42 = arith.constant 0 : index
    %100 = vector.load %arg6[%c2, %c0_42] : memref<25x512xf32, #tpu.memory_space<vmem>>, vector<1x512xf32>
    %101 = vector.broadcast %99 : vector<32x1xf32> to vector<32x512xf32>
    %102 = arith.mulf %98, %101 : vector<32x512xf32>
    %103 = vector.broadcast %100 : vector<1x512xf32> to vector<32x512xf32>
    %104 = arith.mulf %102, %103 : vector<32x512xf32>
    %105 = arith.addf %97, %104 : vector<32x512xf32>
    %c39_i32 = arith.constant 39 : i32
    %106 = tpu.dynamic_rotate %8 by %c39_i32 dim 1 : vector<32x512xf32>, i32 -> vector<32x512xf32>
    %c416 = arith.constant 416 : index
    %c0_43 = arith.constant 0 : index
    %107 = vector.load %arg7[%c416, %c0_43] : memref<1120x1xf32, #tpu.memory_space<vmem>>, vector<32x1xf32>
    %c3 = arith.constant 3 : index
    %c0_44 = arith.constant 0 : index
    %108 = vector.load %arg6[%c3, %c0_44] : memref<25x512xf32, #tpu.memory_space<vmem>>, vector<1x512xf32>
    %109 = vector.broadcast %107 : vector<32x1xf32> to vector<32x512xf32>
    %110 = arith.mulf %106, %109 : vector<32x512xf32>
    %111 = vector.broadcast %108 : vector<1x512xf32> to vector<32x512xf32>
    %112 = arith.mulf %110, %111 : vector<32x512xf32>
    %113 = arith.addf %105, %112 : vector<32x512xf32>
    %c38_i32 = arith.constant 38 : i32
    %114 = tpu.dynamic_rotate %8 by %c38_i32 dim 1 : vector<32x512xf32>, i32 -> vector<32x512xf32>
    %c448 = arith.constant 448 : index
    %c0_45 = arith.constant 0 : index
    %115 = vector.load %arg7[%c448, %c0_45] : memref<1120x1xf32, #tpu.memory_space<vmem>>, vector<32x1xf32>
    %c4 = arith.constant 4 : index
    %c0_46 = arith.constant 0 : index
    %116 = vector.load %arg6[%c4, %c0_46] : memref<25x512xf32, #tpu.memory_space<vmem>>, vector<1x512xf32>
    %117 = vector.broadcast %115 : vector<32x1xf32> to vector<32x512xf32>
    %118 = arith.mulf %114, %117 : vector<32x512xf32>
    %119 = vector.broadcast %116 : vector<1x512xf32> to vector<32x512xf32>
    %120 = arith.mulf %118, %119 : vector<32x512xf32>
    %121 = arith.addf %113, %120 : vector<32x512xf32>
    %c22_i32 = arith.constant 22 : i32
    %122 = tpu.dynamic_rotate %8 by %c22_i32 dim 1 : vector<32x512xf32>, i32 -> vector<32x512xf32>
    %c480 = arith.constant 480 : index
    %c0_47 = arith.constant 0 : index
    %123 = vector.load %arg7[%c480, %c0_47] : memref<1120x1xf32, #tpu.memory_space<vmem>>, vector<32x1xf32>
    %c5 = arith.constant 5 : index
    %c0_48 = arith.constant 0 : index
    %124 = vector.load %arg6[%c5, %c0_48] : memref<25x512xf32, #tpu.memory_space<vmem>>, vector<1x512xf32>
    %125 = vector.broadcast %123 : vector<32x1xf32> to vector<32x512xf32>
    %126 = arith.mulf %122, %125 : vector<32x512xf32>
    %127 = vector.broadcast %124 : vector<1x512xf32> to vector<32x512xf32>
    %128 = arith.mulf %126, %127 : vector<32x512xf32>
    %129 = arith.addf %121, %128 : vector<32x512xf32>
    %c21_i32 = arith.constant 21 : i32
    %130 = tpu.dynamic_rotate %8 by %c21_i32 dim 1 : vector<32x512xf32>, i32 -> vector<32x512xf32>
    %c512 = arith.constant 512 : index
    %c0_49 = arith.constant 0 : index
    %131 = vector.load %arg7[%c512, %c0_49] : memref<1120x1xf32, #tpu.memory_space<vmem>>, vector<32x1xf32>
    %c6 = arith.constant 6 : index
    %c0_50 = arith.constant 0 : index
    %132 = vector.load %arg6[%c6, %c0_50] : memref<25x512xf32, #tpu.memory_space<vmem>>, vector<1x512xf32>
    %133 = vector.broadcast %131 : vector<32x1xf32> to vector<32x512xf32>
    %134 = arith.mulf %130, %133 : vector<32x512xf32>
    %135 = vector.broadcast %132 : vector<1x512xf32> to vector<32x512xf32>
    %136 = arith.mulf %134, %135 : vector<32x512xf32>
    %137 = arith.addf %129, %136 : vector<32x512xf32>
    %c20_i32 = arith.constant 20 : i32
    %138 = tpu.dynamic_rotate %8 by %c20_i32 dim 1 : vector<32x512xf32>, i32 -> vector<32x512xf32>
    %c544 = arith.constant 544 : index
    %c0_51 = arith.constant 0 : index
    %139 = vector.load %arg7[%c544, %c0_51] : memref<1120x1xf32, #tpu.memory_space<vmem>>, vector<32x1xf32>
    %c7 = arith.constant 7 : index
    %c0_52 = arith.constant 0 : index
    %140 = vector.load %arg6[%c7, %c0_52] : memref<25x512xf32, #tpu.memory_space<vmem>>, vector<1x512xf32>
    %141 = vector.broadcast %139 : vector<32x1xf32> to vector<32x512xf32>
    %142 = arith.mulf %138, %141 : vector<32x512xf32>
    %143 = vector.broadcast %140 : vector<1x512xf32> to vector<32x512xf32>
    %144 = arith.mulf %142, %143 : vector<32x512xf32>
    %145 = arith.addf %137, %144 : vector<32x512xf32>
    %c19_i32 = arith.constant 19 : i32
    %146 = tpu.dynamic_rotate %8 by %c19_i32 dim 1 : vector<32x512xf32>, i32 -> vector<32x512xf32>
    %c576 = arith.constant 576 : index
    %c0_53 = arith.constant 0 : index
    %147 = vector.load %arg7[%c576, %c0_53] : memref<1120x1xf32, #tpu.memory_space<vmem>>, vector<32x1xf32>
    %c8 = arith.constant 8 : index
    %c0_54 = arith.constant 0 : index
    %148 = vector.load %arg6[%c8, %c0_54] : memref<25x512xf32, #tpu.memory_space<vmem>>, vector<1x512xf32>
    %149 = vector.broadcast %147 : vector<32x1xf32> to vector<32x512xf32>
    %150 = arith.mulf %146, %149 : vector<32x512xf32>
    %151 = vector.broadcast %148 : vector<1x512xf32> to vector<32x512xf32>
    %152 = arith.mulf %150, %151 : vector<32x512xf32>
    %153 = arith.addf %145, %152 : vector<32x512xf32>
    %c18_i32 = arith.constant 18 : i32
    %154 = tpu.dynamic_rotate %8 by %c18_i32 dim 1 : vector<32x512xf32>, i32 -> vector<32x512xf32>
    %c608 = arith.constant 608 : index
    %c0_55 = arith.constant 0 : index
    %155 = vector.load %arg7[%c608, %c0_55] : memref<1120x1xf32, #tpu.memory_space<vmem>>, vector<32x1xf32>
    %c9 = arith.constant 9 : index
    %c0_56 = arith.constant 0 : index
    %156 = vector.load %arg6[%c9, %c0_56] : memref<25x512xf32, #tpu.memory_space<vmem>>, vector<1x512xf32>
    %157 = vector.broadcast %155 : vector<32x1xf32> to vector<32x512xf32>
    %158 = arith.mulf %154, %157 : vector<32x512xf32>
    %159 = vector.broadcast %156 : vector<1x512xf32> to vector<32x512xf32>
    %160 = arith.mulf %158, %159 : vector<32x512xf32>
    %161 = arith.addf %153, %160 : vector<32x512xf32>
    %c2_i32 = arith.constant 2 : i32
    %162 = tpu.dynamic_rotate %8 by %c2_i32 dim 1 : vector<32x512xf32>, i32 -> vector<32x512xf32>
    %c640 = arith.constant 640 : index
    %c0_57 = arith.constant 0 : index
    %163 = vector.load %arg7[%c640, %c0_57] : memref<1120x1xf32, #tpu.memory_space<vmem>>, vector<32x1xf32>
    %c10 = arith.constant 10 : index
    %c0_58 = arith.constant 0 : index
    %164 = vector.load %arg6[%c10, %c0_58] : memref<25x512xf32, #tpu.memory_space<vmem>>, vector<1x512xf32>
    %165 = vector.broadcast %163 : vector<32x1xf32> to vector<32x512xf32>
    %166 = arith.mulf %162, %165 : vector<32x512xf32>
    %167 = vector.broadcast %164 : vector<1x512xf32> to vector<32x512xf32>
    %168 = arith.mulf %166, %167 : vector<32x512xf32>
    %169 = arith.addf %161, %168 : vector<32x512xf32>
    %c1_i32 = arith.constant 1 : i32
    %170 = tpu.dynamic_rotate %8 by %c1_i32 dim 1 : vector<32x512xf32>, i32 -> vector<32x512xf32>
    %c672 = arith.constant 672 : index
    %c0_59 = arith.constant 0 : index
    %171 = vector.load %arg7[%c672, %c0_59] : memref<1120x1xf32, #tpu.memory_space<vmem>>, vector<32x1xf32>
    %c11 = arith.constant 11 : index
    %c0_60 = arith.constant 0 : index
    %172 = vector.load %arg6[%c11, %c0_60] : memref<25x512xf32, #tpu.memory_space<vmem>>, vector<1x512xf32>
    %173 = vector.broadcast %171 : vector<32x1xf32> to vector<32x512xf32>
    %174 = arith.mulf %170, %173 : vector<32x512xf32>
    %175 = vector.broadcast %172 : vector<1x512xf32> to vector<32x512xf32>
    %176 = arith.mulf %174, %175 : vector<32x512xf32>
    %177 = arith.addf %169, %176 : vector<32x512xf32>
    %c704 = arith.constant 704 : index
    %c0_61 = arith.constant 0 : index
    %178 = vector.load %arg7[%c704, %c0_61] : memref<1120x1xf32, #tpu.memory_space<vmem>>, vector<32x1xf32>
    %c12 = arith.constant 12 : index
    %c0_62 = arith.constant 0 : index
    %179 = vector.load %arg6[%c12, %c0_62] : memref<25x512xf32, #tpu.memory_space<vmem>>, vector<1x512xf32>
    %180 = vector.broadcast %178 : vector<32x1xf32> to vector<32x512xf32>
    %181 = arith.mulf %8, %180 : vector<32x512xf32>
    %182 = vector.broadcast %179 : vector<1x512xf32> to vector<32x512xf32>
    %183 = arith.mulf %181, %182 : vector<32x512xf32>
    %184 = arith.addf %177, %183 : vector<32x512xf32>
    %c511_i32 = arith.constant 511 : i32
    %185 = tpu.dynamic_rotate %8 by %c511_i32 dim 1 : vector<32x512xf32>, i32 -> vector<32x512xf32>
    %c736 = arith.constant 736 : index
    %c0_63 = arith.constant 0 : index
    %186 = vector.load %arg7[%c736, %c0_63] : memref<1120x1xf32, #tpu.memory_space<vmem>>, vector<32x1xf32>
    %c13 = arith.constant 13 : index
    %c0_64 = arith.constant 0 : index
    %187 = vector.load %arg6[%c13, %c0_64] : memref<25x512xf32, #tpu.memory_space<vmem>>, vector<1x512xf32>
    %188 = vector.broadcast %186 : vector<32x1xf32> to vector<32x512xf32>
    %189 = arith.mulf %185, %188 : vector<32x512xf32>
    %190 = vector.broadcast %187 : vector<1x512xf32> to vector<32x512xf32>
    %191 = arith.mulf %189, %190 : vector<32x512xf32>
    %192 = arith.addf %184, %191 : vector<32x512xf32>
    %c510_i32 = arith.constant 510 : i32
    %193 = tpu.dynamic_rotate %8 by %c510_i32 dim 1 : vector<32x512xf32>, i32 -> vector<32x512xf32>
    %c768 = arith.constant 768 : index
    %c0_65 = arith.constant 0 : index
    %194 = vector.load %arg7[%c768, %c0_65] : memref<1120x1xf32, #tpu.memory_space<vmem>>, vector<32x1xf32>
    %c14 = arith.constant 14 : index
    %c0_66 = arith.constant 0 : index
    %195 = vector.load %arg6[%c14, %c0_66] : memref<25x512xf32, #tpu.memory_space<vmem>>, vector<1x512xf32>
    %196 = vector.broadcast %194 : vector<32x1xf32> to vector<32x512xf32>
    %197 = arith.mulf %193, %196 : vector<32x512xf32>
    %198 = vector.broadcast %195 : vector<1x512xf32> to vector<32x512xf32>
    %199 = arith.mulf %197, %198 : vector<32x512xf32>
    %200 = arith.addf %192, %199 : vector<32x512xf32>
    %c494_i32 = arith.constant 494 : i32
    %201 = tpu.dynamic_rotate %8 by %c494_i32 dim 1 : vector<32x512xf32>, i32 -> vector<32x512xf32>
    %c800 = arith.constant 800 : index
    %c0_67 = arith.constant 0 : index
    %202 = vector.load %arg7[%c800, %c0_67] : memref<1120x1xf32, #tpu.memory_space<vmem>>, vector<32x1xf32>
    %c15 = arith.constant 15 : index
    %c0_68 = arith.constant 0 : index
    %203 = vector.load %arg6[%c15, %c0_68] : memref<25x512xf32, #tpu.memory_space<vmem>>, vector<1x512xf32>
    %204 = vector.broadcast %202 : vector<32x1xf32> to vector<32x512xf32>
    %205 = arith.mulf %201, %204 : vector<32x512xf32>
    %206 = vector.broadcast %203 : vector<1x512xf32> to vector<32x512xf32>
    %207 = arith.mulf %205, %206 : vector<32x512xf32>
    %208 = arith.addf %200, %207 : vector<32x512xf32>
    %c493_i32 = arith.constant 493 : i32
    %209 = tpu.dynamic_rotate %8 by %c493_i32 dim 1 : vector<32x512xf32>, i32 -> vector<32x512xf32>
    %c832 = arith.constant 832 : index
    %c0_69 = arith.constant 0 : index
    %210 = vector.load %arg7[%c832, %c0_69] : memref<1120x1xf32, #tpu.memory_space<vmem>>, vector<32x1xf32>
    %c16 = arith.constant 16 : index
    %c0_70 = arith.constant 0 : index
    %211 = vector.load %arg6[%c16, %c0_70] : memref<25x512xf32, #tpu.memory_space<vmem>>, vector<1x512xf32>
    %212 = vector.broadcast %210 : vector<32x1xf32> to vector<32x512xf32>
    %213 = arith.mulf %209, %212 : vector<32x512xf32>
    %214 = vector.broadcast %211 : vector<1x512xf32> to vector<32x512xf32>
    %215 = arith.mulf %213, %214 : vector<32x512xf32>
    %216 = arith.addf %208, %215 : vector<32x512xf32>
    %c492_i32 = arith.constant 492 : i32
    %217 = tpu.dynamic_rotate %8 by %c492_i32 dim 1 : vector<32x512xf32>, i32 -> vector<32x512xf32>
    %c864 = arith.constant 864 : index
    %c0_71 = arith.constant 0 : index
    %218 = vector.load %arg7[%c864, %c0_71] : memref<1120x1xf32, #tpu.memory_space<vmem>>, vector<32x1xf32>
    %c17 = arith.constant 17 : index
    %c0_72 = arith.constant 0 : index
    %219 = vector.load %arg6[%c17, %c0_72] : memref<25x512xf32, #tpu.memory_space<vmem>>, vector<1x512xf32>
    %220 = vector.broadcast %218 : vector<32x1xf32> to vector<32x512xf32>
    %221 = arith.mulf %217, %220 : vector<32x512xf32>
    %222 = vector.broadcast %219 : vector<1x512xf32> to vector<32x512xf32>
    %223 = arith.mulf %221, %222 : vector<32x512xf32>
    %224 = arith.addf %216, %223 : vector<32x512xf32>
    %c491_i32 = arith.constant 491 : i32
    %225 = tpu.dynamic_rotate %8 by %c491_i32 dim 1 : vector<32x512xf32>, i32 -> vector<32x512xf32>
    %c896 = arith.constant 896 : index
    %c0_73 = arith.constant 0 : index
    %226 = vector.load %arg7[%c896, %c0_73] : memref<1120x1xf32, #tpu.memory_space<vmem>>, vector<32x1xf32>
    %c18 = arith.constant 18 : index
    %c0_74 = arith.constant 0 : index
    %227 = vector.load %arg6[%c18, %c0_74] : memref<25x512xf32, #tpu.memory_space<vmem>>, vector<1x512xf32>
    %228 = vector.broadcast %226 : vector<32x1xf32> to vector<32x512xf32>
    %229 = arith.mulf %225, %228 : vector<32x512xf32>
    %230 = vector.broadcast %227 : vector<1x512xf32> to vector<32x512xf32>
    %231 = arith.mulf %229, %230 : vector<32x512xf32>
    %232 = arith.addf %224, %231 : vector<32x512xf32>
    %c490_i32 = arith.constant 490 : i32
    %233 = tpu.dynamic_rotate %8 by %c490_i32 dim 1 : vector<32x512xf32>, i32 -> vector<32x512xf32>
    %c928 = arith.constant 928 : index
    %c0_75 = arith.constant 0 : index
    %234 = vector.load %arg7[%c928, %c0_75] : memref<1120x1xf32, #tpu.memory_space<vmem>>, vector<32x1xf32>
    %c19 = arith.constant 19 : index
    %c0_76 = arith.constant 0 : index
    %235 = vector.load %arg6[%c19, %c0_76] : memref<25x512xf32, #tpu.memory_space<vmem>>, vector<1x512xf32>
    %236 = vector.broadcast %234 : vector<32x1xf32> to vector<32x512xf32>
    %237 = arith.mulf %233, %236 : vector<32x512xf32>
    %238 = vector.broadcast %235 : vector<1x512xf32> to vector<32x512xf32>
    %239 = arith.mulf %237, %238 : vector<32x512xf32>
    %240 = arith.addf %232, %239 : vector<32x512xf32>
    %c474_i32 = arith.constant 474 : i32
    %241 = tpu.dynamic_rotate %8 by %c474_i32 dim 1 : vector<32x512xf32>, i32 -> vector<32x512xf32>
    %c960 = arith.constant 960 : index
    %c0_77 = arith.constant 0 : index
    %242 = vector.load %arg7[%c960, %c0_77] : memref<1120x1xf32, #tpu.memory_space<vmem>>, vector<32x1xf32>
    %c20 = arith.constant 20 : index
    %c0_78 = arith.constant 0 : index
    %243 = vector.load %arg6[%c20, %c0_78] : memref<25x512xf32, #tpu.memory_space<vmem>>, vector<1x512xf32>
    %244 = vector.broadcast %242 : vector<32x1xf32> to vector<32x512xf32>
    %245 = arith.mulf %241, %244 : vector<32x512xf32>
    %246 = vector.broadcast %243 : vector<1x512xf32> to vector<32x512xf32>
    %247 = arith.mulf %245, %246 : vector<32x512xf32>
    %248 = arith.addf %240, %247 : vector<32x512xf32>
    %c473_i32 = arith.constant 473 : i32
    %249 = tpu.dynamic_rotate %8 by %c473_i32 dim 1 : vector<32x512xf32>, i32 -> vector<32x512xf32>
    %c992 = arith.constant 992 : index
    %c0_79 = arith.constant 0 : index
    %250 = vector.load %arg7[%c992, %c0_79] : memref<1120x1xf32, #tpu.memory_space<vmem>>, vector<32x1xf32>
    %c21 = arith.constant 21 : index
    %c0_80 = arith.constant 0 : index
    %251 = vector.load %arg6[%c21, %c0_80] : memref<25x512xf32, #tpu.memory_space<vmem>>, vector<1x512xf32>
    %252 = vector.broadcast %250 : vector<32x1xf32> to vector<32x512xf32>
    %253 = arith.mulf %249, %252 : vector<32x512xf32>
    %254 = vector.broadcast %251 : vector<1x512xf32> to vector<32x512xf32>
    %255 = arith.mulf %253, %254 : vector<32x512xf32>
    %256 = arith.addf %248, %255 : vector<32x512xf32>
    %c472_i32 = arith.constant 472 : i32
    %257 = tpu.dynamic_rotate %8 by %c472_i32 dim 1 : vector<32x512xf32>, i32 -> vector<32x512xf32>
    %c1024 = arith.constant 1024 : index
    %c0_81 = arith.constant 0 : index
    %258 = vector.load %arg7[%c1024, %c0_81] : memref<1120x1xf32, #tpu.memory_space<vmem>>, vector<32x1xf32>
    %c22 = arith.constant 22 : index
    %c0_82 = arith.constant 0 : index
    %259 = vector.load %arg6[%c22, %c0_82] : memref<25x512xf32, #tpu.memory_space<vmem>>, vector<1x512xf32>
    %260 = vector.broadcast %258 : vector<32x1xf32> to vector<32x512xf32>
    %261 = arith.mulf %257, %260 : vector<32x512xf32>
    %262 = vector.broadcast %259 : vector<1x512xf32> to vector<32x512xf32>
    %263 = arith.mulf %261, %262 : vector<32x512xf32>
    %264 = arith.addf %256, %263 : vector<32x512xf32>
    %c471_i32 = arith.constant 471 : i32
    %265 = tpu.dynamic_rotate %8 by %c471_i32 dim 1 : vector<32x512xf32>, i32 -> vector<32x512xf32>
    %c1056 = arith.constant 1056 : index
    %c0_83 = arith.constant 0 : index
    %266 = vector.load %arg7[%c1056, %c0_83] : memref<1120x1xf32, #tpu.memory_space<vmem>>, vector<32x1xf32>
    %c23 = arith.constant 23 : index
    %c0_84 = arith.constant 0 : index
    %267 = vector.load %arg6[%c23, %c0_84] : memref<25x512xf32, #tpu.memory_space<vmem>>, vector<1x512xf32>
    %268 = vector.broadcast %266 : vector<32x1xf32> to vector<32x512xf32>
    %269 = arith.mulf %265, %268 : vector<32x512xf32>
    %270 = vector.broadcast %267 : vector<1x512xf32> to vector<32x512xf32>
    %271 = arith.mulf %269, %270 : vector<32x512xf32>
    %272 = arith.addf %264, %271 : vector<32x512xf32>
    %c470_i32 = arith.constant 470 : i32
    %273 = tpu.dynamic_rotate %8 by %c470_i32 dim 1 : vector<32x512xf32>, i32 -> vector<32x512xf32>
    %c1088 = arith.constant 1088 : index
    %c0_85 = arith.constant 0 : index
    %274 = vector.load %arg7[%c1088, %c0_85] : memref<1120x1xf32, #tpu.memory_space<vmem>>, vector<32x1xf32>
    %c24 = arith.constant 24 : index
    %c0_86 = arith.constant 0 : index
    %275 = vector.load %arg6[%c24, %c0_86] : memref<25x512xf32, #tpu.memory_space<vmem>>, vector<1x512xf32>
    %276 = vector.broadcast %274 : vector<32x1xf32> to vector<32x512xf32>
    %277 = arith.mulf %273, %276 : vector<32x512xf32>
    %278 = vector.broadcast %275 : vector<1x512xf32> to vector<32x512xf32>
    %279 = arith.mulf %277, %278 : vector<32x512xf32>
    %280 = arith.addf %272, %279 : vector<32x512xf32>
    %c32 = arith.constant 32 : index
    %c0_87 = arith.constant 0 : index
    %281 = vector.load %arg7[%c32, %c0_87] : memref<1120x1xf32, #tpu.memory_space<vmem>>, vector<32x1xf32>
    %282 = arith.addf %80, %280 : vector<32x512xf32>
    %283 = vector.broadcast %281 : vector<32x1xf32> to vector<32x512xf32>
    %284 = arith.addf %282, %283 : vector<32x512xf32>
    %285 = arith.mulf %284, %9 : vector<32x512xf32>
    %c64 = arith.constant 64 : index
    %c0_88 = arith.constant 0 : index
    %286 = vector.load %arg7[%c64, %c0_88] : memref<1120x1xf32, #tpu.memory_space<vmem>>, vector<32x1xf32>
    %c128 = arith.constant 128 : index
    %c0_89 = arith.constant 0 : index
    %287 = vector.load %arg2[%c128, %c0_89] : memref<224x32xf32, #tpu.memory_space<vmem>>, vector<32x32xf32>
    %cst_90 = arith.constant dense<0.000000e+00> : vector<32x512xf32>
    %288 = tpu.matmul %287, %285, %cst_90 {dimension_numbers = #tpu.dot_dimension_numbers<[1], [0], [0], [1], [0, 0, 1, 1], [], []>} : vector<32x32xf32>, vector<32x512xf32>, vector<32x512xf32> -> vector<32x512xf32>
    %289 = vector.broadcast %286 : vector<32x1xf32> to vector<32x512xf32>
    %290 = arith.addf %288, %289 : vector<32x512xf32>
    %cst_91 = arith.constant 1.000000e+00 : f32
    %291 = vector.broadcast %cst_91 : f32 to vector<1x32xf32>
    %c96 = arith.constant 96 : index
    %c0_92 = arith.constant 0 : index
    %292 = vector.load %arg7[%c96, %c0_92] : memref<1120x1xf32, #tpu.memory_space<vmem>>, vector<32x1xf32>
    %c128_93 = arith.constant 128 : index
    %c0_94 = arith.constant 0 : index
    %293 = vector.load %arg7[%c128_93, %c0_94] : memref<1120x1xf32, #tpu.memory_space<vmem>>, vector<32x1xf32>
    %c160 = arith.constant 160 : index
    %c0_95 = arith.constant 0 : index
    %294 = vector.load %arg7[%c160, %c0_95] : memref<1120x1xf32, #tpu.memory_space<vmem>>, vector<32x1xf32>
    %c192 = arith.constant 192 : index
    %c0_96 = arith.constant 0 : index
    %295 = vector.load %arg7[%c192, %c0_96] : memref<1120x1xf32, #tpu.memory_space<vmem>>, vector<32x1xf32>
    %c224 = arith.constant 224 : index
    %c0_97 = arith.constant 0 : index
    %296 = vector.load %arg7[%c224, %c0_97] : memref<1120x1xf32, #tpu.memory_space<vmem>>, vector<32x1xf32>
    %c256 = arith.constant 256 : index
    %c0_98 = arith.constant 0 : index
    %297 = vector.load %arg7[%c256, %c0_98] : memref<1120x1xf32, #tpu.memory_space<vmem>>, vector<64x1xf32>
    %298 = arith.addf %1, %290 : vector<32x512xf32>
    %cst_99 = arith.constant dense<0.000000e+00> : vector<1x512xf32>
    %299 = tpu.matmul %291, %298, %cst_99 {dimension_numbers = #tpu.dot_dimension_numbers<[1], [0], [0], [1], [0, 0, 1, 1], [], []>} : vector<1x32xf32>, vector<32x512xf32>, vector<1x512xf32> -> vector<1x512xf32>
    %cst_100 = arith.constant 3.125000e-02 : f32
    %300 = vector.broadcast %cst_100 : f32 to vector<1x512xf32>
    %301 = arith.mulf %299, %300 : vector<1x512xf32>
    %302 = arith.mulf %298, %298 : vector<32x512xf32>
    %cst_101 = arith.constant dense<0.000000e+00> : vector<1x512xf32>
    %303 = tpu.matmul %291, %302, %cst_101 {dimension_numbers = #tpu.dot_dimension_numbers<[1], [0], [0], [1], [0, 0, 1, 1], [], []>} : vector<1x32xf32>, vector<32x512xf32>, vector<1x512xf32> -> vector<1x512xf32>
    %cst_102 = arith.constant 3.125000e-02 : f32
    %304 = vector.broadcast %cst_102 : f32 to vector<1x512xf32>
    %305 = arith.mulf %303, %304 : vector<1x512xf32>
    %306 = arith.mulf %301, %301 : vector<1x512xf32>
    %307 = arith.subf %305, %306 : vector<1x512xf32>
    %cst_103 = arith.constant 0.000000e+00 : f32
    %308 = vector.broadcast %cst_103 : f32 to vector<1x512xf32>
    %309 = arith.maximumf %307, %308 : vector<1x512xf32>
    %310 = vector.broadcast %301 : vector<1x512xf32> to vector<32x512xf32>
    %311 = arith.subf %298, %310 : vector<32x512xf32>
    %cst_104 = arith.constant 9.99999997E-7 : f32
    %312 = vector.broadcast %cst_104 : f32 to vector<1x512xf32>
    %313 = arith.addf %309, %312 : vector<1x512xf32>
    %314 = math.rsqrt %313 : vector<1x512xf32>
    %315 = vector.broadcast %314 : vector<1x512xf32> to vector<32x512xf32>
    %316 = arith.mulf %311, %315 : vector<32x512xf32>
    %317 = vector.broadcast %292 : vector<32x1xf32> to vector<32x512xf32>
    %318 = arith.mulf %316, %317 : vector<32x512xf32>
    %319 = vector.broadcast %293 : vector<32x1xf32> to vector<32x512xf32>
    %320 = arith.addf %318, %319 : vector<32x512xf32>
    %c160_105 = arith.constant 160 : index
    %c0_106 = arith.constant 0 : index
    %321 = vector.load %arg2[%c160_105, %c0_106] : memref<224x32xf32, #tpu.memory_space<vmem>>, vector<64x32xf32>
    %cst_107 = arith.constant dense<0.000000e+00> : vector<64x512xf32>
    %322 = tpu.matmul %321, %320, %cst_107 {dimension_numbers = #tpu.dot_dimension_numbers<[1], [0], [0], [1], [0, 0, 1, 1], [], []>} : vector<64x32xf32>, vector<32x512xf32>, vector<64x512xf32> -> vector<64x512xf32>
    %323 = vector.broadcast %297 : vector<64x1xf32> to vector<64x512xf32>
    %324 = arith.addf %322, %323 : vector<64x512xf32>
    %cst_108 = arith.constant 5.000000e-01 : f32
    %325 = vector.broadcast %cst_108 : f32 to vector<64x512xf32>
    %326 = arith.mulf %325, %324 : vector<64x512xf32>
    %cst_109 = arith.constant 4.471500e-02 : f32
    %327 = vector.broadcast %cst_109 : f32 to vector<64x512xf32>
    %328 = arith.mulf %327, %324 : vector<64x512xf32>
    %329 = arith.mulf %328, %324 : vector<64x512xf32>
    %330 = arith.mulf %329, %324 : vector<64x512xf32>
    %331 = arith.addf %324, %330 : vector<64x512xf32>
    %cst_110 = arith.constant 0.797884583 : f32
    %332 = vector.broadcast %cst_110 : f32 to vector<64x512xf32>
    %333 = arith.mulf %332, %331 : vector<64x512xf32>
    %334 = math.tanh %333 : vector<64x512xf32>
    %cst_111 = arith.constant 1.000000e+00 : f32
    %335 = vector.broadcast %cst_111 : f32 to vector<64x512xf32>
    %336 = arith.addf %335, %334 : vector<64x512xf32>
    %337 = arith.mulf %326, %336 : vector<64x512xf32>
    %c0_112 = arith.constant 0 : index
    %c0_113 = arith.constant 0 : index
    %338 = vector.load %arg3[%c0_112, %c0_113] : memref<32x64xf32, #tpu.memory_space<vmem>>, vector<32x64xf32>
    %cst_114 = arith.constant dense<0.000000e+00> : vector<32x512xf32>
    %339 = tpu.matmul %338, %337, %cst_114 {dimension_numbers = #tpu.dot_dimension_numbers<[1], [0], [0], [1], [0, 0, 1, 1], [], []>} : vector<32x64xf32>, vector<64x512xf32>, vector<32x512xf32> -> vector<32x512xf32>
    %340 = vector.broadcast %296 : vector<32x1xf32> to vector<32x512xf32>
    %341 = arith.addf %339, %340 : vector<32x512xf32>
    %342 = arith.addf %320, %341 : vector<32x512xf32>
    %cst_115 = arith.constant dense<0.000000e+00> : vector<1x512xf32>
    %343 = tpu.matmul %291, %342, %cst_115 {dimension_numbers = #tpu.dot_dimension_numbers<[1], [0], [0], [1], [0, 0, 1, 1], [], []>} : vector<1x32xf32>, vector<32x512xf32>, vector<1x512xf32> -> vector<1x512xf32>
    %cst_116 = arith.constant 3.125000e-02 : f32
    %344 = vector.broadcast %cst_116 : f32 to vector<1x512xf32>
    %345 = arith.mulf %343, %344 : vector<1x512xf32>
    %346 = arith.mulf %342, %342 : vector<32x512xf32>
    %cst_117 = arith.constant dense<0.000000e+00> : vector<1x512xf32>
    %347 = tpu.matmul %291, %346, %cst_117 {dimension_numbers = #tpu.dot_dimension_numbers<[1], [0], [0], [1], [0, 0, 1, 1], [], []>} : vector<1x32xf32>, vector<32x512xf32>, vector<1x512xf32> -> vector<1x512xf32>
    %cst_118 = arith.constant 3.125000e-02 : f32
    %348 = vector.broadcast %cst_118 : f32 to vector<1x512xf32>
    %349 = arith.mulf %347, %348 : vector<1x512xf32>
    %350 = arith.mulf %345, %345 : vector<1x512xf32>
    %351 = arith.subf %349, %350 : vector<1x512xf32>
    %cst_119 = arith.constant 0.000000e+00 : f32
    %352 = vector.broadcast %cst_119 : f32 to vector<1x512xf32>
    %353 = arith.maximumf %351, %352 : vector<1x512xf32>
    %354 = vector.broadcast %345 : vector<1x512xf32> to vector<32x512xf32>
    %355 = arith.subf %342, %354 : vector<32x512xf32>
    %cst_120 = arith.constant 9.99999997E-7 : f32
    %356 = vector.broadcast %cst_120 : f32 to vector<1x512xf32>
    %357 = arith.addf %353, %356 : vector<1x512xf32>
    %358 = math.rsqrt %357 : vector<1x512xf32>
    %359 = vector.broadcast %358 : vector<1x512xf32> to vector<32x512xf32>
    %360 = arith.mulf %355, %359 : vector<32x512xf32>
    %361 = vector.broadcast %294 : vector<32x1xf32> to vector<32x512xf32>
    %362 = arith.mulf %360, %361 : vector<32x512xf32>
    %363 = vector.broadcast %295 : vector<32x1xf32> to vector<32x512xf32>
    %364 = arith.addf %362, %363 : vector<32x512xf32>
    %c0_121 = arith.constant 0 : index
    %c0_122 = arith.constant 0 : index
    %c0_123 = arith.constant 0 : index
    %365 = vector.load %arg8[%c0_121, %c0_122, %c0_123] : memref<1x32x512xf32, #tpu.memory_space<vmem>>, vector<1x32x512xf32>
    %366 = vector.shape_cast %365 : vector<1x32x512xf32> to vector<32x512xf32>
    %367 = vector.shape_cast %364 : vector<32x512xf32> to vector<1x32x512xf32>
    tpu.vector_store %arg8[%c0_121, %c0_122, %c0_123], %367 {strides = array<i32>} : memref<1x32x512xf32, #tpu.memory_space<vmem>>, vector<1x32x512xf32>,
    return
  }
  func.func @transform_0(%arg0: i32) -> (i32, i32, i32) {
    %c0_i32 = arith.constant 0 : i32
    %c0_i32_0 = arith.constant 0 : i32
    %c0_i32_1 = arith.constant 0 : i32
    return %arg0, %c0_i32, %c0_i32_0 : i32, i32, i32
  }
  func.func @transform_1(%arg0: i32) -> (i32, i32) {
    %c0_i32 = arith.constant 0 : i32
    %c0_i32_0 = arith.constant 0 : i32
    %c0_i32_1 = arith.constant 0 : i32
    return %c0_i32, %c0_i32_0 : i32, i32
  }
  func.func @transform_2(%arg0: i32) -> (i32, i32) {
    %c0_i32 = arith.constant 0 : i32
    %c0_i32_0 = arith.constant 0 : i32
    %c0_i32_1 = arith.constant 0 : i32
    return %c0_i32, %c0_i32_0 : i32, i32
  }
  func.func @transform_3(%arg0: i32) -> (i32, i32) {
    %c0_i32 = arith.constant 0 : i32
    %c0_i32_0 = arith.constant 0 : i32
    %c0_i32_1 = arith.constant 0 : i32
    return %c0_i32, %c0_i32_0 : i32, i32
  }
  func.func @transform_4(%arg0: i32) -> (i32, i32) {
    %c0_i32 = arith.constant 0 : i32
    %c0_i32_0 = arith.constant 0 : i32
    %c0_i32_1 = arith.constant 0 : i32
    return %c0_i32, %c0_i32_0 : i32, i32
  }
  func.func @transform_5(%arg0: i32) -> (i32, i32) {
    %c0_i32 = arith.constant 0 : i32
    %c0_i32_0 = arith.constant 0 : i32
    %c0_i32_1 = arith.constant 0 : i32
    return %c0_i32, %c0_i32_0 : i32, i32
  }
  func.func @transform_6(%arg0: i32) -> (i32, i32) {
    %c0_i32 = arith.constant 0 : i32
    %c0_i32_0 = arith.constant 0 : i32
    %c0_i32_1 = arith.constant 0 : i32
    return %c0_i32, %c0_i32_0 : i32, i32
  }
  func.func @transform_7(%arg0: i32) -> (i32, i32, i32) {
    %c0_i32 = arith.constant 0 : i32
    %c0_i32_0 = arith.constant 0 : i32
    %c0_i32_1 = arith.constant 0 : i32
    return %arg0, %c0_i32, %c0_i32_0 : i32, i32, i32
  }
}

</mosaic_0001>

<bundles_post_ra>
// kernel: pola_encoder_forward.1
= control target key start
LH: loop header
LB: loop body
LE: loop exit
PB: predicated region body
PF: predicated region fallthrough
CT: control target
= control target key end

     0   :  { %s7427_s24 = smov 0   ;;  %s15134_s0 = inlined_call_operand.vmem [shape: f32[2,32,512], index: 0, kind: input, shape index: {}]   ;;  %s15135_s1 = inlined_call_operand.vmem [shape: f32[224,32], index: 1, kind: input, shape index: {}]   ;;  %s15136_s2 = inlined_call_operand.vmem [shape: f32[32,64], index: 2, kind: input, shape index: {}]   ;;  %s15137_s3 = inlined_call_operand.vmem [shape: f32[32,512], index: 3, kind: input, shape index: {}]   ;;  %s15138_s4 = inlined_call_operand.vmem [shape: f32[32,64], index: 4, kind: input, shape index: {}]   ;;  %s15139_s5 = inlined_call_operand.vmem [shape: f32[25,512], index: 5, kind: input, shape index: {}]   ;;  %s15140_s6 = inlined_call_operand.vmem [shape: f32[1120,1], index: 6, kind: input, shape index: {}]   ;;  %s15141_s7 = inlined_call_operand.vmem [shape: f32[2,32,512], index: 7, kind: output, shape index: {}]  }
   0x1 LB: > { %s6731_s25 = sadd.s32 4294967295, %s7359_s24   ;;  %p6735_p0 = scmp.ge.s32.totalorder %s7359_s24, 1  ;;  %s7359_s24 = sphi %s7427_s24, %s17_s24  }
   0x2   : > { %p237_p1 = scmp.lt.s32.totalorder %s7359_s24, 3 }
   0x4   : > { %p238_p2 = pnand %p6735_p0, %p237_p1 }
   0x6   : > { %241 = sbr.rel (%p238_p2) target bundleno = 2751 (0xabf), region = 48 }
   0xb   : > { %p269_p3 = scmp.lt.s32.totalorder %s6731_s25, 1  ;;  %v7361_v0 = vmov 0   ;;  %v652_v1 = vld [vmem:[%s15140_s6] sm:$0xff]  ;;  %vm15161_vm0 = vcmask 261120   ;;  %v653_v19 = vld [vmem:[%s15140_s6 + $0x8] sm:$0xff]  ;;  %v654_v20 = vld [vmem:[%s15140_s6 + $0x10] sm:$0xff] }
   0xc   : > { %7074 = vset.pattern.permute.xlu0 %v7361_v0  ;;  %7075 = vset.pattern.permute.xlu1 %v7361_v0  ;;  %v295_v18 = vld [vmem:[%s15135_s1] sm:$0xff]  ;;  %v296_v21 = vld [vmem:[%s15135_s1 + $0x8] sm:$0xff]  ;;  %v655_v22 = vld [vmem:[%s15140_s6 + $0x18] sm:$0xff]  ;;  %s7362_s23 = smov 41   ;;  %s7363_s26 = smov 42  }
   0xd   : > { %s17605_s25 = smov (!%p269_p3, %s6731_s25), 1  ;;  %722 = vperm.xlu0 %7074, %v652_v1   ;;  %7076 = vset.pattern.permute.xlu2 %v7361_v0  ;;  %v297_v23 = vld [vmem:[%s15135_s1 + $0x10] sm:$0xff]  ;;  %v298_v24 = vld [vmem:[%s15135_s1 + $0x18] sm:$0xff]  ;;  %v299_v25 = vld [vmem:[%s15135_s1 + $0x20] sm:$0xff]  ;;  %s7364_s30 = smov 39  }
   0xe   : > { %s7038_s28 = sshll.u32 %s17605_s25, 7  ;;  %732 = vperm.xlu1 %7075, %v654_v20   ;;  %v1788_v26 = vld [vmem:[%s15140_s6 + $0x140] sm:$0xff]  ;;  %v300_v27 = vld [vmem:[%s15135_s1 + $0x28] sm:$0xff]  ;;  %v1791_v28 = vld [vmem:[%s15140_s6 + $0x158] sm:$0xff]  ;;  %s7365_s9 = smov 40  }
   0xf   : > { %s7446_s8 = scalar_lea.vmem %s15134_s0, %s7038_s28  ;;  %v301_v29 = vld [vmem:[%s15135_s1 + $0x30] sm:$0xff]  ;;  %v1920_v30 = vld [vmem:[%s15140_s6 + $0x168] sm:$0xff]  ;;  %v302_v31 = vld [vmem:[%s15135_s1 + $0x38] sm:$0xff]  ;;  %s7366_s22 = smov 38  }
  0x10   : > { %v291_v2 = vld [vmem:[%s7446_s8 + $0x60] sm:$0xff]  ;;  %v292_v3 = vld [vmem:[%s7446_s8 + $0x68] sm:$0xff]  ;;  %v293_v4 = vld [vmem:[%s7446_s8 + $0x70] sm:$0xff]  ;;  %s7367_s18 = smov 22   ;;  %s7368_s27 = smov 21  }
  0x11   : > { %372 = vmatpush.msra.mxu0 %v291_v2  ;;  %437 = vmatpush.msra.mxu1 %v292_v3  ;;  %v294_v5 = vld [vmem:[%s7446_s8 + $0x78] sm:$0xff]  ;;  %v287_v6 = vld [vmem:[%s7446_s8 + $0x40] sm:$0xff]  ;;  %v288_v7 = vld [vmem:[%s7446_s8 + $0x48] sm:$0xff]  ;;  %s7369_s13 = smov 20   ;;  %s7370_s21 = smov 19  }
  0x12   : > { %502 = vmatpush.msra.mxu2 %v293_v4  ;;  %567 = vmatpush.msra.mxu3 %v294_v5  ;;  %v289_v8 = vld [vmem:[%s7446_s8 + $0x50] sm:$0xff]  ;;  %v290_v9 = vld [vmem:[%s7446_s8 + $0x58] sm:$0xff]  ;;  %v283_v10 = vld [vmem:[%s7446_s8 + $0x20] sm:$0xff]  ;;  %s7371_s16 = smov 18   ;;  %s7373_s17 = smov 1  }
  0x13   : > { %373 = vmatpush.msra.mxu0 %v287_v6  ;;  %438 = vmatpush.msra.mxu1 %v288_v7  ;;  %v284_v11 = vld [vmem:[%s7446_s8 + $0x28] sm:$0xff]  ;;  %v285_v12 = vld [vmem:[%s7446_s8 + $0x30] sm:$0xff]  ;;  %v286_v13 = vld [vmem:[%s7446_s8 + $0x38] sm:$0xff]  ;;  %s7375_s11 = smov 126   ;;  %s7376_s15 = smov 110  }
  0x14   : > { %503 = vmatpush.msra.mxu2 %v289_v8  ;;  %568 = vmatpush.msra.mxu3 %v290_v9  ;;  %v279_v14 = vld [vmem:[%s7446_s8] sm:$0xff]  ;;  %v280_v15 = vld [vmem:[%s7446_s8 + $0x8] sm:$0xff]  ;;  %v281_v16 = vld [vmem:[%s7446_s8 + $0x10] sm:$0xff]  ;;  %s7377_s19 = smov 109   ;;  %s7378_s14 = smov 108  }
  0x15   : > { %374 = vmatpush.msra.mxu0 %v283_v10  ;;  %439 = vmatpush.msra.mxu1 %v284_v11  ;;  %v282_v17 = vld [vmem:[%s7446_s8 + $0x18] sm:$0xff]  ;;  %v2053_v32 = vld [vmem:[%s15140_s6 + $0x190] sm:$0xff]  ;;  %v303_v33 = vld [vmem:[%s15135_s1 + $0x40] sm:$0xff]  ;;  %s7383_s20 = smov 88   ;;  %s7385_s10 = smov 86  }
  0x16   : > { %504 = vmatpush.msra.mxu2 %v285_v12  ;;  %569 = vmatpush.msra.mxu3 %v286_v13  ;;  %v304_v34 = vld [vmem:[%s15135_s1 + $0x48] sm:$0xff]  ;;  %v305_v35 = vld [vmem:[%s15135_s1 + $0x50] sm:$0xff]  ;;  %v2051_v38 = vld [vmem:[%s15140_s6 + $0x180] sm:$0xff] }
  0x17   : > { %375 = vmatpush.msra.mxu0 %v279_v14  ;;  %440 = vmatpush.msra.mxu1 %v280_v15  ;;  %v1789_v36 = vld [vmem:[%s15140_s6 + $0x148] sm:$0xff]  ;;  %v1921_v37 = vld [vmem:[%s15140_s6 + $0x170] sm:$0xff]  ;;  %v2054_v41 = vld [vmem:[%s15140_s6 + $0x198] sm:$0xff] }
  0x18   : > { %505 = vmatpush.msra.mxu2 %v281_v16  ;;  %570 = vmatpush.msra.mxu3 %v282_v17  ;;  %v1790_v42 = vld [vmem:[%s15140_s6 + $0x150] sm:$0xff]  ;;  %v1919_v50 = vld [vmem:[%s15140_s6 + $0x160] sm:$0xff]  ;;  %v306_v52 = vld [vmem:[%s15135_s1 + $0x58] sm:$0xff] }
  0x19   : > { %6740 = vmatmul.msk.f32.vlgmr.msra.gmra.mxu0 %vm15161_vm0, %v295_v18  ;;  %6756 = vmatmul.msk.f32.vlgmr.msra.gmra.mxu1 %vm15161_vm0, %v295_v18  ;;  %v1922_v62 = vld [vmem:[%s15140_s6 + $0x178] sm:$0xff] }
  0x1a   : > { %6772 = vmatmul.msk.f32.vlgmr.msra.gmra.mxu2 %vm15161_vm0, %v295_v18  ;;  %6788 = vmatmul.msk.f32.vlgmr.msra.gmra.mxu3 %vm15161_vm0, %v295_v18  ;;  %v2052_v18 = vld [vmem:[%s15140_s6 + $0x188] sm:$0xff] }
  0x1b   : > { %727 = vperm.xlu0 %7074, %v653_v19   ;;  %737 = vperm.xlu1 %7075, %v655_v22  }
  0x1c   : > { %1800 = vperm.xlu2 %7076, %v1789_v36  }
  0x21   : > { %6741 = vmatmul.msk.f32.gmra.mxu0 %vm15161_vm0, %v296_v21  ;;  %6757 = vmatmul.msk.f32.gmra.mxu1 %vm15161_vm0, %v296_v21 }
  0x22   : > { %6773 = vmatmul.msk.f32.gmra.mxu2 %vm15161_vm0, %v296_v21  ;;  %6789 = vmatmul.msk.f32.gmra.mxu3 %vm15161_vm0, %v296_v21 }
  0x23   : > { %1795 = vperm.xlu0 %7074, %v1788_v26   ;;  %1805 = vperm.xlu1 %7075, %v1790_v42  }
  0x24   : > { %1937 = vperm.xlu2 %7076, %v1921_v37  }
  0x29   : > { %6742 = vmatmul.msk.f32.gmra.mxu0 %vm15161_vm0, %v297_v23  ;;  %6758 = vmatmul.msk.f32.gmra.mxu1 %vm15161_vm0, %v297_v23 }
  0x2a   : > { %6774 = vmatmul.msk.f32.gmra.mxu2 %vm15161_vm0, %v297_v23  ;;  %6790 = vmatmul.msk.f32.gmra.mxu3 %vm15161_vm0, %v297_v23 }
  0x2b   : > { %1810 = vperm.xlu0 %7074, %v1791_v28   ;;  %1927 = vperm.xlu1 %7075, %v1919_v50   ;;  %v621_v50 = vld [vmem:[%s15137_s3 + $0x8] sm:$0xff] }
  0x2c   : > { %2059 = vperm.xlu2 %7076, %v2051_v38  }
  0x31   : > { %6743 = vmatmul.msk.f32.gmra.mxu0 %vm15161_vm0, %v298_v24  ;;  %6759 = vmatmul.msk.f32.gmra.mxu1 %vm15161_vm0, %v298_v24 }
  0x32   : > { %6775 = vmatmul.msk.f32.gmra.mxu2 %vm15161_vm0, %v298_v24  ;;  %6791 = vmatmul.msk.f32.gmra.mxu3 %vm15161_vm0, %v298_v24 }
  0x33   : > { %1932 = vperm.xlu0 %7074, %v1920_v30   ;;  %1942 = vperm.xlu1 %7075, %v1922_v62  }
  0x34   : > { %2074 = vperm.xlu2 %7076, %v2054_v41  }
  0x39   : > { %6744 = vmatmul.msk.f32.gmra.mxu0 %vm15161_vm0, %v299_v25  ;;  %6760 = vmatmul.msk.f32.gmra.mxu1 %vm15161_vm0, %v299_v25 }
  0x3a   : > { %6776 = vmatmul.msk.f32.gmra.mxu2 %vm15161_vm0, %v299_v25  ;;  %6792 = vmatmul.msk.f32.gmra.mxu3 %vm15161_vm0, %v299_v25 }
  0x3b   : > { %2069 = vperm.xlu0 %7074, %v2053_v32   ;;  %2064 = vperm.xlu1 %7075, %v2052_v18   ;;  %v622_v18 = vld [vmem:[%s15137_s3 + $0x10] sm:$0xff] }
  0x41   : > { %6745 = vmatmul.msk.f32.gmra.mxu0 %vm15161_vm0, %v300_v27  ;;  %6761 = vmatmul.msk.f32.gmra.mxu1 %vm15161_vm0, %v300_v27 }
  0x42   : > { %6777 = vmatmul.msk.f32.gmra.mxu2 %vm15161_vm0, %v300_v27  ;;  %6793 = vmatmul.msk.f32.gmra.mxu3 %vm15161_vm0, %v300_v27  ;;  %v620_v27 = vld [vmem:[%s15137_s3] sm:$0xff] }
  0x49   : > { %6746 = vmatmul.msk.f32.gmra.mxu0 %vm15161_vm0, %v301_v29  ;;  %6762 = vmatmul.msk.f32.gmra.mxu1 %vm15161_vm0, %v301_v29 }
  0x4a   : > { %6778 = vmatmul.msk.f32.gmra.mxu2 %vm15161_vm0, %v301_v29  ;;  %6794 = vmatmul.msk.f32.gmra.mxu3 %vm15161_vm0, %v301_v29 }
  0x51   : > { %6747 = vmatmul.msk.f32.gmra.mxu0 %vm15161_vm0, %v302_v31  ;;  %6763 = vmatmul.msk.f32.gmra.mxu1 %vm15161_vm0, %v302_v31 }
  0x52   : > { %6779 = vmatmul.msk.f32.gmra.mxu2 %vm15161_vm0, %v302_v31  ;;  %6795 = vmatmul.msk.f32.gmra.mxu3 %vm15161_vm0, %v302_v31 }
  0x59   : > { %6748 = vmatmul.msk.f32.gmra.mxu0 %vm15161_vm0, %v303_v33  ;;  %6764 = vmatmul.msk.f32.gmra.mxu1 %vm15161_vm0, %v303_v33 }
  0x5a   : > { %6780 = vmatmul.msk.f32.gmra.mxu2 %vm15161_vm0, %v303_v33  ;;  %6796 = vmatmul.msk.f32.gmra.mxu3 %vm15161_vm0, %v303_v33 }
  0x61   : > { %6749 = vmatmul.msk.f32.gmra.mxu0 %vm15161_vm0, %v304_v34  ;;  %6765 = vmatmul.msk.f32.gmra.mxu1 %vm15161_vm0, %v304_v34 }
  0x62   : > { %6781 = vmatmul.msk.f32.gmra.mxu2 %vm15161_vm0, %v304_v34  ;;  %6797 = vmatmul.msk.f32.gmra.mxu3 %vm15161_vm0, %v304_v34 }
  0x69   : > { %6750 = vmatmul.msk.f32.gmra.mxu0 %vm15161_vm0, %v305_v35  ;;  %6766 = vmatmul.msk.f32.gmra.mxu1 %vm15161_vm0, %v305_v35 }
  0x6a   : > { %6782 = vmatmul.msk.f32.gmra.mxu2 %vm15161_vm0, %v305_v35  ;;  %6798 = vmatmul.msk.f32.gmra.mxu3 %vm15161_vm0, %v305_v35 }
  0x71   : > { %6767 = vmatmul.msk.f32.gmra.mxu1 %vm15161_vm0, %v306_v52  ;;  %6751 = vmatmul.msk.f32.gmra.mxu0 %vm15161_vm0, %v306_v52 }
  0x72   : > { %6783 = vmatmul.msk.f32.gmra.mxu2 %vm15161_vm0, %v306_v52  ;;  %6799 = vmatmul.msk.f32.gmra.mxu3 %vm15161_vm0, %v306_v52 }
  0x7f   : > { %v7611_v61 = vpop.permute.xlu0 %722 }
  0x80   : > { %v7635_v23 = vpop.permute.xlu1 %732 }
  0x81   : > { %15906 = vst [vmem:[#allocation10_spill] sm:$0xff] %v7635_v23 }
  0x8d   : > { %v7633_v21 = vpop.permute.xlu0 %727 }
  0x96   : > { %v7571_v39 = vpop.f32.mrf.mxu0  ;;  %v7573_v40 = vpop.f32.mrf.mxu1 }
  0x97   : > { %v656_v47 = vand.u32 2147483647, %v7571_v39  ;;  %v657_v48 = vand.u32 2147483647, %v7573_v40 }
  0x99   : > { %v672_v53 = vmax.f32 %v656_v47, 1e-30  ;;  %v673_v54 = vmax.f32 %v657_v48, 1e-30 }
  0x9b   : > { %7077 = vlog2.f32 %v672_v53 }
  0x9c   : > { %7079 = vlog2.f32 %v673_v54  ;;  %v624_v54 = vld [vmem:[%s15137_s3 + $0x20] sm:$0xff] }
  0x9d   : > { %v7581_v43 = vpop.f32.mrf.mxu2  ;;  %v7583_v44 = vpop.f32.mrf.mxu3 }
  0x9e   : > { %15898 = vst [vmem:[#allocation2_spill] sm:$0xff] %v7581_v43  ;;  %v7585_v45 = vpop.f32.mrf.mxu0  ;;  %v7587_v46 = vpop.f32.mrf.mxu1  ;;  %v658_v14 = vand.u32 2147483647, %v7581_v43  ;;  %v659_v19 = vand.u32 2147483647, %v7583_v44 }
  0x9f   : > { %15899 = vst [vmem:[#allocation3_spill] sm:$0xff] %v7583_v44  ;;  %v660_v49 = vand.u32 2147483647, %v7585_v45  ;;  %v661_v51 = vand.u32 2147483647, %v7587_v46 }
  0xa0   : > { %v674_v31 = vmax.f32 %v658_v14, 1e-30  ;;  %v675_v33 = vmax.f32 %v659_v19, 1e-30 }
  0xa1   : > { %v676_v57 = vmax.f32 %v660_v49, 1e-30  ;;  %v677_v60 = vmax.f32 %v661_v51, 1e-30  ;;  %v7078_v2 = vpop.eup %7077 }
  0xa2   : > { %v7080_v5 = vpop.eup %7079  ;;  %v689_v12 = vmul.f32 0.6931472, %v7078_v2 }
  0xa3   : > { %7081 = vlog2.f32 %v676_v57  ;;  %v691_v13 = vmul.f32 0.6931472, %v7080_v5  ;;  %v625_v5 = vld [vmem:[%s15137_s3 + $0x28] sm:$0xff] }
  0xa4   : > { %7083 = vlog2.f32 %v677_v60  ;;  %v740_v24 = vmul.f32 %v7611_v61, %v689_v12 }
  0xa5   : > { %v7601_v55 = vpop.f32.mrf.mxu2  ;;  %v7603_v56 = vpop.f32.mrf.mxu3  ;;  %v741_v28 = vmul.f32 %v7611_v61, %v691_v13 }
  0xa6   : > { %15900 = vst [vmem:[#allocation4_spill] sm:$0xff] %v7601_v55  ;;  %v7607_v58 = vpop.f32.mrf.mxu0  ;;  %v7609_v59 = vpop.f32.mrf.mxu1  ;;  %v756_v36 = vmul.f32 1.442695, %v740_v24 }
  0xa7   : > { %15901 = vst [vmem:[#allocation5_spill] sm:$0xff] %v7603_v56  ;;  %v664_v63 = vand.u32 2147483647, %v7607_v58  ;;  %v665_v6 = vand.u32 2147483647, %v7609_v59 }
  0xa8   : > { %15902 = vst [vmem:[#allocation6_spill] sm:$0xff] %v7607_v58  ;;  %v758_v41 = vmul.f32 1.442695, %v741_v28 }
  0xa9   : > { %15903 = vst [vmem:[#allocation7_spill] sm:$0xff] %v7609_v59  ;;  %v7082_v8 = vpop.eup %7081  ;;  %v680_v9 = vmax.f32 %v664_v63, 1e-30  ;;  %v681_v17 = vmax.f32 %v665_v6, 1e-30 }
  0xaa   : > { %v7084_v11 = vpop.eup %7083  ;;  %v697_v16 = vmul.f32 0.6931472, %v7082_v8 }
  0xab   : > { %v699_v20 = vmul.f32 0.6931472, %v7084_v11  ;;  %7085 = vlog2.f32 %v680_v9 }
  0xac   : > { %v744_v32 = vmul.f32 %v7633_v21, %v697_v16 }
  0xad   : > { %v7617_v0 = vpop.f32.mrf.mxu2  ;;  %v7619_v1 = vpop.f32.mrf.mxu3  ;;  %v745_v34 = vmul.f32 %v7633_v21, %v699_v20 }
  0xae   : > { %15904 = vst [vmem:[#allocation8_spill] sm:$0xff] %v7617_v0  ;;  %v7621_v3 = vpop.f32.mrf.mxu0  ;;  %v7623_v4 = vpop.f32.mrf.mxu1  ;;  %v666_v37 = vand.u32 2147483647, %v7617_v0  ;;  %v667_v42 = vand.u32 2147483647, %v7619_v1 }
  0xaf   : > { %15905 = vst [vmem:[#allocation9_spill] sm:$0xff] %v7619_v1  ;;  %v668_v7 = vand.u32 2147483647, %v7621_v3  ;;  %v669_v10 = vand.u32 2147483647, %v7623_v4 }
  0xb0   : > { %v764_v48 = vmul.f32 1.442695, %v744_v32  ;;  %v766_v52 = vmul.f32 1.442695, %v745_v34  ;;  %v682_v62 = vmax.f32 %v666_v37, 1e-30 }
  0xb1   : > { %v684_v15 = vmax.f32 %v668_v7, 1e-30  ;;  %v685_v22 = vmax.f32 %v669_v10, 1e-30  ;;  %v7086_v38 = vpop.eup %7085  ;;  %v683_v7 = vmax.f32 %v667_v42, 1e-30 }
  0xb2   : > { %v705_v60 = vmul.f32 0.6931472, %v7086_v38  ;;  %v626_v37 = vld [vmem:[%s15137_s3 + $0x30] sm:$0xff] }
  0xb3   : > { %7087 = vlog2.f32 %v684_v15 }
  0xb4   : > { %7089 = vlog2.f32 %v681_v17  ;;  %v7668_v17 = vpop.permute.xlu1 %737  ;;  %v748_v24 = vmul.f32 %v7635_v23, %v705_v60 }
  0xb5   : > { %v7638_v25 = vpop.f32.mrf.mxu2  ;;  %v7640_v26 = vpop.f32.mrf.mxu3  ;;  %7091 = vlog2.f32 %v685_v22 }
  0xb6   : > { %v389_v29 = vpop.f32.mrf.mxu0  ;;  %v454_v30 = vpop.f32.mrf.mxu1  ;;  %v670_v47 = vand.u32 2147483647, %v7638_v25  ;;  %7093 = vlog2.f32 %v674_v31  ;;  %v671_v49 = vand.u32 2147483647, %v7640_v26 }
  0xb7   : > { %v7648_v35 = vadd.f32 %v620_v27, %v389_v29  ;;  %7095 = vlog2.f32 %v675_v33  ;;  %v7664_v9 = vadd.f32 %v621_v50, %v454_v30  ;;  %v623_v27 = vld [vmem:[%s15137_s3 + $0x18] sm:$0xff] }
  0xb8   : > { %7097 = vpow2.f32 %v756_v36  ;;  %v686_v8 = vmax.f32 %v670_v47, 1e-30  ;;  %v687_v13 = vmax.f32 %v671_v49, 1e-30 }
  0xb9   : > { %v7088_v51 = vpop.eup %7087  ;;  %v852_v53 = vand.u32 2147483647, %v7648_v35  ;;  %7099 = vpow2.f32 %v758_v41  ;;  %v853_v30 = vand.u32 2147483647, %v7664_v9 }
  0xba   : > { %v7090_v57 = vpop.eup %7089  ;;  %7101 = vpow2.f32 %v764_v48  ;;  %v713_v12 = vmul.f32 0.6931472, %v7088_v51  ;;  %v627_v48 = vld [vmem:[%s15137_s3 + $0x38] sm:$0xff]  ;;  %v772_v51 = vmul.f32 1.442695, %v748_v24 }
  0xbb   : > { %v7092_v6 = vpop.eup %7091  ;;  %v707_v15 = vmul.f32 0.6931472, %v7090_v57  ;;  %7103 = vpow2.f32 %v766_v52  ;;  %v868_v16 = vmax.f32 %v852_v53, 1e-30  ;;  %v628_v57 = vld [vmem:[%s15137_s3 + $0x40] sm:$0xff] }
  0xbc   : > { %v7675_v20 = vpop.eup %7093  ;;  %7105 = vlog2.f32 %v682_v62  ;;  %v715_v22 = vmul.f32 0.6931472, %v7092_v6  ;;  %v752_v33 = vmul.f32 %v7668_v17, %v713_v12 }
  0xbd   : > { %v519_v63 = vpop.f32.mrf.mxu2  ;;  %v584_v2 = vpop.f32.mrf.mxu3  ;;  %7107 = vlog2.f32 %v686_v8  ;;  %v749_v41 = vmul.f32 %v7635_v23, %v707_v15 }
  0xbe   : > { %v392_v10 = vpop.f32.mrf.mxu0  ;;  %v457_v11 = vpop.f32.mrf.mxu1  ;;  %7109 = vlog2.f32 %v687_v13  ;;  %v7689_v34 = vadd.f32 %v622_v18, %v519_v63  ;;  %v7697_v42 = vadd.f32 %v623_v27, %v584_v2  ;;  %v753_v52 = vmul.f32 %v7668_v17, %v715_v22 }
  0xbf   : > { %v7666_v14 = vadd.f32 %v624_v54, %v392_v10  ;;  %v7673_v19 = vadd.f32 %v625_v5, %v457_v11  ;;  %v7682_v29 = vpop.eup %7095  ;;  %7111 = vlog2.f32 %v868_v16  ;;  %v869_v63 = vmax.f32 %v853_v30, 1e-30 }
  0xc0   : > { %v7686_v32 = vpop.eup %7097  ;;  %15907 = vst [vmem:[#allocation11_spill] sm:$0xff] %v7697_v42  ;;  %7113 = vlog2.f32 %v683_v7  ;;  %v629_v7 = vld [vmem:[%s15137_s3 + $0x48] sm:$0xff]  ;;  %v780_v10 = vmul.f32 1.442695, %v752_v33  ;;  %v854_v11 = vand.u32 2147483647, %v7689_v34 }
  0xc1   : > { %v856_v28 = vand.u32 2147483647, %v7666_v14  ;;  %v857_v31 = vand.u32 2147483647, %v7673_v19  ;;  %v7694_v38 = vpop.eup %7099  ;;  %v7722_v15 = vmul.f32 1.442695, %v749_v41 }
  0xc2   : > { %v7702_v49 = vpop.eup %7101  ;;  %v855_v16 = vand.u32 2147483647, %v7697_v42  ;;  %v782_v27 = vmul.f32 1.442695, %v753_v52  ;;  %v631_v41 = vld [vmem:[%s15137_s3 + $0x58] sm:$0xff]  ;;  %vm1000_vm1 = vcmp.lt.f32.partialorder %v7666_v14, 0.0 }
  0xc3   : > { %v872_v36 = vmax.f32 %v856_v28, 1e-30  ;;  %v873_v47 = vmax.f32 %v857_v31, 1e-30  ;;  %v7709_v60 = vpop.eup %7103  ;;  %v630_v31 = vld [vmem:[%s15137_s3 + $0x50] sm:$0xff]  ;;  %vm1001_vm2 = vcmp.lt.f32.partialorder %v7673_v19, 0.0 }
  0xc4   : > { %v7717_v8 = vpop.eup %7105  ;;  %v870_v52 = vmax.f32 %v854_v11, 1e-30  ;;  %vm15164_vm12 = vcmp.gt.f32.partialorder %v7666_v14, 0.0  ;;  %vm15163_vm13 = vcmp.gt.f32.partialorder %v7673_v19, 0.0 }
  0xc5   : > { %v522_v53 = vpop.f32.mrf.mxu2  ;;  %v587_v54 = vpop.f32.mrf.mxu3  ;;  %7115 = vlog2.f32 %v872_v36  ;;  %15908 = vst [vmem:[#allocation12_spill] sm:$0xff] %v7717_v8 }
  0xc6   : > { %v7712_v2 = vadd.f32 %v626_v37, %v522_v53  ;;  %v395_v5 = vpop.f32.mrf.mxu0  ;;  %v460_v6 = vpop.f32.mrf.mxu1  ;;  %7117 = vlog2.f32 %v873_v47  ;;  %v7720_v12 = vadd.f32 %v627_v48, %v587_v54  ;;  %v307_v47 = vld [vmem:[%s15135_s1 + $0x60] sm:$0xff] }
  0xc7   : > { %v7108_v13 = vpop.eup %7107  ;;  %v7726_v22 = vadd.f32 %v628_v57, %v395_v5  ;;  %7119 = vpow2.f32 %v772_v51  ;;  %v7729_v30 = vadd.f32 %v629_v7, %v460_v6  ;;  %v632_v54 = vld [vmem:[%s15137_s3 + $0x60] sm:$0xff]  ;;  %6752 = vmatmul.msk.f32.gmra.mxu0 %vm15161_vm0, %v307_v47  ;;  %6768 = vmatmul.msk.f32.gmra.mxu1 %vm15161_vm0, %v307_v47  ;;  %v871_v5 = vmax.f32 %v855_v16, 1e-30 }
  0xc8   : > { %v858_v18 = vand.u32 2147483647, %v7712_v2  ;;  %v7110_v24 = vpop.eup %7109  ;;  %v859_v28 = vand.u32 2147483647, %v7720_v12  ;;  %7121 = vlog2.f32 %v869_v63  ;;  %v717_v51 = vmul.f32 0.6931472, %v7108_v13  ;;  %6784 = vmatmul.msk.f32.gmra.mxu2 %vm15161_vm0, %v307_v47  ;;  %6800 = vmatmul.msk.f32.gmra.mxu3 %vm15161_vm0, %v307_v47 }
  0xc9   : > { %v7112_v33 = vpop.eup %7111  ;;  %v860_v37 = vand.u32 2147483647, %v7726_v22  ;;  %7123 = vpow2.f32 %v780_v10  ;;  %v861_v53 = vand.u32 2147483647, %v7729_v30  ;;  %v719_v63 = vmul.f32 0.6931472, %v7110_v24 }
  0xca   : > { %v874_v36 = vmax.f32 %v858_v18, 1e-30  ;;  %v7741_v48 = vpop.eup %7113  ;;  %v7751_v10 = vmul.f32 0.6931472, %v7112_v33  ;;  %v875_v1 = vmax.f32 %v859_v28, 1e-30  ;;  %v754_v33 = vmul.f32 %v7668_v17, %v717_v51 }
  0xcb   : > { %15909 = vst [vmem:[#allocation13_spill] sm:$0xff] %v7741_v48  ;;  %v7116_v57 = vpop.eup %7115  ;;  %v876_v6 = vmax.f32 %v860_v37, 1e-30  ;;  %v877_v13 = vmax.f32 %v861_v53, 1e-30  ;;  %vm1004_vm3 = vcmp.lt.f32.partialorder %v7726_v22, 0.0 }
  0xcc   : > { %7125 = vlog2.f32 %v874_v36  ;;  %v7118_v7 = vpop.eup %7117  ;;  %v893_v11 = vmul.f32 0.6931472, %v7116_v57  ;;  %v633_v36 = vld [vmem:[%s15137_s3 + $0x68] sm:$0xff]  ;;  %vm1002_vm4 = vcmp.lt.f32.partialorder %v7712_v2, 0.0  ;;  %vm1005_vm5 = vcmp.lt.f32.partialorder %v7729_v30, 0.0 }
  0xcd   : > { %7127 = vpow2.f32 %v782_v27  ;;  %v525_v18 = vpop.f32.mrf.mxu2  ;;  %v590_v62 = vpop.f32.mrf.mxu3  ;;  %v895_v50 = vmul.f32 0.6931472, %v7118_v7  ;;  %vm972_vm9 = vcmp.gt.f32.partialorder %v7726_v22, 0.0  ;;  %vm973_vm10 = vcmp.gt.f32.partialorder %v7729_v30, 0.0  ;;  %v15953_v30 = vld [vmem:[#allocation10_spill] sm:$0xff] }
  0xce   : > { %7129 = vlog2.f32 %v876_v6  ;;  %v7753_v0 = vadd.f32 %v630_v31, %v525_v18  ;;  %v398_v16 = vpop.f32.mrf.mxu0  ;;  %v463_v24 = vpop.f32.mrf.mxu1  ;;  %v920_v27 = vmul.f32 %v893_v11, %v7633_v21  ;;  %v7762_v47 = vadd.f32 %v631_v41, %v590_v62  ;;  %v634_v62 = vld [vmem:[%s15137_s3 + $0x70] sm:$0xff] }
  0xcf   : > { %v7758_v37 = vpop.eup %7119  ;;  %7131 = vlog2.f32 %v877_v13  ;;  %v921_v28 = vmul.f32 %v895_v50, %v7633_v21  ;;  %v7766_v57 = vadd.f32 %v632_v54, %v398_v16  ;;  %v7771_v51 = vadd.f32 %v633_v36, %v463_v24 }
  0xd0   : > { %15910 = vst [vmem:[#allocation14_spill] sm:$0xff] %v7758_v37  ;;  %v7122_v53 = vpop.eup %7121  ;;  %7133 = vlog2.f32 %v870_v52  ;;  %v862_v31 = vand.u32 2147483647, %v7753_v0  ;;  %v940_v7 = vmul.f32 1.442695, %v920_v27  ;;  %v755_v36 = vmul.f32 %v7668_v17, %v719_v63 }
  0xd1   : > { %v7768_v6 = vpop.eup %7123  ;;  %7135 = vlog2.f32 %v871_v5  ;;  %v863_v18 = vand.u32 2147483647, %v7762_v47  ;;  %v942_v52 = vmul.f32 1.442695, %v921_v28  ;;  %v864_v11 = vand.u32 2147483647, %v7766_v57 }
  0xd2   : > { %v7126_v41 = vpop.eup %7125  ;;  %7137 = vlog2.f32 %v875_v1  ;;  %v878_v50 = vmax.f32 %v862_v31, 1e-30  ;;  %v865_v16 = vand.u32 2147483647, %v7771_v51  ;;  %v887_v24 = vmul.f32 0.6931472, %v7122_v53 }
  0xd3   : > { %v7777_v54 = vpop.eup %7127  ;;  %7139 = vpow2.f32 %v940_v7  ;;  %v897_v13 = vmul.f32 0.6931472, %v7126_v41  ;;  %v879_v5 = vmax.f32 %v863_v18, 1e-30  ;;  %v880_v44 = vmax.f32 %v864_v11, 1e-30 }
  0xd4   : > { %v7130_v27 = vpop.eup %7129  ;;  %7141 = vpow2.f32 %v942_v52  ;;  %v635_v1 = vld [vmem:[%s15137_s3 + $0x78] sm:$0xff]  ;;  %v308_v28 = vld [vmem:[%s15135_s1 + $0x68] sm:$0xff]  ;;  %v881_v41 = vmax.f32 %v865_v16, 1e-30  ;;  %v784_v52 = vmul.f32 1.442695, %v754_v33  ;;  %v916_v33 = vmul.f32 %v7751_v10, %v7611_v61 }
  0xd5   : > { %v7132_v31 = vpop.eup %7131  ;;  %v922_v7 = vmul.f32 %v897_v13, %v7633_v21  ;;  %v901_v18 = vmul.f32 0.6931472, %v7130_v27  ;;  %7143 = vlog2.f32 %v878_v50  ;;  %v528_v43 = vpop.f32.mrf.mxu2  ;;  %6753 = vmatmul.msk.f32.gmra.mxu0 %vm15161_vm0, %v308_v28  ;;  %6769 = vmatmul.msk.f32.gmra.mxu1 %vm15161_vm0, %v308_v28  ;;  %vm1008_vm6 = vcmp.lt.f32.partialorder %v7766_v57, 0.0 }
  0xd6   : > { %v593_v53 = vpop.f32.mrf.mxu3  ;;  %v7134_v63 = vpop.eup %7133  ;;  %v903_v11 = vmul.f32 0.6931472, %v7132_v31  ;;  %7145 = vlog2.f32 %v879_v5  ;;  %v7790_v48 = vadd.f32 %v634_v62, %v528_v43  ;;  %6785 = vmatmul.msk.f32.gmra.mxu2 %vm15161_vm0, %v308_v28  ;;  %6801 = vmatmul.msk.f32.gmra.mxu3 %vm15161_vm0, %v308_v28  ;;  %vm1009_vm7 = vcmp.lt.f32.partialorder %v7771_v51, 0.0 }
  0xd7   : > { %v7792_v8 = vpop.f32.mrf.mxu0  ;;  %v7794_v37 = vpop.f32.mrf.mxu1  ;;  %v944_v13 = vmul.f32 1.442695, %v922_v7  ;;  %v924_v16 = vmul.f32 %v901_v18, %v7635_v23  ;;  %7147 = vlog2.f32 %v880_v44  ;;  %v7801_v27 = vadd.f32 %v635_v1, %v593_v53 }
  0xd8   : > { %15911 = vst [vmem:[#allocation15_spill] sm:$0xff] %v7792_v8  ;;  %v7798_v50 = vpop.eup %7135  ;;  %1878 = vrot.lane.b32.xlu1 %v7794_v37, %s7362_s23  ;;  %1745 = vrot.lane.b32.xlu0 %v7794_v37, %s7363_s26  ;;  %v925_v62 = vmul.f32 %v903_v11, %v7635_v23  ;;  %7149 = vlog2.f32 %v881_v41  ;;  %v866_v5 = vand.u32 2147483647, %v7790_v48  ;;  %v917_v1 = vmul.f32 %v887_v24, %v7611_v61  ;;  %v309_v41 = vld [vmem:[%s15135_s1 + $0x70] sm:$0xff] }
  0xd9   : > { %15912 = vst [vmem:[#allocation16_spill] sm:$0xff] %v7794_v37  ;;  %v7138_v43 = vpop.eup %7137  ;;  %1737 = vrot.lane.b32.xlu2 %v7792_v8, %s7363_s26  ;;  %7151 = vpow2.f32 %v944_v13  ;;  %v948_v28 = vmul.f32 1.442695, %v924_v16  ;;  %v867_v31 = vand.u32 2147483647, %v7801_v27  ;;  %vm1006_vm8 = vcmp.lt.f32.partialorder %v7753_v0, 0.0 }
  0xda   : > { %v7813_v44 = vpop.eup %7139  ;;  %7153 = vpow2.f32 %v784_v52  ;;  %v950_v10 = vmul.f32 1.442695, %v925_v62  ;;  %v882_v18 = vmax.f32 %v866_v5, 1e-30  ;;  %v786_v11 = vmul.f32 1.442695, %v755_v36 }
  0xdb   : > { %v7817_v7 = vpop.eup %7141  ;;  %7155 = vpow2.f32 %v948_v28  ;;  %v883_v59 = vmax.f32 %v867_v31, 1e-30  ;;  %v1016_v24 = vsel %vm1000_vm1, %v7813_v44, 0.0  ;;  %v7826_v16 = vmul.f32 1.442695, %v916_v33 }
  0xdc   : > { %v7144_v53 = vpop.eup %7143  ;;  %7157 = vpow2.f32 %v950_v10  ;;  %v7829_v5 = vmul.f32 1.442695, %v917_v1  ;;  %v1017_v36 = vsel %vm1001_vm2, %v7817_v7, 0.0  ;;  %vm976_vm11 = vcmp.gt.f32.partialorder %v7766_v57, 0.0 }
  0xdd   : > { %v7146_v13 = vpop.eup %7145  ;;  %v905_v52 = vmul.f32 0.6931472, %v7144_v53  ;;  %7159 = vlog2.f32 %v882_v18  ;;  %6754 = vmatmul.msk.f32.gmra.mxu0 %vm15161_vm0, %v309_v41  ;;  %6770 = vmatmul.msk.f32.gmra.mxu1 %vm15161_vm0, %v309_v41  ;;  %v7837_v10 = vadd.f32 %v1017_v36, %v1016_v24  ;;  %v889_v18 = vmul.f32 0.6931472, %v7134_v63 }
  0xde   : > { %v7148_v62 = vpop.eup %7147  ;;  %v907_v58 = vmul.f32 0.6931472, %v7146_v13  ;;  %7161 = vlog2.f32 %v883_v59  ;;  %6786 = vmatmul.msk.f32.gmra.mxu2 %vm15161_vm0, %v309_v41  ;;  %6802 = vmatmul.msk.f32.gmra.mxu3 %vm15161_vm0, %v309_v41  ;;  %v899_v24 = vmul.f32 0.6931472, %v7138_v43  ;;  %vm977_vm14 = vcmp.gt.f32.partialorder %v7771_v51, 0.0 }
  0xdf   : > { %v7150_v28 = vpop.eup %7149  ;;  %v926_v33 = vmul.f32 %v905_v52, %v7635_v23  ;;  %v909_v31 = vmul.f32 0.6931472, %v7148_v62  ;;  %15913 = vst [vmem:[#allocation17_spill] sm:$0xff] %v7837_v10  ;;  %7163 = vpow2.f32 %v786_v11  ;;  %v891_v11 = vmul.f32 0.6931472, %v7798_v50  ;;  %v310_v50 = vld [vmem:[%s15135_s1 + $0x78] sm:$0xff] }
  0xe0   : > { %v7841_v1 = vpop.eup %7151  ;;  %v911_v53 = vmul.f32 0.6931472, %v7150_v28  ;;  %2134 = vrot.lane.b32.xlu1 %v7792_v8, %s7364_s30  ;;  %2002 = vrot.lane.b32.xlu0 %v7792_v8, %s7365_s9  ;;  %v927_v36 = vmul.f32 %v907_v58, %v7635_v23  ;;  %v7883_v23 = vpop.f32.mrf.mxu3  ;;  %vm15162_vm15 = vcmp.gt.f32.partialorder %v7753_v0, 0.0 }
  0xe1   : > { %v7848_v59 = vpop.eup %7153  ;;  %v952_v13 = vmul.f32 1.442695, %v926_v33  ;;  %v928_v41 = vmul.f32 %v909_v31, %v7668_v17  ;;  %1870 = vrot.lane.b32.xlu2 %v7792_v8, %s7362_s23  ;;  %v7862_v43 = vsel %vm1002_vm4, %v7841_v1, 0.0  ;;  %v7881_v8 = vpop.f32.mrf.mxu2  ;;  %15916 = vst [vmem:[#allocation20_spill] sm:$0xff] %v7883_v23 }
  0xe2   : > { %v7854_v63 = vpop.eup %7155  ;;  %v929_v52 = vmul.f32 %v911_v53, %v7668_v17  ;;  %15914 = vst [vmem:[#allocation18_spill] sm:$0xff] %v7862_v43  ;;  %v7874_v53 = vmul.f32 %v889_v18, %v7611_v61 }
  0xe3   : > { %v7864_v62 = vpop.eup %7157  ;;  %7165 = vpow2.f32 %v952_v13  ;;  %v956_v28 = vmul.f32 1.442695, %v928_v41  ;;  %v1020_v33 = vsel %vm1004_vm3, %v7854_v63, 0.0  ;;  %v923_v41 = vmul.f32 %v899_v24, %v7633_v21  ;;  %15915 = vst [vmem:[#allocation19_spill] sm:$0xff] %v7881_v8 }
  0xe4   : > { %v7160_v31 = vpop.eup %7159  ;;  %v958_v10 = vmul.f32 1.442695, %v929_v52  ;;  %v1021_v58 = vsel %vm1005_vm5, %v7864_v62, 0.0  ;;  %v954_v24 = vmul.f32 1.442695, %v927_v36  ;;  %v989_v36 = vsel %vm973_vm10, %v7864_v62, 0.0 }
  0xe5   : > { %v7162_v13 = vpop.eup %7161  ;;  %7167 = vpow2.f32 %v956_v28  ;;  %v913_v43 = vmul.f32 0.6931472, %v7160_v31  ;;  %v7885_v42 = vadd.f32 %v1021_v58, %v1020_v33  ;;  %6755 = vmatmul.msk.f32.gmra.mxu0 %vm15161_vm0, %v310_v50  ;;  %6771 = vmatmul.msk.f32.gmra.mxu1 %vm15161_vm0, %v310_v50 }
  0xe6   : > { %v7887_v18 = vpop.eup %7163  ;;  %7169 = vpow2.f32 %v958_v10  ;;  %v915_v52 = vmul.f32 0.6931472, %v7162_v13  ;;  %6787 = vmatmul.msk.f32.gmra.mxu2 %vm15161_vm0, %v310_v50  ;;  %6803 = vmatmul.msk.f32.gmra.mxu3 %vm15161_vm0, %v310_v50  ;;  %v984_v13 = vsel %vm15164_vm12, %v7813_v44, 0.0  ;;  %vm15167_vm0 = vcmp.lt.f32.partialorder %v7801_v27, 0.0 }
  0xe7   : > { %15917 = vst [vmem:[#allocation21_spill] sm:$0xff] %v7885_v42  ;;  %v930_v28 = vmul.f32 %v913_v43, %v7668_v17  ;;  %v988_v43 = vsel %vm972_vm9, %v7854_v63, 0.0  ;;  %vm15171_vm12 = vcmp.lt.f32.partialorder %v7623_v4, 0.0 }
  0xe8   : > { %v931_v10 = vmul.f32 %v915_v52, %v7668_v17  ;;  %1761 = vrot.lane.b32.xlu1 %v7883_v23, %s7363_s26  ;;  %1886 = vrot.lane.b32.xlu0 %v7881_v8, %s7362_s23  ;;  %v7914_v17 = vadd.f32 %v989_v36, %v988_v43  ;;  %v985_v52 = vsel %vm15163_vm13, %v7817_v7, 0.0  ;;  %vm15208_vm13 = vcmp.lt.f32.partialorder %v7621_v3, 0.0 }
  0xe9   : > { %v7910_v33 = vpop.eup %7165  ;;  %v960_v50 = vmul.f32 1.442695, %v930_v28  ;;  %2010 = vrot.lane.b32.xlu2 %v7794_v37, %s7365_s9  ;;  %v7932_v43 = vadd.f32 %v985_v52, %v984_v13  ;;  %v919_v52 = vmul.f32 %v891_v11, %v7611_v61 }
  0xea   : > { %15918 = vst [vmem:[#allocation22_spill] sm:$0xff] %v7914_v17  ;;  %v962_v31 = vmul.f32 1.442695, %v931_v10  ;;  %v7921_v58 = vsel %vm1006_vm8, %v7910_v33, 0.0  ;;  %v7949_v13 = vsel %vm15162_vm15, %v7910_v33, 0.0  ;;  %vm978_vm15 = vcmp.gt.f32.partialorder %v7790_v48, 0.0 }
  0xeb   : > { %15919 = vst [vmem:[#allocation23_spill] sm:$0xff] %v7921_v58  ;;  %v7929_v28 = vpop.eup %7167  ;;  %7171 = vpow2.f32 %v960_v50 }
  0xec   : > { %15920 = vst [vmem:[#allocation24_spill] sm:$0xff] %v7932_v43  ;;  %v7935_v10 = vpop.eup %7169  ;;  %7173 = vpow2.f32 %v962_v31  ;;  %v1024_v36 = vsel %vm1008_vm6, %v7929_v28, 0.0  ;;  %6804 = vmatpush.xpose.msk.msrb.mxu0 %vm1008_vm6, %v7929_v28  ;;  %v992_v50 = vsel %vm976_vm11, %v7929_v28, 0.0  ;;  %v946_v31 = vmul.f32 1.442695, %v923_v41 }
  0xed   : > { %15921 = vst [vmem:[#allocation25_spill] sm:$0xff] %v7949_v13  ;;  %v1025_v42 = vsel %vm1009_vm7, %v7935_v10, 0.0  ;;  %6812 = vmatpush.xpose.msk.msrb.mxu1 %vm1009_vm7, %v7935_v10  ;;  %v993_v58 = vsel %vm977_vm14, %v7935_v10, 0.0  ;;  %vm1010_vm6 = vcmp.lt.f32.partialorder %v7790_v48, 0.0  ;;  %vm15170_vm7 = vcmp.gt.f32.partialorder %v7712_v2, 0.0  ;;  %v8203_v48 = vpop.f32.mrf.mxu2 }
  0xee   : > { %v7961_v17 = vadd.f32 %v1025_v42, %v1024_v36  ;;  %v7965_v11 = vadd.f32 %v993_v58, %v992_v50  ;;  %7175 = vpow2.f32 %v954_v24  ;;  %v7979_v42 = vsel %vm15208_vm13, %v7768_v6, 0.0 }
  0xef   : > { %15924 = vst [vmem:[#allocation28_spill] sm:$0xff] %v7979_v42  ;;  %v7984_v41 = vsel %vm15171_vm12, %v7777_v54, 0.0  ;;  %v7989_v24 = vsel %vm15170_vm7, %v7841_v1, 0.0  ;;  %7177 = vpow2.f32 %v7826_v16  ;;  %v936_v36 = vmul.f32 1.442695, %v7874_v53 }
  0xf0   : > { %15922 = vst [vmem:[#allocation26_spill] sm:$0xff] %v7961_v17  ;;  %6805 = vmatpush.xpose.msk.msrb.mxu0 %vm1004_vm3, %v7854_v63  ;;  %2018 = vrot.lane.b32.xlu1 %v7881_v8, %s7365_s9  ;;  %7179 = vpow2.f32 %v7829_v5  ;;  %v15929_v53 = vand.u32 2147483647, %v7601_v55  ;;  %vm15168_vm3 = vcmp.lt.f32.partialorder %v7638_v25, 0.0  ;;  %v15930_v5 = vand.u32 2147483647, %v7603_v56 }
  0xf1   : > { %15923 = vst [vmem:[#allocation27_spill] sm:$0xff] %v7965_v11  ;;  %v7991_v58 = vpop.eup %7171  ;;  %6813 = vmatpush.xpose.msk.msrb.mxu1 %vm1005_vm5, %v7864_v62  ;;  %2026 = vrot.lane.b32.xlu0 %v7883_v23, %s7365_s9  ;;  %7181 = vpow2.f32 %v7722_v15  ;;  %vm15169_vm5 = vcmp.lt.f32.partialorder %v7640_v26, 0.0  ;;  %v8039_v15 = vpop.f32.mrf.mxu0  ;;  %vm15204_vm7 = vcmp.lt.f32.partialorder %v7573_v40, 0.0  ;;  %vm15199_vm12 = vcmp.gt.f32.partialorder %v7585_v45, 0.0 }
  0xf2   : > { %15925 = vst [vmem:[#allocation29_spill] sm:$0xff] %v7984_v41  ;;  %v8000_v50 = vpop.eup %7173  ;;  %v938_v41 = vmul.f32 1.442695, %v919_v52  ;;  %v8006_v42 = vsel %vm1010_vm6, %v7991_v58, 0.0  ;;  %6820 = vmatpush.xpose.msk.msrb.mxu2 %vm1010_vm6, %v7991_v58  ;;  %v8014_v16 = vsel %vm978_vm15, %v7991_v58, 0.0  ;;  %7183 = vpow2.f32 %v946_v31 }
  0xf3   : > { %15926 = vst [vmem:[#allocation30_spill] sm:$0xff] %v7989_v24  ;;  %v678_v17 = vmax.f32 %v15929_v53, 1e-30  ;;  %6828 = vmatpush.xpose.msk.msrb.mxu3 %vm15167_vm0, %v8000_v50  ;;  %v679_v52 = vmax.f32 %v15930_v5, 1e-30  ;;  %v8031_v53 = vsel %vm15168_vm3, %v7848_v59, 0.0  ;;  %7185 = vpow2.f32 %v936_v36 }
  0xf4   : > { %15927 = vst [vmem:[#allocation31_spill] sm:$0xff] %v8006_v42  ;;  %6806 = vmatpush.xpose.msk.msrb.mxu0 %vm1000_vm1, %v7813_v44  ;;  %vm15176_vm6 = vcmp.lt.f32.partialorder %v7648_v35, 0.0  ;;  %vm15179_vm0 = vcmp.lt.f32.partialorder %v7664_v9, 0.0  ;;  %v8044_v31 = vsel %vm15169_vm5, %v7887_v18, 0.0  ;;  %v8046_v5 = vpop.eup %7175  ;;  %7187 = vpow2.f32 %v938_v41 }
  0xf5   : > { %15928 = vst [vmem:[#allocation32_spill] sm:$0xff] %v8014_v16  ;;  %6814 = vmatpush.xpose.msk.msrb.mxu1 %vm1001_vm2, %v7817_v7  ;;  %vm15173_vm1 = vcmp.lt.f32.partialorder %v7762_v47, 0.0  ;;  %vm15202_vm2 = vcmp.lt.f32.partialorder %v7585_v45, 0.0  ;;  %vm15203_vm3 = vcmp.lt.f32.partialorder %v7587_v46, 0.0  ;;  %v8054_v36 = vpop.eup %7177  ;;  %vm15205_vm5 = vcmp.lt.f32.partialorder %v7571_v39, 0.0 }
  0xf6   : > { %15931 = vst [vmem:[#allocation33_spill] sm:$0xff] %v8031_v53  ;;  %6821 = vmatpush.xpose.msk.msrb.mxu2 %vm1006_vm8, %v7910_v33  ;;  %v8065_v41 = vsel %vm15202_vm2, %v7702_v49, 0.0  ;;  %vm15188_vm8 = vcmp.gt.f32.partialorder %v7587_v46, 0.0  ;;  %v8079_v53 = vsel %vm15203_vm3, %v7709_v60, 0.0  ;;  %7189 = vlog2.f32 %v678_v17  ;;  %v15942_v17 = vld [vmem:[#allocation11_spill] sm:$0xff] }
  0xf7   : > { %15932 = vst [vmem:[#allocation34_spill] sm:$0xff] %v8039_v15  ;;  %6829 = vmatpush.xpose.msk.msrb.mxu3 %vm15173_vm1, %v8046_v5  ;;  %vm15187_vm1 = vcmp.gt.f32.partialorder %v7571_v39, 0.0  ;;  %v8107_v11 = vsel %vm15188_vm8, %v7709_v60, 0.0  ;;  %v693_v43 = vmul.f32 0.6931472, %v7675_v20  ;;  %7191 = vlog2.f32 %v679_v52  ;;  %v15945_v20 = vld [vmem:[#allocation7_spill] sm:$0xff] }
  0xf8   : > { %15933 = vst [vmem:[#allocation35_spill] sm:$0xff] %v8044_v31  ;;  %v8067_v31 = vpop.eup %7179  ;;  %6807 = vmatpush.xpose.msk.msrb.mxu0 %vm15176_vm6, %v8054_v36  ;;  %1872 = vrot.lane.b32.xlu1 %v8039_v15, %s7362_s23  ;;  %vm15183_vm6 = vcmp.gt.f32.partialorder %v7573_v40, 0.0  ;;  %v695_v24 = vmul.f32 0.6931472, %v7682_v29  ;;  %v15946_v29 = vld [vmem:[#allocation14_spill] sm:$0xff] }
  0xf9   : > { %15934 = vst [vmem:[#allocation36_spill] sm:$0xff] %v8065_v41  ;;  %v8084_v41 = vsel %vm15205_vm5, %v7686_v32, 0.0  ;;  %v8086_v42 = vpop.eup %7181  ;;  %6815 = vmatpush.xpose.msk.msrb.mxu1 %vm15179_vm0, %v8067_v31  ;;  %1739 = vrot.lane.b32.xlu0 %v8039_v15, %s7363_s26  ;;  %vm15186_vm0 = vcmp.lt.f32.partialorder %v7720_v12, 0.0  ;;  %v742_v52 = vmul.f32 %v7611_v61, %v693_v43 }
  0xfa   : > { %15935 = vst [vmem:[#allocation37_spill] sm:$0xff] %v8079_v53  ;;  %v8097_v53 = vsel %vm15204_vm7, %v7694_v38, 0.0  ;;  %v8109_v16 = vpop.eup %7183  ;;  %6822 = vmatpush.xpose.msk.msrb.mxu2 %vm1002_vm4, %v7841_v1  ;;  %vm15200_vm4 = vcmp.lt.f32.partialorder %v7689_v34, 0.0 }
  0xfb   : > { %15936 = vst [vmem:[#allocation38_spill] sm:$0xff] %v8084_v41  ;;  %v8102_v41 = vsel %vm15199_vm12, %v7702_v49, 0.0  ;;  %v8125_v13 = vpop.eup %7185  ;;  %6830 = vmatpush.xpose.msk.msrb.mxu3 %vm15186_vm0, %v8109_v16  ;;  %v760_v22 = vmul.f32 1.442695, %v742_v52  ;;  %vm15959_vm12 = vcmp.gt.f32.partialorder %v7712_v2, 0.0 }
  0xfc   : > { %15937 = vst [vmem:[#allocation39_spill] sm:$0xff] %v8097_v53  ;;  %v8118_v53 = vsel %vm15187_vm1, %v7686_v32, 0.0  ;;  %6808 = vmatpush.xpose.msk.msrb.mxu0 %vm976_vm11, %v7929_v28  ;;  %vm15201_vm1 = vcmp.lt.f32.partialorder %v15945_v20, 0.0  ;;  %vm797_vm11 = vcmp.gt.f32.partialorder %v15945_v20, 0.0 }
  0xfd   : > { %15938 = vst [vmem:[#allocation40_spill] sm:$0xff] %v8102_v41  ;;  %v8123_v41 = vsel %vm15183_vm6, %v7694_v38, 0.0  ;;  %6816 = vmatpush.xpose.msk.msrb.mxu1 %vm977_vm14, %v7935_v10  ;;  %vm15197_vm6 = vcmp.lt.f32.partialorder %v15942_v17, 0.0  ;;  %v8159_v51 = vsel %vm15201_vm1, %v8086_v42, 0.0  ;;  %v8172_v10 = vsel %vm797_vm11, %v8086_v42, 0.0 }
  0xfe   : > { %15939 = vst [vmem:[#allocation41_spill] sm:$0xff] %v8107_v11  ;;  %v8130_v11 = vpop.eup %7187  ;;  %6823 = vmatpush.xpose.msk.msrb.mxu2 %vm15200_vm4, %v8125_v13  ;;  %vm15955_vm14 = vcmp.gt.f32.partialorder %v7673_v19, 0.0  ;;  %7193 = vpow2.f32 %v760_v22  ;;  %vm971_vm4 = vcmp.gt.f32.partialorder %v7720_v12, 0.0  ;;  %v15963_v22 = vld [vmem:[#allocation3_spill] sm:$0xff] }
  0xff   : > { %15940 = vst [vmem:[#allocation42_spill] sm:$0xff] %v8118_v53  ;;  %v15944_v53 = vld [vmem:[#allocation6_spill] sm:$0xff]  ;;  %6831 = vmatpush.xpose.msk.msrb.mxu3 %vm15197_vm6, %v8130_v11  ;;  %vm15957_vm6 = vcmp.gt.f32.partialorder %v7753_v0, 0.0 }
 0x100   : > { %15941 = vst [vmem:[#allocation43_spill] sm:$0xff] %v8123_v41  ;;  %v8142_v41 = vpop.f32.mrf.mxu1  ;;  %vm15206_vm0 = vcmp.lt.f32.partialorder %v15944_v53, 0.0  ;;  %vm796_vm8 = vcmp.gt.f32.partialorder %v15944_v53, 0.0  ;;  %6809 = vmatpush.xpose.msk.msrb.mxu0 %vm972_vm9, %v7854_v63  ;;  %vm15196_vm9 = vcmp.gt.f32.partialorder %v7801_v27, 0.0 }
 0x101   : > { %15943 = vst [vmem:[#allocation11_spill] sm:$0xff] %v8142_v41  ;;  %v8154_v57 = vsel %vm15206_vm0, %v15946_v29, 0.0  ;;  %v8164_v28 = vsel %vm796_vm8, %v15946_v29, 0.0  ;;  %2012 = vrot.lane.b32.xlu1 %v8142_v41, %s7365_s9  ;;  %6817 = vmatpush.xpose.msk.msrb.mxu1 %vm973_vm10, %v7864_v62  ;;  %vm15954_vm10 = vcmp.gt.f32.partialorder %v7666_v14, 0.0 }
 0x102   : > { %15947 = vst [vmem:[#allocation6_spill] sm:$0xff] %v8154_v57  ;;  %v15951_v57 = vld [vmem:[#allocation12_spill] sm:$0xff]  ;;  %1880 = vrot.lane.b32.xlu0 %v8142_v41, %s7362_s23  ;;  %6824 = vmatpush.xpose.msk.msrb.mxu2 %vm978_vm15, %v7991_v58  ;;  %vm800_vm15 = vcmp.gt.f32.partialorder %v7621_v3, 0.0 }
 0x103   : > { %15948 = vst [vmem:[#allocation7_spill] sm:$0xff] %v8159_v51  ;;  %v709_v56 = vmul.f32 0.6931472, %v15951_v57  ;;  %v15952_v51 = vld [vmem:[#allocation13_spill] sm:$0xff]  ;;  %v743_v57 = vmul.f32 %v7611_v61, %v695_v24  ;;  %6832 = vmatpush.xpose.msk.msrb.mxu3 %vm15196_vm9, %v8000_v50  ;;  %vm801_vm9 = vcmp.gt.f32.partialorder %v7623_v4, 0.0 }
 0x104   : > { %15949 = vst [vmem:[#allocation14_spill] sm:$0xff] %v8164_v28  ;;  %v7190_v28 = vpop.eup %7189  ;;  %v711_v55 = vmul.f32 0.6931472, %v15952_v51  ;;  %6810 = vmatpush.xpose.msk.msrb.mxu0 %vm15954_vm10, %v7813_v44  ;;  %vm15198_vm10 = vcmp.gt.f32.partialorder %v7762_v47, 0.0 }
 0x105   : > { %15950 = vst [vmem:[#allocation44_spill] sm:$0xff] %v8172_v10  ;;  %v7192_v43 = vpop.eup %7191  ;;  %v701_v63 = vmul.f32 0.6931472, %v7190_v28  ;;  %v750_v62 = vmul.f32 %v15953_v30, %v709_v56  ;;  %6818 = vmatpush.xpose.msk.msrb.mxu1 %vm15955_vm14, %v7817_v7  ;;  %v762_v24 = vmul.f32 1.442695, %v743_v57  ;;  %v8219_v56 = vsel %vm801_vm9, %v7777_v54, 0.0 }
 0x106   : > { %v703_v51 = vmul.f32 0.6931472, %v7192_v43  ;;  %v751_v61 = vmul.f32 %v15953_v30, %v711_v55  ;;  %15956 = vst [vmem:[#allocation12_spill] sm:$0xff] %v8203_v48  ;;  %6825 = vmatpush.xpose.msk.msrb.mxu2 %vm15957_vm6, %v7910_v33  ;;  %v8214_v55 = vsel %vm800_vm15, %v7768_v6, 0.0  ;;  %vm964_vm14 = vcmp.gt.f32.partialorder %v7648_v35, 0.0  ;;  %v15960_v7 = vld [vmem:[#allocation15_spill] sm:$0xff]  ;;  %v8266_v58 = vpop.eup %7193 }
 0x107   : > { %6833 = vmatpush.xpose.msk.msrb.mxu3 %vm15198_vm10, %v8046_v5  ;;  %v746_v0 = vmul.f32 %v7633_v21, %v701_v63  ;;  %v776_v14 = vmul.f32 1.442695, %v750_v62  ;;  %vm965_vm6 = vcmp.gt.f32.partialorder %v7664_v9, 0.0  ;;  %7195 = vpow2.f32 %v762_v24  ;;  %v15961_v28 = vld [vmem:[#allocation2_spill] sm:$0xff] }
 0x108   : > { %6811 = vmatpush.xpose.msk.msrb.mxu0 %vm964_vm14, %v8054_v36  ;;  %v747_v19 = vmul.f32 %v7633_v21, %v703_v51  ;;  %v778_v44 = vmul.f32 1.442695, %v751_v61  ;;  %vm15958_vm10 = vcmp.lt.f32.partialorder %v7623_v4, 0.0  ;;  %v980_v2 = vsel %vm964_vm14, %v8054_v36, 0.0  ;;  %v8310_v51 = vpop.f32.mrf.mxu3  ;;  %v15967_v61 = vld [vmem:[#allocation8_spill] sm:$0xff] }
 0x109   : > { %1755 = vrot.lane.b32.xlu1 %v8203_v48, %s7363_s26  ;;  %6819 = vmatpush.xpose.msk.msrb.mxu1 %vm965_vm6, %v8067_v31  ;;  %v768_v21 = vmul.f32 1.442695, %v746_v0  ;;  %7197 = vpow2.f32 %v776_v14  ;;  %vm790_vm14 = vcmp.gt.f32.partialorder %v15961_v28, 0.0  ;;  %15966 = vst [vmem:[#allocation10_spill] sm:$0xff] %v8310_v51  ;;  %v15968_v14 = vld [vmem:[#allocation9_spill] sm:$0xff] }
 0x10a   : > { %6826 = vmatpush.xpose.msk.msrb.mxu2 %vm15959_vm12, %v7841_v1  ;;  %2136 = vrot.lane.b32.xlu0 %v8039_v15, %s7364_s30  ;;  %v770_v33 = vmul.f32 1.442695, %v747_v19  ;;  %7199 = vpow2.f32 %v778_v44  ;;  %v981_v1 = vsel %vm965_vm6, %v8067_v31, 0.0  ;;  %vm822_vm12 = vcmp.lt.f32.partialorder %v15961_v28, 0.0 }
 0x10b   : > { %6834 = vmatpush.xpose.msk.msrb.mxu3 %vm971_vm4, %v8109_v16  ;;  %1044 = vmatmul.f32.vlgmr.msrb.gmra.mxu0 %v15960_v7  ;;  %vm967_vm6 = vcmp.gt.f32.partialorder %v15942_v17, 0.0  ;;  %7201 = vpow2.f32 %v768_v21  ;;  %v1156_v57 = vadd.f32 %v981_v1, %v980_v2  ;;  %v8298_v63 = vsel %vm822_vm12, %v8266_v58, 0.0  ;;  %v15970_v2 = vld [vmem:[#allocation4_spill] sm:$0xff] }
 0x10c   : > { %6836 = vmatpush.msk.msra.mxu0 %vm15208_vm13, %v7768_v6  ;;  %1073 = vmatmul.f32.vlgmr.msrb.gmra.mxu1 %v7794_v37  ;;  %7203 = vpow2.f32 %v770_v33  ;;  %v8303_v30 = vsel %vm790_vm14, %v8266_v58, 0.0  ;;  %v983_v19 = vsel %vm967_vm6, %v8130_v11, 0.0 }
 0x10d   : > { %6846 = vmatpush.msk.msra.mxu1 %vm15958_vm10, %v7777_v54  ;;  %vm966_vm10 = vcmp.gt.f32.partialorder %v7689_v34, 0.0  ;;  %v8279_v43 = vpop.eup %7195  ;;  %15964 = vst [vmem:[#allocation13_spill] sm:$0xff] %v8303_v30 }
 0x10e   : > { %6837 = vmatpush.msk.msra.mxu0 %vm15206_vm0, %v15946_v29  ;;  %6827 = vmatpush.xpose.msk.msrb.mxu2 %vm966_vm10, %v8125_v13  ;;  %v982_v52 = vsel %vm966_vm10, %v8125_v13, 0.0  ;;  %vm830_vm10 = vcmp.lt.f32.partialorder %v15967_v61, 0.0  ;;  %vm15972_vm0 = vcmp.lt.f32.partialorder %v7664_v9, 0.0 }
 0x10f   : > { %6847 = vmatpush.msk.msra.mxu1 %vm15201_vm1, %v8086_v42  ;;  %6835 = vmatpush.xpose.msk.msrb.mxu3 %vm967_vm6, %v8130_v11  ;;  %vm15962_vm1 = vcmp.lt.f32.partialorder %v7638_v25, 0.0  ;;  %v8305_v62 = vpop.eup %7197  ;;  %v1157_v24 = vadd.f32 %v1156_v57, %v982_v52  ;;  %vm15211_vm6 = vcmp.lt.f32.partialorder %v15970_v2, 0.0 }
 0x110   : > { %6838 = vmatpush.msk.msra.mxu0 %vm15202_vm2, %v7702_v49  ;;  %vm15212_vm2 = vcmp.lt.f32.partialorder %v15963_v22, 0.0  ;;  %v8314_v0 = vpop.eup %7199 }
 0x111   : > { %6848 = vmatpush.msk.msra.mxu1 %vm15203_vm3, %v7709_v60  ;;  %vm15209_vm3 = vcmp.gt.f32.partialorder %v15963_v22, 0.0  ;;  %1102 = vmatmul.f32.vlgmr.msrb.gmra.mxu2 %v7881_v8  ;;  %v8329_v44 = vsel %vm15212_vm2, %v8279_v43, 0.0  ;;  %v8346_v33 = vpop.eup %7201  ;;  %v1158_v1 = vadd.f32 %v1157_v24, %v983_v19  ;;  %v15973_v24 = vld [vmem:[#allocation5_spill] sm:$0xff] }
 0x112   : > { %6856 = vmatpush.msk.msra.mxu2 %vm15962_vm1, %v7848_v59  ;;  %6839 = vmatpush.msk.msra.mxu0 %vm15205_vm5, %v7686_v32  ;;  %vm15965_vm1 = vcmp.lt.f32.partialorder %v7640_v26, 0.0  ;;  %v8334_v21 = vsel %vm15209_vm3, %v8279_v43, 0.0  ;;  %v8354_v52 = vpop.eup %7203  ;;  %vm15971_vm5 = vcmp.lt.f32.partialorder %v7648_v35, 0.0  ;;  %vm827_vm13 = vcmp.lt.f32.partialorder %v15973_v24, 0.0 }
 0x113   : > { %6849 = vmatpush.msk.msra.mxu1 %vm15204_vm7, %v7694_v38  ;;  %6866 = vmatpush.msk.msra.mxu3 %vm15965_vm1, %v7887_v18  ;;  %vm15210_vm7 = vcmp.lt.f32.partialorder %v15968_v14, 0.0  ;;  %15969 = vst [vmem:[#allocation2_spill] sm:$0xff] %v8334_v21  ;;  %vm794_vm1 = vcmp.gt.f32.partialorder %v15970_v2, 0.0  ;;  %v1012_v57 = vsel %vm15971_vm5, %v8054_v36, 0.0  ;;  %v1013_v21 = vsel %vm15972_vm0, %v8067_v31, 0.0 }
 0x114   : > { %6840 = vmatpush.msk.msra.mxu0 %vm800_vm15, %v7768_v6  ;;  %6857 = vmatpush.msk.msra.mxu2 %vm830_vm10, %v8305_v62  ;;  %vm795_vm5 = vcmp.gt.f32.partialorder %v15973_v24, 0.0  ;;  %vm15974_vm0 = vcmp.lt.f32.partialorder %v7689_v34, 0.0  ;;  %vm15975_vm3 = vcmp.gt.f32.partialorder %v7585_v45, 0.0  ;;  %v8385_v9 = vsel %vm15211_vm6, %v8346_v33, 0.0 }
 0x115   : > { %6850 = vmatpush.msk.msra.mxu1 %vm801_vm9, %v7777_v54  ;;  %6867 = vmatpush.msk.msra.mxu3 %vm15210_vm7, %v8314_v0  ;;  %v1014_v35 = vsel %vm15974_vm0, %v8125_v13, 0.0  ;;  %vm15976_vm7 = vcmp.gt.f32.partialorder %v7587_v46, 0.0  ;;  %v8390_v31 = vsel %vm794_vm1, %v8346_v33, 0.0  ;;  %v1176_v34 = vadd.f32 %v1013_v21, %v1012_v57  ;;  %v8428_v21 = vpop.f32.mrf.mxu0  ;;  %v15983_v57 = vld [vmem:[#allocation30_spill] sm:$0xff] }
 0x116   : > { %1896 = vrot.lane.b32.xlu1 %v8310_v51, %s7362_s23  ;;  %1763 = vrot.lane.b32.xlu0 %v8310_v51, %s7363_s26  ;;  %15977 = vst [vmem:[#allocation3_spill] sm:$0xff] %v8390_v31  ;;  %vm802_vm0 = vcmp.gt.f32.partialorder %v7638_v25, 0.0  ;;  %v8409_v13 = vsel %vm827_vm13, %v8354_v52, 0.0  ;;  %v8414_v36 = vsel %vm795_vm5, %v8354_v52, 0.0  ;;  %v987_v31 = vsel %vm971_vm4, %v8109_v16, 0.0 }
 0x117   : > { %1131 = vmatmul.f32.vlgmr.msrb.gmra.mxu3 %v7883_v23  ;;  %6841 = vmatpush.msk.msra.mxu0 %vm796_vm8, %v15946_v29  ;;  %15980 = vst [vmem:[#allocation8_spill] sm:$0xff] %v8414_v36  ;;  %v1177_v19 = vadd.f32 %v1176_v34, %v1014_v35  ;;  %v15984_v35 = vld [vmem:[#allocation24_spill] sm:$0xff]  ;;  %v15986_v34 = vld [vmem:[#allocation17_spill] sm:$0xff]  ;;  %vm15989_vm4 = vcmp.gt.f32.partialorder %v7587_v46, 0.0 }
 0x118   : > { %6851 = vmatpush.msk.msra.mxu1 %vm797_vm11, %v8086_v42  ;;  %6858 = vmatpush.msk.msra.mxu2 %vm15211_vm6, %v8346_v33  ;;  %vm803_vm6 = vcmp.gt.f32.partialorder %v7640_v26, 0.0  ;;  %15981 = vst [vmem:[#allocation9_spill] sm:$0xff] %v8428_v21 }
 0x119   : > { %6868 = vmatpush.msk.msra.mxu3 %vm827_vm13, %v8354_v52  ;;  %1159 = vadd.xlane.f32.xlu2 %v1158_v1 }
 0x11a   : > { %6842 = vmatpush.msk.msra.mxu0 %vm15975_vm3, %v7702_v49  ;;  %6852 = vmatpush.msk.msra.mxu1 %vm15976_vm7, %v7709_v60  ;;  %vm15978_vm7 = vcmp.gt.f32.partialorder %v7571_v39, 0.0  ;;  %vm15979_vm3 = vcmp.gt.f32.partialorder %v7573_v40, 0.0 }
 0x11b   : > { %6859 = vmatpush.msk.msra.mxu2 %vm822_vm12, %v8266_v58  ;;  %6869 = vmatpush.msk.msra.mxu3 %vm15212_vm2, %v8279_v43  ;;  %vm15982_vm2 = vcmp.lt.f32.partialorder %v15942_v17, 0.0  ;;  %v1162_v17 = vadd.f32 %v15984_v35, %v15983_v57 }
 0x11c   : > { %6843 = vmatpush.msk.msra.mxu0 %vm15978_vm7, %v7686_v32  ;;  %6853 = vmatpush.msk.msra.mxu1 %vm15979_vm3, %v7694_v38  ;;  %vm798_vm7 = vcmp.gt.f32.partialorder %v15967_v61, 0.0  ;;  %vm799_vm3 = vcmp.gt.f32.partialorder %v15968_v14, 0.0  ;;  %v1015_v1 = vsel %vm15982_vm2, %v8130_v11, 0.0  ;;  %v15985_v11 = vld [vmem:[#allocation18_spill] sm:$0xff]  ;;  %vm15987_vm2 = vcmp.lt.f32.partialorder %v7720_v12, 0.0 }
 0x11d   : > { %6860 = vmatpush.msk.msra.mxu2 %vm802_vm0, %v7848_v59  ;;  %6870 = vmatpush.msk.msra.mxu3 %vm803_vm6, %v7887_v18  ;;  %v1182_v30 = vadd.f32 %v15986_v34, %v15985_v11  ;;  %v1178_v36 = vadd.f32 %v1177_v19, %v1015_v1  ;;  %v1019_v10 = vsel %vm15987_vm2, %v8109_v16, 0.0  ;;  %v8467_v57 = vadd.f32 %v1162_v17, %v987_v31  ;;  %v15997_v31 = vld [vmem:[#allocation22_spill] sm:$0xff]  ;;  %v15998_v1 = vld [vmem:[#allocation23_spill] sm:$0xff]  ;;  %v15999_v17 = vld [vmem:[#allocation21_spill] sm:$0xff] }
 0x11e   : > { %6876 = vmatpush.msk.msrb.mxu0 %vm800_vm15, %v7768_v6  ;;  %6886 = vmatpush.msk.msrb.mxu1 %vm801_vm9, %v7777_v54  ;;  %v8474_v19 = vsel %vm830_vm10, %v8305_v62, 0.0  ;;  %v8479_v12 = vsel %vm798_vm7, %v8305_v62, 0.0  ;;  %vm15991_vm9 = vcmp.gt.f32.partialorder %v15963_v22, 0.0  ;;  %vm15992_vm15 = vcmp.gt.f32.partialorder %v7571_v39, 0.0 }
 0x11f   : > { %6861 = vmatpush.msk.msra.mxu2 %vm798_vm7, %v8305_v62  ;;  %6871 = vmatpush.msk.msra.mxu3 %vm799_vm3, %v8314_v0  ;;  %v8469_v35 = vadd.f32 %v1182_v30, %v1019_v10  ;;  %v8498_v10 = vsel %vm799_vm3, %v8314_v0, 0.0  ;;  %vm15993_vm2 = vcmp.gt.f32.partialorder %v7573_v40, 0.0  ;;  %v15996_v30 = vld [vmem:[#allocation25_spill] sm:$0xff]  ;;  %v1187_v11 = vadd.f32 %v15999_v17, %v15998_v1 }
 0x120   : > { %6877 = vmatpush.msk.msrb.mxu0 %vm796_vm8, %v15946_v29  ;;  %6887 = vmatpush.msk.msrb.mxu1 %vm797_vm11, %v8086_v42  ;;  %vm15988_vm8 = vcmp.gt.f32.partialorder %v7585_v45, 0.0  ;;  %vm15990_vm11 = vcmp.lt.f32.partialorder %v15968_v14, 0.0 }
 0x121   : > { %2020 = vrot.lane.b32.xlu0 %v8203_v48, %s7365_s9  ;;  %1741 = vrot.lane.b32.xlu1 %v8428_v21, %s7363_s26  ;;  %v8493_v16 = vsel %vm15990_vm11, %v8314_v0, 0.0  ;;  %vm16001_vm11 = vcmp.lt.f32.partialorder %v15944_v53, 0.0  ;;  %v8553_v53 = vsel %vm802_vm0, %v7848_v59, 0.0 }
 0x122   : > { %6862 = vmatpush.msk.msra.mxu2 %vm794_vm1, %v8346_v33  ;;  %6872 = vmatpush.msk.msra.mxu3 %vm795_vm5, %v8354_v52 }
 0x123   : > { %1179 = vadd.xlane.f32.xlu2 %v1178_v36  ;;  %6878 = vmatpush.msk.msrb.mxu0 %vm15988_vm8, %v7702_v49  ;;  %vm15994_vm8 = vcmp.lt.f32.partialorder %v7621_v3, 0.0  ;;  %v1167_v36 = vadd.f32 %v15997_v31, %v15996_v30  ;;  %v8531_v3 = vpop.f32.mrf.mxu1 }
 0x124   : > { %6888 = vmatpush.msk.msrb.mxu1 %vm15989_vm4, %v7709_v60  ;;  %6863 = vmatpush.msk.msra.mxu2 %vm790_vm14, %v8266_v58  ;;  %vm15995_vm4 = vcmp.lt.f32.partialorder %v7623_v4, 0.0  ;;  %16000 = vst [vmem:[#allocation4_spill] sm:$0xff] %v8531_v3 }
 0x125   : > { %6873 = vmatpush.msk.msra.mxu3 %vm15991_vm9, %v8279_v43  ;;  %6879 = vmatpush.msk.msrb.mxu0 %vm15992_vm15, %v7686_v32  ;;  %vm16002_vm9 = vcmp.gt.f32.partialorder %v7762_v47, 0.0  ;;  %vm16004_vm15 = vcmp.lt.f32.partialorder %v15945_v20, 0.0 }
 0x126   : > { %6889 = vmatpush.msk.msrb.mxu1 %vm15993_vm2, %v7694_v38  ;;  %6896 = vmatpush.msk.msrb.mxu2 %vm802_vm0, %v7848_v59  ;;  %v991_v4 = vsel %vm16002_vm9, %v8046_v5, 0.0  ;;  %vm16006_vm0 = vcmp.lt.f32.partialorder %v7587_v46, 0.0  ;;  %vm16010_vm2 = vcmp.lt.f32.partialorder %v7638_v25, 0.0  ;;  %v16013_v46 = vld [vmem:[#allocation27_spill] sm:$0xff]  ;;  %vm16020_vm9 = vcmp.lt.f32.partialorder %v15963_v22, 0.0 }
 0x127   : > { %6906 = vmatpush.msk.msrb.mxu3 %vm803_vm6, %v7887_v18  ;;  %6880 = vmatpush.msk.msrb.mxu0 %vm15994_vm8, %v7768_v6  ;;  %vm16011_vm8 = vcmp.lt.f32.partialorder %v7640_v26, 0.0 }
 0x128   : > { %6890 = vmatpush.msk.msrb.mxu1 %vm15995_vm4, %v7777_v54  ;;  %6897 = vmatpush.msk.msrb.mxu2 %vm798_vm7, %v8305_v62  ;;  %vm16003_vm7 = vcmp.lt.f32.partialorder %v7762_v47, 0.0  ;;  %v1168_v54 = vadd.f32 %v1167_v36, %v991_v4  ;;  %v8568_v47 = vsel %vm803_vm6, %v7887_v18, 0.0  ;;  %vm16009_vm6 = vcmp.lt.f32.partialorder %v7573_v40, 0.0 }
 0x129   : > { %6907 = vmatpush.msk.msrb.mxu3 %vm799_vm3, %v8314_v0  ;;  %6881 = vmatpush.msk.msrb.mxu0 %vm16001_vm11, %v15946_v29  ;;  %v1023_v6 = vsel %vm16003_vm7, %v8046_v5, 0.0  ;;  %vm16008_vm3 = vcmp.lt.f32.partialorder %v7571_v39, 0.0  ;;  %v16015_v39 = vld [vmem:[#allocation26_spill] sm:$0xff]  ;;  %vm16017_vm4 = vcmp.lt.f32.partialorder %v7801_v27, 0.0  ;;  %vm16018_vm11 = vcmp.lt.f32.partialorder %v15968_v14, 0.0  ;;  %v8653_v5 = vpop.permute.xlu0 %1795 }
 0x12a   : > { %6891 = vmatpush.msk.msrb.mxu1 %vm16004_vm15, %v8086_v42  ;;  %6898 = vmatpush.msk.msrb.mxu2 %vm794_vm1, %v8346_v33  ;;  %v8548_v34 = vadd.f32 %v1187_v11, %v1023_v6  ;;  %vm16005_vm1 = vcmp.lt.f32.partialorder %v7585_v45, 0.0  ;;  %v16012_v45 = vld [vmem:[#allocation32_spill] sm:$0xff]  ;;  %v1027_v25 = vsel %vm16017_vm4, %v8000_v50, 0.0  ;;  %v8648_v42 = vpop.f32.mrf.mxu0  ;;  %16026 = vst [vmem:[#allocation25_spill] sm:$0xff] %v8653_v5 }
 0x12b   : > { %6908 = vmatpush.msk.msrb.mxu3 %vm795_vm5, %v8354_v52  ;;  %1874 = vrot.lane.b32.xlu0 %v8428_v21, %s7362_s23  ;;  %vm16007_vm5 = vcmp.gt.f32.partialorder %v15963_v22, 0.0  ;;  %16024 = vst [vmem:[#allocation18_spill] sm:$0xff] %v8648_v42 }
 0x12c   : > { %1749 = vrot.lane.b32.xlu1 %v8531_v3, %s7363_s26  ;;  %6882 = vmatpush.msk.msrb.mxu0 %vm16005_vm1, %v7702_v49  ;;  %v1172_v49 = vadd.f32 %v16013_v46, %v16012_v45 }
 0x12d   : > { %6892 = vmatpush.msk.msrb.mxu1 %vm16006_vm0, %v7709_v60  ;;  %6899 = vmatpush.msk.msrb.mxu2 %vm790_vm14, %v8266_v58  ;;  %v16014_v60 = vld [vmem:[#allocation31_spill] sm:$0xff]  ;;  %vm16016_vm14 = vcmp.gt.f32.partialorder %v7801_v27, 0.0  ;;  %v8629_v27 = vpop.f32.mrf.mxu2 }
 0x12e   : > { %6909 = vmatpush.msk.msrb.mxu3 %vm16007_vm5, %v8279_v43  ;;  %6883 = vmatpush.msk.msrb.mxu0 %vm16008_vm3, %v7686_v32  ;;  %v1192_v32 = vadd.f32 %v16015_v39, %v16014_v60  ;;  %v995_v40 = vsel %vm16016_vm14, %v8000_v50, 0.0  ;;  %16021 = vst [vmem:[#allocation5_spill] sm:$0xff] %v8629_v27  ;;  %v8651_v50 = vpop.permute.xlu1 %1805 }
 0x12f   : > { %6893 = vmatpush.msk.msrb.mxu1 %vm16009_vm6, %v7694_v38  ;;  %6900 = vmatpush.msk.msrb.mxu2 %vm16010_vm2, %v7848_v59  ;;  %v1173_v26 = vadd.f32 %v1172_v49, %v995_v40  ;;  %v8631_v59 = vpop.f32.mrf.mxu3  ;;  %16025 = vst [vmem:[#allocation17_spill] sm:$0xff] %v8651_v50 }
 0x130   : > { %6910 = vmatpush.msk.msrb.mxu3 %vm16011_vm8, %v7887_v18  ;;  %1105 = vmatmul.f32.gmra.mxu2 %v8203_v48  ;;  %v8610_v38 = vadd.f32 %v1192_v32, %v1027_v25  ;;  %16022 = vst [vmem:[#allocation30_spill] sm:$0xff] %v8631_v59  ;;  %v8641_v18 = vpop.f32.mrf.mxu1 }
 0x131   : > { %6901 = vmatpush.msk.msrb.mxu2 %vm830_vm10, %v8305_v62  ;;  %1134 = vmatmul.f32.gmra.mxu3 %v8310_v51  ;;  %vm16019_vm10 = vcmp.lt.f32.partialorder %v15970_v2, 0.0  ;;  %16023 = vst [vmem:[#allocation24_spill] sm:$0xff] %v8641_v18 }
 0x132   : > { %6911 = vmatpush.msk.msrb.mxu3 %vm16018_vm11, %v8314_v0  ;;  %1076 = vmatmul.f32.gmra.mxu1 %v8142_v41 }
 0x133   : > { %6902 = vmatpush.msk.msrb.mxu2 %vm16019_vm10, %v8346_v33  ;;  %2014 = vrot.lane.b32.xlu0 %v8531_v3, %s7365_s9 }
 0x134   : > { %6912 = vmatpush.msk.msrb.mxu3 %vm827_vm13, %v8354_v52  ;;  %2006 = vrot.lane.b32.xlu1 %v8428_v21, %s7365_s9  ;;  %vm15759_vm13 = vcmask 523264  }
 0x135   : > { %6903 = vmatpush.msk.msrb.mxu2 %vm822_vm12, %v8266_v58  ;;  %1047 = vmatmul.f32.gmra.mxu0 %v8039_v15  ;;  %v8661_v29 = vpop.f32.mrf.mxu2  ;;  %v8664_v58 = vpop.permute.xlu0 %1810 }
 0x136   : > { %6913 = vmatpush.msk.msrb.mxu3 %vm16020_vm9, %v8279_v43  ;;  %v8659_v20 = vpop.permute.xlu1 %1927  ;;  %16028 = vst [vmem:[#allocation23_spill] sm:$0xff] %v8661_v29 }
 0x137   : > { %16027 = vst [vmem:[#allocation22_spill] sm:$0xff] %v8659_v20  ;;  %v8668_v28 = vpop.f32.mrf.mxu3 }
 0x138   : > { %1108 = vmatmul.f32.gmra.mxu2 %v8629_v27  ;;  %16029 = vst [vmem:[#allocation21_spill] sm:$0xff] %v8664_v58 }
 0x139   : > { %1137 = vmatmul.f32.gmra.mxu3 %v8631_v59  ;;  %16030 = vst [vmem:[#allocation32_spill] sm:$0xff] %v8668_v28 }
 0x13a   : > { %1079 = vmatmul.f32.gmra.mxu1 %v8531_v3 }
 0x13b   : > { %1753 = vrot.lane.b32.xlu2 %v7881_v8, %s7363_s26 }
 0x13c   : > { %1890 = vrot.lane.b32.xlu1 %v8629_v27, %s7362_s23 }
 0x13d   : > { %1050 = vmatmul.f32.gmra.mxu0 %v8428_v21  ;;  %v8673_v22 = vpop.permute.xlu0 %1932 }
 0x13e   : > { %v8671_v43 = vpop.permute.xlu1 %1942  ;;  %16032 = vst [vmem:[#allocation31_spill] sm:$0xff] %v8673_v22 }
 0x13f   : > { %16031 = vst [vmem:[#allocation27_spill] sm:$0xff] %v8671_v43 }
 0x140   : > { %1111 = vmatmul.f32.gmra.mxu2 %v8661_v29 }
 0x141   : > { %1140 = vmatmul.f32.gmra.mxu3 %v8668_v28 }
 0x142   : > { %1082 = vmatmul.f32.gmra.mxu1 %v8641_v18 }
 0x143   : > { %1894 = vrot.lane.b32.xlu2 %v7883_v23, %s7362_s23 }
 0x144   : > { %2030 = vrot.lane.b32.xlu1 %v8631_v59, %s7365_s9  ;;  %v8679_v0 = vpop.f32.mrf.mxu1  ;;  %v8681_v14 = vpop.f32.mrf.mxu0 }
 0x145   : > { %1053 = vmatmul.f32.gmra.mxu0 %v8648_v42  ;;  %v8677_v61 = vpop.permute.xlu0 %2069  ;;  %16035 = vst [vmem:[#allocation46_spill] sm:$0xff] %v8679_v0 }
 0x146   : > { %v8675_v62 = vpop.permute.xlu1 %2064  ;;  %16034 = vst [vmem:[#allocation45_spill] sm:$0xff] %v8677_v61 }
 0x147   : > { %16033 = vst [vmem:[#allocation26_spill] sm:$0xff] %v8675_v62  ;;  %v16167_v62 = vld [vmem:[#allocation8_spill] sm:$0xff] }
 0x148   : > { %16036 = vst [vmem:[#allocation47_spill] sm:$0xff] %v8681_v14 }
 0x14b   : > { %1747 = vrot.lane.b32.xlu2 %v8142_v41, %s7363_s26  ;;  %v8683_v33 = vpop.f32.mrf.mxu2  ;;  %v8691_v24 = vpop.f32.mrf.mxu3 }
 0x14c   : > { %1884 = vrot.lane.b32.xlu1 %v8641_v18, %s7362_s23  ;;  %16037 = vst [vmem:[#allocation48_spill] sm:$0xff] %v8683_v33 }
 0x14d   : > { %v8687_v52 = vpop.permute.xlu0 %1745  ;;  %16040 = vst [vmem:[#allocation51_spill] sm:$0xff] %v8691_v24 }
 0x14e   : > { %v8685_v2 = vpop.permute.xlu1 %1878  ;;  %16039 = vst [vmem:[#allocation50_spill] sm:$0xff] %v8687_v52 }
 0x14f   : > { %16038 = vst [vmem:[#allocation49_spill] sm:$0xff] %v8685_v2 }
 0x152   : > { %v8693_v30 = vpop.f32.mrf.mxu1  ;;  %v8695_v31 = vpop.f32.mrf.mxu0 }
 0x153   : > { %2004 = vrot.lane.b32.xlu2 %v8039_v15, %s7365_s9  ;;  %16041 = vst [vmem:[#allocation52_spill] sm:$0xff] %v8693_v30  ;;  %v1144_v30 = vld [vmem:[%s15138_s4] sm:$0xff] }
 0x154   : > { %16042 = vst [vmem:[#allocation53_spill] sm:$0xff] %v8695_v31 }
 0x155   : > { %v8701_v17 = vpop.permute.xlu0 %2002 }
 0x156   : > { %v8699_v1 = vpop.permute.xlu1 %2134  ;;  %16045 = vst [vmem:[#allocation56_spill] sm:$0xff] %v8701_v17 }
 0x157   : > { %16044 = vst [vmem:[#allocation55_spill] sm:$0xff] %v8699_v1 }
 0x159   : > { %v8697_v36 = vpop.f32.mrf.mxu2  ;;  %v8706_v11 = vpop.f32.mrf.mxu3 }
 0x15a   : > { %16043 = vst [vmem:[#allocation54_spill] sm:$0xff] %v8697_v36  ;;  %v8708_v4 = vpop.f32.mrf.mxu1  ;;  %v8710_v6 = vpop.f32.mrf.mxu0 }
 0x15b   : > { %16046 = vst [vmem:[#allocation57_spill] sm:$0xff] %v8706_v11 }
 0x15c   : > { %16047 = vst [vmem:[#allocation58_spill] sm:$0xff] %v8708_v4 }
 0x15d   : > { %1169 = vadd.xlane.f32.xlu0 %v1168_v54  ;;  %16048 = vst [vmem:[#allocation59_spill] sm:$0xff] %v8710_v6  ;;  %v8718_v46 = vpop.permute.xlu0 %1886 }
 0x15e   : > { %v8716_v45 = vpop.permute.xlu1 %1761  ;;  %16051 = vst [vmem:[#allocation62_spill] sm:$0xff] %v8718_v46 }
 0x15f   : > { %16050 = vst [vmem:[#allocation61_spill] sm:$0xff] %v8716_v45  ;;  %v16157_v45 = vld [vmem:[#allocation38_spill] sm:$0xff] }
 0x161   : > { %v8714_v54 = vpop.f32.mrf.mxu2  ;;  %v8721_v49 = vpop.f32.mrf.mxu3 }
 0x162   : > { %16049 = vst [vmem:[#allocation60_spill] sm:$0xff] %v8714_v54  ;;  %v8725_v60 = vpop.f32.mrf.mxu0 }
 0x163   : > { %16052 = vst [vmem:[#allocation63_spill] sm:$0xff] %v8721_v49 }
 0x164   : > { %16054 = vst [vmem:[#allocation65_spill] sm:$0xff] %v8725_v60 }
 0x165   : > { %v8733_v40 = vpop.permute.xlu0 %2026 }
 0x166   : > { %v8731_v32 = vpop.permute.xlu1 %2018  ;;  %16057 = vst [vmem:[#allocation68_spill] sm:$0xff] %v8733_v40 }
 0x167   : > { %16056 = vst [vmem:[#allocation67_spill] sm:$0xff] %v8731_v32 }
 0x169   : > { %v8729_v39 = vpop.f32.mrf.mxu2  ;;  %v8737_v25 = vpop.f32.mrf.mxu3 }
 0x16a   : > { %16055 = vst [vmem:[#allocation66_spill] sm:$0xff] %v8729_v39 }
 0x16b   : > { %16058 = vst [vmem:[#allocation69_spill] sm:$0xff] %v8737_v25 }
 0x16d   : > { %v8746_v4 = vpop.permute.xlu0 %1739 }
 0x16e   : > { %v8744_v31 = vpop.permute.xlu1 %1872  ;;  %16060 = vst [vmem:[#allocation71_spill] sm:$0xff] %v8746_v4 }
 0x16f   : > { %16059 = vst [vmem:[#allocation70_spill] sm:$0xff] %v8744_v31 }
 0x171   : > { %1757 = vrot.lane.b32.xlu0 %v8629_v27, %s7363_s26 }
 0x176   : > { %1174 = vadd.xlane.f32.xlu1 %v1173_v26 }
 0x179   : > { %1898 = vrot.lane.b32.xlu0 %v8631_v59, %s7362_s23 }
 0x17c   : > { %1164 = vadd.xlane.f32.xlu2 %v8467_v57  ;;  %v8723_v57 = vpop.f32.mrf.mxu1 }
 0x17d   : > { %16053 = vst [vmem:[#allocation64_spill] sm:$0xff] %v8723_v57  ;;  %v1148_v57 = vmul.f32 0.0025, %v1144_v30 }
 0x181   : > { %1751 = vrot.lane.b32.xlu0 %v8641_v18, %s7363_s26 }
 0x184   : > { %1184 = vadd.xlane.f32.xlu2 %v8469_v35 }
 0x188   : > { %v1045_v26 = vpop.f32.mrf.mxu0 }
 0x189   : > { %2008 = vrot.lane.b32.xlu0 %v8648_v42, %s7365_s9  ;;  %v1074_v35 = vpop.f32.mrf.mxu1 }
 0x18a   : > { %v1075_v0 = vadd.f32 %v1074_v35, %v1045_v26 }
 0x18f   : > { %1767 = vrot.lane.b32.xlu1 %v8668_v28, %s7363_s26 }
 0x191   : > { %1892 = vrot.lane.b32.xlu0 %v8661_v29, %s7362_s23 }
 0x194   : > { %v1103_v14 = vpop.f32.mrf.mxu2 }
 0x195   : > { %v1104_v6 = vadd.f32 %v1103_v14, %v1075_v0  ;;  %v8759_v0 = vpop.permute.xlu1 %2012  ;;  %v8761_v14 = vpop.permute.xlu0 %1880 }
 0x196   : > { %16061 = vst [vmem:[#allocation72_spill] sm:$0xff] %v8759_v0 }
 0x197   : > { %2024 = vrot.lane.b32.xlu1 %v8661_v29, %s7365_s9  ;;  %16062 = vst [vmem:[#allocation73_spill] sm:$0xff] %v8761_v14 }
 0x199   : > { %2032 = vrot.lane.b32.xlu0 %v8668_v28, %s7365_s9 }
 0x19a   : > { %v1132_v60 = vpop.f32.mrf.mxu3 }
 0x19b   : > { %v1133_v24 = vadd.f32 %v1132_v60, %v1104_v6  ;;  %v1145_v60 = vld [vmem:[%s15138_s4 + $0x8] sm:$0xff] }
 0x19c   : > { %1888 = vrot.lane.b32.xlu2 %v8203_v48, %s7362_s23  ;;  %v1149_v54 = vmul.f32 0.0025, %v1145_v60 }
 0x19d   : > { %v1152_v35 = vmul.f32 %v1148_v57, %v1133_v24  ;;  %v8772_v24 = vpop.permute.xlu1 %1755  ;;  %v8774_v30 = vpop.permute.xlu0 %2136 }
 0x19e   : > { %16063 = vst [vmem:[#allocation74_spill] sm:$0xff] %v8772_v24 }
 0x19f   : > { %2140 = vrot.lane.b32.xlu1 %v8648_v42, %s7364_s30  ;;  %6844 = vmatmul.msk.f32.vlgmr.msra.gmra.mxu0 %vm15759_vm13, %v1152_v35  ;;  %16064 = vst [vmem:[#allocation75_spill] sm:$0xff] %v8774_v30 }
 0x1a0   : > { %6854 = vmatmul.msk.f32.vlgmr.msra.gmra.mxu1 %vm15759_vm13, %v1152_v35  ;;  %6864 = vmatmul.msk.f32.vlgmr.msra.gmra.mxu2 %vm15759_vm13, %v1152_v35 }
 0x1a1   : > { %2142 = vrot.lane.b32.xlu0 %v7794_v37, %s7364_s30  ;;  %6874 = vmatmul.msk.f32.vlgmr.msra.gmra.mxu3 %vm15759_vm13, %v1152_v35 }
 0x1a4   : > { %2028 = vrot.lane.b32.xlu2 %v8310_v51, %s7365_s9 }
 0x1a5   : > { %v8787_v11 = vpop.permute.xlu1 %1896  ;;  %v8789_v36 = vpop.permute.xlu0 %1763 }
 0x1a6   : > { %16065 = vst [vmem:[#allocation76_spill] sm:$0xff] %v8787_v11 }
 0x1a7   : > { %2146 = vrot.lane.b32.xlu1 %v8531_v3, %s7364_s30  ;;  %16066 = vst [vmem:[#allocation77_spill] sm:$0xff] %v8789_v36 }
 0x1a9   : > { %2148 = vrot.lane.b32.xlu0 %v8641_v18, %s7364_s30 }
 0x1ac   : > { %1882 = vrot.lane.b32.xlu2 %v8531_v3, %s7362_s23 }
 0x1ad   : > { %v8804_v60 = vpop.permute.xlu1 %1741 }
 0x1ae   : > { %16068 = vst [vmem:[#allocation79_spill] sm:$0xff] %v8804_v60 }
 0x1af   : > { %2152 = vrot.lane.b32.xlu1 %v8203_v48, %s7364_s30  ;;  %v1077_v6 = vpop.f32.mrf.mxu1 }
 0x1b1   : > { %2154 = vrot.lane.b32.xlu0 %v8629_v27, %s7364_s30 }
 0x1b2   : > { %v1048_v57 = vpop.f32.mrf.mxu0 }
 0x1b3   : > { %v1078_v26 = vadd.f32 %v1077_v6, %v1048_v57  ;;  %v1106_v35 = vpop.f32.mrf.mxu2  ;;  %v2183_v6 = vld [vmem:[%s15140_s6 + $0x1a0] sm:$0xff]  ;;  %v8802_v57 = vpop.permute.xlu0 %2020 }
 0x1b4   : > { %2138 = vrot.lane.b32.xlu2 %v8428_v21, %s7364_s30  ;;  %v1135_v33 = vpop.f32.mrf.mxu3  ;;  %16067 = vst [vmem:[#allocation78_spill] sm:$0xff] %v8802_v57 }
 0x1b5   : > { %v1107_v49 = vadd.f32 %v1106_v35, %v1078_v26 }
 0x1b7   : > { %2158 = vrot.lane.b32.xlu1 %v7883_v23, %s7364_s30  ;;  %v1136_v25 = vadd.f32 %v1135_v33, %v1107_v49  ;;  %v8808_v33 = vpop.permute.xlu2 %1800  ;;  %v2186_v49 = vld [vmem:[%s15140_s6 + $0x1b8] sm:$0xff]  ;;  %v1080_v17 = vpop.f32.mrf.mxu1 }
 0x1b8   : > { %16069 = vst [vmem:[#allocation80_spill] sm:$0xff] %v8808_v33 }
 0x1b9   : > { %2160 = vrot.lane.b32.xlu0 %v8310_v51, %s7364_s30  ;;  %v1153_v39 = vmul.f32 %v1149_v54, %v1136_v25  ;;  %v2185_v54 = vld [vmem:[%s15140_s6 + $0x1b0] sm:$0xff]  ;;  %v8818_v25 = vpop.permute.xlu1 %1749 }
 0x1ba   : > { %16071 = vst [vmem:[#allocation82_spill] sm:$0xff] %v8818_v25 }
 0x1bb   : > { %6845 = vmatmul.msk.f32.gmra.mxu0 %vm15759_vm13, %v1153_v39  ;;  %6855 = vmatmul.msk.f32.gmra.mxu1 %vm15759_vm13, %v1153_v39  ;;  %v1109_v52 = vpop.f32.mrf.mxu2 }
 0x1bc   : > { %6865 = vmatmul.msk.f32.gmra.mxu2 %vm15759_vm13, %v1153_v39  ;;  %6875 = vmatmul.msk.f32.gmra.mxu3 %vm15759_vm13, %v1153_v39  ;;  %v8816_v39 = vpop.permute.xlu0 %1874  ;;  %v1138_v30 = vpop.f32.mrf.mxu3 }
 0x1bd   : > { %16070 = vst [vmem:[#allocation81_spill] sm:$0xff] %v8816_v39  ;;  %v2315_v39 = vld [vmem:[%s15140_s6 + $0x1c0] sm:$0xff] }
 0x1bf   : > { %2164 = vrot.lane.b32.xlu1 %v8668_v28, %s7364_s30  ;;  %v8820_v26 = vpop.permute.xlu2 %1937  ;;  %v1083_v50 = vpop.f32.mrf.mxu1 }
 0x1c0   : > { %16072 = vst [vmem:[#allocation83_spill] sm:$0xff] %v8820_v26 }
 0x1c1   : > { %2191 = vperm.xlu0 %7074, %v2183_v6   ;;  %v8828_v6 = vpop.permute.xlu1 %2006 }
 0x1c2   : > { %16074 = vst [vmem:[#allocation85_spill] sm:$0xff] %v8828_v6 }
 0x1c4   : > { %v8826_v35 = vpop.permute.xlu0 %2014 }
 0x1c5   : > { %16073 = vst [vmem:[#allocation84_spill] sm:$0xff] %v8826_v35 }
 0x1c7   : > { %2201 = vperm.xlu1 %7075, %v2185_v54   ;;  %v8830_v58 = vpop.permute.xlu2 %2059 }
 0x1c8   : > { %16075 = vst [vmem:[#allocation86_spill] sm:$0xff] %v8830_v58 }
 0x1c9   : > { %2206 = vperm.xlu0 %7074, %v2186_v49   ;;  %v8838_v49 = vpop.permute.xlu1 %1890 }
 0x1ca   : > { %16076 = vst [vmem:[#allocation87_spill] sm:$0xff] %v8838_v49  ;;  %v2581_v49 = vld [vmem:[%s15140_s6 + $0x210] sm:$0xff] }
 0x1cf   : > { %2268 = vrot.lane.b32.xlu1 %v8039_v15, %s7366_s22  ;;  %v8841_v43 = vpop.permute.xlu2 %2074 }
 0x1d0   : > { %v8836_v54 = vpop.xlane.xlu0 %1169  ;;  %16077 = vst [vmem:[#allocation88_spill] sm:$0xff] %v8841_v43 }
 0x1d1   : > { %2270 = vrot.lane.b32.xlu0 %v8428_v21, %s7366_s22  ;;  %v8851_v35 = vpop.permute.xlu1 %2030 }
 0x1d2   : > { %16080 = vst [vmem:[#allocation91_spill] sm:$0xff] %v8851_v35 }
 0x1d7   : > { %2274 = vrot.lane.b32.xlu1 %v7794_v37, %s7366_s22  ;;  %v8849_v6 = vpop.permute.xlu2 %1737 }
 0x1d8   : > { %16079 = vst [vmem:[#allocation90_spill] sm:$0xff] %v8849_v6  ;;  %v1051_v6 = vpop.f32.mrf.mxu0 }
 0x1d9   : > { %2276 = vrot.lane.b32.xlu0 %v8142_v41, %s7366_s22  ;;  %v8859_v43 = vpop.permute.xlu1 %1884  ;;  %v1081_v2 = vadd.f32 %v1080_v17, %v1051_v6  ;;  %v1147_v17 = vld [vmem:[%s15138_s4 + $0x18] sm:$0xff] }
 0x1da   : > { %16082 = vst [vmem:[#allocation93_spill] sm:$0xff] %v8859_v43  ;;  %v2316_v43 = vld [vmem:[%s15140_s6 + $0x1c8] sm:$0xff] }
 0x1db   : > { %v1110_v14 = vadd.f32 %v1109_v52, %v1081_v2  ;;  %v1112_v52 = vpop.f32.mrf.mxu2 }
 0x1dd   : > { %1189 = vadd.xlane.f32.xlu2 %v8548_v34  ;;  %v1139_v61 = vadd.f32 %v1138_v30, %v1110_v14  ;;  %v1151_v30 = vmul.f32 0.0025, %v1147_v17 }
 0x1df   : > { %2280 = vrot.lane.b32.xlu1 %v8641_v18, %s7366_s22  ;;  %v8863_v60 = vpop.permute.xlu2 %1870 }
 0x1e0   : > { %16083 = vst [vmem:[#allocation94_spill] sm:$0xff] %v8863_v60  ;;  %v1146_v60 = vld [vmem:[%s15138_s4 + $0x10] sm:$0xff] }
 0x1e1   : > { %2282 = vrot.lane.b32.xlu0 %v7881_v8, %s7366_s22  ;;  %v1150_v4 = vmul.f32 0.0025, %v1146_v60  ;;  %v1141_v60 = vpop.f32.mrf.mxu3 }
 0x1e3   : > { %v8847_v1 = vpop.permute.xlu0 %1757  ;;  %v1154_v26 = vmul.f32 %v1150_v4, %v1139_v61 }
 0x1e4   : > { %16078 = vst [vmem:[#allocation89_spill] sm:$0xff] %v8847_v1 }
 0x1e5   : > { %6884 = vmatmul.msk.f32.vlgmr.msrb.gmra.mxu0 %vm15759_vm13, %v1154_v26  ;;  %6894 = vmatmul.msk.f32.vlgmr.msrb.gmra.mxu1 %vm15759_vm13, %v1154_v26 }
 0x1e6   : > { %6904 = vmatmul.msk.f32.vlgmr.msrb.gmra.mxu2 %vm15759_vm13, %v1154_v26  ;;  %6914 = vmatmul.msk.f32.vlgmr.msrb.gmra.mxu3 %vm15759_vm13, %v1154_v26 }
 0x1e7   : > { %2286 = vrot.lane.b32.xlu1 %v8629_v27, %s7366_s22  ;;  %v8882_v0 = vpop.permute.xlu2 %2010 }
 0x1e8   : > { %16085 = vst [vmem:[#allocation96_spill] sm:$0xff] %v8882_v0 }
 0x1e9   : > { %2288 = vrot.lane.b32.xlu0 %v8661_v29, %s7366_s22 }
 0x1eb   : > { %v8857_v34 = vpop.permute.xlu0 %1898 }
 0x1ec   : > { %16081 = vst [vmem:[#allocation92_spill] sm:$0xff] %v8857_v34  ;;  %v2582_v34 = vld [vmem:[%s15140_s6 + $0x218] sm:$0xff] }
 0x1ef   : > { %2292 = vrot.lane.b32.xlu1 %v8310_v51, %s7366_s22  ;;  %v8901_v61 = vpop.xlane.xlu2 %1159 }
 0x1f1   : > { %2294 = vrot.lane.b32.xlu0 %v8631_v59, %s7366_s22 }
 0x1f3   : > { %v8867_v25 = vpop.permute.xlu0 %1751 }
 0x1f4   : > { %16084 = vst [vmem:[#allocation95_spill] sm:$0xff] %v8867_v25  ;;  %v8880_v25 = vpop.xlane.xlu1 %1174 }
 0x1f5   : > { %1765 = vrot.lane.b32.xlu2 %v8631_v59, %s7363_s26 }
 0x1f7   : > { %2323 = vperm.xlu1 %7075, %v2315_v39   ;;  %v2318_v39 = vld [vmem:[%s15140_s6 + $0x1d8] sm:$0xff]  ;;  %v8920_v17 = vpop.xlane.xlu2 %1179 }
 0x1f9   : > { %2328 = vperm.xlu0 %7074, %v2316_v43   ;;  %v1054_v43 = vpop.f32.mrf.mxu0 }
 0x1fa   : > { %v1084_v2 = vadd.f32 %v1083_v50, %v1054_v43 }
 0x1fb   : > { %v8884_v31 = vpop.permute.xlu0 %2008 }
 0x1fc   : > { %16086 = vst [vmem:[#allocation97_spill] sm:$0xff] %v8884_v31  ;;  %v1113_v14 = vadd.f32 %v1112_v52, %v1084_v2 }
 0x1fd   : > { %2022 = vrot.lane.b32.xlu2 %v8629_v27, %s7365_s9 }
 0x1fe   : > { %v1142_v50 = vadd.f32 %v1141_v60, %v1113_v14 }
 0x1ff   : > { %2338 = vperm.xlu1 %7075, %v2318_v39   ;;  %v8934_v14 = vpop.permute.xlu2 %1753 }
 0x200   : > { %v1155_v39 = vmul.f32 %v1151_v30, %v1142_v50  ;;  %16093 = vst [vmem:[#allocation104_spill] sm:$0xff] %v8934_v14 }
 0x201   : > { %v8894_v6 = vpop.permute.xlu1 %1767  ;;  %2398 = vrot.lane.b32.xlu0 %v15960_v7, %s7367_s18 }
 0x202   : > { %16087 = vst [vmem:[#allocation98_spill] sm:$0xff] %v8894_v6  ;;  %6885 = vmatmul.msk.f32.gmra.mxu0 %vm15759_vm13, %v1155_v39  ;;  %6895 = vmatmul.msk.f32.gmra.mxu1 %vm15759_vm13, %v1155_v39 }
 0x203   : > { %v8903_v4 = vpop.permute.xlu0 %1892  ;;  %6905 = vmatmul.msk.f32.gmra.mxu2 %vm15759_vm13, %v1155_v39  ;;  %6915 = vmatmul.msk.f32.gmra.mxu3 %vm15759_vm13, %v1155_v39 }
 0x204   : > { %16088 = vst [vmem:[#allocation99_spill] sm:$0xff] %v8903_v4 }
 0x205   : > { %1743 = vrot.lane.b32.xlu2 %v8648_v42, %s7363_s26 }
 0x207   : > { %2402 = vrot.lane.b32.xlu1 %v8428_v21, %s7367_s18  ;;  %v8946_v50 = vpop.permute.xlu2 %1894 }
 0x208   : > { %16096 = vst [vmem:[#allocation107_spill] sm:$0xff] %v8946_v50 }
 0x209   : > { %v8910_v43 = vpop.permute.xlu1 %2024  ;;  %2404 = vrot.lane.b32.xlu0 %v8648_v42, %s7367_s18 }
 0x20a   : > { %16089 = vst [vmem:[#allocation100_spill] sm:$0xff] %v8910_v43 }
 0x20b   : > { %v8917_v26 = vpop.permute.xlu0 %2032 }
 0x20c   : > { %16090 = vst [vmem:[#allocation101_spill] sm:$0xff] %v8917_v26 }
 0x20d   : > { %1876 = vrot.lane.b32.xlu2 %v8648_v42, %s7362_s23 }
 0x20f   : > { %2408 = vrot.lane.b32.xlu1 %v8142_v41, %s7367_s18  ;;  %v8960_v6 = vpop.permute.xlu2 %1747 }
 0x210   : > { %16100 = vst [vmem:[#allocation111_spill] sm:$0xff] %v8960_v6 }
 0x211   : > { %v8926_v2 = vpop.permute.xlu1 %2140  ;;  %2410 = vrot.lane.b32.xlu0 %v8531_v3, %s7367_s18 }
 0x212   : > { %16091 = vst [vmem:[#allocation102_spill] sm:$0xff] %v8926_v2 }
 0x213   : > { %v8930_v52 = vpop.permute.xlu0 %2142 }
 0x214   : > { %16092 = vst [vmem:[#allocation103_spill] sm:$0xff] %v8930_v52  ;;  %v2449_v52 = vld [vmem:[%s15140_s6 + $0x1f0] sm:$0xff] }
 0x215   : > { %2016 = vrot.lane.b32.xlu2 %v8641_v18, %s7365_s9 }
 0x217   : > { %2414 = vrot.lane.b32.xlu1 %v7881_v8, %s7367_s18 }
 0x219   : > { %v8938_v30 = vpop.permute.xlu1 %2146  ;;  %2416 = vrot.lane.b32.xlu0 %v8203_v48, %s7367_s18 }
 0x21a   : > { %16094 = vst [vmem:[#allocation105_spill] sm:$0xff] %v8938_v30  ;;  %v8974_v30 = vpop.permute.xlu2 %2004 }
 0x21b   : > { %v8942_v60 = vpop.permute.xlu0 %2148  ;;  %16104 = vst [vmem:[#allocation115_spill] sm:$0xff] %v8974_v30 }
 0x21c   : > { %16095 = vst [vmem:[#allocation106_spill] sm:$0xff] %v8942_v60  ;;  %v2448_v60 = vld [vmem:[%s15140_s6 + $0x1e8] sm:$0xff] }
 0x21f   : > { %2420 = vrot.lane.b32.xlu1 %v8661_v29, %s7367_s18 }
 0x221   : > { %v8948_v39 = vpop.permute.xlu1 %2152  ;;  %2422 = vrot.lane.b32.xlu0 %v7883_v23, %s7367_s18 }
 0x222   : > { %16097 = vst [vmem:[#allocation108_spill] sm:$0xff] %v8948_v39 }
 0x223   : > { %v8952_v43 = vpop.permute.xlu0 %2154 }
 0x224   : > { %16098 = vst [vmem:[#allocation109_spill] sm:$0xff] %v8952_v43  ;;  %v8984_v43 = vpop.xlane.xlu2 %1164 }
 0x227   : > { %2426 = vrot.lane.b32.xlu1 %v8631_v59, %s7367_s18 }
 0x229   : > { %v8956_v4 = vpop.permute.xlu1 %2158  ;;  %2428 = vrot.lane.b32.xlu0 %v8668_v28, %s7367_s18 }
 0x22a   : > { %16099 = vst [vmem:[#allocation110_spill] sm:$0xff] %v8956_v4  ;;  %v16149_v4 = vld [vmem:[#allocation35_spill] sm:$0xff] }
 0x22b   : > { %v8962_v2 = vpop.permute.xlu0 %2160 }
 0x22c   : > { %16101 = vst [vmem:[#allocation112_spill] sm:$0xff] %v8962_v2  ;;  %v9214_v2 = vmul.f32 0.0025, %v8836_v54 }
 0x22f   : > { %2460 = vperm.xlu1 %7075, %v2448_v60  }
 0x231   : > { %v8970_v26 = vpop.permute.xlu1 %2164  ;;  %2465 = vperm.xlu0 %7074, %v2449_v52  }
 0x232   : > { %16102 = vst [vmem:[#allocation113_spill] sm:$0xff] %v8970_v26  ;;  %v8995_v26 = vpop.xlane.xlu2 %1184 }
 0x233   : > { %v8972_v31 = vpop.permute.xlu0 %2191 }
 0x234   : > { %16103 = vst [vmem:[#allocation114_spill] sm:$0xff] %v8972_v31 }
 0x237   : > { %2530 = vrot.lane.b32.xlu1 %v15960_v7, %s7368_s27 }
 0x239   : > { %v8978_v0 = vpop.permute.xlu1 %2201  ;;  %2532 = vrot.lane.b32.xlu0 %v8039_v15, %s7368_s27 }
 0x23a   : > { %16105 = vst [vmem:[#allocation116_spill] sm:$0xff] %v8978_v0 }
 0x23b   : > { %v8982_v6 = vpop.permute.xlu0 %2206 }
 0x23c   : > { %16106 = vst [vmem:[#allocation117_spill] sm:$0xff] %v8982_v6 }
 0x23e   : > { %1194 = vadd.xlane.f32.xlu2 %v8610_v38 }
 0x23f   : > { %2536 = vrot.lane.b32.xlu1 %v8648_v42, %s7368_s27 }
 0x241   : > { %v8989_v52 = vpop.permute.xlu1 %2268  ;;  %2538 = vrot.lane.b32.xlu0 %v7794_v37, %s7368_s27 }
 0x242   : > { %16107 = vst [vmem:[#allocation118_spill] sm:$0xff] %v8989_v52  ;;  %v9007_v52 = vpop.permute.xlu2 %1888 }
 0x243   : > { %v8993_v60 = vpop.permute.xlu0 %2270  ;;  %16111 = vst [vmem:[#allocation122_spill] sm:$0xff] %v9007_v52 }
 0x244   : > { %16108 = vst [vmem:[#allocation119_spill] sm:$0xff] %v8993_v60 }
 0x247   : > { %2542 = vrot.lane.b32.xlu1 %v8531_v3, %s7368_s27 }
 0x249   : > { %v8999_v6 = vpop.permute.xlu1 %2274  ;;  %2544 = vrot.lane.b32.xlu0 %v8641_v18, %s7368_s27 }
 0x24a   : > { %16109 = vst [vmem:[#allocation120_spill] sm:$0xff] %v8999_v6 }
 0x24b   : > { %v9003_v38 = vpop.permute.xlu0 %2276 }
 0x24c   : > { %16110 = vst [vmem:[#allocation121_spill] sm:$0xff] %v9003_v38  ;;  %v9023_v38 = vpop.permute.xlu2 %2028 }
 0x24d   : > { %16115 = vst [vmem:[#allocation126_spill] sm:$0xff] %v9023_v38  ;;  %v9272_v38 = vld [vmem:[%s15138_s4] sm:$0xff] }
 0x24f   : > { %2548 = vrot.lane.b32.xlu1 %v8203_v48, %s7368_s27 }
 0x251   : > { %v9009_v30 = vpop.permute.xlu1 %2280  ;;  %2550 = vrot.lane.b32.xlu0 %v8629_v27, %s7368_s27 }
 0x252   : > { %16112 = vst [vmem:[#allocation123_spill] sm:$0xff] %v9009_v30  ;;  %v2579_v30 = vld [vmem:[%s15140_s6 + $0x200] sm:$0xff] }
 0x253   : > { %v9013_v60 = vpop.permute.xlu0 %2282 }
 0x254   : > { %16113 = vst [vmem:[#allocation124_spill] sm:$0xff] %v9013_v60 }
 0x256   : > { %1759 = vrot.lane.b32.xlu2 %v8661_v29, %s7363_s26 }
 0x257   : > { %2554 = vrot.lane.b32.xlu1 %v7883_v23, %s7368_s27 }
 0x259   : > { %v9019_v6 = vpop.permute.xlu1 %2286  ;;  %2556 = vrot.lane.b32.xlu0 %v8310_v51, %s7368_s27 }
 0x25a   : > { %16114 = vst [vmem:[#allocation125_spill] sm:$0xff] %v9019_v6 }
 0x25b   : > { %v9025_v0 = vpop.permute.xlu0 %2288 }
 0x25c   : > { %16116 = vst [vmem:[#allocation127_spill] sm:$0xff] %v9025_v0  ;;  %v9041_v0 = vpop.permute.xlu2 %1882 }
 0x25d   : > { %16119 = vst [vmem:[#allocation130_spill] sm:$0xff] %v9041_v0 }
 0x25e   : > { %1900 = vrot.lane.b32.xlu2 %v8668_v28, %s7362_s23  ;;  %s7380_s23 = smov 106  }
 0x25f   : > { %2560 = vrot.lane.b32.xlu1 %v8668_v28, %s7368_s27 }
 0x261   : > { %v9034_v35 = vpop.permute.xlu1 %2292  ;;  %2587 = vperm.xlu0 %7074, %v2579_v30  }
 0x262   : > { %16117 = vst [vmem:[#allocation128_spill] sm:$0xff] %v9034_v35 }
 0x263   : > { %v9036_v6 = vpop.permute.xlu0 %2294 }
 0x264   : > { %16118 = vst [vmem:[#allocation129_spill] sm:$0xff] %v9036_v6  ;;  %v9054_v6 = vpop.permute.xlu2 %2138 }
 0x265   : > { %16122 = vst [vmem:[#allocation133_spill] sm:$0xff] %v9054_v6 }
 0x266   : > { %2144 = vrot.lane.b32.xlu2 %v8142_v41, %s7364_s30 }
 0x267   : > { %2597 = vperm.xlu1 %7075, %v2581_v49  }
 0x269   : > { %v9048_v1 = vpop.permute.xlu1 %2323  ;;  %2602 = vperm.xlu0 %7074, %v2582_v34  }
 0x26a   : > { %16120 = vst [vmem:[#allocation131_spill] sm:$0xff] %v9048_v1 }
 0x26b   : > { %v9050_v30 = vpop.permute.xlu0 %2328 }
 0x26c   : > { %16121 = vst [vmem:[#allocation132_spill] sm:$0xff] %v9050_v30  ;;  %v1190_v34 = vpop.xlane.xlu2 %1189  ;;  %v16147_v30 = vld [vmem:[#allocation29_spill] sm:$0xff] }
 0x26e   : > { %2150 = vrot.lane.b32.xlu2 %v7881_v8, %s7364_s30 }
 0x26f   : > { %2664 = vrot.lane.b32.xlu1 %v8039_v15, %s7369_s13 }
 0x271   : > { %v9058_v0 = vpop.permute.xlu1 %2338  ;;  %2666 = vrot.lane.b32.xlu0 %v8428_v21, %s7369_s13 }
 0x272   : > { %16123 = vst [vmem:[#allocation134_spill] sm:$0xff] %v9058_v0 }
 0x273   : > { %v9062_v49 = vpop.permute.xlu0 %2398 }
 0x274   : > { %16124 = vst [vmem:[#allocation135_spill] sm:$0xff] %v9062_v49  ;;  %v9078_v0 = vpop.permute.xlu2 %1765 }
 0x275   : > { %16127 = vst [vmem:[#allocation138_spill] sm:$0xff] %v9078_v0 }
 0x276   : > { %2156 = vrot.lane.b32.xlu2 %v8661_v29, %s7364_s30 }
 0x277   : > { %2670 = vrot.lane.b32.xlu1 %v7794_v37, %s7369_s13 }
 0x279   : > { %v9068_v1 = vpop.permute.xlu1 %2402  ;;  %2672 = vrot.lane.b32.xlu0 %v8142_v41, %s7369_s13 }
 0x27a   : > { %16125 = vst [vmem:[#allocation136_spill] sm:$0xff] %v9068_v1  ;;  %v2184_v1 = vld [vmem:[%s15140_s6 + $0x1a8] sm:$0xff] }
 0x27b   : > { %v9072_v6 = vpop.permute.xlu0 %2404 }
 0x27c   : > { %16126 = vst [vmem:[#allocation137_spill] sm:$0xff] %v9072_v6  ;;  %v9095_v0 = vpop.permute.xlu2 %2022 }
 0x27d   : > { %16131 = vst [vmem:[#allocation142_spill] sm:$0xff] %v9095_v0 }
 0x27e   : > { %2162 = vrot.lane.b32.xlu2 %v8631_v59, %s7364_s30  ;;  %s7374_s30 = smov 127  }
 0x27f   : > { %2676 = vrot.lane.b32.xlu1 %v8641_v18, %s7369_s13 }
 0x281   : > { %v9080_v49 = vpop.permute.xlu1 %2408  ;;  %2678 = vrot.lane.b32.xlu0 %v7881_v8, %s7369_s13 }
 0x282   : > { %16128 = vst [vmem:[#allocation139_spill] sm:$0xff] %v9080_v49 }
 0x283   : > { %v9084_v60 = vpop.permute.xlu0 %2410 }
 0x284   : > { %16129 = vst [vmem:[#allocation140_spill] sm:$0xff] %v9084_v60  ;;  %v9112_v0 = vpop.permute.xlu2 %1743 }
 0x285   : > { %16135 = vst [vmem:[#allocation146_spill] sm:$0xff] %v9112_v0 }
 0x286   : > { %2196 = vperm.xlu2 %7076, %v2184_v1  }
 0x287   : > { %2682 = vrot.lane.b32.xlu1 %v8629_v27, %s7369_s13 }
 0x289   : > { %v9091_v6 = vpop.permute.xlu1 %2414  ;;  %2684 = vrot.lane.b32.xlu0 %v8661_v29, %s7369_s13 }
 0x28a   : > { %16130 = vst [vmem:[#allocation141_spill] sm:$0xff] %v9091_v6  ;;  %v2711_v6 = vld [vmem:[%s15140_s6 + $0x220] sm:$0xff] }
 0x28b   : > { %v9097_v49 = vpop.permute.xlu0 %2416 }
 0x28c   : > { %16132 = vst [vmem:[#allocation143_spill] sm:$0xff] %v9097_v49  ;;  %v2712_v49 = vld [vmem:[%s15140_s6 + $0x228] sm:$0xff]  ;;  %v9128_v0 = vpop.permute.xlu2 %1876 }
 0x28d   : > { %16138 = vst [vmem:[#allocation149_spill] sm:$0xff] %v9128_v0 }
 0x28e   : > { %2266 = vrot.lane.b32.xlu2 %v15960_v7, %s7366_s22 }
 0x28f   : > { %2688 = vrot.lane.b32.xlu1 %v8310_v51, %s7369_s13 }
 0x291   : > { %v9103_v60 = vpop.permute.xlu1 %2420  ;;  %2690 = vrot.lane.b32.xlu0 %v8631_v59, %s7369_s13 }
 0x292   : > { %16133 = vst [vmem:[#allocation144_spill] sm:$0xff] %v9103_v60 }
 0x293   : > { %v9107_v1 = vpop.permute.xlu0 %2422 }
 0x294   : > { %16134 = vst [vmem:[#allocation145_spill] sm:$0xff] %v9107_v1  ;;  %v2714_v1 = vld [vmem:[%s15140_s6 + $0x238] sm:$0xff] }
 0x296   : > { %2272 = vrot.lane.b32.xlu2 %v8648_v42, %s7366_s22 }
 0x297   : > { %2719 = vperm.xlu1 %7075, %v2711_v6  }
 0x299   : > { %v9119_v60 = vpop.permute.xlu1 %2426  ;;  %2724 = vperm.xlu0 %7074, %v2712_v49   ;;  %v9140_v49 = vpop.permute.xlu2 %2016 }
 0x29a   : > { %16136 = vst [vmem:[#allocation147_spill] sm:$0xff] %v9119_v60  ;;  %v16146_v60 = vld [vmem:[#allocation28_spill] sm:$0xff] }
 0x29b   : > { %v9121_v31 = vpop.permute.xlu0 %2428  ;;  %16141 = vst [vmem:[#allocation152_spill] sm:$0xff] %v9140_v49 }
 0x29c   : > { %16137 = vst [vmem:[#allocation148_spill] sm:$0xff] %v9121_v31 }
 0x29e   : > { %2278 = vrot.lane.b32.xlu2 %v8531_v3, %s7366_s22 }
 0x29f   : > { %2734 = vperm.xlu1 %7075, %v2714_v1  }
 0x2a1   : > { %v9130_v58 = vpop.permute.xlu1 %2460  ;;  %2794 = vrot.lane.b32.xlu0 %v15960_v7, %s7370_s21 }
 0x2a2   : > { %16139 = vst [vmem:[#allocation150_spill] sm:$0xff] %v9130_v58 }
 0x2a3   : > { %v9134_v6 = vpop.permute.xlu0 %2465 }
 0x2a4   : > { %16140 = vst [vmem:[#allocation151_spill] sm:$0xff] %v9134_v6 }
 0x2a6   : > { %2284 = vrot.lane.b32.xlu2 %v8203_v48, %s7366_s22 }
 0x2a7   : > { %2798 = vrot.lane.b32.xlu1 %v8428_v21, %s7370_s21  ;;  %v16148_v21 = vld [vmem:[#allocation33_spill] sm:$0xff] }
 0x2a9   : > { %v9142_v31 = vpop.permute.xlu1 %2530  ;;  %2800 = vrot.lane.b32.xlu0 %v8648_v42, %s7370_s21 }
 0x2aa   : > { %16142 = vst [vmem:[#allocation153_spill] sm:$0xff] %v9142_v31  ;;  %v9158_v31 = vmul.f32 0.0025, %v1190_v34  ;;  %v9176_v34 = vmul.f32 0.0025, %v8920_v17 }
 0x2ab   : > { %v9146_v1 = vpop.permute.xlu0 %2532 }
 0x2ac   : > { %16143 = vst [vmem:[#allocation154_spill] sm:$0xff] %v9146_v1  ;;  %v1429_v40 = vmul.f32 %v9158_v31, %v8474_v19  ;;  %v1419_v39 = vmul.f32 %v9176_v34, %v16157_v45 }
 0x2ae   : > { %2290 = vrot.lane.b32.xlu2 %v7883_v23, %s7366_s22 }
 0x2af   : > { %2804 = vrot.lane.b32.xlu1 %v8142_v41, %s7370_s21 }
 0x2b1   : > { %v9152_v0 = vpop.permute.xlu1 %2536  ;;  %2806 = vrot.lane.b32.xlu0 %v8531_v3, %s7370_s21  ;;  %v1195_v58 = vpop.xlane.xlu2 %1194 }
 0x2b2   : > { %16144 = vst [vmem:[#allocation155_spill] sm:$0xff] %v9152_v0  ;;  %v9156_v49 = vmul.f32 0.0025, %v1195_v58  ;;  %v9169_v0 = vmul.f32 0.0025, %v8995_v26  ;;  %v16151_v26 = vld [vmem:[#allocation7_spill] sm:$0xff] }
 0x2b3   : > { %v9160_v6 = vpop.permute.xlu0 %2538  ;;  %v1428_v32 = vmul.f32 %v9158_v31, %v16151_v26 }
 0x2b4   : > { %16145 = vst [vmem:[#allocation156_spill] sm:$0xff] %v9160_v6  ;;  %v1431_v1 = vmul.f32 %v9156_v49, %v16146_v60  ;;  %v1432_v35 = vmul.f32 %v9156_v49, %v16147_v30  ;;  %v1433_v41 = vmul.f32 %v9156_v49, %v16148_v21  ;;  %v1434_v58 = vmul.f32 %v9156_v49, %v16149_v4  ;;  %v16150_v6 = vld [vmem:[#allocation6_spill] sm:$0xff] }
 0x2b5   : > { %v1427_v5 = vmul.f32 %v9158_v31, %v16150_v6  ;;  %v1425_v14 = vmul.f32 %v9169_v0, %v8385_v9 }
 0x2b6   : > { %2296 = vrot.lane.b32.xlu2 %v8668_v28, %s7366_s22  ;;  %1449 = vmatpush.msra.mxu0 %v1431_v1  ;;  %v16154_v1 = vld [vmem:[#allocation36_spill] sm:$0xff]  ;;  %s7372_s22 = smov 2  }
 0x2b7   : > { %2810 = vrot.lane.b32.xlu1 %v7881_v8, %s7370_s21  ;;  %1472 = vmatpush.msra.mxu1 %v1432_v35  ;;  %v1430_v35 = vmul.f32 %v9158_v31, %v8493_v16  ;;  %v16155_v8 = vld [vmem:[#allocation37_spill] sm:$0xff] }
 0x2b8   : > { %1495 = vmatpush.msra.mxu2 %v1433_v41  ;;  %1518 = vmatpush.msra.mxu3 %v1434_v58  ;;  %v1423_v41 = vmul.f32 %v9169_v0, %v16154_v1  ;;  %v9197_v58 = vmul.f32 0.0025, %v8880_v25  ;;  %v1421_v25 = vmul.f32 %v9176_v34, %v8298_v63 }
 0x2b9   : > { %v9186_v20 = vpop.permute.xlu1 %2542  ;;  %2812 = vrot.lane.b32.xlu0 %v8203_v48, %s7370_s21  ;;  %1450 = vmatpush.msra.mxu0 %v1427_v5  ;;  %v9192_v17 = vpop.permute.xlu2 %1759 }
 0x2ba   : > { %16152 = vst [vmem:[#allocation28_spill] sm:$0xff] %v9186_v20  ;;  %1473 = vmatpush.msra.mxu1 %v1428_v32  ;;  %1496 = vmatpush.msra.mxu2 %v1429_v40  ;;  %v1424_v20 = vmul.f32 %v9169_v0, %v16155_v8  ;;  %v16158_v32 = vld [vmem:[#allocation39_spill] sm:$0xff]  ;;  %v1416_v54 = vmul.f32 %v9197_v58, %v8219_v56 }
 0x2bb   : > { %16153 = vst [vmem:[#allocation29_spill] sm:$0xff] %v9192_v17  ;;  %1519 = vmatpush.msra.mxu3 %v1430_v35  ;;  %v9203_v5 = vpop.permute.xlu0 %2544  ;;  %1451 = vmatpush.msra.mxu0 %v1423_v41  ;;  %v1426_v17 = vmul.f32 %v9169_v0, %v8409_v13  ;;  %v1420_v40 = vmul.f32 %v9176_v34, %v16158_v32  ;;  %v2317_v41 = vld [vmem:[%s15140_s6 + $0x1d0] sm:$0xff] }
 0x2bc   : > { %16156 = vst [vmem:[#allocation33_spill] sm:$0xff] %v9203_v5  ;;  %1474 = vmatpush.msra.mxu1 %v1424_v20  ;;  %1497 = vmatpush.msra.mxu2 %v1425_v14  ;;  %v1422_v35 = vmul.f32 %v9176_v34, %v8329_v44  ;;  %v1415_v20 = vmul.f32 %v9197_v58, %v8214_v55  ;;  %v9224_v14 = vmul.f32 0.0025, %v8984_v43  ;;  %v16161_v5 = vld [vmem:[#allocation44_spill] sm:$0xff] }
 0x2bd   : > { %1520 = vmatpush.msra.mxu3 %v1426_v17  ;;  %1452 = vmatpush.msra.mxu0 %v1419_v39  ;;  %v1417_v39 = vmul.f32 %v9197_v58, %v8553_v53  ;;  %v1418_v17 = vmul.f32 %v9197_v58, %v8568_v47 }
 0x2be   : > { %1475 = vmatpush.msra.mxu1 %v1420_v40  ;;  %1498 = vmatpush.msra.mxu2 %v1421_v25  ;;  %v9235_v40 = vmul.f32 0.0025, %v8901_v61  ;;  %v16160_v25 = vld [vmem:[#allocation14_spill] sm:$0xff]  ;;  %v1413_v61 = vmul.f32 %v9214_v2, %v8479_v12  ;;  %v1410_v33 = vmul.f32 %v9224_v14, %v16167_v62 }
 0x2bf   : > { %1521 = vmatpush.msra.mxu3 %v1422_v35  ;;  %2816 = vrot.lane.b32.xlu1 %v8661_v29, %s7370_s21  ;;  %v1411_v35 = vmul.f32 %v9214_v2, %v16160_v25  ;;  %v1412_v29 = vmul.f32 %v9214_v2, %v16161_v5 }
 0x2c0   : > { %2333 = vperm.xlu2 %7076, %v2317_v41   ;;  %1453 = vmatpush.msra.mxu0 %v1415_v20  ;;  %v1414_v41 = vmul.f32 %v9214_v2, %v8498_v10 }
 0x2c1   : > { %1476 = vmatpush.msra.mxu1 %v1416_v54  ;;  %1499 = vmatpush.msra.mxu2 %v1417_v39  ;;  %v9237_v43 = vpop.permute.xlu1 %2548  ;;  %v9243_v46 = vpop.permute.xlu2 %1900  ;;  %v16164_v54 = vld [vmem:[#allocation40_spill] sm:$0xff] }
 0x2c2   : > { %16159 = vst [vmem:[#allocation35_spill] sm:$0xff] %v9237_v43  ;;  %1522 = vmatpush.msra.mxu3 %v1418_v17  ;;  %2818 = vrot.lane.b32.xlu0 %v7883_v23, %s7370_s21  ;;  %v1407_v39 = vmul.f32 %v9224_v14, %v16164_v54  ;;  %v16165_v43 = vld [vmem:[#allocation41_spill] sm:$0xff]  ;;  %v16166_v17 = vld [vmem:[#allocation3_spill] sm:$0xff] }
 0x2c3   : > { %16162 = vst [vmem:[#allocation6_spill] sm:$0xff] %v9243_v46  ;;  %1454 = vmatpush.msra.mxu0 %v1411_v35  ;;  %1477 = vmatpush.msra.mxu1 %v1412_v29  ;;  %v9251_v20 = vpop.permute.xlu0 %2550  ;;  %v1408_v46 = vmul.f32 %v9224_v14, %v16165_v43  ;;  %v1409_v50 = vmul.f32 %v9224_v14, %v16166_v17  ;;  %v16168_v35 = vld [vmem:[#allocation42_spill] sm:$0xff]  ;;  %v16170_v23 = vld [vmem:[#allocation13_spill] sm:$0xff] }
 0x2c4   : > { %16163 = vst [vmem:[#allocation7_spill] sm:$0xff] %v9251_v20  ;;  %1500 = vmatpush.msra.mxu2 %v1413_v61  ;;  %1523 = vmatpush.msra.mxu3 %v1414_v41  ;;  %v1403_v29 = vmul.f32 %v9235_v40, %v16168_v35  ;;  %v16169_v20 = vld [vmem:[#allocation43_spill] sm:$0xff]  ;;  %v1405_v61 = vmul.f32 %v9235_v40, %v16170_v23  ;;  %v16171_v41 = vld [vmem:[#allocation2_spill] sm:$0xff] }
 0x2c5   : > { %1455 = vmatpush.msra.mxu0 %v1407_v39  ;;  %1478 = vmatpush.msra.mxu1 %v1408_v46  ;;  %v1404_v22 = vmul.f32 %v9235_v40, %v16169_v20  ;;  %v1406_v57 = vmul.f32 %v9235_v40, %v16171_v41  ;;  %v1561_v46 = vmul.f32 %v9156_v49, %v8214_v55 }
 0x2c6   : > { %1501 = vmatpush.msra.mxu2 %v1409_v50  ;;  %1524 = vmatpush.msra.mxu3 %v1410_v33  ;;  %v1562_v39 = vmul.f32 %v9156_v49, %v8219_v56  ;;  %v1564_v55 = vmul.f32 %v9156_v49, %v8568_v47  ;;  %v1557_v56 = vmul.f32 %v9158_v31, %v16160_v25 }
 0x2c7   : > { %1456 = vmatpush.msra.mxu0 %v1403_v29  ;;  %1479 = vmatpush.msra.mxu1 %v1404_v22  ;;  %v1563_v22 = vmul.f32 %v9156_v49, %v8553_v53  ;;  %v1558_v53 = vmul.f32 %v9158_v31, %v16161_v5  ;;  %v1559_v47 = vmul.f32 %v9158_v31, %v8479_v12 }
 0x2c8   : > { %1502 = vmatpush.msra.mxu2 %v1405_v61  ;;  %1525 = vmatpush.msra.mxu3 %v1406_v57  ;;  %v1560_v49 = vmul.f32 %v9158_v31, %v8498_v10  ;;  %v1553_v29 = vmul.f32 %v9169_v0, %v16164_v54  ;;  %v1554_v5 = vmul.f32 %v9169_v0, %v16165_v43  ;;  %v2844_v54 = vld [vmem:[%s15140_s6 + $0x248] sm:$0xff] }
 0x2c9   : > { %2822 = vrot.lane.b32.xlu1 %v8631_v59, %s7370_s21  ;;  %6916 = vmatmul.msk.f32.vlgmr.msra.gmra.mxu0 %vm15759_vm13, %v9272_v38  ;;  %v9280_v33 = vpop.permute.xlu1 %2554  ;;  %v9282_v50 = vpop.permute.xlu2 %2144  ;;  %v1555_v25 = vmul.f32 %v9169_v0, %v16166_v17  ;;  %v1556_v12 = vmul.f32 %v9169_v0, %v16167_v62  ;;  %v1549_v10 = vmul.f32 %v9176_v34, %v16168_v35  ;;  %v9336_v0 = vld [vmem:[%s15138_s4 + $0x8] sm:$0xff] }
 0x2ca   : > { %16172 = vst [vmem:[#allocation36_spill] sm:$0xff] %v9280_v33  ;;  %6918 = vmatmul.msk.f32.vlgmr.msra.gmra.mxu1 %vm15759_vm13, %v9272_v38  ;;  %6920 = vmatmul.msk.f32.vlgmr.msra.gmra.mxu2 %vm15759_vm13, %v9272_v38  ;;  %v1550_v31 = vmul.f32 %v9176_v34, %v16169_v20  ;;  %v1551_v43 = vmul.f32 %v9176_v34, %v16170_v23 }
 0x2cb   : > { %16173 = vst [vmem:[#allocation37_spill] sm:$0xff] %v9282_v50  ;;  %6922 = vmatmul.msk.f32.vlgmr.msra.gmra.mxu3 %vm15759_vm13, %v9272_v38  ;;  %1573 = vmatpush.msrb.mxu0 %v1561_v46  ;;  %v9296_v57 = vpop.permute.xlu0 %2556  ;;  %v1552_v62 = vmul.f32 %v9176_v34, %v16171_v41  ;;  %v1545_v34 = vmul.f32 %v9197_v58, %v16146_v60 }
 0x2cc   : > { %16174 = vst [vmem:[#allocation38_spill] sm:$0xff] %v9296_v57  ;;  %1596 = vmatpush.msrb.mxu1 %v1562_v39  ;;  %1619 = vmatpush.msrb.mxu2 %v1563_v22  ;;  %v1546_v20 = vmul.f32 %v9197_v58, %v16147_v30  ;;  %v1547_v35 = vmul.f32 %v9197_v58, %v16148_v21  ;;  %v2845_v21 = vld [vmem:[%s15140_s6 + $0x250] sm:$0xff] }
 0x2cd   : > { %1642 = vmatpush.msrb.mxu3 %v1564_v55  ;;  %2400 = vrot.lane.b32.xlu2 %v8039_v15, %s7367_s18  ;;  %v1548_v41 = vmul.f32 %v9197_v58, %v16149_v4  ;;  %v1541_v60 = vmul.f32 %v9214_v2, %v16150_v6  ;;  %v1542_v30 = vmul.f32 %v9214_v2, %v16151_v26 }
 0x2ce   : > { %1574 = vmatpush.msrb.mxu0 %v1557_v56  ;;  %1597 = vmatpush.msrb.mxu1 %v1558_v53  ;;  %v1543_v46 = vmul.f32 %v9214_v2, %v8474_v19  ;;  %v1544_v4 = vmul.f32 %v9214_v2, %v8493_v16  ;;  %v1537_v19 = vmul.f32 %v9224_v14, %v16154_v1  ;;  %v1769_v56 = vlaneseq  ;;  %v2447_v53 = vld [vmem:[%s15140_s6 + $0x1e0] sm:$0xff] }
 0x2cf   : > { %1620 = vmatpush.msrb.mxu2 %v1559_v47  ;;  %1643 = vmatpush.msrb.mxu3 %v1560_v49  ;;  %v1538_v26 = vmul.f32 %v9224_v14, %v16155_v8  ;;  %v1539_v39 = vmul.f32 %v9224_v14, %v8385_v9  ;;  %v1540_v16 = vmul.f32 %v9224_v14, %v8409_v13 }
 0x2d0   : > { %2824 = vrot.lane.b32.xlu0 %v8668_v28, %s7370_s21  ;;  %1575 = vmatpush.msrb.mxu0 %v1553_v29  ;;  %v1533_v22 = vmul.f32 %v9235_v40, %v16157_v45  ;;  %v1534_v1 = vmul.f32 %v9235_v40, %v16158_v32  ;;  %v1535_v8 = vmul.f32 %v9235_v40, %v8298_v63  ;;  %v9448_v47 = vand.u32 127, %v1769_v56  ;;  %v16207_v56 = vld [vmem:[#allocation108_spill] sm:$0xff] }
 0x2d1   : > { %1598 = vmatpush.msrb.mxu1 %v1554_v5  ;;  %1621 = vmatpush.msrb.mxu2 %v1555_v25  ;;  %v9327_v17 = vpop.permute.xlu1 %2560  ;;  %v9329_v61 = vpop.permute.xlu2 %2150  ;;  %v1536_v9 = vmul.f32 %v9235_v40, %v8329_v44 }
 0x2d2   : > { %16175 = vst [vmem:[#allocation39_spill] sm:$0xff] %v9327_v17  ;;  %1644 = vmatpush.msrb.mxu3 %v1556_v12  ;;  %1576 = vmatpush.msrb.mxu0 %v1549_v10  ;;  %vm1902_vm12 = vcmp.lt.s32.totalorder %v9448_v47, 41  ;;  %vm1771_vm7 = vcmp.lt.s32.totalorder %v9448_v47, 42  ;;  %vm2034_vm15 = vcmp.lt.s32.totalorder %v9448_v47, 40  ;;  %v2450_v12 = vld [vmem:[%s15140_s6 + $0x1f8] sm:$0xff]  ;;  %vm2166_vm1 = vcmp.lt.s32.totalorder %v9448_v47, 39 }
 0x2d3   : > { %16176 = vst [vmem:[#allocation14_spill] sm:$0xff] %v9329_v61  ;;  %1599 = vmatpush.msrb.mxu1 %v1550_v31  ;;  %1622 = vmatpush.msrb.mxu2 %v1551_v43  ;;  %v9338_v23 = vpop.permute.xlu0 %2587  ;;  %v1904_v25 = vsel %vm1902_vm12, %v9007_v52, %v8787_v11  ;;  %v1773_v10 = vsel %vm1771_vm7, %v8772_v24, %v8789_v36  ;;  %v16193_v31 = vld [vmem:[#allocation126_spill] sm:$0xff]  ;;  %vm2298_vm0 = vcmp.lt.s32.totalorder %v9448_v47, 38  ;;  %v2977_v36 = vld [vmem:[%s15140_s6 + $0x270] sm:$0xff]  ;;  %vm2430_vm5 = vcmp.lt.s32.totalorder %v9448_v47, 22 }
 0x2d4   : > { %16177 = vst [vmem:[#allocation44_spill] sm:$0xff] %v9338_v23  ;;  %1645 = vmatpush.msrb.mxu3 %v1552_v62  ;;  %2856 = vperm.xlu1 %7075, %v2844_v54   ;;  %v16194_v43 = vld [vmem:[#allocation78_spill] sm:$0xff]  ;;  %v16195_v62 = vld [vmem:[#allocation20_spill] sm:$0xff]  ;;  %vm2562_vm3 = vcmp.lt.s32.totalorder %v9448_v47, 21  ;;  %vm2694_vm6 = vcmp.lt.s32.totalorder %v9448_v47, 20  ;;  %vm15794_vm2 = vcmp.lt.s32.totalorder %v9448_v47, 19 }
 0x2d5   : > { %6917 = vmatmul.msk.f32.gmra.mxu0 %vm15759_vm13, %v9336_v0  ;;  %6919 = vmatmul.msk.f32.gmra.mxu1 %vm15759_vm13, %v9336_v0  ;;  %v2036_v54 = vsel %vm2034_vm15, %v16194_v43, %v16193_v31  ;;  %v9547_v17 = vld [vmem:[%s15139_s5 + $0x4] ss:$8 sm:$0xf]  ;;  %vm15787_vm8 = vcmp.lt.s32.totalorder %v9448_v47, 18  ;;  %vm15776_vm14 = vcmp.lt.s32.totalorder %v9448_v47, 2  ;;  %vm15772_vm4 = vcmp.lt.s32.totalorder %v9448_v47, 1 }
 0x2d6   : > { %6921 = vmatmul.msk.f32.gmra.mxu2 %vm15759_vm13, %v9336_v0  ;;  %6923 = vmatmul.msk.f32.gmra.mxu3 %vm15759_vm13, %v9336_v0  ;;  %vm3437_vm11 = vcmp.lt.s32.totalorder %v9448_v47, 127  ;;  %vm3569_vm10 = vcmp.lt.s32.totalorder %v9448_v47, 126  ;;  %vm3701_vm9 = vcmp.lt.s32.totalorder %v9448_v47, 110 }
 0x2d7   : > { %1577 = vmatpush.msrb.mxu0 %v1545_v34  ;;  %1600 = vmatpush.msrb.mxu1 %v1546_v20  ;;  %v16196_v34 = vld [vmem:[#allocation31_spill] sm:$0xff] }
 0x2d8   : > { %1623 = vmatpush.msrb.mxu2 %v1547_v35  ;;  %1646 = vmatpush.msrb.mxu3 %v1548_v41  ;;  %v1952_v20 = vmul.f32 %v16196_v34, %v1904_v25 }
 0x2d9   : > { %2406 = vrot.lane.b32.xlu2 %v7794_v37, %s7367_s18  ;;  %1578 = vmatpush.msrb.mxu0 %v1541_v60  ;;  %v9369_v6 = vpop.permute.xlu1 %2597  ;;  %v9371_v58 = vpop.permute.xlu2 %2156  ;;  %v9491_v60 = vld [vmem:[%s15139_s5 + $0x1] ss:$8 sm:$0xf] }
 0x2da   : > { %16178 = vst [vmem:[#allocation40_spill] sm:$0xff] %v9369_v6  ;;  %1601 = vmatpush.msrb.mxu1 %v1542_v30  ;;  %1624 = vmatpush.msrb.mxu2 %v1543_v46  ;;  %v16200_v46 = vld [vmem:[#allocation80_spill] sm:$0xff] }
 0x2db   : > { %16179 = vst [vmem:[#allocation41_spill] sm:$0xff] %v9371_v58  ;;  %1647 = vmatpush.msrb.mxu3 %v1544_v4  ;;  %2861 = vperm.xlu0 %7074, %v2845_v21   ;;  %v9381_v2 = vpop.permute.xlu0 %2602  ;;  %v1820_v21 = vmul.f32 %v16200_v46, %v1773_v10  ;;  %v9498_v4 = vperm.slane %v9491_v60, 3  ;;  %v16210_v10 = vld [vmem:[#allocation104_spill] sm:$0xff] }
 0x2dc   : > { %16180 = vst [vmem:[#allocation3_spill] sm:$0xff] %v9381_v2  ;;  %1579 = vmatpush.msrb.mxu0 %v1537_v19  ;;  %1602 = vmatpush.msrb.mxu1 %v1538_v26  ;;  %v16202_v19 = vld [vmem:[#allocation26_spill] sm:$0xff] }
 0x2dd   : > { %1625 = vmatpush.msrb.mxu2 %v1539_v39  ;;  %1648 = vmatpush.msrb.mxu3 %v1540_v16  ;;  %16201 = vst [vmem:[#allocation167_spill] sm:$0xff] %v9498_v4  ;;  %v2084_v26 = vmul.f32 %v16202_v19, %v2036_v54  ;;  %v9509_v16 = vld [vmem:[%s15139_s5 + $0x2] ss:$8 sm:$0xf] }
 0x2de   : > { %1580 = vmatpush.msrb.mxu0 %v1533_v22  ;;  %1603 = vmatpush.msrb.mxu1 %v1534_v1  ;;  %v16204_v22 = vld [vmem:[#allocation107_spill] sm:$0xff]  ;;  %v16205_v1 = vld [vmem:[#allocation62_spill] sm:$0xff]  ;;  %v9520_v25 = vperm.slane %v9509_v16, 3 }
 0x2df   : > { %1626 = vmatpush.msrb.mxu2 %v1535_v8  ;;  %1649 = vmatpush.msrb.mxu3 %v1536_v9  ;;  %v1903_v8 = vsel %vm1902_vm12, %v16205_v1, %v16204_v22  ;;  %v16206_v9 = vld [vmem:[#allocation112_spill] sm:$0xff] }
 0x2e0   : > { %2926 = vrot.lane.b32.xlu1 %v15960_v7, %s7371_s16  ;;  %6924 = vmatmul.msk.f32.vlgmr.msrb.gmra.mxu0 %vm15759_vm13, %v9272_v38  ;;  %16208 = vst [vmem:[#allocation169_spill] sm:$0xff] %v9520_v25  ;;  %v9531_v1 = vld [vmem:[%s15139_s5 + $0x3] ss:$8 sm:$0xf]  ;;  %v2109_v52 = vmul.f32 %v9520_v25, %v2084_v26 }
 0x2e1   : > { %6926 = vmatmul.msk.f32.vlgmr.msrb.gmra.mxu1 %vm15759_vm13, %v9272_v38  ;;  %6928 = vmatmul.msk.f32.vlgmr.msrb.gmra.mxu2 %vm15759_vm13, %v9272_v38  ;;  %v9399_v63 = vpop.permute.xlu1 %2664  ;;  %v9401_v44 = vpop.permute.xlu2 %2162  ;;  %v16222_v22 = vld [vmem:[#allocation132_spill] sm:$0xff] }
 0x2e2   : > { %16181 = vst [vmem:[#allocation8_spill] sm:$0xff] %v9399_v63  ;;  %6930 = vmatmul.msk.f32.vlgmr.msrb.gmra.mxu3 %vm15759_vm13, %v9272_v38  ;;  %2412 = vrot.lane.b32.xlu2 %v8641_v18, %s7367_s18  ;;  %v3241_v63 = vld [vmem:[%s15140_s6 + $0x2b0] sm:$0xff] }
 0x2e3   : > { %16182 = vst [vmem:[#allocation42_spill] sm:$0xff] %v9401_v44  ;;  %2928 = vrot.lane.b32.xlu0 %v8039_v15, %s7371_s16  ;;  %v9409_v13 = vpop.permute.xlu0 %2666 }
 0x2e4   : > { %16183 = vst [vmem:[#allocation43_spill] sm:$0xff] %v9409_v13 }
 0x2e8   : > { %2932 = vrot.lane.b32.xlu1 %v8648_v42, %s7371_s16  ;;  %6925 = vmatmul.msk.f32.gmra.mxu0 %vm15759_vm13, %v9336_v0 }
 0x2e9   : > { %6927 = vmatmul.msk.f32.gmra.mxu1 %vm15759_vm13, %v9336_v0  ;;  %6929 = vmatmul.msk.f32.gmra.mxu2 %vm15759_vm13, %v9336_v0  ;;  %v9419_v45 = vpop.permute.xlu1 %2670  ;;  %v9421_v38 = vpop.permute.xlu2 %2196 }
 0x2ea   : > { %16184 = vst [vmem:[#allocation13_spill] sm:$0xff] %v9419_v45  ;;  %6931 = vmatmul.msk.f32.gmra.mxu3 %vm15759_vm13, %v9336_v0  ;;  %2418 = vrot.lane.b32.xlu2 %v8629_v27, %s7367_s18  ;;  %v9481_v0 = vld [vmem:[%s15139_s5] ss:$8 sm:$0xf]  ;;  %vm15822_vm13 = vcmp.lt.s32.totalorder %v9448_v47, 109 }
 0x2eb   : > { %16185 = vst [vmem:[#allocation2_spill] sm:$0xff] %v9421_v38  ;;  %2934 = vrot.lane.b32.xlu0 %v7794_v37, %s7371_s16  ;;  %v9429_v32 = vpop.permute.xlu0 %2672  ;;  %v9494_v30 = vperm.slane %v9481_v0, 3  ;;  %v16213_v45 = vld [vmem:[#allocation68_spill] sm:$0xff] }
 0x2ec   : > { %16186 = vst [vmem:[#allocation157_spill] sm:$0xff] %v9429_v32 }
 0x2ed   : > { %16199 = vst [vmem:[#allocation166_spill] sm:$0xff] %v9494_v30  ;;  %v1845_v43 = vmul.f32 %v9494_v30, %v1820_v21  ;;  %v2975_v21 = vld [vmem:[%s15140_s6 + $0x260] sm:$0xff] }
 0x2f0   : > { %2938 = vrot.lane.b32.xlu1 %v8531_v3, %s7371_s16 }
 0x2f1   : > { %v9433_v14 = vpop.permute.xlu1 %2676  ;;  %v9435_v40 = vpop.permute.xlu2 %2266 }
 0x2f2   : > { %16187 = vst [vmem:[#allocation158_spill] sm:$0xff] %v9433_v14  ;;  %2424 = vrot.lane.b32.xlu2 %v8310_v51, %s7367_s18  ;;  %v9537_v14 = vperm.slane %v9531_v1, 3  ;;  %s7382_s18 = smov 89  }
 0x2f3   : > { %16188 = vst [vmem:[#allocation159_spill] sm:$0xff] %v9435_v40  ;;  %2940 = vrot.lane.b32.xlu0 %v8641_v18, %s7371_s16  ;;  %v9441_v55 = vpop.permute.xlu0 %2678  ;;  %v16219_v40 = vld [vmem:[#allocation110_spill] sm:$0xff] }
 0x2f4   : > { %16189 = vst [vmem:[#allocation160_spill] sm:$0xff] %v9441_v55  ;;  %v2167_v13 = vsel %vm2166_vm1, %v9329_v61, %v16219_v40  ;;  %v16225_v40 = vld [vmem:[#allocation114_spill] sm:$0xff] }
 0x2f5   : > { %16212 = vst [vmem:[#allocation170_spill] sm:$0xff] %v9537_v14  ;;  %v2212_v31 = vmul.f32 %v16225_v40, %v2167_v13 }
 0x2f8   : > { %2944 = vrot.lane.b32.xlu1 %v8203_v48, %s7371_s16 }
 0x2f9   : > { %v9450_v49 = vpop.permute.xlu1 %2682  ;;  %v9452_v29 = vpop.permute.xlu2 %2272 }
 0x2fa   : > { %16190 = vst [vmem:[#allocation161_spill] sm:$0xff] %v9450_v49  ;;  %2455 = vperm.xlu2 %7076, %v2447_v53   ;;  %v2168_v53 = vsel %vm2166_vm1, %v16207_v56, %v16206_v9  ;;  %v16211_v56 = vld [vmem:[#allocation22_spill] sm:$0xff] }
 0x2fb   : > { %16191 = vst [vmem:[#allocation162_spill] sm:$0xff] %v9452_v29  ;;  %2946 = vrot.lane.b32.xlu0 %v8629_v27, %s7371_s16  ;;  %v9456_v5 = vpop.permute.xlu0 %2684  ;;  %v2216_v58 = vmul.f32 %v9421_v38, %v2168_v53  ;;  %v1948_v24 = vmul.f32 %v16211_v56, %v1903_v8  ;;  %v16215_v53 = vld [vmem:[#allocation25_spill] sm:$0xff]  ;;  %v16224_v56 = vld [vmem:[#allocation86_spill] sm:$0xff] }
 0x2fc   : > { %16192 = vst [vmem:[#allocation163_spill] sm:$0xff] %v9456_v5  ;;  %v1977_v5 = vmul.f32 %v9498_v4, %v1952_v20 }
 0x2fd   : > { %v2241_v8 = vmul.f32 %v9537_v14, %v2216_v58 }
 0x2fe   : > { %v1993_v26 = vadd.f32 %v1977_v5, %v1845_v43  ;;  %v16221_v5 = vld [vmem:[#allocation128_spill] sm:$0xff]  ;;  %v1973_v43 = vmul.f32 %v9498_v4, %v1948_v24 }
 0x300   : > { %2950 = vrot.lane.b32.xlu1 %v16195_v62, %s7371_s16 }
 0x301   : > { %v9484_v35 = vpop.permute.xlu1 %2688  ;;  %v9486_v41 = vpop.permute.xlu2 %2278 }
 0x302   : > { %16197 = vst [vmem:[#allocation164_spill] sm:$0xff] %v9484_v35  ;;  %2470 = vperm.xlu2 %7076, %v2450_v12   ;;  %v16209_v12 = vld [vmem:[#allocation61_spill] sm:$0xff] }
 0x303   : > { %16198 = vst [vmem:[#allocation165_spill] sm:$0xff] %v9486_v41  ;;  %2952 = vrot.lane.b32.xlu0 %v8310_v51, %s7371_s16  ;;  %v9504_v39 = vpop.permute.xlu0 %2690  ;;  %v1772_v54 = vsel %vm1771_vm7, %v16210_v10, %v16209_v12  ;;  %v16214_v10 = vld [vmem:[#allocation67_spill] sm:$0xff]  ;;  %v16220_v41 = vld [vmem:[#allocation9_spill] sm:$0xff] }
 0x304   : > { %16203 = vst [vmem:[#allocation168_spill] sm:$0xff] %v9504_v39  ;;  %v2035_v20 = vsel %vm2034_vm15, %v16214_v10, %v16213_v45  ;;  %v1816_v2 = vmul.f32 %v16215_v53, %v1772_v54  ;;  %v9559_v54 = vperm.slane %v9547_v17, 3  ;;  %v2125_v45 = vadd.f32 %v2109_v52, %v1993_v26 }
 0x305   : > { %v2080_v9 = vmul.f32 %v16224_v56, %v2035_v20 }
 0x306   : > { %16217 = vst [vmem:[#allocation172_spill] sm:$0xff] %v9559_v54  ;;  %v1841_v61 = vmul.f32 %v9494_v30, %v1816_v2  ;;  %v2257_v11 = vadd.f32 %v2241_v8, %v2125_v45  ;;  %v2237_v2 = vmul.f32 %v9537_v14, %v2212_v31  ;;  %v16228_v45 = vld [vmem:[#allocation11_spill] sm:$0xff] }
 0x307   : > { %v2105_v20 = vmul.f32 %v9520_v25, %v2080_v9 }
 0x308   : > { %2956 = vrot.lane.b32.xlu1 %v8668_v28, %s7371_s16  ;;  %v1989_v24 = vadd.f32 %v1973_v43, %v1841_v61  ;;  %v16229_v61 = vld [vmem:[#allocation124_spill] sm:$0xff] }
 0x309   : > { %v9556_v10 = vpop.permute.xlu1 %2719  ;;  %v9561_v29 = vpop.permute.xlu2 %2284 }
 0x30a   : > { %16216 = vst [vmem:[#allocation171_spill] sm:$0xff] %v9556_v10  ;;  %2534 = vrot.lane.b32.xlu2 %v16220_v41, %s7368_s27  ;;  %v2300_v58 = vsel %vm2298_vm0, %v9561_v29, %v16221_v5 }
 0x30b   : > { %16218 = vst [vmem:[#allocation173_spill] sm:$0xff] %v9561_v29  ;;  %2983 = vperm.xlu0 %7074, %v2975_v21   ;;  %v2348_v12 = vmul.f32 %v16222_v22, %v2300_v58  ;;  %v9575_v53 = vpop.permute.xlu0 %2724  ;;  %v2978_v21 = vld [vmem:[%s15140_s6 + $0x278] sm:$0xff] }
 0x30c   : > { %16223 = vst [vmem:[#allocation9_spill] sm:$0xff] %v9575_v53 }
 0x30d   : > { %v2373_v29 = vmul.f32 %v9559_v54, %v2348_v12 }
 0x30f   : > { %v9584_v52 = vadd.f32 %v2373_v29, %v2257_v11  ;;  %v2121_v11 = vadd.f32 %v2105_v20, %v1989_v24  ;;  %v16230_v29 = vld [vmem:[#allocation131_spill] sm:$0xff]  ;;  %v16235_v24 = vld [vmem:[#allocation89_spill] sm:$0xff] }
 0x310   : > { %2993 = vperm.xlu1 %7075, %v2977_v36   ;;  %v16236_v20 = vld [vmem:[#allocation19_spill] sm:$0xff] }
 0x311   : > { %v9591_v13 = vpop.permute.xlu1 %2734  ;;  %v9593_v26 = vpop.permute.xlu2 %2290  ;;  %v2253_v9 = vadd.f32 %v2237_v2, %v2121_v11  ;;  %v16239_v11 = vld [vmem:[#allocation87_spill] sm:$0xff] }
 0x312   : > { %16226 = vst [vmem:[#allocation174_spill] sm:$0xff] %v9591_v13  ;;  %2540 = vrot.lane.b32.xlu2 %v16228_v45, %s7368_s27  ;;  %v2299_v36 = vsel %vm2298_vm0, %v16229_v61, %v9593_v26  ;;  %v16234_v61 = vld [vmem:[#allocation138_spill] sm:$0xff] }
 0x313   : > { %16227 = vst [vmem:[#allocation175_spill] sm:$0xff] %v9593_v26  ;;  %2998 = vperm.xlu0 %7074, %v2978_v21   ;;  %v2344_v12 = vmul.f32 %v16230_v29, %v2299_v36  ;;  %v9602_v8 = vpop.permute.xlu0 %2794  ;;  %v1774_v21 = vsel %vm1771_vm7, %v16235_v24, %v16234_v61  ;;  %v16238_v36 = vld [vmem:[#allocation92_spill] sm:$0xff]  ;;  %v16242_v29 = vld [vmem:[#allocation17_spill] sm:$0xff] }
 0x314   : > { %16231 = vst [vmem:[#allocation176_spill] sm:$0xff] %v9602_v8  ;;  %v1824_v24 = vmul.f32 %v16242_v29, %v1774_v21  ;;  %v16249_v21 = vld [vmem:[#allocation129_spill] sm:$0xff] }
 0x315   : > { %v2369_v31 = vmul.f32 %v9559_v54, %v2344_v12  ;;  %v1905_v12 = vsel %vm1902_vm12, %v16239_v11, %v16238_v36  ;;  %v16246_v36 = vld [vmem:[#allocation116_spill] sm:$0xff] }
 0x316   : > { %v1849_v11 = vmul.f32 %v9494_v30, %v1824_v24 }
 0x317   : > { %v9605_v58 = vadd.f32 %v2369_v31, %v2253_v9  ;;  %v16240_v9 = vld [vmem:[#allocation91_spill] sm:$0xff]  ;;  %v16241_v31 = vld [vmem:[#allocation142_spill] sm:$0xff] }
 0x318   : > { %3060 = vrot.lane.b32.xlu1 %v8039_v15, %s7372_s22  ;;  %v2037_v8 = vsel %vm2034_vm15, %v16241_v31, %v16240_v9  ;;  %v16250_v9 = vld [vmem:[#allocation125_spill] sm:$0xff] }
 0x319   : > { %v9609_v43 = vpop.permute.xlu1 %2798  ;;  %v9611_v13 = vpop.permute.xlu2 %2296 }
 0x31a   : > { %16232 = vst [vmem:[#allocation177_spill] sm:$0xff] %v9609_v43  ;;  %2546 = vrot.lane.b32.xlu2 %v16236_v20, %s7368_s27  ;;  %v16244_v43 = vld [vmem:[#allocation83_spill] sm:$0xff] }
 0x31b   : > { %16233 = vst [vmem:[#allocation178_spill] sm:$0xff] %v9611_v13  ;;  %3062 = vrot.lane.b32.xlu0 %v16220_v41, %s7372_s22  ;;  %v9621_v2 = vpop.permute.xlu0 %2800  ;;  %v16243_v13 = vld [vmem:[#allocation109_spill] sm:$0xff]  ;;  %v1956_v40 = vmul.f32 %v16244_v43, %v1905_v12  ;;  %v16251_v12 = vld [vmem:[#allocation23_spill] sm:$0xff] }
 0x31c   : > { %16237 = vst [vmem:[#allocation179_spill] sm:$0xff] %v9621_v2  ;;  %v2169_v26 = vsel %vm2166_vm1, %v16243_v13, %v9401_v44  ;;  %v16245_v2 = vld [vmem:[#allocation45_spill] sm:$0xff]  ;;  %v2301_v13 = vsel %vm2298_vm0, %v16250_v9, %v16249_v21 }
 0x31d   : > { %v2088_v61 = vmul.f32 %v16245_v2, %v2037_v8  ;;  %v2220_v56 = vmul.f32 %v16246_v36, %v2169_v26  ;;  %v1981_v8 = vmul.f32 %v9498_v4, %v1956_v40  ;;  %v16265_v4 = vld [vmem:[#allocation151_spill] sm:$0xff] }
 0x31f   : > { %v2113_v44 = vmul.f32 %v9520_v25, %v2088_v61  ;;  %v1997_v24 = vadd.f32 %v1981_v8, %v1849_v11  ;;  %v2245_v30 = vmul.f32 %v9537_v14, %v2220_v56  ;;  %v16264_v14 = vld [vmem:[#allocation147_spill] sm:$0xff] }
 0x320   : > { %3066 = vrot.lane.b32.xlu1 %v7794_v37, %s7372_s22 }
 0x321   : > { %v9642_v5 = vpop.permute.xlu1 %2804  ;;  %v9644_v31 = vpop.permute.xlu2 %2333  ;;  %v2129_v2 = vadd.f32 %v2113_v44, %v1997_v24  ;;  %v2580_v44 = vld [vmem:[%s15140_s6 + $0x208] sm:$0xff] }
 0x322   : > { %16247 = vst [vmem:[#allocation180_spill] sm:$0xff] %v9642_v5  ;;  %2552 = vrot.lane.b32.xlu2 %v16251_v12, %s7368_s27  ;;  %v2352_v26 = vmul.f32 %v9644_v31, %v2301_v13  ;;  %v9707_v24 = vld [vmem:[%s15139_s5 + $0x5] ss:$8 sm:$0xf] }
 0x323   : > { %16248 = vst [vmem:[#allocation181_spill] sm:$0xff] %v9644_v31  ;;  %3068 = vrot.lane.b32.xlu0 %v16228_v45, %s7372_s22  ;;  %v9658_v36 = vpop.permute.xlu0 %2806  ;;  %v2261_v21 = vadd.f32 %v2245_v30, %v2129_v2 }
 0x324   : > { %16252 = vst [vmem:[#allocation182_spill] sm:$0xff] %v9658_v36  ;;  %v2377_v9 = vmul.f32 %v9559_v54, %v2352_v26  ;;  %v3108_v26 = vld [vmem:[%s15140_s6 + $0x288] sm:$0xff]  ;;  %v3110_v54 = vld [vmem:[%s15140_s6 + $0x298] sm:$0xff] }
 0x325   : > { %16260 = vst [vmem:[#allocation190_spill] sm:$0xff] %v9707_v24 }
 0x326   : > { %v2393_v56 = vadd.f32 %v2377_v9, %v2261_v21  ;;  %v3107_v21 = vld [vmem:[%s15140_s6 + $0x280] sm:$0xff] }
 0x328   : > { %3072 = vrot.lane.b32.xlu1 %v8641_v18, %s7372_s22 }
 0x329   : > { %v9663_v40 = vpop.permute.xlu2 %2400  ;;  %v9667_v61 = vpop.permute.xlu1 %2810 }
 0x32a   : > { %2558 = vrot.lane.b32.xlu2 %v8631_v59, %s7368_s27  ;;  %16253 = vst [vmem:[#allocation183_spill] sm:$0xff] %v9667_v61 }
 0x32b   : > { %3074 = vrot.lane.b32.xlu0 %v16236_v20, %s7372_s22  ;;  %v9674_v13 = vpop.permute.xlu0 %2812 }
 0x32c   : > { %16254 = vst [vmem:[#allocation184_spill] sm:$0xff] %v9674_v13 }
 0x330   : > { %3078 = vrot.lane.b32.xlu1 %v8629_v27, %s7372_s22 }
 0x331   : > { %v9682_v2 = vpop.permute.xlu1 %2816 }
 0x332   : > { %2592 = vperm.xlu2 %7076, %v2580_v44   ;;  %16256 = vst [vmem:[#allocation186_spill] sm:$0xff] %v9682_v2  ;;  %v9713_v2 = vperm.slane %v9707_v24, 3 }
 0x333   : > { %3080 = vrot.lane.b32.xlu0 %v16251_v12, %s7372_s22  ;;  %v9680_v30 = vpop.permute.xlu2 %2406 }
 0x334   : > { %16255 = vst [vmem:[#allocation185_spill] sm:$0xff] %v9680_v30  ;;  %v9686_v11 = vpop.permute.xlu0 %2818 }
 0x335   : > { %16257 = vst [vmem:[#allocation187_spill] sm:$0xff] %v9686_v11 }
 0x336   : > { %16262 = vst [vmem:[#allocation192_spill] sm:$0xff] %v9713_v2 }
 0x338   : > { %3084 = vrot.lane.b32.xlu1 %v8310_v51, %s7372_s22 }
 0x33a   : > { %2662 = vrot.lane.b32.xlu2 %v15960_v7, %s7369_s13 }
 0x33b   : > { %3086 = vrot.lane.b32.xlu0 %v8631_v59, %s7372_s22  ;;  %v9697_v8 = vpop.permute.xlu1 %2822 }
 0x33c   : > { %v9692_v9 = vpop.permute.xlu2 %2412  ;;  %16259 = vst [vmem:[#allocation189_spill] sm:$0xff] %v9697_v8 }
 0x33d   : > { %16258 = vst [vmem:[#allocation188_spill] sm:$0xff] %v9692_v9 }
 0x340   : > { %3115 = vperm.xlu1 %7075, %v3107_v21  }
 0x342   : > { %2668 = vrot.lane.b32.xlu2 %v8648_v42, %s7369_s13  ;;  %v9709_v44 = vpop.permute.xlu0 %2824 }
 0x343   : > { %3120 = vperm.xlu0 %7074, %v3108_v26   ;;  %16261 = vst [vmem:[#allocation191_spill] sm:$0xff] %v9709_v44 }
 0x344   : > { %v9715_v21 = vpop.permute.xlu2 %2418 }
 0x345   : > { %16263 = vst [vmem:[#allocation193_spill] sm:$0xff] %v9715_v21  ;;  %v2433_v25 = vsel %vm2430_vm5, %v9715_v21, %v16264_v14  ;;  %v16270_v21 = vld [vmem:[#allocation150_spill] sm:$0xff] }
 0x346   : > { %v2484_v26 = vmul.f32 %v16265_v4, %v2433_v25  ;;  %v9725_v44 = vpop.permute.xlu1 %2856  ;;  %v16269_v25 = vld [vmem:[#allocation143_spill] sm:$0xff] }
 0x347   : > { %16266 = vst [vmem:[#allocation194_spill] sm:$0xff] %v9725_v44 }
 0x348   : > { %3130 = vperm.xlu1 %7075, %v3110_v54   ;;  %v2509_v9 = vmul.f32 %v9713_v2, %v2484_v26 }
 0x34a   : > { %2674 = vrot.lane.b32.xlu2 %v8531_v3, %s7369_s13  ;;  %v9730_v30 = vadd.f32 %v2509_v9, %v2393_v56 }
 0x34b   : > { %3190 = vrot.lane.b32.xlu0 %v15960_v7, %s7373_s17 }
 0x34c   : > { %v9734_v36 = vpop.permute.xlu2 %2424 }
 0x34d   : > { %16267 = vst [vmem:[#allocation195_spill] sm:$0xff] %v9734_v36  ;;  %v9736_v31 = vpop.permute.xlu0 %2861  ;;  %v2432_v54 = vsel %vm2430_vm5, %v16269_v25, %v9734_v36 }
 0x34e   : > { %16268 = vst [vmem:[#allocation196_spill] sm:$0xff] %v9736_v31  ;;  %v2480_v26 = vmul.f32 %v16270_v21, %v2432_v54  ;;  %v16274_v54 = vld [vmem:[#allocation145_spill] sm:$0xff] }
 0x350   : > { %3194 = vrot.lane.b32.xlu1 %v16220_v41, %s7373_s17  ;;  %v2505_v56 = vmul.f32 %v9713_v2, %v2480_v26  ;;  %v16275_v26 = vld [vmem:[#allocation141_spill] sm:$0xff] }
 0x351   : > { %v2431_v29 = vsel %vm2430_vm5, %v16275_v26, %v16274_v54  ;;  %v3240_v54 = vld [vmem:[%s15140_s6 + $0x2a8] sm:$0xff] }
 0x352   : > { %2680 = vrot.lane.b32.xlu2 %v8203_v48, %s7369_s13  ;;  %v9748_v9 = vpop.permute.xlu1 %2926  ;;  %v9753_v14 = vadd.f32 %v2505_v56, %v9584_v52 }
 0x353   : > { %16271 = vst [vmem:[#allocation197_spill] sm:$0xff] %v9748_v9  ;;  %3196 = vrot.lane.b32.xlu0 %v8648_v42, %s7373_s17 }
 0x354   : > { %v9755_v4 = vpop.permute.xlu2 %2455 }
 0x355   : > { %16272 = vst [vmem:[#allocation198_spill] sm:$0xff] %v9755_v4  ;;  %v9757_v25 = vpop.permute.xlu0 %2928  ;;  %v2476_v52 = vmul.f32 %v9755_v4, %v2431_v29 }
 0x356   : > { %16273 = vst [vmem:[#allocation199_spill] sm:$0xff] %v9757_v25 }
 0x357   : > { %v2501_v36 = vmul.f32 %v9713_v2, %v2476_v52  ;;  %v2713_v52 = vld [vmem:[%s15140_s6 + $0x230] sm:$0xff] }
 0x358   : > { %3200 = vrot.lane.b32.xlu1 %v16228_v45, %s7373_s17 }
 0x35a   : > { %2686 = vrot.lane.b32.xlu2 %v16195_v62, %s7369_s13  ;;  %v9767_v9 = vpop.permute.xlu1 %2932 }
 0x35b   : > { %16276 = vst [vmem:[#allocation200_spill] sm:$0xff] %v9767_v9  ;;  %3202 = vrot.lane.b32.xlu0 %v8531_v3, %s7373_s17  ;;  %v2517_v9 = vadd.f32 %v2501_v36, %v9605_v58 }
 0x35c   : > { %v9772_v56 = vpop.permute.xlu2 %2470 }
 0x35d   : > { %16277 = vst [vmem:[#allocation201_spill] sm:$0xff] %v9772_v56  ;;  %v9774_v43 = vpop.permute.xlu0 %2934 }
 0x35e   : > { %16278 = vst [vmem:[#allocation202_spill] sm:$0xff] %v9774_v43 }
 0x360   : > { %3206 = vrot.lane.b32.xlu1 %v16236_v20, %s7373_s17 }
 0x362   : > { %2692 = vrot.lane.b32.xlu2 %v8668_v28, %s7369_s13  ;;  %v9781_v26 = vpop.permute.xlu1 %2938 }
 0x363   : > { %16279 = vst [vmem:[#allocation203_spill] sm:$0xff] %v9781_v26  ;;  %3208 = vrot.lane.b32.xlu0 %v8203_v48, %s7373_s17 }
 0x364   : > { %v9786_v29 = vpop.permute.xlu2 %2534 }
 0x365   : > { %16280 = vst [vmem:[#allocation204_spill] sm:$0xff] %v9786_v29  ;;  %v9788_v56 = vpop.permute.xlu0 %2940 }
 0x366   : > { %16281 = vst [vmem:[#allocation205_spill] sm:$0xff] %v9788_v56 }
 0x368   : > { %3212 = vrot.lane.b32.xlu1 %v16251_v12, %s7373_s17 }
 0x36a   : > { %2729 = vperm.xlu2 %7076, %v2713_v52   ;;  %v9795_v2 = vpop.permute.xlu1 %2944  ;;  %v9815_v52 = vld [vmem:[%s15139_s5 + $0x6] ss:$8 sm:$0xf] }
 0x36b   : > { %16282 = vst [vmem:[#allocation206_spill] sm:$0xff] %v9795_v2  ;;  %3214 = vrot.lane.b32.xlu0 %v16195_v62, %s7373_s17  ;;  %v9825_v26 = vperm.slane %v9815_v52, 3 }
 0x36c   : > { %v9799_v43 = vpop.permute.xlu2 %2540  ;;  %16286 = vst [vmem:[#allocation210_spill] sm:$0xff] %v9815_v52 }
 0x36d   : > { %16283 = vst [vmem:[#allocation207_spill] sm:$0xff] %v9799_v43  ;;  %v9801_v58 = vpop.permute.xlu0 %2946 }
 0x36e   : > { %16284 = vst [vmem:[#allocation208_spill] sm:$0xff] %v9801_v58 }
 0x36f   : > { %16288 = vst [vmem:[#allocation212_spill] sm:$0xff] %v9825_v26 }
 0x370   : > { %3218 = vrot.lane.b32.xlu1 %v8631_v59, %s7373_s17 }
 0x372   : > { %2796 = vrot.lane.b32.xlu2 %v8039_v15, %s7370_s21  ;;  %v9807_v36 = vpop.permute.xlu1 %2950 }
 0x373   : > { %16285 = vst [vmem:[#allocation209_spill] sm:$0xff] %v9807_v36  ;;  %3220 = vrot.lane.b32.xlu0 %v8668_v28, %s7373_s17 }
 0x374   : > { %v9817_v56 = vpop.permute.xlu2 %2546 }
 0x375   : > { %16287 = vst [vmem:[#allocation211_spill] sm:$0xff] %v9817_v56  ;;  %v9819_v4 = vpop.permute.xlu0 %2952  ;;  %v2563_v29 = vsel %vm2562_vm3, %v9817_v56, %v9280_v33  ;;  %v16297_v33 = vld [vmem:[#allocation35_spill] sm:$0xff] }
 0x376   : > { %v2608_v25 = vmul.f32 %v9338_v23, %v2563_v29 }
 0x378   : > { %3252 = vperm.xlu1 %7075, %v3240_v54   ;;  %v2633_v32 = vmul.f32 %v9825_v26, %v2608_v25  ;;  %v3322_v54 = vld [vmem:[%s15140_s6 + $0x2c0] sm:$0xff]  ;;  %v3323_v25 = vld [vmem:[%s15140_s6 + $0x2c8] sm:$0xff] }
 0x37a   : > { %2802 = vrot.lane.b32.xlu2 %v7794_v37, %s7370_s21  ;;  %v9838_v5 = vpop.permute.xlu1 %2956  ;;  %v9840_v52 = vadd.f32 %v2633_v32, %v2517_v9  ;;  %v3325_v9 = vld [vmem:[%s15140_s6 + $0x2d8] sm:$0xff] }
 0x37b   : > { %16289 = vst [vmem:[#allocation213_spill] sm:$0xff] %v9838_v5  ;;  %3257 = vperm.xlu0 %7074, %v3241_v63  }
 0x37c   : > { %v9842_v24 = vpop.permute.xlu2 %2552 }
 0x37d   : > { %16290 = vst [vmem:[#allocation214_spill] sm:$0xff] %v9842_v24  ;;  %v9844_v56 = vpop.permute.xlu0 %2983 }
 0x37e   : > { %16291 = vst [vmem:[#allocation215_spill] sm:$0xff] %v9844_v56 }
 0x380   : > { %3330 = vperm.xlu1 %7075, %v3322_v54   ;;  %v16295_v54 = vld [vmem:[#allocation7_spill] sm:$0xff] }
 0x382   : > { %2808 = vrot.lane.b32.xlu2 %v8641_v18, %s7370_s21  ;;  %v9854_v29 = vpop.permute.xlu1 %2993 }
 0x383   : > { %16292 = vst [vmem:[#allocation216_spill] sm:$0xff] %v9854_v29  ;;  %3335 = vperm.xlu0 %7074, %v3323_v25  }
 0x384   : > { %v9856_v63 = vpop.permute.xlu2 %2558 }
 0x385   : > { %16293 = vst [vmem:[#allocation217_spill] sm:$0xff] %v9856_v63  ;;  %v9858_v32 = vpop.permute.xlu0 %2998  ;;  %v2565_v24 = vsel %vm2562_vm3, %v16295_v54, %v9856_v63 }
 0x386   : > { %16294 = vst [vmem:[#allocation218_spill] sm:$0xff] %v9858_v32  ;;  %v2616_v5 = vmul.f32 %v9369_v6, %v2565_v24  ;;  %v2564_v24 = vsel %vm2562_vm3, %v16297_v33, %v9296_v57 }
 0x388   : > { %3345 = vperm.xlu1 %7075, %v3325_v9   ;;  %v2641_v23 = vmul.f32 %v9825_v26, %v2616_v5 }
 0x38a   : > { %2814 = vrot.lane.b32.xlu2 %v8629_v27, %s7370_s21  ;;  %v9871_v25 = vpop.permute.xlu1 %3060  ;;  %v9874_v32 = vadd.f32 %v2641_v23, %v9730_v30 }
 0x38b   : > { %16296 = vst [vmem:[#allocation219_spill] sm:$0xff] %v9871_v25  ;;  %3405 = vrot.lane.b32.xlu0 %v15960_v7, %s7374_s30 }
 0x38c   : > { %v9882_v9 = vpop.permute.xlu2 %2592 }
 0x38d   : > { %16298 = vst [vmem:[#allocation220_spill] sm:$0xff] %v9882_v9  ;;  %v9884_v5 = vpop.permute.xlu0 %3062  ;;  %v2612_v54 = vmul.f32 %v9882_v9, %v2564_v24  ;;  %v2843_v24 = vld [vmem:[%s15140_s6 + $0x240] sm:$0xff] }
 0x38e   : > { %16299 = vst [vmem:[#allocation221_spill] sm:$0xff] %v9884_v5 }
 0x38f   : > { %v2637_v23 = vmul.f32 %v9825_v26, %v2612_v54 }
 0x390   : > { %3409 = vrot.lane.b32.xlu1 %v16220_v41, %s7374_s30 }
 0x391   : > { %v2653_v5 = vadd.f32 %v2637_v23, %v9753_v14  ;;  %v2846_v14 = vld [vmem:[%s15140_s6 + $0x258] sm:$0xff] }
 0x392   : > { %2820 = vrot.lane.b32.xlu2 %v8310_v51, %s7370_s21  ;;  %v9892_v30 = vpop.permute.xlu1 %3066  ;;  %s7381_s21 = smov 90  }
 0x393   : > { %16300 = vst [vmem:[#allocation222_spill] sm:$0xff] %v9892_v30  ;;  %3411 = vrot.lane.b32.xlu0 %v8648_v42, %s7374_s30 }
 0x394   : > { %v9896_v33 = vpop.permute.xlu2 %2662 }
 0x395   : > { %16301 = vst [vmem:[#allocation223_spill] sm:$0xff] %v9896_v33  ;;  %v9898_v63 = vpop.permute.xlu0 %3068 }
 0x396   : > { %16302 = vst [vmem:[#allocation224_spill] sm:$0xff] %v9898_v63 }
 0x398   : > { %3415 = vrot.lane.b32.xlu1 %v16228_v45, %s7374_s30 }
 0x39a   : > { %2851 = vperm.xlu2 %7076, %v2843_v24   ;;  %v9906_v54 = vpop.permute.xlu1 %3072 }
 0x39b   : > { %16303 = vst [vmem:[#allocation225_spill] sm:$0xff] %v9906_v54  ;;  %3417 = vrot.lane.b32.xlu0 %v8531_v3, %s7374_s30 }
 0x39c   : > { %v9910_v26 = vpop.permute.xlu2 %2668 }
 0x39d   : > { %16304 = vst [vmem:[#allocation226_spill] sm:$0xff] %v9910_v26  ;;  %v9912_v30 = vpop.permute.xlu0 %3074 }
 0x39e   : > { %16305 = vst [vmem:[#allocation227_spill] sm:$0xff] %v9912_v30 }
 0x3a0   : > { %3421 = vrot.lane.b32.xlu1 %v16236_v20, %s7374_s30 }
 0x3a2   : > { %2866 = vperm.xlu2 %7076, %v2846_v14   ;;  %v9919_v23 = vpop.permute.xlu1 %3078  ;;  %v9936_v14 = vld [vmem:[%s15139_s5 + $0x7] ss:$8 sm:$0xf] }
 0x3a3   : > { %16306 = vst [vmem:[#allocation228_spill] sm:$0xff] %v9919_v23  ;;  %3423 = vrot.lane.b32.xlu0 %v8203_v48, %s7374_s30 }
 0x3a4   : > { %v9923_v24 = vpop.permute.xlu2 %2674  ;;  %16310 = vst [vmem:[#allocation232_spill] sm:$0xff] %v9936_v14 }
 0x3a5   : > { %16307 = vst [vmem:[#allocation229_spill] sm:$0xff] %v9923_v24  ;;  %v9925_v54 = vpop.permute.xlu0 %3080 }
 0x3a6   : > { %16308 = vst [vmem:[#allocation230_spill] sm:$0xff] %v9925_v54  ;;  %v9942_v54 = vperm.slane %v9936_v14, 3 }
 0x3a8   : > { %3427 = vrot.lane.b32.xlu1 %v16251_v12, %s7374_s30  ;;  %16311 = vst [vmem:[#allocation233_spill] sm:$0xff] %v9942_v54 }
 0x3aa   : > { %2930 = vrot.lane.b32.xlu2 %v16220_v41, %s7371_s16  ;;  %v9931_v26 = vpop.permute.xlu1 %3084 }
 0x3ab   : > { %16309 = vst [vmem:[#allocation231_spill] sm:$0xff] %v9931_v26  ;;  %3429 = vrot.lane.b32.xlu0 %v16195_v62, %s7374_s30 }
 0x3ac   : > { %v9944_v33 = vpop.permute.xlu2 %2680 }
 0x3ad   : > { %16312 = vst [vmem:[#allocation234_spill] sm:$0xff] %v9944_v33  ;;  %v9946_v24 = vpop.permute.xlu0 %3086  ;;  %v2696_v6 = vsel %vm2694_vm6, %v9944_v33, %v9484_v35 }
 0x3ae   : > { %16313 = vst [vmem:[#allocation235_spill] sm:$0xff] %v9946_v24  ;;  %v2744_v57 = vmul.f32 %v9575_v53, %v2696_v6  ;;  %v3455_v6 = vld [vmem:[%s15140_s6 + $0x2e8] sm:$0xff] }
 0x3b0   : > { %3433 = vrot.lane.b32.xlu1 %v8631_v59, %s7374_s30  ;;  %v2769_v25 = vmul.f32 %v9942_v54, %v2744_v57 }
 0x3b2   : > { %2936 = vrot.lane.b32.xlu2 %v16228_v45, %s7371_s16  ;;  %v9958_v63 = vpop.permute.xlu1 %3115  ;;  %v9960_v23 = vadd.f32 %v2769_v25, %v2653_v5  ;;  %v3456_v25 = vld [vmem:[%s15140_s6 + $0x2f0] sm:$0xff] }
 0x3b3   : > { %16314 = vst [vmem:[#allocation236_spill] sm:$0xff] %v9958_v63  ;;  %3435 = vrot.lane.b32.xlu0 %v8668_v28, %s7374_s30 }
 0x3b4   : > { %v9964_v24 = vpop.permute.xlu2 %2686 }
 0x3b5   : > { %16315 = vst [vmem:[#allocation237_spill] sm:$0xff] %v9964_v24  ;;  %v9966_v33 = vpop.permute.xlu0 %3120  ;;  %v2695_v57 = vsel %vm2694_vm6, %v9441_v55, %v9964_v24 }
 0x3b6   : > { %16316 = vst [vmem:[#allocation238_spill] sm:$0xff] %v9966_v33  ;;  %v2740_v35 = vmul.f32 %v9556_v10, %v2695_v57 }
 0x3b8   : > { %3467 = vperm.xlu1 %7075, %v3455_v6   ;;  %v2765_v5 = vmul.f32 %v9942_v54, %v2740_v35 }
 0x3ba   : > { %2942 = vrot.lane.b32.xlu2 %v16236_v20, %s7371_s16  ;;  %v9982_v45 = vpop.permute.xlu1 %3130  ;;  %v9985_v53 = vadd.f32 %v2765_v5, %v9840_v52  ;;  %v2697_v52 = vsel %vm2694_vm6, %v9450_v49, %v9504_v39 }
 0x3bb   : > { %16317 = vst [vmem:[#allocation239_spill] sm:$0xff] %v9982_v45  ;;  %3472 = vperm.xlu0 %7074, %v3456_v25  }
 0x3bc   : > { %v9987_v14 = vpop.permute.xlu2 %2692 }
 0x3bd   : > { %16318 = vst [vmem:[#allocation240_spill] sm:$0xff] %v9987_v14  ;;  %v9989_v55 = vpop.permute.xlu0 %3190 }
 0x3be   : > { %16319 = vst [vmem:[#allocation241_spill] sm:$0xff] %v9989_v55 }
 0x3c0   : > { %3537 = vrot.lane.b32.xlu1 %v15960_v7, %s7375_s11 }
 0x3c2   : > { %2948 = vrot.lane.b32.xlu2 %v16251_v12, %s7371_s16  ;;  %v9995_v35 = vpop.permute.xlu1 %3194 }
 0x3c3   : > { %16320 = vst [vmem:[#allocation242_spill] sm:$0xff] %v9995_v35  ;;  %3539 = vrot.lane.b32.xlu0 %v8039_v15, %s7375_s11 }
 0x3c4   : > { %v10003_v6 = vpop.permute.xlu2 %2729 }
 0x3c5   : > { %16321 = vst [vmem:[#allocation243_spill] sm:$0xff] %v10003_v6  ;;  %v10005_v57 = vpop.permute.xlu0 %3196  ;;  %v2748_v25 = vmul.f32 %v10003_v6, %v2697_v52  ;;  %v2976_v52 = vld [vmem:[%s15140_s6 + $0x268] sm:$0xff] }
 0x3c6   : > { %16322 = vst [vmem:[#allocation244_spill] sm:$0xff] %v10005_v57 }
 0x3c7   : > { %v2773_v5 = vmul.f32 %v9942_v54, %v2748_v25  ;;  %v3589_v25 = vld [vmem:[%s15140_s6 + $0x318] sm:$0xff] }
 0x3c8   : > { %3543 = vrot.lane.b32.xlu1 %v8648_v42, %s7375_s11 }
 0x3c9   : > { %v2789_v57 = vadd.f32 %v2773_v5, %v9874_v32 }
 0x3ca   : > { %2954 = vrot.lane.b32.xlu2 %v8631_v59, %s7371_s16  ;;  %v10013_v45 = vpop.permute.xlu1 %3200 }
 0x3cb   : > { %16323 = vst [vmem:[#allocation245_spill] sm:$0xff] %v10013_v45  ;;  %3545 = vrot.lane.b32.xlu0 %v7794_v37, %s7375_s11 }
 0x3cc   : > { %v10017_v49 = vpop.permute.xlu2 %2796 }
 0x3cd   : > { %v10019_v55 = vpop.permute.xlu0 %3202 }
 0x3ce   : > { %16324 = vst [vmem:[#allocation246_spill] sm:$0xff] %v10019_v55 }
 0x3d0   : > { %3567 = vrot.lane.b32.xlu1 %v8668_v28, %s7375_s11 }
 0x3d2   : > { %2988 = vperm.xlu2 %7076, %v2976_v52   ;;  %v10030_v54 = vpop.permute.xlu1 %3206 }
 0x3d3   : > { %16325 = vst [vmem:[#allocation247_spill] sm:$0xff] %v10030_v54  ;;  %3609 = vperm.xlu0 %7074, %v3589_v25   ;;  %v3588_v25 = vld [vmem:[%s15140_s6 + $0x310] sm:$0xff] }
 0x3d4   : > { %v10032_v14 = vpop.permute.xlu2 %2802 }
 0x3d5   : > { %16326 = vst [vmem:[#allocation248_spill] sm:$0xff] %v10032_v14  ;;  %v10034_v10 = vpop.permute.xlu0 %3208 }
 0x3d6   : > { %16327 = vst [vmem:[#allocation249_spill] sm:$0xff] %v10034_v10  ;;  %v3984_v10 = vld [vmem:[%s15140_s6 + $0x370] sm:$0xff] }
 0x3d8   : > { %3565 = vrot.lane.b32.xlu1 %v8631_v59, %s7375_s11 }
 0x3da   : > { %3058 = vrot.lane.b32.xlu2 %v15960_v7, %s7372_s22  ;;  %v10040_v32 = vpop.permute.xlu1 %3212 }
 0x3db   : > { %16328 = vst [vmem:[#allocation250_spill] sm:$0xff] %v10040_v32  ;;  %3675 = vrot.lane.b32.xlu0 %v8648_v42, %s7376_s15  ;;  %v10060_v32 = vld [vmem:[%s15139_s5 + $0x20] ss:$8 sm:$0xf] }
 0x3dc   : > { %v10044_v5 = vpop.permute.xlu2 %2808 }
 0x3dd   : > { %16329 = vst [vmem:[#allocation251_spill] sm:$0xff] %v10044_v5  ;;  %v10046_v52 = vpop.permute.xlu0 %3214  ;;  %v10064_v5 = vperm.slane %v10060_v32, 3 }
 0x3de   : > { %16330 = vst [vmem:[#allocation252_spill] sm:$0xff] %v10046_v52 }
 0x3df   : > { %16332 = vst [vmem:[#allocation254_spill] sm:$0xff] %v10064_v5 }
 0x3e0   : > { %3699 = vrot.lane.b32.xlu1 %v8668_v28, %s7376_s15 }
 0x3e2   : > { %3064 = vrot.lane.b32.xlu2 %v8648_v42, %s7372_s22  ;;  %v10055_v14 = vpop.permute.xlu1 %3218 }
 0x3e3   : > { %16331 = vst [vmem:[#allocation253_spill] sm:$0xff] %v10055_v14  ;;  %3604 = vperm.xlu0 %7074, %v3588_v25  }
 0x3e4   : > { %v10066_v24 = vpop.permute.xlu2 %2814 }
 0x3e5   : > { %16333 = vst [vmem:[#allocation255_spill] sm:$0xff] %v10066_v24  ;;  %v10068_v39 = vpop.permute.xlu0 %3220  ;;  %v2829_v35 = vsel %vm15794_vm2, %v10066_v24, %v9697_v8 }
 0x3e6   : > { %16334 = vst [vmem:[#allocation256_spill] sm:$0xff] %v10068_v39  ;;  %v2880_v55 = vmul.f32 %v9736_v31, %v2829_v35 }
 0x3e8   : > { %3555 = vrot.lane.b32.xlu1 %v8203_v48, %s7375_s11  ;;  %v2905_v25 = vmul.f32 %v10064_v5, %v2880_v55 }
 0x3ea   : > { %3070 = vrot.lane.b32.xlu2 %v8531_v3, %s7372_s22  ;;  %v10080_v6 = vpop.permute.xlu1 %3252  ;;  %v10082_v54 = vadd.f32 %v2905_v25, %v2789_v57 }
 0x3eb   : > { %16335 = vst [vmem:[#allocation257_spill] sm:$0xff] %v10080_v6  ;;  %3563 = vrot.lane.b32.xlu0 %v8310_v51, %s7375_s11 }
 0x3ec   : > { %v10086_v39 = vpop.permute.xlu2 %2820 }
 0x3ed   : > { %v10088_v24 = vpop.permute.xlu0 %3257  ;;  %v2828_v35 = vsel %vm15794_vm2, %v9674_v13, %v10086_v39 }
 0x3ee   : > { %16336 = vst [vmem:[#allocation258_spill] sm:$0xff] %v10088_v24  ;;  %v2876_v55 = vmul.f32 %v9725_v44, %v2828_v35  ;;  %v2827_v35 = vsel %vm15794_vm2, %v9667_v61, %v9686_v11 }
 0x3f0   : > { %3689 = vrot.lane.b32.xlu1 %v8629_v27, %s7376_s15  ;;  %v2901_v57 = vmul.f32 %v10064_v5, %v2876_v55 }
 0x3f2   : > { %3076 = vrot.lane.b32.xlu2 %v8203_v48, %s7372_s22  ;;  %v10100_v25 = vpop.permute.xlu1 %3330  ;;  %v10103_v8 = vadd.f32 %v2901_v57, %v9960_v23 }
 0x3f3   : > { %16337 = vst [vmem:[#allocation259_spill] sm:$0xff] %v10100_v25  ;;  %3697 = vrot.lane.b32.xlu0 %v8631_v59, %s7376_s15 }
 0x3f4   : > { %v10107_v3 = vpop.permute.xlu2 %2851 }
 0x3f5   : > { %16338 = vst [vmem:[#allocation260_spill] sm:$0xff] %v10107_v3  ;;  %v10109_v13 = vpop.permute.xlu0 %3335  ;;  %v2872_v55 = vmul.f32 %v10107_v3, %v2827_v35  ;;  %v3720_v35 = vld [vmem:[%s15140_s6 + $0x330] sm:$0xff] }
 0x3f6   : > { %16339 = vst [vmem:[#allocation261_spill] sm:$0xff] %v10109_v13 }
 0x3f7   : > { %v2897_v23 = vmul.f32 %v10064_v5, %v2872_v55  ;;  %v3853_v55 = vld [vmem:[%s15140_s6 + $0x358] sm:$0xff] }
 0x3f8   : > { %3823 = vrot.lane.b32.xlu1 %v16251_v12, %s7377_s19 }
 0x3f9   : > { %v2913_v61 = vadd.f32 %v2897_v23, %v9985_v53  ;;  %v3109_v23 = vld [vmem:[%s15140_s6 + $0x290] sm:$0xff] }
 0x3fa   : > { %3082 = vrot.lane.b32.xlu2 %v16195_v62, %s7372_s22  ;;  %v10121_v57 = vpop.permute.xlu1 %3345 }
 0x3fb   : > { %16340 = vst [vmem:[#allocation262_spill] sm:$0xff] %v10121_v57  ;;  %3831 = vrot.lane.b32.xlu0 %v8668_v28, %s7377_s19 }
 0x3fc   : > { %v10125_v25 = vpop.permute.xlu2 %2866 }
 0x3fd   : > { %16341 = vst [vmem:[#allocation263_spill] sm:$0xff] %v10125_v25  ;;  %v10128_v11 = vpop.permute.xlu0 %3405 }
 0x3fe   : > { %16342 = vst [vmem:[#allocation264_spill] sm:$0xff] %v10128_v11 }
 0x400   : > { %3736 = vperm.xlu1 %7075, %v3720_v35  }
 0x402   : > { %3088 = vrot.lane.b32.xlu2 %v8668_v28, %s7372_s22  ;;  %v10138_v5 = vpop.permute.xlu1 %3409  ;;  %s7379_s22 = smov 107  }
 0x403   : > { %16343 = vst [vmem:[#allocation265_spill] sm:$0xff] %v10138_v5  ;;  %3873 = vperm.xlu0 %7074, %v3853_v55  }
 0x404   : > { %v10140_v57 = vpop.permute.xlu2 %2930 }
 0x405   : > { %16344 = vst [vmem:[#allocation266_spill] sm:$0xff] %v10140_v57  ;;  %v10142_v53 = vpop.permute.xlu0 %3411 }
 0x406   : > { %16345 = vst [vmem:[#allocation267_spill] sm:$0xff] %v10142_v53 }
 0x408   : > { %3561 = vrot.lane.b32.xlu1 %v16195_v62, %s7375_s11 }
 0x40a   : > { %3125 = vperm.xlu2 %7076, %v3109_v23   ;;  %v10149_v35 = vpop.permute.xlu1 %3415  ;;  %v10166_v23 = vld [vmem:[%s15139_s5 + $0x21] ss:$8 sm:$0xf] }
 0x40b   : > { %16346 = vst [vmem:[#allocation268_spill] sm:$0xff] %v10149_v35  ;;  %3671 = vrot.lane.b32.xlu0 %v8039_v15, %s7376_s15  ;;  %v10172_v35 = vperm.slane %v10166_v23, 3 }
 0x40c   : > { %v10153_v11 = vpop.permute.xlu2 %2936 }
 0x40d   : > { %16347 = vst [vmem:[#allocation269_spill] sm:$0xff] %v10153_v11  ;;  %v10155_v55 = vpop.permute.xlu0 %3417 }
 0x40e   : > { %16348 = vst [vmem:[#allocation270_spill] sm:$0xff] %v10155_v55 }
 0x40f   : > { %16350 = vst [vmem:[#allocation272_spill] sm:$0xff] %v10172_v35 }
 0x410   : > { %3695 = vrot.lane.b32.xlu1 %v8310_v51, %s7376_s15 }
 0x412   : > { %3192 = vrot.lane.b32.xlu2 %v8039_v15, %s7373_s17  ;;  %v10161_v53 = vpop.permute.xlu1 %3421 }
 0x413   : > { %16349 = vst [vmem:[#allocation271_spill] sm:$0xff] %v10161_v53  ;;  %3805 = vrot.lane.b32.xlu0 %v16220_v41, %s7377_s19 }
 0x414   : > { %v10174_v5 = vpop.permute.xlu2 %2942 }
 0x415   : > { %16351 = vst [vmem:[#allocation273_spill] sm:$0xff] %v10174_v5  ;;  %v10176_v55 = vpop.permute.xlu0 %3423  ;;  %v2959_v53 = vsel %vm15787_vm8, %v10174_v5, %v9807_v36 }
 0x416   : > { %16352 = vst [vmem:[#allocation274_spill] sm:$0xff] %v10176_v55  ;;  %v3004_v25 = vmul.f32 %v9844_v56, %v2959_v53 }
 0x418   : > { %3829 = vrot.lane.b32.xlu1 %v8631_v59, %s7377_s19  ;;  %v3029_v3 = vmul.f32 %v10172_v35, %v3004_v25  ;;  %v3586_v25 = vld [vmem:[%s15140_s6 + $0x300] sm:$0xff] }
 0x41a   : > { %3198 = vrot.lane.b32.xlu2 %v7794_v37, %s7373_s17  ;;  %v10188_v31 = vpop.permute.xlu1 %3427  ;;  %v10190_v57 = vadd.f32 %v3029_v3, %v2913_v61 }
 0x41b   : > { %16353 = vst [vmem:[#allocation275_spill] sm:$0xff] %v10188_v31  ;;  %3939 = vrot.lane.b32.xlu0 %v8648_v42, %s7378_s14 }
 0x41c   : > { %v10194_v55 = vpop.permute.xlu2 %2948 }
 0x41d   : > { %16354 = vst [vmem:[#allocation276_spill] sm:$0xff] %v10194_v55  ;;  %v10196_v5 = vpop.permute.xlu0 %3429  ;;  %v3852_v55 = vld [vmem:[%s15140_s6 + $0x350] sm:$0xff] }
 0x41e   : > { %16355 = vst [vmem:[#allocation277_spill] sm:$0xff] %v10196_v5 }
 0x420   : > { %3963 = vrot.lane.b32.xlu1 %v8668_v28, %s7378_s14 }
 0x422   : > { %3204 = vrot.lane.b32.xlu2 %v8641_v18, %s7373_s17  ;;  %v10205_v3 = vpop.permute.xlu1 %3433 }
 0x423   : > { %16356 = vst [vmem:[#allocation278_spill] sm:$0xff] %v10205_v3  ;;  %3594 = vperm.xlu0 %7074, %v3586_v25   ;;  %v3985_v25 = vld [vmem:[%s15140_s6 + $0x378] sm:$0xff] }
 0x424   : > { %v10207_v61 = vpop.permute.xlu2 %2954 }
 0x425   : > { %16357 = vst [vmem:[#allocation279_spill] sm:$0xff] %v10207_v61  ;;  %v10209_v53 = vpop.permute.xlu0 %3435  ;;  %v2961_v31 = vsel %vm15787_vm8, %v9801_v58, %v10207_v61  ;;  %v3851_v61 = vld [vmem:[%s15140_s6 + $0x348] sm:$0xff] }
 0x426   : > { %16358 = vst [vmem:[#allocation280_spill] sm:$0xff] %v10209_v53  ;;  %v3012_v5 = vmul.f32 %v9854_v29, %v2961_v31  ;;  %v2960_v31 = vsel %vm15787_vm8, %v9795_v2, %v9819_v4  ;;  %v16380_v29 = vld [vmem:[#allocation115_spill] sm:$0xff] }
 0x428   : > { %3868 = vperm.xlu1 %7075, %v3852_v55   ;;  %v3037_v3 = vmul.f32 %v10172_v35, %v3012_v5 }
 0x42a   : > { %3210 = vrot.lane.b32.xlu2 %v8629_v27, %s7373_s17  ;;  %v10225_v53 = vpop.permute.xlu1 %3467  ;;  %v10228_v56 = vadd.f32 %v3037_v3, %v10082_v54 }
 0x42b   : > { %16359 = vst [vmem:[#allocation281_spill] sm:$0xff] %v10225_v53  ;;  %4005 = vperm.xlu0 %7074, %v3985_v25  }
 0x42c   : > { %v10230_v36 = vpop.permute.xlu2 %2988 }
 0x42d   : > { %16360 = vst [vmem:[#allocation282_spill] sm:$0xff] %v10230_v36  ;;  %v10236_v55 = vpop.permute.xlu0 %3472  ;;  %v3008_v5 = vmul.f32 %v10230_v36, %v2960_v31  ;;  %v3239_v31 = vld [vmem:[%s15140_s6 + $0x2a0] sm:$0xff] }
 0x42e   : > { %16361 = vst [vmem:[#allocation283_spill] sm:$0xff] %v10236_v55 }
 0x42f   : > { %v3033_v53 = vmul.f32 %v10172_v35, %v3008_v5 }
 0x430   : > { %3685 = vrot.lane.b32.xlu1 %v16236_v20, %s7376_s15 }
 0x431   : > { %v3049_v3 = vadd.f32 %v3033_v53, %v10103_v8  ;;  %v3242_v53 = vld [vmem:[%s15140_s6 + $0x2b8] sm:$0xff] }
 0x432   : > { %3216 = vrot.lane.b32.xlu2 %v8310_v51, %s7373_s17  ;;  %v10244_v54 = vpop.permute.xlu1 %3537  ;;  %s7384_s17 = smov 87  }
 0x433   : > { %16362 = vst [vmem:[#allocation284_spill] sm:$0xff] %v10244_v54  ;;  %3693 = vrot.lane.b32.xlu0 %v16195_v62, %s7376_s15  ;;  %v10327_v62 = vperm.slane %v9481_v0, 1 }
 0x434   : > { %v10249_v25 = vpop.permute.xlu2 %3058 }
 0x435   : > { %16363 = vst [vmem:[#allocation285_spill] sm:$0xff] %v10249_v25  ;;  %v10251_v2 = vpop.permute.xlu0 %3539  ;;  %v16377_v25 = vld [vmem:[#allocation73_spill] sm:$0xff] }
 0x436   : > { %16364 = vst [vmem:[#allocation286_spill] sm:$0xff] %v10251_v2 }
 0x438   : > { %3819 = vrot.lane.b32.xlu1 %v8203_v48, %s7377_s19 }
 0x43a   : > { %3247 = vperm.xlu2 %7076, %v3239_v31   ;;  %v10258_v5 = vpop.permute.xlu1 %3543 }
 0x43b   : > { %16365 = vst [vmem:[#allocation287_spill] sm:$0xff] %v10258_v5  ;;  %3827 = vrot.lane.b32.xlu0 %v8310_v51, %s7377_s19 }
 0x43c   : > { %v10262_v35 = vpop.permute.xlu2 %3064 }
 0x43d   : > { %16366 = vst [vmem:[#allocation288_spill] sm:$0xff] %v10262_v35  ;;  %v10264_v8 = vpop.permute.xlu0 %3545 }
 0x43e   : > { %16367 = vst [vmem:[#allocation289_spill] sm:$0xff] %v10264_v8  ;;  %v3324_v8 = vld [vmem:[%s15140_s6 + $0x2d0] sm:$0xff] }
 0x440   : > { %3953 = vrot.lane.b32.xlu1 %v8629_v27, %s7378_s14 }
 0x442   : > { %3262 = vperm.xlu2 %7076, %v3242_v53   ;;  %v10271_v54 = vpop.permute.xlu1 %3567  ;;  %v10289_v53 = vld [vmem:[%s15139_s5 + $0x22] ss:$8 sm:$0xf] }
 0x443   : > { %16368 = vst [vmem:[#allocation290_spill] sm:$0xff] %v10271_v54  ;;  %3961 = vrot.lane.b32.xlu0 %v8631_v59, %s7378_s14  ;;  %v16372_v54 = vld [vmem:[#allocation111_spill] sm:$0xff]  ;;  %v10299_v58 = vperm.slane %v10289_v53, 3 }
 0x444   : > { %v10275_v31 = vpop.permute.xlu2 %3070 }
 0x445   : > { %16369 = vst [vmem:[#allocation291_spill] sm:$0xff] %v10275_v31  ;;  %v10277_v5 = vpop.permute.xlu0 %3609  ;;  %v16379_v31 = vld [vmem:[#allocation72_spill] sm:$0xff] }
 0x446   : > { %16370 = vst [vmem:[#allocation292_spill] sm:$0xff] %v10277_v5  ;;  %v16373_v5 = vld [vmem:[#allocation71_spill] sm:$0xff]  ;;  %v2044_v59 = vsel %vm2034_vm15, %v16380_v29, %v16379_v31  ;;  %v10341_v31 = vperm.slane %v9509_v16, 1 }
 0x447   : > { %v1781_v55 = vsel %vm1771_vm7, %v16373_v5, %v16372_v54  ;;  %16374 = vst [vmem:[#allocation71_spill] sm:$0xff] %v10299_v58  ;;  %v16378_v54 = vld [vmem:[#allocation70_spill] sm:$0xff] }
 0x448   : > { %4087 = vrot.lane.b32.xlu1 %v16251_v12, %s7379_s22  ;;  %v1818_v52 = vmul.f32 %v16200_v46, %v1781_v55 }
 0x44a   : > { %3340 = vperm.xlu2 %7076, %v3324_v8   ;;  %v10284_v2 = vpop.permute.xlu1 %3565  ;;  %v1843_v0 = vmul.f32 %v10327_v62, %v1818_v52  ;;  %v10360_v52 = vperm.slane %v9531_v1, 1 }
 0x44b   : > { %16371 = vst [vmem:[#allocation293_spill] sm:$0xff] %v10284_v2  ;;  %4095 = vrot.lane.b32.xlu0 %v8668_v28, %s7379_s22  ;;  %v1912_v28 = vsel %vm1902_vm12, %v16378_v54, %v16377_v25 }
 0x44c   : > { %v10301_v8 = vpop.permute.xlu2 %3076  ;;  %v1950_v25 = vmul.f32 %v16196_v34, %v1912_v28  ;;  %16386 = vst [vmem:[#allocation297_spill] sm:$0xff] %v10360_v52 }
 0x44d   : > { %16375 = vst [vmem:[#allocation294_spill] sm:$0xff] %v10301_v8  ;;  %v10303_v2 = vpop.permute.xlu0 %3675  ;;  %v3092_v35 = vsel %vm15776_vm14, %v10301_v8, %v9931_v26  ;;  %v2082_v26 = vmul.f32 %v16202_v19, %v2044_v59 }
 0x44e   : > { %16376 = vst [vmem:[#allocation295_spill] sm:$0xff] %v10303_v2  ;;  %v3140_v2 = vmul.f32 %v9966_v33, %v3092_v35 }
 0x450   : > { %3863 = vperm.xlu1 %7075, %v3851_v61   ;;  %v3165_v8 = vmul.f32 %v10299_v58, %v3140_v2  ;;  %v10338_v61 = vperm.slane %v9491_v60, 1  ;;  %v16383_v2 = vld [vmem:[#allocation75_spill] sm:$0xff]  ;;  %v2107_v60 = vmul.f32 %v10341_v31, %v2082_v26 }
 0x451   : > { %v2176_v59 = vsel %vm2166_vm1, %v16383_v2, %v9282_v50 }
 0x452   : > { %3407 = vrot.lane.b32.xlu2 %v8039_v15, %s7374_s30  ;;  %v10333_v35 = vpop.permute.xlu1 %3699  ;;  %v10335_v55 = vadd.f32 %v3165_v8, %v3049_v3  ;;  %v2214_v28 = vmul.f32 %v9421_v38, %v2176_v59  ;;  %v1975_v3 = vmul.f32 %v10338_v61, %v1950_v25  ;;  %v16387_v59 = vld [vmem:[#allocation139_spill] sm:$0xff] }
 0x453   : > { %16381 = vst [vmem:[#allocation70_spill] sm:$0xff] %v10333_v35  ;;  %4000 = vperm.xlu0 %7074, %v3984_v10   ;;  %v2440_v25 = vsel %vm2430_vm5, %v9663_v40, %v16387_v59 }
 0x454   : > { %16382 = vst [vmem:[#allocation115_spill] sm:$0xff] %v10335_v55  ;;  %v10349_v24 = vpop.permute.xlu2 %3082  ;;  %v1991_v35 = vadd.f32 %v1975_v3, %v1843_v0  ;;  %v2239_v26 = vmul.f32 %v10360_v52, %v2214_v28  ;;  %v10376_v0 = vperm.slane %v9547_v17, 1  ;;  %v16394_v17 = vld [vmem:[#allocation190_spill] sm:$0xff] }
 0x455   : > { %16384 = vst [vmem:[#allocation75_spill] sm:$0xff] %v10349_v24  ;;  %v10353_v8 = vpop.permute.xlu0 %3604  ;;  %v3091_v16 = vsel %vm15776_vm14, %v9912_v30, %v10349_v24  ;;  %v16388_v30 = vld [vmem:[#allocation121_spill] sm:$0xff]  ;;  %v16389_v24 = vld [vmem:[#allocation118_spill] sm:$0xff] }
 0x456   : > { %16385 = vst [vmem:[#allocation296_spill] sm:$0xff] %v10353_v8  ;;  %v3136_v10 = vmul.f32 %v9958_v63, %v3091_v16  ;;  %v2123_v8 = vadd.f32 %v2107_v60, %v1991_v35  ;;  %v2308_v1 = vsel %vm2298_vm0, %v16389_v24, %v16388_v30  ;;  %v2478_v16 = vmul.f32 %v16270_v21, %v2440_v25  ;;  %v16393_v35 = vld [vmem:[#allocation154_spill] sm:$0xff]  ;;  %v16400_v63 = vld [vmem:[#allocation180_spill] sm:$0xff] }
 0x457   : > { %16390 = vst [vmem:[#allocation118_spill] sm:$0xff] %v10376_v0  ;;  %v2346_v3 = vmul.f32 %v16222_v22, %v2308_v1  ;;  %v2572_v60 = vsel %vm2562_vm3, %v16393_v35, %v9799_v43  ;;  %v10394_v1 = vperm.slane %v16394_v17, 1 }
 0x458   : > { %3801 = vrot.lane.b32.xlu1 %v15960_v7, %s7377_s19  ;;  %v3161_v50 = vmul.f32 %v10299_v58, %v3136_v10  ;;  %v2255_v25 = vadd.f32 %v2239_v26, %v2123_v8  ;;  %v2610_v59 = vmul.f32 %v9882_v9, %v2572_v60  ;;  %v16401_v26 = vld [vmem:[#allocation157_spill] sm:$0xff]  ;;  %v16402_v60 = vld [vmem:[#allocation8_spill] sm:$0xff] }
 0x459   : > { %16395 = vst [vmem:[#allocation154_spill] sm:$0xff] %v10394_v1  ;;  %v2503_v43 = vmul.f32 %v10394_v1, %v2478_v16  ;;  %v16405_v16 = vld [vmem:[#allocation9_spill] sm:$0xff] }
 0x45a   : > { %3413 = vrot.lane.b32.xlu2 %v7794_v37, %s7374_s30  ;;  %v10382_v28 = vpop.permute.xlu1 %3555  ;;  %v10385_v10 = vadd.f32 %v3161_v50, %v10190_v57  ;;  %v2371_v50 = vmul.f32 %v10376_v0, %v2346_v3  ;;  %v16398_v57 = vld [vmem:[#allocation210_spill] sm:$0xff]  ;;  %v2704_v3 = vsel %vm2694_vm6, %v16402_v60, %v16401_v26 }
 0x45b   : > { %16391 = vst [vmem:[#allocation298_spill] sm:$0xff] %v10382_v28  ;;  %3817 = vrot.lane.b32.xlu0 %v16236_v20, %s7377_s19  ;;  %v10403_v37 = vperm.slane %v16398_v57, 1  ;;  %v2836_v20 = vsel %vm15794_vm2, %v10017_v49, %v16400_v63  ;;  %v2742_v1 = vmul.f32 %v16405_v16, %v2704_v3  ;;  %v10433_v63 = vperm.slane %v10060_v32, 1  ;;  %v16408_v3 = vld [vmem:[#allocation235_spill] sm:$0xff] }
 0x45c   : > { %16392 = vst [vmem:[#allocation299_spill] sm:$0xff] %v10385_v10  ;;  %v10397_v30 = vpop.permute.xlu2 %3088  ;;  %v2387_v10 = vadd.f32 %v2371_v50, %v2255_v25  ;;  %v2874_v0 = vmul.f32 %v9725_v44, %v2836_v20  ;;  %v16407_v25 = vld [vmem:[#allocation199_spill] sm:$0xff] }
 0x45d   : > { %16396 = vst [vmem:[#allocation190_spill] sm:$0xff] %v10397_v30  ;;  %v10399_v28 = vpop.permute.xlu0 %3563  ;;  %v2635_v8 = vmul.f32 %v10403_v37, %v2610_v59  ;;  %v2968_v50 = vsel %vm15787_vm8, %v16407_v25, %v10153_v11 }
 0x45e   : > { %16397 = vst [vmem:[#allocation300_spill] sm:$0xff] %v10399_v28  ;;  %v16403_v28 = vld [vmem:[#allocation232_spill] sm:$0xff]  ;;  %v2519_v55 = vadd.f32 %v2503_v43, %v2387_v10  ;;  %v3006_v26 = vmul.f32 %v10230_v36, %v2968_v50  ;;  %v2899_v52 = vmul.f32 %v10433_v63, %v2874_v0  ;;  %v16413_v50 = vld [vmem:[#allocation219_spill] sm:$0xff] }
 0x45f   : > { %16399 = vst [vmem:[#allocation210_spill] sm:$0xff] %v10403_v37  ;;  %v10418_v30 = vperm.slane %v16403_v28, 1  ;;  %v16409_v43 = vld [vmem:[#allocation228_spill] sm:$0xff] }
 0x460   : > { %3935 = vrot.lane.b32.xlu1 %v8039_v15, %s7378_s14  ;;  %v3093_v20 = vsel %vm15776_vm14, %v16409_v43, %v16408_v3  ;;  %v2651_v10 = vadd.f32 %v2635_v8, %v2519_v55  ;;  %v16412_v8 = vld [vmem:[#allocation224_spill] sm:$0xff] }
 0x461   : > { %16404 = vst [vmem:[#allocation8_spill] sm:$0xff] %v10418_v30  ;;  %v2767_v37 = vmul.f32 %v10418_v30, %v2742_v1  ;;  %v10459_v1 = vperm.slane %v10289_v53, 1  ;;  %v16416_v0 = vld [vmem:[#allocation76_spill] sm:$0xff] }
 0x462   : > { %3419 = vrot.lane.b32.xlu2 %v8641_v18, %s7374_s30  ;;  %v10424_v59 = vpop.permute.xlu1 %3689 }
 0x463   : > { %16406 = vst [vmem:[#allocation232_spill] sm:$0xff] %v10424_v59  ;;  %3951 = vrot.lane.b32.xlu0 %v8203_v48, %s7378_s14  ;;  %v10447_v48 = vperm.slane %v10166_v23, 1  ;;  %v2783_v14 = vadd.f32 %v2767_v37, %v2651_v10 }
 0x464   : > { %v10440_v59 = vpop.permute.xlu2 %3125  ;;  %16414 = vst [vmem:[#allocation219_spill] sm:$0xff] %v10459_v1 }
 0x465   : > { %v10442_v18 = vpop.permute.xlu0 %3697  ;;  %v3144_v11 = vmul.f32 %v10440_v59, %v3093_v20  ;;  %16411 = vst [vmem:[#allocation301_spill] sm:$0xff] %v10447_v48  ;;  %v3031_v55 = vmul.f32 %v10447_v48, %v3006_v26  ;;  %v3100_v20 = vsel %vm15776_vm14, %v16413_v50, %v16412_v8  ;;  %v2915_v43 = vadd.f32 %v2899_v52, %v2783_v14  ;;  %v10479_v14 = vld [vmem:[%s15139_s5 + $0x23] ss:$8 sm:$0xf] }
 0x466   : > { %16410 = vst [vmem:[#allocation199_spill] sm:$0xff] %v10442_v18  ;;  %v3138_v18 = vmul.f32 %v9966_v33, %v3100_v20  ;;  %v1916_v26 = vsel %vm1902_vm12, %v16416_v0, %v16378_v54  ;;  %v16417_v20 = vld [vmem:[#allocation77_spill] sm:$0xff] }
 0x467   : > { %v3169_v15 = vmul.f32 %v10299_v58, %v3144_v11  ;;  %v3047_v52 = vadd.f32 %v3031_v55, %v2915_v43  ;;  %v10500_v55 = vperm.slane %v10479_v14, 1  ;;  %v10508_v58 = vld [vmem:[%s15139_s5 + $0x1] ss:$8 sm:$0xf] }
 0x468   : > { %4069 = vrot.lane.b32.xlu1 %v16220_v41, %s7379_s22  ;;  %v3163_v43 = vmul.f32 %v10459_v1, %v3138_v18  ;;  %16421 = vst [vmem:[#allocation303_spill] sm:$0xff] %v10508_v58  ;;  %v16422_v18 = vld [vmem:[#allocation126_spill] sm:$0xff]  ;;  %v16443_v48 = vld [vmem:[#allocation25_spill] sm:$0xff] }
 0x469   : > { %v10469_v11 = vadd.f32 %v3169_v15, %v10228_v56  ;;  %v1785_v15 = vsel %vm1771_vm7, %v16417_v20, %v16373_v5  ;;  %v10490_v56 = vld [vmem:[%s15139_s5 + $0x24] ss:$8 sm:$0xf]  ;;  %16419 = vst [vmem:[#allocation77_spill] sm:$0xff] %v10500_v55  ;;  %v2048_v8 = vsel %vm2034_vm15, %v16422_v18, %v16380_v29 }
 0x46a   : > { %3425 = vrot.lane.b32.xlu2 %v8629_v27, %s7374_s30  ;;  %v10464_v37 = vpop.permute.xlu1 %3823  ;;  %v1817_v3 = vmul.f32 %v16200_v46, %v1785_v15  ;;  %v2081_v29 = vmul.f32 %v16202_v19, %v2048_v8  ;;  %v16427_v46 = vld [vmem:[#allocation112_spill] sm:$0xff] }
 0x46b   : > { %16415 = vst [vmem:[#allocation302_spill] sm:$0xff] %v10464_v37  ;;  %4085 = vrot.lane.b32.xlu0 %v8629_v27, %s7379_s22  ;;  %v16420_v37 = vld [vmem:[#allocation11_spill] sm:$0xff]  ;;  %v2180_v8 = vsel %vm2166_vm1, %v16427_v46, %v16383_v2 }
 0x46c   : > { %v10481_v10 = vpop.permute.xlu2 %3192  ;;  %v3353_v5 = vmul.f32 %v10109_v13, %v16420_v37  ;;  %v10520_v37 = vperm.slane %v10490_v56, 1 }
 0x46d   : > { %v10492_v54 = vpop.permute.xlu0 %3831  ;;  %v3232_v0 = vsel %vm15772_vm4, %v10481_v10, %v10013_v45  ;;  %v1949_v45 = vmul.f32 %v16196_v34, %v1916_v26  ;;  %v10528_v26 = vld [vmem:[%s15139_s5] ss:$8 sm:$0xf] }
 0x46e   : > { %16418 = vst [vmem:[#allocation76_spill] sm:$0xff] %v10492_v54  ;;  %v3270_v20 = vmul.f32 %v10080_v6, %v3232_v0  ;;  %v10511_v54 = vperm.slane %v10508_v58, 0  ;;  %v3179_v0 = vadd.f32 %v3163_v43, %v3047_v52  ;;  %v10531_v34 = vperm.slane %v10528_v26, 0  ;;  %v10542_v43 = vld [vmem:[%s15139_s5 + $0x2] ss:$8 sm:$0xf] }
 0x46f   : > { %16423 = vst [vmem:[#allocation126_spill] sm:$0xff] %v10520_v37  ;;  %v3378_v15 = vmul.f32 %v10520_v37, %v3353_v5 }
 0x470   : > { %4203 = vrot.lane.b32.xlu1 %v8648_v42, %s7380_s23  ;;  %v3295_v58 = vmul.f32 %v10500_v55, %v3270_v20  ;;  %16424 = vst [vmem:[#allocation304_spill] sm:$0xff] %v10528_v26  ;;  %v10545_v20 = vperm.slane %v10542_v43, 0  ;;  %v1974_v5 = vmul.f32 %v10511_v54, %v1949_v45  ;;  %v10569_v45 = vld [vmem:[%s15139_s5 + $0x3] ss:$8 sm:$0xf] }
 0x471   : > { %16426 = vst [vmem:[#allocation306_spill] sm:$0xff] %v10542_v43  ;;  %v3850_v43 = vld [vmem:[%s15140_s6 + $0x340] sm:$0xff]  ;;  %v10572_v2 = vperm.slane %v10569_v45, 0 }
 0x472   : > { %3431 = vrot.lane.b32.xlu2 %v8310_v51, %s7374_s30  ;;  %v10537_v18 = vpop.permute.xlu1 %3736  ;;  %v3311_v52 = vadd.f32 %v3295_v58, %v3179_v0  ;;  %v1842_v58 = vmul.f32 %v10531_v34, %v1817_v3  ;;  %v2213_v0 = vmul.f32 %v9421_v38, %v2180_v8  ;;  %v2106_v46 = vmul.f32 %v10545_v20, %v2081_v29  ;;  %v16433_v3 = vld [vmem:[#allocation195_spill] sm:$0xff]  ;;  %v16434_v8 = vld [vmem:[#allocation49_spill] sm:$0xff]  ;;  %v16437_v38 = vld [vmem:[#allocation90_spill] sm:$0xff]  ;;  %s15065_s30 = scalar_lea.vmem %s15141_s7, %s7038_s28 }
 0x473   : > { %16425 = vst [vmem:[#allocation305_spill] sm:$0xff] %v10537_v18  ;;  %4219 = vrot.lane.b32.xlu0 %v16251_v12, %s7380_s23 }
 0x474   : > { %v10556_v18 = vadd.f32 %v3378_v15, %v3311_v52  ;;  %v10558_v19 = vpop.permute.xlu2 %3198  ;;  %16431 = vst [vmem:[#allocation309_spill] sm:$0xff] %v10569_v45  ;;  %v2444_v15 = vsel %vm2430_vm5, %v16433_v3, %v9663_v40  ;;  %v3454_v52 = vld [vmem:[%s15140_s6 + $0x2e0] sm:$0xff]  ;;  %v2238_v37 = vmul.f32 %v10572_v2, %v2213_v0  ;;  %v3983_v40 = vld [vmem:[%s15140_s6 + $0x368] sm:$0xff]  ;;  %v16438_v3 = vld [vmem:[#allocation128_spill] sm:$0xff] }
 0x475   : > { %16429 = vst [vmem:[#allocation307_spill] sm:$0xff] %v10558_v19  ;;  %v10560_v26 = vpop.permute.xlu0 %3873  ;;  %v1990_v19 = vadd.f32 %v1974_v5, %v1842_v58  ;;  %v2312_v55 = vsel %vm2298_vm0, %v16438_v3, %v16389_v24  ;;  %v2477_v58 = vmul.f32 %v16270_v21, %v2444_v15  ;;  %v10616_v3 = vperm.slane %v16394_v17, 0 }
 0x476   : > { %16428 = vst [vmem:[#allocation112_spill] sm:$0xff] %v10556_v18  ;;  %v16436_v18 = vld [vmem:[#allocation50_spill] sm:$0xff]  ;;  %v10632_v17 = vperm.slane %v16398_v57, 0 }
 0x477   : > { %16430 = vst [vmem:[#allocation308_spill] sm:$0xff] %v10560_v26  ;;  %v16435_v26 = vld [vmem:[#allocation94_spill] sm:$0xff]  ;;  %v1780_v45 = vsel %vm1771_vm7, %v16437_v38, %v16436_v18  ;;  %v2122_v1 = vadd.f32 %v2106_v46, %v1990_v19 }
 0x478   : > { %16432 = vst [vmem:[#allocation310_spill] sm:$0xff] %v10572_v2  ;;  %v1911_v29 = vsel %vm1902_vm12, %v16435_v26, %v16434_v8  ;;  %3858 = vperm.xlu1 %7075, %v3850_v43   ;;  %v10600_v8 = vld [vmem:[%s15139_s5 + $0x4] ss:$8 sm:$0xf]  ;;  %v2345_v43 = vmul.f32 %v16222_v22, %v2312_v55  ;;  %v1814_v24 = vmul.f32 %v16443_v48, %v1780_v45 }
 0x479   : > { %16439 = vst [vmem:[#allocation195_spill] sm:$0xff] %v10600_v8  ;;  %v10603_v5 = vperm.slane %v10600_v8, 0  ;;  %v16442_v18 = vld [vmem:[#allocation22_spill] sm:$0xff]  ;;  %v2254_v8 = vadd.f32 %v2238_v37, %v2122_v1  ;;  %v4249_v45 = vld [vmem:[%s15140_s6 + $0x3b8] sm:$0xff]  ;;  %v2502_v1 = vmul.f32 %v10616_v3, %v2477_v58  ;;  %v16456_v22 = vld [vmem:[#allocation79_spill] sm:$0xff] }
 0x47a   : > { %3462 = vperm.xlu2 %7076, %v3454_v52   ;;  %v10607_v0 = vpop.permute.xlu1 %3561  ;;  %v1946_v2 = vmul.f32 %v16442_v18, %v1911_v29  ;;  %v16444_v19 = vld [vmem:[#allocation38_spill] sm:$0xff]  ;;  %16445 = vst [vmem:[#allocation128_spill] sm:$0xff] %v10616_v3  ;;  %v16448_v29 = vld [vmem:[#allocation96_spill] sm:$0xff] }
 0x47b   : > { %16440 = vst [vmem:[#allocation94_spill] sm:$0xff] %v10603_v5  ;;  %v2576_v46 = vsel %vm2562_vm3, %v16444_v19, %v16393_v35  ;;  %3995 = vperm.xlu0 %7074, %v3983_v40   ;;  %v2370_v40 = vmul.f32 %v10603_v5, %v2345_v43  ;;  %v1839_v19 = vmul.f32 %v10327_v62, %v1814_v24  ;;  %v16452_v43 = vld [vmem:[#allocation81_spill] sm:$0xff]  ;;  %v16457_v5 = vld [vmem:[#allocation164_spill] sm:$0xff] }
 0x47c   : > { %16441 = vst [vmem:[#allocation90_spill] sm:$0xff] %v10607_v0  ;;  %v2609_v55 = vmul.f32 %v9882_v9, %v2576_v46  ;;  %v10619_v15 = vpop.permute.xlu2 %3204  ;;  %v16449_v0 = vld [vmem:[#allocation56_spill] sm:$0xff]  ;;  %v1971_v37 = vmul.f32 %v10338_v61, %v1946_v2  ;;  %v2840_v46 = vsel %vm15794_vm2, %v10086_v39, %v10017_v49  ;;  %v16451_v9 = vld [vmem:[#allocation130_spill] sm:$0xff] }
 0x47d   : > { %16446 = vst [vmem:[#allocation38_spill] sm:$0xff] %v10619_v15  ;;  %v10621_v52 = vpop.permute.xlu0 %3671  ;;  %v2043_v35 = vsel %vm2034_vm15, %v16449_v0, %v16448_v29  ;;  %v1913_v57 = vsel %vm1902_vm12, %v16452_v43, %v16451_v9  ;;  %v2386_v21 = vadd.f32 %v2370_v40, %v2254_v8  ;;  %v16453_v2 = vld [vmem:[#allocation86_spill] sm:$0xff]  ;;  %v16454_v29 = vld [vmem:[#allocation61_spill] sm:$0xff]  ;;  %v2708_v8 = vsel %vm2694_vm6, %v16457_v5, %v16402_v60  ;;  %v16460_v9 = vld [vmem:[#allocation107_spill] sm:$0xff] }
 0x47e   : > { %16447 = vst [vmem:[#allocation311_spill] sm:$0xff] %v10621_v52  ;;  %v3457_v52 = vld [vmem:[%s15140_s6 + $0x2f8] sm:$0xff]  ;;  %v2634_v58 = vmul.f32 %v10632_v17, %v2609_v55  ;;  %v2078_v24 = vmul.f32 %v16453_v2, %v2043_v35  ;;  %v1784_v49 = vsel %vm1771_vm7, %v16454_v29, %v16437_v38  ;;  %v16455_v39 = vld [vmem:[#allocation82_spill] sm:$0xff]  ;;  %v10663_v55 = vperm.slane %v16403_v28, 0 }
 0x47f   : > { %16450 = vst [vmem:[#allocation56_spill] sm:$0xff] %v10632_v17  ;;  %v1782_v15 = vsel %vm1771_vm7, %v16456_v22, %v16455_v39  ;;  %v2518_v35 = vadd.f32 %v2502_v1, %v2386_v21  ;;  %v2873_v40 = vmul.f32 %v9725_v44, %v2840_v46  ;;  %v1987_v29 = vadd.f32 %v1971_v37, %v1839_v19  ;;  %v16461_v17 = vld [vmem:[#allocation83_spill] sm:$0xff]  ;;  %v16465_v37 = vld [vmem:[#allocation17_spill] sm:$0xff]  ;;  %v16474_v44 = vld [vmem:[#allocation20_spill] sm:$0xff] }
 0x480   : > { %4269 = vperm.xlu1 %7075, %v4249_v45   ;;  %16458 = vst [vmem:[#allocation81_spill] sm:$0xff] %v10663_v55  ;;  %v2741_v45 = vmul.f32 %v16405_v16, %v2708_v8  ;;  %v1915_v39 = vsel %vm1902_vm12, %v16460_v9, %v16435_v26  ;;  %v1954_v3 = vmul.f32 %v16461_v17, %v1913_v57  ;;  %v10681_v21 = vperm.slane %v10060_v32, 0  ;;  %v16467_v19 = vld [vmem:[#allocation253_spill] sm:$0xff]  ;;  %v16469_v8 = vld [vmem:[#allocation258_spill] sm:$0xff] }
 0x481   : > { %v2972_v28 = vsel %vm15787_vm8, %v9819_v4, %v16407_v25  ;;  %v2650_v60 = vadd.f32 %v2634_v58, %v2518_v35  ;;  %v2103_v26 = vmul.f32 %v10341_v31, %v2078_v24  ;;  %v1813_v1 = vmul.f32 %v16443_v48, %v1784_v49  ;;  %v16470_v49 = vld [vmem:[#allocation68_spill] sm:$0xff]  ;;  %v16484_v48 = vld [vmem:[#allocation165_spill] sm:$0xff] }
 0x482   : > { %3477 = vperm.xlu2 %7076, %v3457_v52   ;;  %v10667_v38 = vpop.permute.xlu1 %3695  ;;  %16462 = vst [vmem:[#allocation79_spill] sm:$0xff] %v10681_v21  ;;  %v3005_v5 = vmul.f32 %v10230_v36, %v2972_v28  ;;  %v10685_v52 = vperm.slane %v10479_v14, 3  ;;  %v1822_v4 = vmul.f32 %v16465_v37, %v1782_v15  ;;  %v2766_v46 = vmul.f32 %v10663_v55, %v2741_v45  ;;  %v16471_v35 = vld [vmem:[#allocation84_spill] sm:$0xff]  ;;  %v16472_v28 = vld [vmem:[#allocation85_spill] sm:$0xff] }
 0x483   : > { %16459 = vst [vmem:[#allocation61_spill] sm:$0xff] %v10667_v38  ;;  %3933 = vrot.lane.b32.xlu0 %v15960_v7, %s7378_s14  ;;  %v10700_v57 = vperm.slane %v10166_v23, 0  ;;  %v2898_v58 = vmul.f32 %v10681_v21, %v2873_v40  ;;  %v2047_v15 = vsel %vm2034_vm15, %v16470_v49, %v16449_v0  ;;  %v2045_v38 = vsel %vm2034_vm15, %v16472_v28, %v16471_v35  ;;  %v16473_v23 = vld [vmem:[#allocation231_spill] sm:$0xff]  ;;  %v16512_v35 = vld [vmem:[#allocation101_spill] sm:$0xff]  ;;  %v16520_v7 = vld [vmem:[#allocation110_spill] sm:$0xff] }
 0x484   : > { %16463 = vst [vmem:[#allocation164_spill] sm:$0xff] %v10685_v52  ;;  %v10687_v9 = vpop.permute.xlu2 %3210  ;;  %v1979_v45 = vmul.f32 %v10338_v61, %v1954_v3  ;;  %v3104_v40 = vsel %vm15776_vm14, %v16473_v23, %v16413_v50  ;;  %v10722_v49 = vadd.f32 %v2103_v26, %v1987_v29  ;;  %v1838_v16 = vmul.f32 %v10531_v34, %v1813_v1  ;;  %v16476_v50 = vld [vmem:[#allocation105_spill] sm:$0xff]  ;;  %v16481_v23 = vld [vmem:[#allocation116_spill] sm:$0xff] }
 0x485   : > { %16464 = vst [vmem:[#allocation107_spill] sm:$0xff] %v10687_v9  ;;  %v10692_v25 = vpop.permute.xlu0 %3805  ;;  %v3225_v32 = vsel %vm15772_vm4, %v10687_v9, %v16467_v19  ;;  %v3030_v36 = vmul.f32 %v10700_v57, %v3005_v5  ;;  %v3137_v3 = vmul.f32 %v9966_v33, %v3104_v40  ;;  %v16480_v1 = vld [vmem:[#allocation45_spill] sm:$0xff]  ;;  %v16482_v33 = vld [vmem:[#allocation34_spill] sm:$0xff]  ;;  %v16532_v55 = vld [vmem:[#allocation152_spill] sm:$0xff] }
 0x486   : > { %16466 = vst [vmem:[#allocation312_spill] sm:$0xff] %v10692_v25  ;;  %v3276_v24 = vmul.f32 %v16469_v8, %v3225_v32  ;;  %v1945_v25 = vmul.f32 %v16442_v18, %v1915_v39  ;;  %v2782_v32 = vadd.f32 %v2766_v46, %v2650_v60  ;;  %v10726_v39 = vperm.slane %v10289_v53, 0  ;;  %v16477_v60 = vld [vmem:[#allocation133_spill] sm:$0xff] }
 0x487   : > { %16468 = vst [vmem:[#allocation313_spill] sm:$0xff] %v10700_v57  ;;  %v1847_v18 = vmul.f32 %v10327_v62, %v1822_v4  ;;  %v2177_v5 = vsel %vm2166_vm1, %v16477_v60, %v16476_v50  ;;  %v2077_v53 = vmul.f32 %v16453_v2, %v2047_v15  ;;  %v16488_v9 = vld [vmem:[#allocation249_spill] sm:$0xff] }
 0x488   : > { %3957 = vrot.lane.b32.xlu1 %v16474_v44, %s7378_s14  ;;  %v3301_v0 = vmul.f32 %v10685_v52, %v3276_v24  ;;  %16475 = vst [vmem:[#allocation258_spill] sm:$0xff] %v10726_v39  ;;  %v2914_v46 = vadd.f32 %v2898_v58, %v2782_v32  ;;  %v2086_v24 = vmul.f32 %v16480_v1, %v2045_v38  ;;  %v16483_v58 = vld [vmem:[#allocation91_spill] sm:$0xff]  ;;  %v16511_v19 = vld [vmem:[#allocation97_spill] sm:$0xff] }
 0x489   : > { %v1970_v4 = vmul.f32 %v10511_v54, %v1945_v25  ;;  %v2218_v40 = vmul.f32 %v16481_v23, %v2177_v5  ;;  %v2049_v32 = vsel %vm2034_vm15, %v16483_v58, %v16472_v28  ;;  %v3162_v5 = vmul.f32 %v10726_v39, %v3137_v3  ;;  %v16522_v39 = vld [vmem:[#allocation93_spill] sm:$0xff] }
 0x48a   : > { %3541 = vrot.lane.b32.xlu2 %v16220_v41, %s7375_s11  ;;  %v10736_v29 = vpop.permute.xlu1 %3829  ;;  %v10739_v26 = vadd.f32 %v3301_v0, %v10469_v11  ;;  %v16485_v11 = vld [vmem:[#allocation119_spill] sm:$0xff]  ;;  %v3046_v0 = vadd.f32 %v3030_v36, %v2914_v46  ;;  %v10766_v28 = vperm.slane %v10479_v14, 0  ;;  %v3352_v36 = vmul.f32 %v10109_v13, %v16482_v33 }
 0x48b   : > { %16478 = vst [vmem:[#allocation68_spill] sm:$0xff] %v10736_v29  ;;  %4067 = vrot.lane.b32.xlu0 %v16482_v33, %s7379_s22  ;;  %v1995_v29 = vadd.f32 %v1979_v45, %v1847_v18  ;;  %v2309_v15 = vsel %vm2298_vm0, %v16485_v11, %v16484_v48  ;;  %v2111_v46 = vmul.f32 %v10341_v31, %v2086_v24  ;;  %v16492_v48 = vld [vmem:[#allocation204_spill] sm:$0xff]  ;;  %v10779_v14 = vperm.slane %v10490_v56, 0 }
 0x48c   : > { %16479 = vst [vmem:[#allocation85_spill] sm:$0xff] %v10739_v26  ;;  %v3217_v38 = vpop.permute.xlu2 %3216  ;;  %v16486_v26 = vld [vmem:[#allocation181_spill] sm:$0xff]  ;;  %v1986_v58 = vadd.f32 %v1970_v4, %v1838_v16  ;;  %v2102_v16 = vmul.f32 %v10545_v20, %v2077_v53  ;;  %v2085_v24 = vmul.f32 %v16480_v1, %v2049_v32 }
 0x48d   : > { %v2350_v25 = vmul.f32 %v16486_v26, %v2309_v15  ;;  %v10757_v2 = vpop.permute.xlu0 %3939  ;;  %v3224_v50 = vsel %vm15772_vm4, %v16488_v9, %v3217_v38  ;;  %v3236_v18 = vsel %vm15772_vm4, %v3217_v38, %v10481_v10  ;;  %16489 = vst [vmem:[#allocation133_spill] sm:$0xff] %v10766_v28  ;;  %v16490_v15 = vld [vmem:[#allocation297_spill] sm:$0xff]  ;;  %v16491_v9 = vld [vmem:[#allocation28_spill] sm:$0xff]  ;;  %v3178_v38 = vadd.f32 %v3162_v5, %v3046_v0 }
 0x48e   : > { %16487 = vst [vmem:[#allocation231_spill] sm:$0xff] %v10757_v2  ;;  %v3269_v45 = vmul.f32 %v10080_v6, %v3236_v18  ;;  %v3272_v3 = vmul.f32 %v10080_v6, %v3224_v50  ;;  %v2243_v2 = vmul.f32 %v16490_v15, %v2218_v40  ;;  %v2573_v10 = vsel %vm2562_vm3, %v16492_v48, %v16491_v9  ;;  %v16494_v40 = vld [vmem:[#allocation118_spill] sm:$0xff]  ;;  %v16495_v6 = vld [vmem:[#allocation140_spill] sm:$0xff] }
 0x48f   : > { %16493 = vst [vmem:[#allocation91_spill] sm:$0xff] %v10779_v14  ;;  %v2127_v4 = vadd.f32 %v2111_v46, %v1995_v29  ;;  %v2375_v13 = vmul.f32 %v16494_v40, %v2350_v25  ;;  %v16496_v9 = vld [vmem:[#allocation136_spill] sm:$0xff]  ;;  %v3377_v33 = vmul.f32 %v10779_v14, %v3352_v36  ;;  %v10808_v36 = vadd.f32 %v2102_v16, %v1986_v58  ;;  %v16509_v58 = vld [vmem:[#allocation243_spill] sm:$0xff] }
 0x490   : > { %4091 = vrot.lane.b32.xlu1 %v8310_v51, %s7379_s22  ;;  %v3294_v18 = vmul.f32 %v10766_v28, %v3269_v45  ;;  %v3297_v50 = vmul.f32 %v10685_v52, %v3272_v3  ;;  %v2441_v56 = vsel %vm2430_vm5, %v16496_v9, %v16495_v6  ;;  %v16498_v45 = vld [vmem:[#allocation115_spill] sm:$0xff]  ;;  %v16500_v29 = vld [vmem:[#allocation92_spill] sm:$0xff]  ;;  %v16521_v28 = vld [vmem:[#allocation113_spill] sm:$0xff] }
 0x491   : > { %v1917_v32 = vsel %vm1902_vm12, %v16500_v29, %v16452_v43  ;;  %v2259_v25 = vadd.f32 %v2243_v2, %v2127_v4  ;;  %v16501_v3 = vld [vmem:[#allocation151_spill] sm:$0xff]  ;;  %v16502_v6 = vld [vmem:[#allocation40_spill] sm:$0xff] }
 0x492   : > { %3559 = vrot.lane.b32.xlu2 %v16251_v12, %s7375_s11  ;;  %v10795_v0 = vpop.permute.xlu1 %3963  ;;  %v3310_v5 = vadd.f32 %v3294_v18, %v3178_v38  ;;  %v10798_v53 = vadd.f32 %v3297_v50, %v16498_v45  ;;  %v2482_v46 = vmul.f32 %v16501_v3, %v2441_v56  ;;  %v2614_v1 = vmul.f32 %v16502_v6, %v2573_v10  ;;  %v16504_v38 = vld [vmem:[#allocation43_spill] sm:$0xff]  ;;  %v16505_v50 = vld [vmem:[#allocation252_spill] sm:$0xff] }
 0x493   : > { %16497 = vst [vmem:[#allocation119_spill] sm:$0xff] %v10795_v0  ;;  %4201 = vrot.lane.b32.xlu0 %v16220_v41, %s7380_s23  ;;  %v16503_v0 = vld [vmem:[#allocation229_spill] sm:$0xff]  ;;  %v16506_v45 = vld [vmem:[#allocation247_spill] sm:$0xff]  ;;  %v10823_v10 = vmul.f32 %v10545_v20, %v2085_v24  ;;  %v2391_v56 = vadd.f32 %v2375_v13, %v2259_v25  ;;  %v16516_v13 = vld [vmem:[#allocation102_spill] sm:$0xff] }
 0x494   : > { %16499 = vst [vmem:[#allocation181_spill] sm:$0xff] %v10798_v53  ;;  %v2705_v18 = vsel %vm2694_vm6, %v16504_v38, %v16503_v0  ;;  %v3223_v43 = vsel %vm15772_vm4, %v16506_v45, %v16505_v50  ;;  %v10818_v2 = vpop.permute.xlu2 %3247  ;;  %v10820_v4 = vadd.f32 %v3377_v33, %v3310_v5  ;;  %v1953_v0 = vmul.f32 %v16461_v17, %v1917_v32  ;;  %v16513_v14 = vld [vmem:[#allocation103_spill] sm:$0xff]  ;;  %v16515_v5 = vld [vmem:[#allocation106_spill] sm:$0xff] }
 0x495   : > { %16507 = vst [vmem:[#allocation297_spill] sm:$0xff] %v10818_v2  ;;  %v2746_v16 = vmul.f32 %v16509_v58, %v2705_v18  ;;  %v10826_v29 = vpop.permute.xlu0 %3594  ;;  %v3268_v53 = vmul.f32 %v10818_v2, %v3223_v43  ;;  %v2050_v45 = vsel %vm2034_vm15, %v16512_v35, %v16511_v19  ;;  %v16514_v33 = vld [vmem:[#allocation55_spill] sm:$0xff]  ;;  %v2178_v25 = vsel %vm2166_vm1, %v16516_v13, %v16515_v5  ;;  %v16517_v18 = vld [vmem:[#allocation138_spill] sm:$0xff]  ;;  %v16523_v58 = vld [vmem:[#allocation149_spill] sm:$0xff] }
 0x496   : > { %16508 = vst [vmem:[#allocation204_spill] sm:$0xff] %v10820_v4  ;;  %v2175_v24 = vsel %vm2166_vm1, %v16514_v33, %v16513_v14  ;;  %v1786_v32 = vsel %vm1771_vm7, %v16517_v18, %v16456_v22  ;;  %v16518_v43 = vld [vmem:[#allocation154_spill] sm:$0xff]  ;;  %v2179_v14 = vsel %vm2166_vm1, %v16520_v7, %v16514_v33  ;;  %v2182_v5 = vsel %vm2166_vm1, %v16521_v28, %v16516_v13  ;;  %v16529_v28 = vld [vmem:[#allocation299_spill] sm:$0xff] }
 0x497   : > { %16510 = vst [vmem:[#allocation118_spill] sm:$0xff] %v10826_v29  ;;  %v2507_v4 = vmul.f32 %v16518_v43, %v2482_v46  ;;  %v16519_v29 = vld [vmem:[#allocation210_spill] sm:$0xff]  ;;  %v3293_v35 = vmul.f32 %v10685_v52, %v3268_v53  ;;  %v1914_v22 = vsel %vm1902_vm12, %v16523_v58, %v16522_v39  ;;  %v16524_v46 = vld [vmem:[#allocation203_spill] sm:$0xff]  ;;  %v2771_v13 = vmul.f32 %v10418_v30, %v2746_v16  ;;  %v16547_v30 = vld [vmem:[#allocation117_spill] sm:$0xff] }
 0x498   : > { %v2639_v17 = vmul.f32 %v16519_v29, %v2614_v1  ;;  %v16525_v18 = vld [vmem:[#allocation266_spill] sm:$0xff]  ;;  %v16527_v52 = vld [vmem:[#allocation95_spill] sm:$0xff]  ;;  %v1821_v6 = vmul.f32 %v16465_v37, %v1786_v32  ;;  %v16538_v32 = vld [vmem:[#allocation216_spill] sm:$0xff] }
 0x499   : > { %v2969_v1 = vsel %vm15787_vm8, %v16525_v18, %v16524_v46  ;;  %v16526_v53 = vld [vmem:[#allocation30_spill] sm:$0xff]  ;;  %v2523_v2 = vadd.f32 %v2507_v4, %v2391_v56  ;;  %v10873_v50 = vadd.f32 %v3293_v35, %v16529_v28  ;;  %v2046_v46 = vsel %vm2034_vm15, %v16511_v19, %v16532_v55  ;;  %v16536_v35 = vld [vmem:[#allocation27_spill] sm:$0xff]  ;;  %v16540_v37 = vld [vmem:[#allocation21_spill] sm:$0xff] }
 0x49a   : > { %4225 = vrot.lane.b32.xlu1 %v16526_v53, %s7380_s23  ;;  %v16528_v7 = vld [vmem:[#allocation146_spill] sm:$0xff]  ;;  %v16534_v53 = vld [vmem:[#allocation177_spill] sm:$0xff]  ;;  %3557 = vrot.lane.b32.xlu2 %v8629_v27, %s7375_s11  ;;  %v10887_v4 = vpop.permute.xlu1 %3868  ;;  %v1958_v28 = vmul.f32 %v16536_v35, %v1914_v22  ;;  %v16541_v27 = vld [vmem:[#allocation291_spill] sm:$0xff] }
 0x49b   : > { %v1783_v33 = vsel %vm1771_vm7, %v16528_v7, %v16527_v52  ;;  %16530 = vst [vmem:[#allocation136_spill] sm:$0xff] %v10873_v50  ;;  %v16531_v39 = vld [vmem:[#allocation114_spill] sm:$0xff]  ;;  %v2655_v16 = vadd.f32 %v2639_v17, %v2523_v2  ;;  %v3010_v50 = vmul.f32 %v16538_v32, %v2969_v1  ;;  %4335 = vrot.lane.b32.xlu0 %v8648_v42, %s7381_s21  ;;  %v16542_v22 = vld [vmem:[#allocation221_spill] sm:$0xff]  ;;  %v16544_v2 = vld [vmem:[#allocation88_spill] sm:$0xff] }
 0x49c   : > { %v2209_v21 = vmul.f32 %v16531_v39, %v2179_v14  ;;  %v16533_v18 = vld [vmem:[#allocation182_spill] sm:$0xff]  ;;  %16535 = vst [vmem:[#allocation115_spill] sm:$0xff] %v10887_v4  ;;  %v16537_v14 = vld [vmem:[#allocation196_spill] sm:$0xff]  ;;  %v2210_v19 = vmul.f32 %v16531_v39, %v2175_v24  ;;  %v1826_v4 = vmul.f32 %v16540_v37, %v1783_v33  ;;  %v3101_v17 = vsel %vm15776_vm14, %v16542_v22, %v16541_v27 }
 0x49d   : > { %v2837_v52 = vsel %vm15794_vm2, %v16534_v53, %v16533_v18  ;;  %v16539_v55 = vld [vmem:[#allocation98_spill] sm:$0xff]  ;;  %v2090_v1 = vmul.f32 %v16544_v2, %v2046_v46  ;;  %v2787_v39 = vadd.f32 %v2771_v13, %v2655_v16  ;;  %v3142_v51 = vmul.f32 %v10440_v59, %v3101_v17 }
 0x49e   : > { %v2878_v56 = vmul.f32 %v16537_v14, %v2837_v52  ;;  %v1787_v18 = vsel %vm1771_vm7, %v16539_v55, %v16528_v7  ;;  %v10904_v52 = vpop.permute.xlu2 %3262  ;;  %v16545_v32 = vld [vmem:[#allocation6_spill] sm:$0xff]  ;;  %v10912_v7 = vpop.permute.xlu0 %4005  ;;  %v1978_v33 = vmul.f32 %v10511_v54, %v1953_v0  ;;  %v2089_v55 = vmul.f32 %v16544_v2, %v2050_v45 }
 0x49f   : > { %16543 = vst [vmem:[#allocation92_spill] sm:$0xff] %v10904_v52  ;;  %v1918_v24 = vsel %vm1902_vm12, %v16545_v32, %v16523_v58  ;;  %v2221_v27 = vmul.f32 %v16547_v30, %v2182_v5  ;;  %v1846_v22 = vmul.f32 %v10531_v34, %v1821_v6  ;;  %v2222_v46 = vmul.f32 %v16547_v30, %v2178_v25  ;;  %v16548_v58 = vld [vmem:[#allocation301_spill] sm:$0xff]  ;;  %v16549_v16 = vld [vmem:[#allocation310_spill] sm:$0xff]  ;;  %v16550_v5 = vld [vmem:[#allocation32_spill] sm:$0xff] }
 0x4a0   : > { %16546 = vst [vmem:[#allocation43_spill] sm:$0xff] %v10912_v7  ;;  %v1983_v52 = vmul.f32 %v10338_v61, %v1958_v28  ;;  %v2903_v57 = vmul.f32 %v10433_v63, %v2878_v56  ;;  %v3035_v13 = vmul.f32 %v16548_v58, %v3010_v50  ;;  %v2234_v17 = vmul.f32 %v16549_v16, %v2209_v21  ;;  %v3982_v6 = vld [vmem:[%s15140_s6 + $0x360] sm:$0xff]  ;;  %v16551_v28 = vld [vmem:[#allocation219_spill] sm:$0xff] }
 0x4a1   : > { %v2235_v7 = vmul.f32 %v16490_v15, %v2210_v19  ;;  %v1825_v0 = vmul.f32 %v16540_v37, %v1787_v18  ;;  %v1957_v45 = vmul.f32 %v16536_v35, %v1918_v24  ;;  %v1851_v61 = vmul.f32 %v10327_v62, %v1826_v4  ;;  %v16552_v24 = vld [vmem:[#allocation246_spill] sm:$0xff]  ;;  %v16571_v32 = vld [vmem:[#allocation175_spill] sm:$0xff] }
 0x4a2   : > { %4359 = vrot.lane.b32.xlu1 %v16550_v5, %s7381_s21  ;;  %v2115_v25 = vmul.f32 %v10341_v31, %v2090_v1  ;;  %v2919_v50 = vadd.f32 %v2903_v57, %v2787_v39  ;;  %v3167_v21 = vmul.f32 %v16551_v28, %v3142_v51  ;;  %v2114_v56 = vmul.f32 %v10545_v20, %v2089_v55  ;;  %v16553_v30 = vld [vmem:[#allocation242_spill] sm:$0xff]  ;;  %v10944_v62 = vpop.permute.xlu1 %3685 }
 0x4a3   : > { %v10936_v18 = vmul.f32 %v16549_v16, %v2221_v27  ;;  %v1994_v19 = vadd.f32 %v1978_v33, %v1846_v22  ;;  %v3233_v2 = vsel %vm15772_vm4, %v16553_v30, %v16552_v24  ;;  %3691 = vrot.lane.b32.xlu2 %v16251_v12, %s7376_s15  ;;  %16554 = vst [vmem:[#allocation97_spill] sm:$0xff] %v10944_v62  ;;  %v16555_v27 = vld [vmem:[#allocation129_spill] sm:$0xff]  ;;  %v16573_v62 = vld [vmem:[#allocation156_spill] sm:$0xff] }
 0x4a4   : > { %v2247_v31 = vmul.f32 %v16490_v15, %v2222_v46  ;;  %v1999_v57 = vadd.f32 %v1983_v52, %v1851_v61  ;;  %v3274_v51 = vmul.f32 %v16469_v8, %v3233_v2  ;;  %v3051_v20 = vadd.f32 %v3035_v13, %v2919_v50  ;;  %3990 = vperm.xlu0 %7074, %v3982_v6   ;;  %v16558_v46 = vld [vmem:[#allocation4_spill] sm:$0xff]  ;;  %v16560_v13 = vld [vmem:[#allocation145_spill] sm:$0xff]  ;;  %v16564_v61 = vld [vmem:[#allocation159_spill] sm:$0xff] }
 0x4a5   : > { %v2313_v55 = vsel %vm2298_vm0, %v16555_v27, %v16485_v11  ;;  %v1850_v39 = vmul.f32 %v10531_v34, %v1825_v0  ;;  %v1982_v4 = vmul.f32 %v10511_v54, %v1957_v45  ;;  %v10955_v22 = vadd.f32 %v2235_v7, %v10722_v49  ;;  %v4248_v11 = vld [vmem:[%s15140_s6 + $0x3b0] sm:$0xff]  ;;  %v16559_v54 = vld [vmem:[#allocation135_spill] sm:$0xff]  ;;  %v16562_v0 = vld [vmem:[#allocation42_spill] sm:$0xff] }
 0x4a6   : > { %v10957_v1 = vpop.permute.xlu2 %3340  ;;  %v2131_v15 = vadd.f32 %v2115_v25, %v1999_v57  ;;  %v10960_v52 = vadd.f32 %v2234_v17, %v10808_v36  ;;  %v3183_v2 = vadd.f32 %v3167_v21, %v3051_v20  ;;  %v10962_v33 = vpop.permute.xlu0 %3693  ;;  %v2443_v49 = vsel %vm2430_vm5, %v16560_v13, %v16559_v54  ;;  %v16561_v7 = vld [vmem:[#allocation147_spill] sm:$0xff]  ;;  %v16563_v6 = vld [vmem:[#allocation120_spill] sm:$0xff]  ;;  %v16566_v21 = vld [vmem:[#allocation162_spill] sm:$0xff] }
 0x4a7   : > { %16556 = vst [vmem:[#allocation55_spill] sm:$0xff] %v10957_v1  ;;  %v3357_v34 = vmul.f32 %v10957_v1, %v16558_v46  ;;  %v2445_v36 = vsel %vm2430_vm5, %v16561_v7, %v16496_v9  ;;  %v2126_v17 = vadd.f32 %v10823_v10, %v1994_v19  ;;  %v2181_v45 = vsel %vm2166_vm1, %v16562_v0, %v16477_v60  ;;  %v16565_v50 = vld [vmem:[#allocation123_spill] sm:$0xff]  ;;  %v16567_v20 = vld [vmem:[#allocation77_spill] sm:$0xff]  ;;  %v16568_v10 = vld [vmem:[#allocation126_spill] sm:$0xff] }
 0x4a8   : > { %16557 = vst [vmem:[#allocation102_spill] sm:$0xff] %v10962_v33  ;;  %v2307_v25 = vsel %vm2298_vm0, %v16564_v61, %v16563_v6  ;;  %v2310_v57 = vsel %vm2298_vm0, %v16566_v21, %v16565_v50  ;;  %v3299_v27 = vmul.f32 %v16567_v20, %v3274_v51  ;;  %v3721_v9 = vld [vmem:[%s15140_s6 + $0x338] sm:$0xff]  ;;  %v16570_v60 = vld [vmem:[#allocation148_spill] sm:$0xff]  ;;  %v1998_v0 = vadd.f32 %v1982_v4, %v1850_v39  ;;  %v16572_v50 = vld [vmem:[#allocation178_spill] sm:$0xff] }
 0x4a9   : > { %v3382_v19 = vmul.f32 %v16568_v10, %v3357_v34  ;;  %v16569_v13 = vld [vmem:[#allocation137_spill] sm:$0xff]  ;;  %v2311_v37 = vsel %vm2298_vm0, %v16571_v32, %v16564_v61  ;;  %v2314_v51 = vsel %vm2298_vm0, %v16572_v50, %v16566_v21  ;;  %v2481_v35 = vmul.f32 %v16501_v3, %v2445_v36  ;;  %v16576_v33 = vld [vmem:[#allocation155_spill] sm:$0xff]  ;;  %v16579_v6 = vld [vmem:[#allocation134_spill] sm:$0xff] }
 0x4aa   : > { %v2446_v7 = vsel %vm2430_vm5, %v16570_v60, %v16569_v13  ;;  %4264 = vperm.xlu1 %7075, %v4248_v11   ;;  %v4381_v34 = vld [vmem:[%s15140_s6 + $0x3d8] sm:$0xff]  ;;  %v2217_v4 = vmul.f32 %v16481_v23, %v2181_v45  ;;  %v3315_v32 = vadd.f32 %v3299_v27, %v3183_v2  ;;  %v16577_v11 = vld [vmem:[#allocation36_spill] sm:$0xff]  ;;  %v16578_v46 = vld [vmem:[#allocation131_spill] sm:$0xff]  ;;  %v2354_v24 = vmul.f32 %v16579_v6, %v2310_v57  ;;  %v11026_v3 = vpop.permute.xlu1 %3819 }
 0x4ab   : > { %v16574_v60 = vld [vmem:[#allocation153_spill] sm:$0xff]  ;;  %v2342_v36 = vmul.f32 %v16578_v46, %v2307_v25  ;;  %3741 = vperm.xlu2 %7076, %v3721_v9   ;;  %16580 = vst [vmem:[#allocation138_spill] sm:$0xff] %v11026_v3  ;;  %v16581_v45 = vld [vmem:[#allocation39_spill] sm:$0xff]  ;;  %v2341_v27 = vmul.f32 %v16578_v46, %v2311_v37  ;;  %v2349_v37 = vmul.f32 %v16486_v26, %v2313_v55 }
 0x4ac   : > { %v2571_v39 = vsel %vm2562_vm3, %v16574_v60, %v16573_v62  ;;  %v16575_v61 = vld [vmem:[#allocation33_spill] sm:$0xff]  ;;  %v2575_v50 = vsel %vm2562_vm3, %v16577_v11, %v16574_v60  ;;  %v2578_v2 = vsel %vm2562_vm3, %v16581_v45, %v16576_v33  ;;  %4401 = vperm.xlu0 %7074, %v4381_v34   ;;  %v11034_v62 = vadd.f32 %v3382_v19, %v3315_v32  ;;  %v16583_v11 = vld [vmem:[#allocation44_spill] sm:$0xff]  ;;  %v16584_v9 = vld [vmem:[#allocation3_spill] sm:$0xff] }
 0x4ad   : > { %v2574_v21 = vsel %vm2562_vm3, %v16576_v33, %v16575_v61  ;;  %v2353_v61 = vmul.f32 %v16579_v6, %v2314_v51  ;;  %v2130_v60 = vadd.f32 %v2114_v56, %v1998_v0  ;;  %v2605_v25 = vmul.f32 %v16583_v11, %v2575_v50  ;;  %v16586_v45 = vld [vmem:[#allocation185_spill] sm:$0xff]  ;;  %v16588_v50 = vld [vmem:[#allocation128_spill] sm:$0xff] }
 0x4ae   : > { %16582 = vst [vmem:[#allocation154_spill] sm:$0xff] %v11034_v62  ;;  %v2606_v57 = vmul.f32 %v16583_v11, %v2571_v39  ;;  %v2617_v23 = vmul.f32 %v16584_v9, %v2578_v2  ;;  %v11039_v3 = vpop.permute.xlu2 %3407  ;;  %v2618_v1 = vmul.f32 %v16584_v9, %v2574_v21  ;;  %v2242_v33 = vmul.f32 %v16549_v16, %v2217_v4  ;;  %v11048_v56 = vpop.permute.xlu0 %3827  ;;  %v16589_v39 = vld [vmem:[#allocation198_spill] sm:$0xff]  ;;  %v16591_v4 = vld [vmem:[#allocation188_spill] sm:$0xff] }
 0x4af   : > { %16585 = vst [vmem:[#allocation210_spill] sm:$0xff] %v11039_v3  ;;  %v2439_v19 = vsel %vm2430_vm5, %v16559_v54, %v16586_v45  ;;  %v2506_v0 = vmul.f32 %v16588_v50, %v2481_v35  ;;  %v2367_v51 = vmul.f32 %v16494_v40, %v2342_v36  ;;  %v2379_v34 = vmul.f32 %v16494_v40, %v2354_v24  ;;  %v16590_v2 = vld [vmem:[#allocation94_spill] sm:$0xff]  ;;  %v16592_v9 = vld [vmem:[#allocation56_spill] sm:$0xff]  ;;  %v16593_v40 = vld [vmem:[#allocation201_spill] sm:$0xff] }
 0x4b0   : > { %16587 = vst [vmem:[#allocation110_spill] sm:$0xff] %v11048_v56  ;;  %v2474_v32 = vmul.f32 %v16589_v39, %v2439_v19  ;;  %v2263_v21 = vadd.f32 %v2247_v31, %v2131_v15  ;;  %v2366_v16 = vmul.f32 %v16590_v2, %v2341_v27  ;;  %v2378_v55 = vmul.f32 %v16590_v2, %v2353_v61  ;;  %v16594_v31 = vld [vmem:[#allocation19_spill] sm:$0xff]  ;;  %v16637_v45 = vld [vmem:[#allocation236_spill] sm:$0xff] }
 0x4b1   : > { %v2442_v54 = vsel %vm2430_vm5, %v16569_v13, %v16591_v4  ;;  %v11061_v6 = vmul.f32 %v16592_v9, %v2605_v25  ;;  %v2631_v35 = vmul.f32 %v16519_v29, %v2606_v57  ;;  %v11065_v36 = vmul.f32 %v16592_v9, %v2617_v23  ;;  %v16596_v4 = vld [vmem:[#allocation168_spill] sm:$0xff] }
 0x4b2   : > { %v2486_v24 = vmul.f32 %v16593_v40, %v2442_v54  ;;  %4081 = vrot.lane.b32.xlu1 %v16594_v31, %s7379_s22  ;;  %v2643_v15 = vmul.f32 %v16519_v29, %v2618_v1  ;;  %v2258_v61 = vadd.f32 %v2242_v33, %v2126_v17  ;;  %v2262_v27 = vadd.f32 %v10936_v18, %v2130_v60  ;;  %v11078_v54 = vpop.permute.xlu1 %3953  ;;  %v16598_v17 = vld [vmem:[#allocation187_spill] sm:$0xff]  ;;  %v16599_v33 = vld [vmem:[#allocation189_spill] sm:$0xff] }
 0x4b3   : > { %v2374_v13 = vmul.f32 %v16590_v2, %v2349_v37  ;;  %v2383_v25 = vadd.f32 %v2367_v51, %v10955_v22  ;;  %v2395_v19 = vadd.f32 %v2379_v34, %v2263_v21  ;;  %v2473_v57 = vmul.f32 %v16589_v39, %v2443_v49  ;;  %3673 = vrot.lane.b32.xlu2 %v16220_v41, %s7376_s15  ;;  %v16597_v49 = vld [vmem:[#allocation176_spill] sm:$0xff]  ;;  %v16600_v51 = vld [vmem:[#allocation13_spill] sm:$0xff]  ;;  %v16604_v21 = vld [vmem:[#allocation191_spill] sm:$0xff] }
 0x4b4   : > { %v2499_v23 = vmul.f32 %v16518_v43, %v2474_v32  ;;  %16595 = vst [vmem:[#allocation149_spill] sm:$0xff] %v11078_v54  ;;  %v11084_v29 = vsel %vm2694_vm6, %v16596_v4, %v16504_v38  ;;  %v2382_v18 = vadd.f32 %v2366_v16, %v10960_v52  ;;  %v2394_v1 = vadd.f32 %v2378_v55, %v2262_v27  ;;  %v16601_v52 = vld [vmem:[#allocation223_spill] sm:$0xff]  ;;  %v16607_v27 = vld [vmem:[#allocation202_spill] sm:$0xff] }
 0x4b5   : > { %v2485_v22 = vmul.f32 %v16593_v40, %v2446_v7  ;;  %4089 = vrot.lane.b32.xlu0 %v16474_v44, %s7379_s22  ;;  %v2839_v60 = vsel %vm15794_vm2, %v16598_v17, %v16597_v49  ;;  %v2841_v37 = vsel %vm15794_vm2, %v16599_v33, %v16534_v53  ;;  %v2511_v38 = vmul.f32 %v16518_v43, %v2486_v24  ;;  %v16603_v32 = vld [vmem:[#allocation179_spill] sm:$0xff]  ;;  %v16605_v53 = vld [vmem:[#allocation237_spill] sm:$0xff]  ;;  %v16612_v54 = vld [vmem:[#allocation158_spill] sm:$0xff] }
 0x4b6   : > { %v2703_v7 = vsel %vm2694_vm6, %v16601_v52, %v16600_v51  ;;  %v11103_v34 = vpop.permute.xlu2 %3413  ;;  %v2842_v2 = vsel %vm15794_vm2, %v16604_v21, %v16603_v32  ;;  %v11110_v16 = vmul.f32 %v16537_v14, %v2841_v37  ;;  %v2390_v55 = vadd.f32 %v2374_v13, %v2258_v61  ;;  %v11116_v4 = vpop.permute.xlu0 %3961  ;;  %v16608_v17 = vld [vmem:[#allocation197_spill] sm:$0xff]  ;;  %v16610_v40 = vld [vmem:[#allocation215_spill] sm:$0xff]  ;;  %v16632_v51 = vld [vmem:[#allocation40_spill] sm:$0xff] }
 0x4b7   : > { %16602 = vst [vmem:[#allocation146_spill] sm:$0xff] %v11103_v34  ;;  %v2707_v43 = vsel %vm2694_vm6, %v16605_v53, %v16601_v52  ;;  %v2498_v24 = vmul.f32 %v16588_v50, %v2473_v57  ;;  %v2967_v33 = vsel %vm15787_vm8, %v16608_v17, %v16607_v27  ;;  %v16609_v21 = vld [vmem:[#allocation209_spill] sm:$0xff]  ;;  %v2515_v61 = vadd.f32 %v2499_v23, %v2383_v25  ;;  %v16611_v53 = vld [vmem:[#allocation171_spill] sm:$0xff]  ;;  %v16614_v27 = vld [vmem:[#allocation248_spill] sm:$0xff] }
 0x4b8   : > { %16606 = vst [vmem:[#allocation299_spill] sm:$0xff] %v11116_v4  ;;  %v2971_v37 = vsel %vm15787_vm8, %v16609_v21, %v16608_v17  ;;  %v2510_v13 = vmul.f32 %v16588_v50, %v2485_v22  ;;  %v3002_v52 = vmul.f32 %v16610_v40, %v2967_v33  ;;  %v2738_v62 = vmul.f32 %v16611_v53, %v2703_v7  ;;  %v16613_v4 = vld [vmem:[#allocation226_spill] sm:$0xff]  ;;  %v16615_v50 = vld [vmem:[#allocation12_spill] sm:$0xff]  ;;  %v16616_v23 = vld [vmem:[#allocation205_spill] sm:$0xff] }
 0x4b9   : > { %v3001_v34 = vmul.f32 %v16610_v40, %v2971_v37  ;;  %v2527_v57 = vadd.f32 %v2511_v38, %v2395_v19  ;;  %v2706_v56 = vsel %vm2694_vm6, %v16613_v4, %v16612_v54  ;;  %v2737_v3 = vmul.f32 %v16611_v53, %v2707_v43  ;;  %v16617_v22 = vld [vmem:[#allocation200_spill] sm:$0xff]  ;;  %v16618_v38 = vld [vmem:[#allocation213_spill] sm:$0xff] }
 0x4ba   : > { %v2835_v25 = vsel %vm15794_vm2, %v16597_v49, %v16614_v27  ;;  %4215 = vrot.lane.b32.xlu1 %v16615_v50, %s7380_s23  ;;  %v2970_v19 = vsel %vm15787_vm8, %v16617_v22, %v16616_v23  ;;  %v2974_v7 = vsel %vm15787_vm8, %v16618_v38, %v16617_v22  ;;  %v11150_v21 = vadd.f32 %v2506_v0, %v2390_v55  ;;  %v16619_v43 = vld [vmem:[#allocation260_spill] sm:$0xff]  ;;  %v16620_v33 = vld [vmem:[#allocation217_spill] sm:$0xff]  ;;  %v11160_v23 = vpop.permute.xlu1 %4087  ;;  %v16624_v38 = vld [vmem:[#allocation174_spill] sm:$0xff] }
 0x4bb   : > { %v2870_v17 = vmul.f32 %v16619_v43, %v2835_v25  ;;  %v2577_v49 = vsel %vm2562_vm3, %v16620_v33, %v16492_v48  ;;  %v2647_v37 = vadd.f32 %v2631_v35, %v2515_v61  ;;  %v2514_v54 = vadd.f32 %v2498_v24, %v2382_v18  ;;  %3807 = vrot.lane.b32.xlu2 %v8648_v42, %s7377_s19  ;;  %v16622_v53 = vld [vmem:[#allocation313_spill] sm:$0xff]  ;;  %v16623_v0 = vld [vmem:[#allocation8_spill] sm:$0xff]  ;;  %v16626_v35 = vld [vmem:[#allocation10_spill] sm:$0xff] }
 0x4bc   : > { %v2869_v40 = vmul.f32 %v16619_v43, %v2839_v60  ;;  %16621 = vst [vmem:[#allocation177_spill] sm:$0xff] %v11160_v23  ;;  %v3026_v22 = vmul.f32 %v16622_v53, %v3001_v34  ;;  %v2763_v55 = vmul.f32 %v16623_v0, %v2738_v62  ;;  %v2750_v25 = vmul.f32 %v16624_v38, %v2706_v56  ;;  %v16625_v27 = vld [vmem:[#allocation240_spill] sm:$0xff]  ;;  %v16627_v24 = vld [vmem:[#allocation81_spill] sm:$0xff]  ;;  %v16628_v33 = vld [vmem:[#allocation222_spill] sm:$0xff] }
 0x4bd   : > { %v2710_v48 = vsel %vm2694_vm6, %v16625_v27, %v16613_v4  ;;  %4223 = vrot.lane.b32.xlu0 %v16626_v35, %s7380_s23  ;;  %v3027_v18 = vmul.f32 %v16548_v58, %v3002_v52  ;;  %v2659_v60 = vadd.f32 %v2643_v15, %v2527_v57  ;;  %v2762_v61 = vmul.f32 %v16627_v24, %v2737_v3  ;;  %v16629_v23 = vld [vmem:[#allocation285_spill] sm:$0xff]  ;;  %v16631_v56 = vld [vmem:[#allocation218_spill] sm:$0xff]  ;;  %v16633_v27 = vld [vmem:[#allocation75_spill] sm:$0xff] }
 0x4be   : > { %v3099_v62 = vsel %vm15776_vm14, %v16629_v23, %v16628_v33  ;;  %v11177_v34 = vpop.permute.xlu2 %3419  ;;  %v3013_v43 = vmul.f32 %v16631_v56, %v2974_v7  ;;  %v2613_v11 = vmul.f32 %v16632_v51, %v2577_v49  ;;  %v2895_v4 = vmul.f32 %v10433_v63, %v2870_v17  ;;  %v11186_v52 = vpop.permute.xlu0 %4095  ;;  %v16635_v35 = vld [vmem:[#allocation79_spill] sm:$0xff] }
 0x4bf   : > { %16630 = vst [vmem:[#allocation196_spill] sm:$0xff] %v11177_v34  ;;  %v3103_v15 = vsel %vm15776_vm14, %v16633_v27, %v16629_v23  ;;  %v2646_v3 = vadd.f32 %v11061_v6, %v2514_v54  ;;  %v2526_v57 = vadd.f32 %v2510_v13, %v2394_v1  ;;  %v2749_v33 = vmul.f32 %v16624_v38, %v2710_v48  ;;  %v16636_v49 = vld [vmem:[#allocation251_spill] sm:$0xff]  ;;  %v16640_v23 = vld [vmem:[#allocation241_spill] sm:$0xff] }
 0x4c0   : > { %16634 = vst [vmem:[#allocation301_spill] sm:$0xff] %v11186_v52  ;;  %v2894_v34 = vmul.f32 %v16635_v35, %v2869_v40  ;;  %v2779_v39 = vadd.f32 %v2763_v55, %v2647_v37  ;;  %v2775_v7 = vmul.f32 %v16623_v0, %v2750_v25  ;;  %v2838_v17 = vsel %vm15794_vm2, %v16603_v32, %v16636_v49  ;;  %v3587_v27 = vld [vmem:[%s15140_s6 + $0x308] sm:$0xff]  ;;  %v16641_v0 = vld [vmem:[#allocation5_spill] sm:$0xff]  ;;  %v16642_v55 = vld [vmem:[#allocation252_spill] sm:$0xff] }
 0x4c1   : > { %v3134_v44 = vmul.f32 %v16637_v45, %v3099_v62  ;;  %v2778_v6 = vadd.f32 %v2762_v61, %v2646_v3  ;;  %v16638_v54 = vld [vmem:[#allocation263_spill] sm:$0xff]  ;;  %v3133_v13 = vmul.f32 %v16637_v45, %v3103_v15  ;;  %v3014_v32 = vmul.f32 %v16631_v56, %v2970_v19  ;;  %v16643_v61 = vld [vmem:[#allocation297_spill] sm:$0xff] }
 0x4c2   : > { %v2882_v1 = vmul.f32 %v16638_v54, %v2838_v17  ;;  %v16639_v40 = vld [vmem:[#allocation307_spill] sm:$0xff]  ;;  %4349 = vrot.lane.b32.xlu1 %v16641_v0, %s7381_s21  ;;  %v3235_v25 = vsel %vm15772_vm4, %v16642_v55, %v16640_v23  ;;  %v2911_v48 = vadd.f32 %v2895_v4, %v2779_v39  ;;  %v2774_v15 = vmul.f32 %v16627_v24, %v2749_v33  ;;  %v11217_v49 = vpop.permute.xlu1 %3863  ;;  %v16646_v4 = vld [vmem:[#allocation30_spill] sm:$0xff]  ;;  %v16649_v55 = vld [vmem:[#allocation225_spill] sm:$0xff] }
 0x4c3   : > { %v3231_v37 = vsel %vm15772_vm4, %v16640_v23, %v16639_v40  ;;  %v2881_v3 = vmul.f32 %v16638_v54, %v2842_v2  ;;  %v2910_v17 = vadd.f32 %v2894_v34, %v2778_v6  ;;  %v3265_v52 = vmul.f32 %v16643_v61, %v3235_v25  ;;  %3599 = vperm.xlu2 %7076, %v3587_v27   ;;  %v16645_v38 = vld [vmem:[#allocation243_spill] sm:$0xff]  ;;  %v16647_v27 = vld [vmem:[#allocation258_spill] sm:$0xff]  ;;  %v16656_v54 = vld [vmem:[#allocation16_spill] sm:$0xff] }
 0x4c4   : > { %v3266_v62 = vmul.f32 %v16643_v61, %v3231_v37  ;;  %16644 = vst [vmem:[#allocation310_spill] sm:$0xff] %v11217_v49  ;;  %v3038_v19 = vmul.f32 %v16622_v53, %v3013_v43  ;;  %v2638_v56 = vmul.f32 %v16592_v9, %v2613_v11  ;;  %v2745_v23 = vmul.f32 %v16645_v38, %v11084_v29  ;;  %v16650_v11 = vld [vmem:[#allocation288_spill] sm:$0xff]  ;;  %v16654_v25 = vld [vmem:[#allocation15_spill] sm:$0xff] }
 0x4c5   : > { %v3159_v39 = vmul.f32 %v16551_v28, %v3134_v44  ;;  %4357 = vrot.lane.b32.xlu0 %v16646_v4, %s7381_s21  ;;  %v2791_v33 = vadd.f32 %v2775_v7, %v2659_v60  ;;  %v2658_v2 = vadd.f32 %v11065_v36, %v2526_v57  ;;  %v2907_v34 = vmul.f32 %v10433_v63, %v2882_v1  ;;  %v16651_v44 = vld [vmem:[#allocation190_spill] sm:$0xff]  ;;  %v16653_v1 = vld [vmem:[#allocation133_spill] sm:$0xff] }
 0x4c6   : > { %v3158_v6 = vmul.f32 %v16647_v27, %v3133_v13  ;;  %v11229_v37 = vpop.permute.xlu2 %3425  ;;  %v3043_v43 = vadd.f32 %v3027_v18, %v2911_v48  ;;  %v3102_v9 = vsel %vm15776_vm14, %v16650_v11, %v16649_v55  ;;  %v3106_v29 = vsel %vm15776_vm14, %v16651_v44, %v16650_v11  ;;  %v11240_v36 = vpop.permute.xlu0 %4000  ;;  %v16655_v48 = vld [vmem:[#allocation259_spill] sm:$0xff]  ;;  %v16657_v11 = vld [vmem:[#allocation266_spill] sm:$0xff] }
 0x4c7   : > { %16648 = vst [vmem:[#allocation219_spill] sm:$0xff] %v11229_v37  ;;  %v3291_v60 = vmul.f32 %v16567_v20, %v3266_v62  ;;  %v2790_v63 = vadd.f32 %v2774_v15, %v2658_v2  ;;  %v2906_v57 = vmul.f32 %v16635_v35, %v2881_v3  ;;  %v3042_v7 = vadd.f32 %v3026_v22, %v2910_v17  ;;  %v16658_v44 = vld [vmem:[#allocation279_spill] sm:$0xff] }
 0x4c8   : > { %16652 = vst [vmem:[#allocation242_spill] sm:$0xff] %v11240_v36  ;;  %v3290_v18 = vmul.f32 %v16653_v1, %v3265_v52  ;;  %v2770_v13 = vmul.f32 %v16627_v24, %v2745_v23  ;;  %v3348_v55 = vmul.f32 %v16655_v48, %v16654_v25  ;;  %v3349_v49 = vmul.f32 %v16655_v48, %v16656_v54  ;;  %v16659_v15 = vld [vmem:[#allocation239_spill] sm:$0xff]  ;;  %v16660_v24 = vld [vmem:[#allocation244_spill] sm:$0xff] }
 0x4c9   : > { %v3175_v61 = vadd.f32 %v3159_v39, %v3043_v43  ;;  %v2973_v62 = vsel %vm15787_vm8, %v16658_v44, %v16657_v11  ;;  %v3146_v2 = vmul.f32 %v16659_v15, %v3102_v9  ;;  %v3174_v3 = vadd.f32 %v3158_v6, %v3042_v7  ;;  %v16661_v52 = vld [vmem:[#allocation256_spill] sm:$0xff]  ;;  %v16662_v39 = vld [vmem:[#allocation38_spill] sm:$0xff] }
 0x4ca   : > { %v3145_v22 = vmul.f32 %v16659_v15, %v3106_v29  ;;  %4483 = vrot.lane.b32.xlu1 %v16251_v12, %s7382_s18  ;;  %v3238_v17 = vsel %vm15772_vm4, %v16661_v52, %v16660_v24  ;;  %v2923_v23 = vadd.f32 %v2907_v34, %v2791_v33  ;;  %v3234_v43 = vsel %vm15772_vm4, %v16660_v24, %v16662_v39  ;;  %v16663_v7 = vld [vmem:[#allocation92_spill] sm:$0xff]  ;;  %v11269_v15 = vpop.permute.xlu1 %3801 }
 0x4cb   : > { %v3307_v44 = vadd.f32 %v3291_v60, %v3175_v61  ;;  %v2922_v9 = vadd.f32 %v2906_v57, %v2790_v63  ;;  %v3306_v6 = vadd.f32 %v3290_v18, %v3174_v3  ;;  %v3277_v29 = vmul.f32 %v16663_v7, %v3238_v17  ;;  %3553 = vrot.lane.b32.xlu2 %v16594_v31, %s7375_s11  ;;  %v16665_v36 = vld [vmem:[#allocation216_spill] sm:$0xff]  ;;  %v16666_v61 = vld [vmem:[#allocation221_spill] sm:$0xff]  ;;  %v16667_v60 = vld [vmem:[#allocation235_spill] sm:$0xff] }
 0x4cc   : > { %v3278_v11 = vmul.f32 %v16663_v7, %v3234_v43  ;;  %16664 = vst [vmem:[#allocation129_spill] sm:$0xff] %v11269_v15  ;;  %v3039_v52 = vmul.f32 %v16548_v58, %v3014_v32  ;;  %v2654_v33 = vadd.f32 %v2638_v56, %v11150_v21  ;;  %v3374_v34 = vmul.f32 %v16568_v10, %v3349_v49  ;;  %v16668_v57 = vld [vmem:[#allocation91_spill] sm:$0xff]  ;;  %v16742_v7 = vld [vmem:[#allocation122_spill] sm:$0xff] }
 0x4cd   : > { %v3009_v24 = vmul.f32 %v16665_v36, %v2973_v62  ;;  %4491 = vrot.lane.b32.xlu0 %v16550_v5, %s7382_s18  ;;  %v3105_v63 = vsel %vm15776_vm14, %v16667_v60, %v16666_v61  ;;  %v3373_v18 = vmul.f32 %v16668_v57, %v3348_v55  ;;  %v3171_v3 = vmul.f32 %v16551_v28, %v3146_v2  ;;  %v4247_v17 = vld [vmem:[%s15140_s6 + $0x3a8] sm:$0xff]  ;;  %v16677_v60 = vld [vmem:[#allocation82_spill] sm:$0xff] }
 0x4ce   : > { %v3170_v58 = vmul.f32 %v16647_v27, %v3145_v22  ;;  %v11284_v32 = vpop.permute.xlu2 %3431  ;;  %v2786_v21 = vadd.f32 %v2770_v13, %v2654_v33  ;;  %v3055_v56 = vadd.f32 %v3039_v52, %v2923_v23  ;;  %v3141_v49 = vmul.f32 %v10440_v59, %v3105_v63  ;;  %v11287_v62 = vpop.permute.xlu0 %3817  ;;  %v16672_v22 = vld [vmem:[#allocation87_spill] sm:$0xff]  ;;  %v16673_v13 = vld [vmem:[#allocation130_spill] sm:$0xff] }
 0x4cf   : > { %16669 = vst [vmem:[#allocation135_spill] sm:$0xff] %v11287_v62  ;;  %v11292_v43 = vadd.f32 %v3374_v34, %v3307_v44  ;;  %v3054_v61 = vadd.f32 %v3038_v19, %v2922_v9  ;;  %v3302_v55 = vmul.f32 %v16653_v1, %v3277_v29  ;;  %v3303_v28 = vmul.f32 %v16567_v20, %v3278_v11  ;;  %v16674_v44 = vld [vmem:[#allocation262_spill] sm:$0xff]  ;;  %v16675_v19 = vld [vmem:[#allocation24_spill] sm:$0xff]  ;;  %v16676_v11 = vld [vmem:[#allocation89_spill] sm:$0xff] }
 0x4d0   : > { %v11296_v2 = vadd.f32 %v3373_v18, %v3306_v6  ;;  %v1909_v52 = vsel %vm1902_vm12, %v16673_v13, %v16672_v22  ;;  %v2902_v23 = vmul.f32 %v16635_v35, %v11110_v16  ;;  %v3034_v33 = vmul.f32 %v16622_v53, %v3009_v24  ;;  %v4380_v6 = vld [vmem:[%s15140_s6 + $0x3d0] sm:$0xff]  ;;  %v16678_v35 = vld [vmem:[#allocation142_spill] sm:$0xff] }
 0x4d1   : > { %16670 = vst [vmem:[#allocation145_spill] sm:$0xff] %v11292_v43  ;;  %v3360_v34 = vmul.f32 %v16674_v44, %v8648_v42  ;;  %v3361_v9 = vmul.f32 %v16674_v44, %v16675_v19  ;;  %v3187_v29 = vadd.f32 %v3171_v3, %v3055_v56  ;;  %v3186_v20 = vadd.f32 %v3170_v58, %v3054_v61  ;;  %v16679_v53 = vld [vmem:[#allocation84_spill] sm:$0xff]  ;;  %v16680_v3 = vld [vmem:[#allocation83_spill] sm:$0xff]  ;;  %v16681_v56 = vld [vmem:[#allocation253_spill] sm:$0xff] }
 0x4d2   : > { %16671 = vst [vmem:[#allocation147_spill] sm:$0xff] %v11296_v2  ;;  %4259 = vperm.xlu1 %7075, %v4247_v17   ;;  %v1778_v16 = vsel %vm1771_vm7, %v16677_v60, %v16676_v11  ;;  %v2041_v24 = vsel %vm2034_vm15, %v16679_v53, %v16678_v35  ;;  %v2918_v63 = vadd.f32 %v2902_v23, %v2786_v21  ;;  %v11328_v13 = vpop.permute.xlu1 %3935  ;;  %v16683_v11 = vld [vmem:[#allocation303_spill] sm:$0xff]  ;;  %v16686_v23 = vld [vmem:[#allocation17_spill] sm:$0xff]  ;;  %v16689_v53 = vld [vmem:[#allocation306_spill] sm:$0xff] }
 0x4d3   : > { %v3166_v18 = vmul.f32 %v16647_v27, %v3141_v49  ;;  %v1955_v58 = vmul.f32 %v16680_v3, %v1909_v52  ;;  %v3237_v17 = vsel %vm15772_vm4, %v16681_v56, %v16553_v30  ;;  %v3318_v61 = vadd.f32 %v3302_v55, %v3186_v20  ;;  %3687 = vrot.lane.b32.xlu2 %v16615_v50, %s7376_s15  ;;  %v16685_v49 = vld [vmem:[#allocation55_spill] sm:$0xff]  ;;  %v16687_v30 = vld [vmem:[#allocation45_spill] sm:$0xff] }
 0x4d4   : > { %v3319_v22 = vadd.f32 %v3303_v28, %v3187_v29  ;;  %16682 = vst [vmem:[#allocation42_spill] sm:$0xff] %v11328_v13  ;;  %v11331_v60 = vperm.slane %v16683_v11, 2  ;;  %v3273_v21 = vmul.f32 %v16469_v8, %v3237_v17  ;;  %v3050_v27 = vadd.f32 %v3034_v33, %v2918_v63  ;;  %v16692_v33 = vld [vmem:[#allocation304_spill] sm:$0xff]  ;;  %v16743_v43 = vld [vmem:[#allocation73_spill] sm:$0xff] }
 0x4d5   : > { %v3356_v52 = vmul.f32 %v16685_v49, %v16220_v41  ;;  %4396 = vperm.xlu0 %7074, %v4380_v6   ;;  %v1823_v35 = vmul.f32 %v16686_v23, %v1778_v16  ;;  %v2087_v55 = vmul.f32 %v16687_v30, %v2041_v24  ;;  %v3385_v28 = vmul.f32 %v16668_v57, %v3360_v34  ;;  %v16699_v23 = vld [vmem:[#allocation165_spill] sm:$0xff] }
 0x4d6   : > { %16684 = vst [vmem:[#allocation159_spill] sm:$0xff] %v11331_v60  ;;  %v3386_v29 = vmul.f32 %v16568_v10, %v3361_v9  ;;  %v11340_v20 = vpop.permute.xlu2 %3462  ;;  %v11343_v3 = vperm.slane %v16689_v53, 2  ;;  %v3182_v56 = vadd.f32 %v3166_v18, %v3050_v27  ;;  %v11345_v17 = vpop.permute.xlu0 %3951  ;;  %v11348_v63 = vperm.slane %v16692_v33, 2  ;;  %v16696_v18 = vld [vmem:[#allocation109_spill] sm:$0xff] }
 0x4d7   : > { %16688 = vst [vmem:[#allocation162_spill] sm:$0xff] %v11340_v20  ;;  %v1980_v6 = vmul.f32 %v11331_v60, %v1955_v58  ;;  %v11351_v16 = vadd.f32 %v3385_v28, %v3318_v61  ;;  %v3298_v34 = vmul.f32 %v16653_v1, %v3273_v21  ;;  %v3381_v10 = vmul.f32 %v16668_v57, %v3356_v52  ;;  %v16697_v27 = vld [vmem:[#allocation105_spill] sm:$0xff]  ;;  %v16701_v21 = vld [vmem:[#allocation140_spill] sm:$0xff] }
 0x4d8   : > { %16690 = vst [vmem:[#allocation77_spill] sm:$0xff] %v11343_v3  ;;  %v11353_v24 = vadd.f32 %v3386_v29, %v3319_v22  ;;  %v1848_v9 = vmul.f32 %v11348_v63, %v1823_v35  ;;  %v2112_v11 = vmul.f32 %v11343_v3, %v2087_v55  ;;  %v2173_v58 = vsel %vm2166_vm1, %v16697_v27, %v16696_v18  ;;  %v16698_v61 = vld [vmem:[#allocation125_spill] sm:$0xff]  ;;  %v16704_v28 = vld [vmem:[#allocation116_spill] sm:$0xff] }
 0x4d9   : > { %16691 = vst [vmem:[#allocation126_spill] sm:$0xff] %v11345_v17  ;;  %v2305_v22 = vsel %vm2298_vm0, %v16699_v23, %v16698_v61  ;;  %v16700_v1 = vld [vmem:[#allocation193_spill] sm:$0xff]  ;;  %v3314_v52 = vadd.f32 %v3298_v34, %v3182_v56  ;;  %v2219_v29 = vmul.f32 %v16704_v28, %v2173_v58  ;;  %v16707_v56 = vld [vmem:[#allocation195_spill] sm:$0xff]  ;;  %v1908_v2 = vsel %vm1902_vm12, %v16743_v43, %v16742_v7 }
 0x4da   : > { %16693 = vst [vmem:[#allocation137_spill] sm:$0xff] %v11348_v63  ;;  %4197 = vrot.lane.b32.xlu1 %v16654_v25, %s7380_s23  ;;  %v2437_v57 = vsel %vm2430_vm5, %v16701_v21, %v16700_v1  ;;  %v1996_v35 = vadd.f32 %v1980_v6, %v1848_v9  ;;  %v16702_v30 = vld [vmem:[#allocation309_spill] sm:$0xff]  ;;  %v2351_v53 = vmul.f32 %v16486_v26, %v2305_v22  ;;  %v11380_v33 = vpop.permute.xlu1 %4069  ;;  %v11387_v6 = vperm.slane %v16707_v56, 2  ;;  %v16709_v34 = vld [vmem:[#allocation151_spill] sm:$0xff]  ;;  %v16713_v21 = vld [vmem:[#allocation34_spill] sm:$0xff] }
 0x4db   : > { %16694 = vst [vmem:[#allocation175_spill] sm:$0xff] %v11351_v16  ;;  %v11374_v55 = vperm.slane %v16702_v30, 2  ;;  %3821 = vrot.lane.b32.xlu2 %v16641_v0, %s7377_s19  ;;  %v11384_v18 = vadd.f32 %v3381_v10, %v3314_v52  ;;  %v2483_v9 = vmul.f32 %v16709_v34, %v2437_v57  ;;  %v7322_v23 = vld [vmem:[%s15139_s5 + $0x5] ss:$8 sm:$0xf] }
 0x4dc   : > { %16695 = vst [vmem:[#allocation153_spill] sm:$0xff] %v11353_v24  ;;  %v2128_v27 = vadd.f32 %v2112_v11, %v1996_v35  ;;  %v11398_v22 = vperm.slane %v7322_v23, 2  ;;  %v2376_v10 = vmul.f32 %v11387_v6, %v2351_v53  ;;  %v16714_v57 = vld [vmem:[#allocation7_spill] sm:$0xff]  ;;  %v16715_v52 = vld [vmem:[#allocation28_spill] sm:$0xff]  ;;  %v16716_v30 = vld [vmem:[#allocation161_spill] sm:$0xff] }
 0x4dd   : > { %16703 = vst [vmem:[#allocation155_spill] sm:$0xff] %v11374_v55  ;;  %4213 = vrot.lane.b32.xlu0 %v16594_v31, %s7380_s23  ;;  %v2244_v26 = vmul.f32 %v11374_v55, %v2219_v29  ;;  %v2569_v35 = vsel %vm2562_vm3, %v16715_v52, %v16714_v57  ;;  %v16717_v28 = vld [vmem:[#allocation229_spill] sm:$0xff]  ;;  %v16718_v56 = vld [vmem:[#allocation255_spill] sm:$0xff]  ;;  %v16719_v34 = vld [vmem:[#allocation182_spill] sm:$0xff] }
 0x4de   : > { %16705 = vst [vmem:[#allocation36_spill] sm:$0xff] %v11380_v33  ;;  %v11390_v61 = vpop.permute.xlu2 %3477  ;;  %v11392_v58 = vpop.permute.xlu0 %4085  ;;  %v2508_v1 = vmul.f32 %v11398_v22, %v2483_v9  ;;  %v2701_v29 = vsel %vm2694_vm6, %v16717_v28, %v16716_v30  ;;  %v2833_v53 = vsel %vm15794_vm2, %v16719_v34, %v16718_v56  ;;  %v7324_v30 = vld [vmem:[%s15139_s5 + $0x7] ss:$8 sm:$0xf] }
 0x4df   : > { %16706 = vst [vmem:[#allocation131_spill] sm:$0xff] %v11384_v18  ;;  %v2260_v11 = vadd.f32 %v2244_v26, %v2128_v27  ;;  %v7323_v27 = vld [vmem:[%s15139_s5 + $0x6] ss:$8 sm:$0xf]  ;;  %v2615_v26 = vmul.f32 %v16632_v51, %v2569_v35  ;;  %v2747_v57 = vmul.f32 %v16645_v38, %v2701_v29  ;;  %v11432_v28 = vperm.slane %v7324_v30, 2 }
 0x4e0   : > { %16708 = vst [vmem:[#allocation128_spill] sm:$0xff] %v11387_v6  ;;  %v11419_v9 = vperm.slane %v7323_v27, 2  ;;  %v2879_v51 = vmul.f32 %v16537_v14, %v2833_v53  ;;  %v7325_v35 = vld [vmem:[%s15139_s5 + $0x20] ss:$8 sm:$0xf] }
 0x4e1   : > { %16710 = vst [vmem:[#allocation94_spill] sm:$0xff] %v11390_v61  ;;  %v2392_v23 = vadd.f32 %v2376_v10, %v2260_v11  ;;  %v11443_v29 = vperm.slane %v7325_v35, 2  ;;  %v2772_v34 = vmul.f32 %v11432_v28, %v2747_v57  ;;  %v16726_v53 = vld [vmem:[#allocation208_spill] sm:$0xff]  ;;  %v16729_v35 = vld [vmem:[#allocation291_spill] sm:$0xff]  ;;  %v16755_v18 = vld [vmem:[#allocation78_spill] sm:$0xff] }
 0x4e2   : > { %16711 = vst [vmem:[#allocation56_spill] sm:$0xff] %v11392_v58  ;;  %4331 = vrot.lane.b32.xlu1 %v16713_v21, %s7381_s21  ;;  %v11425_v52 = vpop.permute.xlu1 %4203  ;;  %v2640_v11 = vmul.f32 %v11419_v9, %v2615_v26  ;;  %v16727_v26 = vld [vmem:[#allocation203_spill] sm:$0xff]  ;;  %v16728_v30 = vld [vmem:[#allocation228_spill] sm:$0xff]  ;;  %v16771_v61 = vld [vmem:[#allocation22_spill] sm:$0xff] }
 0x4e3   : > { %16712 = vst [vmem:[#allocation19_spill] sm:$0xff] %v11398_v22  ;;  %3955 = vrot.lane.b32.xlu2 %v16251_v12, %s7378_s14  ;;  %v2524_v56 = vadd.f32 %v2508_v1, %v2392_v23  ;;  %v3719_v1 = vld [vmem:[%s15140_s6 + $0x328] sm:$0xff]  ;;  %v2904_v14 = vmul.f32 %v11443_v29, %v2879_v51  ;;  %v2965_v23 = vsel %vm15787_vm8, %v16727_v26, %v16726_v53  ;;  %v16754_v24 = vld [vmem:[#allocation80_spill] sm:$0xff] }
 0x4e4   : > { %16720 = vst [vmem:[#allocation168_spill] sm:$0xff] %v11419_v9  ;;  %v3097_v57 = vsel %vm15776_vm14, %v16729_v35, %v16728_v30  ;;  %v7326_v51 = vld [vmem:[%s15139_s5 + $0x21] ss:$8 sm:$0xf]  ;;  %v3011_v15 = vmul.f32 %v16665_v36, %v2965_v23 }
 0x4e5   : > { %16721 = vst [vmem:[#allocation176_spill] sm:$0xff] %v11425_v52  ;;  %4347 = vrot.lane.b32.xlu0 %v16615_v50, %s7381_s21  ;;  %v2656_v27 = vadd.f32 %v2640_v11, %v2524_v56  ;;  %v16731_v52 = vld [vmem:[#allocation246_spill] sm:$0xff]  ;;  %v11467_v11 = vperm.slane %v7326_v51, 2  ;;  %v3143_v53 = vmul.f32 %v10440_v59, %v3097_v57  ;;  %v16756_v16 = vld [vmem:[#allocation72_spill] sm:$0xff] }
 0x4e6   : > { %16722 = vst [vmem:[#allocation187_spill] sm:$0xff] %v11432_v28  ;;  %v11435_v10 = vpop.permute.xlu2 %3541  ;;  %v11437_v38 = vpop.permute.xlu0 %4219  ;;  %v16736_v59 = vld [vmem:[#allocation278_spill] sm:$0xff] }
 0x4e7   : > { %16723 = vst [vmem:[#allocation189_spill] sm:$0xff] %v11435_v10  ;;  %v2788_v44 = vadd.f32 %v2772_v34, %v2656_v27  ;;  %v3036_v23 = vmul.f32 %v11467_v11, %v3011_v15  ;;  %v7328_v35 = vld [vmem:[%s15139_s5 + $0x23] ss:$8 sm:$0xf] }
 0x4e8   : > { %16724 = vst [vmem:[#allocation223_spill] sm:$0xff] %v11437_v38  ;;  %v16730_v38 = vld [vmem:[#allocation107_spill] sm:$0xff] }
 0x4e9   : > { %16725 = vst [vmem:[#allocation179_spill] sm:$0xff] %v11443_v29  ;;  %v3229_v56 = vsel %vm15772_vm4, %v16731_v52, %v16730_v38  ;;  %v7327_v52 = vld [vmem:[%s15139_s5 + $0x22] ss:$8 sm:$0xf]  ;;  %v2920_v30 = vadd.f32 %v2904_v14, %v2788_v44  ;;  %v11494_v44 = vperm.slane %v7328_v35, 2 }
 0x4ea   : > { %4465 = vrot.lane.b32.xlu1 %v16220_v41, %s7382_s18  ;;  %16732 = vst [vmem:[#allocation237_spill] sm:$0xff] %v11467_v11  ;;  %v11471_v26 = vpop.permute.xlu1 %3858  ;;  %v11478_v38 = vperm.slane %v7327_v52, 2  ;;  %v3275_v36 = vmul.f32 %v16469_v8, %v3229_v56  ;;  %v3358_v8 = vmul.f32 %v16685_v49, %v16641_v0  ;;  %v11502_v57 = vld [vmem:[%s15139_s5 + $0x24] ss:$8 sm:$0xf] }
 0x4eb   : > { %3731 = vperm.xlu2 %7076, %v3719_v1   ;;  %16733 = vst [vmem:[#allocation197_spill] sm:$0xff] %v11471_v26  ;;  %v3440_v1 = vsel %vm3437_vm11, %v11229_v37, %v16736_v59  ;;  %v11505_v56 = vperm.slane %v11502_v57, 2  ;;  %v11510_v15 = vld [vmem:[%s15139_s5 + $0x25] ss:$8 sm:$0xf]  ;;  %v3052_v51 = vadd.f32 %v3036_v23, %v2920_v30 }
 0x4ec   : > { %16734 = vst [vmem:[#allocation209_spill] sm:$0xff] %v11478_v38  ;;  %v3168_v14 = vmul.f32 %v11478_v38, %v3143_v53  ;;  %v3300_v52 = vmul.f32 %v11494_v44, %v3275_v36  ;;  %v11514_v53 = vperm.slane %v11510_v15, 2  ;;  %v16741_v35 = vld [vmem:[#allocation283_spill] sm:$0xff]  ;;  %v16745_v36 = vld [vmem:[#allocation74_spill] sm:$0xff]  ;;  %v16772_v37 = vld [vmem:[#allocation132_spill] sm:$0xff] }
 0x4ed   : > { %4481 = vrot.lane.b32.xlu0 %v16641_v0, %s7382_s18  ;;  %16738 = vst [vmem:[#allocation200_spill] sm:$0xff] %v11494_v44  ;;  %v3490_v39 = vmul.f32 %v16741_v35, %v3440_v1  ;;  %v3383_v62 = vmul.f32 %v11505_v56, %v3358_v8  ;;  %v16746_v1 = vld [vmem:[#allocation111_spill] sm:$0xff] }
 0x4ee   : > { %v11482_v34 = vpop.permute.xlu2 %3559  ;;  %v11488_v27 = vpop.permute.xlu0 %3995  ;;  %16739 = vst [vmem:[#allocation217_spill] sm:$0xff] %v11505_v56  ;;  %v3184_v26 = vadd.f32 %v3168_v14, %v3052_v51  ;;  %v1777_v23 = vsel %vm1771_vm7, %v16746_v1, %v16745_v36  ;;  %v16748_v14 = vld [vmem:[#allocation31_spill] sm:$0xff]  ;;  %v4246_v36 = vld [vmem:[%s15140_s6 + $0x3a0] sm:$0xff]  ;;  %v16751_v1 = vld [vmem:[#allocation293_spill] sm:$0xff] }
 0x4ef   : > { %16735 = vst [vmem:[#allocation226_spill] sm:$0xff] %v11482_v34  ;;  %v3515_v7 = vmul.f32 %v11514_v53, %v3490_v39  ;;  %v1951_v8 = vmul.f32 %v16748_v14, %v1908_v2  ;;  %v11542_v51 = vld [vmem:[%s15139_s5 + $0x26] ss:$8 sm:$0xf]  ;;  %v1819_v33 = vmul.f32 %v16754_v24, %v1777_v23 }
 0x4f0   : > { %16737 = vst [vmem:[#allocation12_spill] sm:$0xff] %v11488_v27  ;;  %v3316_v34 = vadd.f32 %v3300_v52, %v3184_v26  ;;  %v11554_v52 = vperm.slane %v11542_v51, 2  ;;  %v16753_v2 = vld [vmem:[#allocation296_spill] sm:$0xff]  ;;  %v4379_v10 = vld [vmem:[%s15140_s6 + $0x3c8] sm:$0xff]  ;;  %v16759_v23 = vld [vmem:[#allocation62_spill] sm:$0xff] }
 0x4f1   : > { %16740 = vst [vmem:[#allocation313_spill] sm:$0xff] %v11514_v53  ;;  %v1976_v24 = vmul.f32 %v11331_v60, %v1951_v8 }
 0x4f2   : > { %4599 = vrot.lane.b32.xlu1 %v8648_v42, %s7383_s20  ;;  %v11526_v30 = vpop.permute.xlu1 %4269  ;;  %16749 = vst [vmem:[#allocation285_spill] sm:$0xff] %v11542_v51  ;;  %v3399_v26 = vadd.f32 %v3383_v62, %v3316_v34  ;;  %v16757_v34 = vld [vmem:[#allocation104_spill] sm:$0xff] }
 0x4f3   : > { %3669 = vrot.lane.b32.xlu2 %v16654_v25, %s7376_s15  ;;  %16744 = vst [vmem:[#allocation8_spill] sm:$0xff] %v11526_v30 }
 0x4f4   : > { %16752 = vst [vmem:[#allocation75_spill] sm:$0xff] %v11554_v52  ;;  %v3531_v58 = vadd.f32 %v3515_v7, %v3399_v26  ;;  %v16762_v7 = vld [vmem:[#allocation37_spill] sm:$0xff] }
 0x4f5   : > { %4615 = vrot.lane.b32.xlu0 %v16251_v12, %s7383_s20  ;;  %v16763_v26 = vld [vmem:[#allocation173_spill] sm:$0xff] }
 0x4f6   : > { %v11536_v43 = vpop.permute.xlu2 %3557  ;;  %v11544_v30 = vpop.permute.xlu0 %3933 }
 0x4f7   : > { %16747 = vst [vmem:[#allocation81_spill] sm:$0xff] %v11536_v43  ;;  %v3572_v39 = vsel %vm3569_vm10, %v11536_v43, %v16751_v1  ;;  %v16758_v43 = vld [vmem:[#allocation50_spill] sm:$0xff]  ;;  %v16764_v1 = vld [vmem:[#allocation121_spill] sm:$0xff] }
 0x4f8   : > { %16750 = vst [vmem:[#allocation40_spill] sm:$0xff] %v11544_v30  ;;  %v3622_v14 = vmul.f32 %v16753_v2, %v3572_v39  ;;  %v2040_v30 = vsel %vm2034_vm15, %v16756_v16, %v16755_v18  ;;  %v1776_v39 = vsel %vm1771_vm7, %v16758_v43, %v16757_v34  ;;  %v16760_v2 = vld [vmem:[#allocation49_spill] sm:$0xff]  ;;  %v16761_v18 = vld [vmem:[#allocation108_spill] sm:$0xff]  ;;  %v16767_v34 = vld [vmem:[#allocation26_spill] sm:$0xff] }
 0x4f9   : > { %v1907_v16 = vsel %vm1902_vm12, %v16760_v2, %v16759_v23  ;;  %v2083_v27 = vmul.f32 %v16767_v34, %v2040_v30  ;;  %v1844_v2 = vmul.f32 %v11348_v63, %v1819_v33  ;;  %v16768_v23 = vld [vmem:[#allocation2_spill] sm:$0xff]  ;;  %v16774_v30 = vld [vmem:[#allocation67_spill] sm:$0xff]  ;;  %v16775_v33 = vld [vmem:[#allocation96_spill] sm:$0xff] }
 0x4fa   : > { %4254 = vperm.xlu1 %7075, %v4246_v36   ;;  %v3647_v62 = vmul.f32 %v11554_v52, %v3622_v14  ;;  %v2172_v36 = vsel %vm2166_vm1, %v16762_v7, %v16761_v18  ;;  %v2304_v14 = vsel %vm2298_vm0, %v16764_v1, %v16763_v26  ;;  %v11585_v43 = vpop.permute.xlu1 %3957  ;;  %v16769_v18 = vld [vmem:[#allocation25_spill] sm:$0xff]  ;;  %v1947_v1 = vmul.f32 %v16771_v61, %v1907_v16  ;;  %v16776_v16 = vld [vmem:[#allocation14_spill] sm:$0xff] }
 0x4fb   : > { %3803 = vrot.lane.b32.xlu2 %v16713_v21, %s7377_s19  ;;  %16765 = vst [vmem:[#allocation79_spill] sm:$0xff] %v11585_v43  ;;  %v2215_v13 = vmul.f32 %v16768_v23, %v2172_v36  ;;  %v1815_v7 = vmul.f32 %v16769_v18, %v1776_v39  ;;  %v1992_v26 = vadd.f32 %v1976_v24, %v1844_v2  ;;  %v16777_v36 = vld [vmem:[#allocation103_spill] sm:$0xff]  ;;  %v16778_v2 = vld [vmem:[#allocation86_spill] sm:$0xff]  ;;  %v16791_v43 = vld [vmem:[#allocation124_spill] sm:$0xff] }
 0x4fc   : > { %v11587_v8 = vadd.f32 %v3647_v62, %v3531_v58  ;;  %v2347_v49 = vmul.f32 %v16772_v37, %v2304_v14  ;;  %v4645_v58 = vld [vmem:[%s15140_s6 + $0x418] sm:$0xff]  ;;  %v2108_v62 = vmul.f32 %v11343_v3, %v2083_v27  ;;  %v1972_v37 = vmul.f32 %v11331_v60, %v1947_v1  ;;  %v16779_v18 = vld [vmem:[#allocation143_spill] sm:$0xff] }
 0x4fd   : > { %4391 = vperm.xlu0 %7074, %v4379_v10   ;;  %v2039_v10 = vsel %vm2034_vm15, %v16775_v33, %v16774_v30  ;;  %v2240_v39 = vmul.f32 %v11374_v55, %v2215_v13  ;;  %v1840_v61 = vmul.f32 %v11348_v63, %v1815_v7  ;;  %v2171_v14 = vsel %vm2166_vm1, %v16777_v36, %v16776_v16  ;;  %v16780_v30 = vld [vmem:[#allocation139_spill] sm:$0xff]  ;;  %v16786_v36 = vld [vmem:[#allocation220_spill] sm:$0xff] }
 0x4fe   : > { %16766 = vst [vmem:[#allocation236_spill] sm:$0xff] %v11587_v8  ;;  %v11593_v17 = vpop.permute.xlu2 %3691  ;;  %v11597_v51 = vpop.permute.xlu0 %4067  ;;  %v2124_v24 = vadd.f32 %v2108_v62, %v1992_v26  ;;  %v2372_v34 = vmul.f32 %v11387_v6, %v2347_v49  ;;  %v2079_v23 = vmul.f32 %v16778_v2, %v2039_v10  ;;  %v2436_v13 = vsel %vm2430_vm5, %v16780_v30, %v16779_v18  ;;  %v16781_v27 = vld [vmem:[#allocation35_spill] sm:$0xff]  ;;  %v16783_v26 = vld [vmem:[#allocation234_spill] sm:$0xff] }
 0x4ff   : > { %16770 = vst [vmem:[#allocation307_spill] sm:$0xff] %v11593_v17  ;;  %v16782_v7 = vld [vmem:[#allocation207_spill] sm:$0xff]  ;;  %v16785_v10 = vld [vmem:[#allocation150_spill] sm:$0xff]  ;;  %v1988_v18 = vadd.f32 %v1972_v37, %v1840_v61 }
 0x500   : > { %16773 = vst [vmem:[#allocation241_spill] sm:$0xff] %v11597_v51  ;;  %v2568_v1 = vsel %vm2562_vm3, %v16782_v7, %v16781_v27  ;;  %v2479_v62 = vmul.f32 %v16785_v10, %v2436_v13  ;;  %v2256_v16 = vadd.f32 %v2240_v39, %v2124_v24  ;;  %v16787_v30 = vld [vmem:[#allocation114_spill] sm:$0xff]  ;;  %v2104_v17 = vmul.f32 %v11343_v3, %v2079_v23  ;;  %v16792_v13 = vld [vmem:[#allocation120_spill] sm:$0xff]  ;;  %v16794_v10 = vld [vmem:[#allocation141_spill] sm:$0xff] }
 0x501   : > { %v2611_v2 = vmul.f32 %v16786_v36, %v2568_v1  ;;  %v2211_v27 = vmul.f32 %v16787_v30, %v2171_v14  ;;  %v2303_v39 = vsel %vm2298_vm0, %v16792_v13, %v16791_v43  ;;  %v16793_v1 = vld [vmem:[#allocation20_spill] sm:$0xff]  ;;  %v16795_v23 = vld [vmem:[#allocation185_spill] sm:$0xff]  ;;  %v16796_v36 = vld [vmem:[#allocation211_spill] sm:$0xff] }
 0x502   : > { %4665 = vperm.xlu1 %7075, %v4645_v58   ;;  %v16784_v58 = vld [vmem:[#allocation157_spill] sm:$0xff]  ;;  %v11630_v49 = vpop.permute.xlu1 %4091  ;;  %v2388_v63 = vadd.f32 %v2372_v34, %v2256_v16  ;;  %v2504_v24 = vmul.f32 %v11398_v22, %v2479_v62  ;;  %v2343_v37 = vmul.f32 %v16578_v46, %v2303_v39  ;;  %v2120_v14 = vadd.f32 %v2104_v17, %v1988_v18  ;;  %v16797_v43 = vld [vmem:[#allocation156_spill] sm:$0xff]  ;;  %v16800_v30 = vld [vmem:[#allocation198_spill] sm:$0xff] }
 0x503   : > { %v2700_v33 = vsel %vm2694_vm6, %v16784_v58, %v16783_v26  ;;  %3937 = vrot.lane.b32.xlu2 %v16220_v41, %s7378_s14  ;;  %v16789_v26 = vld [vmem:[#allocation9_spill] sm:$0xff]  ;;  %v2636_v61 = vmul.f32 %v11419_v9, %v2611_v2  ;;  %v2236_v34 = vmul.f32 %v11374_v55, %v2211_v27  ;;  %v2435_v16 = vsel %vm2430_vm5, %v16795_v23, %v16794_v10  ;;  %v16798_v46 = vld [vmem:[#allocation184_spill] sm:$0xff]  ;;  %v16803_v39 = vld [vmem:[#allocation294_spill] sm:$0xff] }
 0x504   : > { %v2743_v58 = vmul.f32 %v16789_v26, %v2700_v33  ;;  %v2520_v33 = vadd.f32 %v2504_v24, %v2388_v63  ;;  %v2567_v62 = vsel %vm2562_vm3, %v16797_v43, %v16796_v36  ;;  %v16799_v17 = vld [vmem:[#allocation180_spill] sm:$0xff]  ;;  %v2475_v27 = vmul.f32 %v16800_v30, %v2435_v16  ;;  %v16801_v63 = vld [vmem:[#allocation206_spill] sm:$0xff]  ;;  %v16802_v26 = vld [vmem:[#allocation269_spill] sm:$0xff] }
 0x505   : > { %4329 = vrot.lane.b32.xlu0 %v16654_v25, %s7381_s21  ;;  %v2832_v18 = vsel %vm15794_vm2, %v16799_v17, %v16798_v46  ;;  %v2964_v13 = vsel %vm15787_vm8, %v16802_v26, %v16801_v63  ;;  %v16804_v24 = vld [vmem:[#allocation224_spill] sm:$0xff]  ;;  %v16806_v23 = vld [vmem:[#allocation194_spill] sm:$0xff]  ;;  %v2252_v17 = vadd.f32 %v2236_v34, %v2120_v14 }
 0x506   : > { %v11637_v7 = vpop.permute.xlu2 %3741  ;;  %v11640_v60 = vpop.permute.xlu0 %4201  ;;  %v2768_v2 = vmul.f32 %v11432_v28, %v2743_v58  ;;  %v3096_v10 = vsel %vm15776_vm14, %v16804_v24, %v16803_v39  ;;  %v2875_v36 = vmul.f32 %v16806_v23, %v2832_v18  ;;  %v2652_v43 = vadd.f32 %v2636_v61, %v2520_v33  ;;  %v16807_v46 = vld [vmem:[#allocation282_spill] sm:$0xff]  ;;  %v16808_v30 = vld [vmem:[#allocation44_spill] sm:$0xff]  ;;  %v16814_v23 = vld [vmem:[#allocation183_spill] sm:$0xff] }
 0x507   : > { %16788 = vst [vmem:[#allocation5_spill] sm:$0xff] %v11637_v7  ;;  %v3007_v16 = vmul.f32 %v16807_v46, %v2964_v13  ;;  %v2607_v63 = vmul.f32 %v16808_v30, %v2567_v62  ;;  %v16809_v39 = vld [vmem:[#allocation238_spill] sm:$0xff]  ;;  %v2368_v7 = vmul.f32 %v11387_v6, %v2343_v37  ;;  %v2500_v18 = vmul.f32 %v11398_v22, %v2475_v27  ;;  %v16811_v62 = vld [vmem:[#allocation160_spill] sm:$0xff]  ;;  %v16812_v13 = vld [vmem:[#allocation13_spill] sm:$0xff] }
 0x508   : > { %16790 = vst [vmem:[#allocation252_spill] sm:$0xff] %v11640_v60  ;;  %v2784_v55 = vadd.f32 %v2768_v2, %v2652_v43  ;;  %v3139_v24 = vmul.f32 %v16809_v39, %v3096_v10  ;;  %v2900_v61 = vmul.f32 %v11443_v29, %v2875_v36  ;;  %v3718_v14 = vld [vmem:[%s15140_s6 + $0x320] sm:$0xff]  ;;  %v2699_v2 = vsel %vm2694_vm6, %v16812_v13, %v16811_v62  ;;  %v16815_v36 = vld [vmem:[#allocation248_spill] sm:$0xff]  ;;  %v16816_v46 = vld [vmem:[#allocation273_spill] sm:$0xff] }
 0x509   : > { %v3032_v33 = vmul.f32 %v11467_v11, %v3007_v16  ;;  %v2384_v34 = vadd.f32 %v2368_v7, %v2252_v17  ;;  %v2632_v10 = vmul.f32 %v11419_v9, %v2607_v63  ;;  %v16813_v37 = vld [vmem:[#allocation10_spill] sm:$0xff]  ;;  %v2831_v43 = vsel %vm15794_vm2, %v16815_v36, %v16814_v23  ;;  %v16818_v30 = vld [vmem:[#allocation171_spill] sm:$0xff]  ;;  %v16819_v63 = vld [vmem:[#allocation249_spill] sm:$0xff] }
 0x50a   : > { %4353 = vrot.lane.b32.xlu1 %v16793_v1, %s7381_s21  ;;  %v2916_v27 = vadd.f32 %v2900_v61, %v2784_v55  ;;  %v16817_v16 = vld [vmem:[#allocation202_spill] sm:$0xff]  ;;  %v3164_v17 = vmul.f32 %v11478_v38, %v3139_v24  ;;  %v2739_v39 = vmul.f32 %v16818_v30, %v2699_v2  ;;  %v16820_v13 = vld [vmem:[#allocation245_spill] sm:$0xff]  ;;  %v16821_v61 = vld [vmem:[#allocation260_spill] sm:$0xff]  ;;  %vm4361_vm2 = vcmp.lt.s32.totalorder %v9448_v47, 90 }
 0x50b   : > { %4071 = vrot.lane.b32.xlu2 %v8648_v42, %s7379_s22  ;;  %v2963_v7 = vsel %vm15787_vm8, %v16817_v16, %v16816_v46  ;;  %v2516_v62 = vadd.f32 %v2500_v18, %v2384_v34  ;;  %v3228_v55 = vsel %vm15772_vm4, %v16820_v13, %v16819_v63  ;;  %v16823_v23 = vld [vmem:[#allocation257_spill] sm:$0xff]  ;;  %v16824_v46 = vld [vmem:[#allocation215_spill] sm:$0xff]  ;;  %v16825_v18 = vld [vmem:[#allocation274_spill] sm:$0xff]  ;;  %vm4229_vm8 = vcmp.lt.s32.totalorder %v9448_v47, 106 }
 0x50c   : > { %v11677_v58 = vpop.permute.xlu1 %4225  ;;  %v3271_v36 = vmul.f32 %v16823_v23, %v3228_v55  ;;  %v3048_v22 = vadd.f32 %v3032_v33, %v2916_v27  ;;  %v3003_v2 = vmul.f32 %v16824_v46, %v2963_v7  ;;  %v3439_v34 = vsel %vm3437_vm11, %v16825_v18, %v11284_v32  ;;  %v16829_v7 = vld [vmem:[#allocation281_spill] sm:$0xff]  ;;  %v16832_v23 = vld [vmem:[#allocation247_spill] sm:$0xff] }
 0x50d   : > { %16805 = vst [vmem:[#allocation243_spill] sm:$0xff] %v11677_v58  ;;  %4463 = vrot.lane.b32.xlu0 %v16713_v21, %s7382_s18  ;;  %v2648_v24 = vadd.f32 %v2632_v10, %v2516_v62  ;;  %v2764_v30 = vmul.f32 %v11432_v28, %v2739_v39  ;;  %v16828_v10 = vld [vmem:[#allocation261_spill] sm:$0xff]  ;;  %v3486_v63 = vmul.f32 %v16829_v7, %v3439_v34  ;;  %v16831_v39 = vld [vmem:[#allocation222_spill] sm:$0xff]  ;;  %v4115_v28 = vld [vmem:[%s15140_s6 + $0x388] sm:$0xff] }
 0x50e   : > { %v11684_v26 = vpop.permute.xlu2 %3673  ;;  %v11687_v3 = vpop.permute.xlu0 %4335  ;;  %v3296_v27 = vmul.f32 %v11494_v44, %v3271_v36  ;;  %v3354_v62 = vmul.f32 %v16828_v10, %v16615_v50  ;;  %v4117_v13 = vld [vmem:[%s15140_s6 + $0x398] sm:$0xff]  ;;  %v3227_v36 = vsel %vm15772_vm4, %v16639_v40, %v16832_v23  ;;  %v16937_v60 = vld [vmem:[#allocation115_spill] sm:$0xff]  ;;  %vm3965_vm4 = vcmp.lt.s32.totalorder %v9448_v47, 108 }
 0x50f   : > { %16810 = vst [vmem:[#allocation258_spill] sm:$0xff] %v11687_v3  ;;  %v2871_v3 = vmul.f32 %v16821_v61, %v2831_v43  ;;  %v3180_v43 = vadd.f32 %v3164_v17, %v3048_v22  ;;  %v2780_v55 = vadd.f32 %v2764_v30, %v2648_v24  ;;  %v3028_v22 = vmul.f32 %v11467_v11, %v3003_v2  ;;  %v16830_v17 = vld [vmem:[#allocation227_spill] sm:$0xff]  ;;  %v16833_v24 = vld [vmem:[#allocation297_spill] sm:$0xff] }
 0x510   : > { %v3267_v30 = vmul.f32 %v16833_v24, %v3227_v36 }
 0x511   : > { %v2896_v33 = vmul.f32 %v11443_v29, %v2871_v3  ;;  %v3095_v3 = vsel %vm15776_vm14, %v16831_v39, %v16830_v17  ;;  %v3312_v61 = vadd.f32 %v3296_v27, %v3180_v43  ;;  %v16835_v27 = vld [vmem:[#allocation300_spill] sm:$0xff]  ;;  %v16836_v17 = vld [vmem:[#allocation298_spill] sm:$0xff]  ;;  %v16838_v39 = vld [vmem:[#allocation277_spill] sm:$0xff]  ;;  %vm4097_vm14 = vcmp.lt.s32.totalorder %v9448_v47, 107 }
 0x512   : > { %4487 = vrot.lane.b32.xlu1 %v16813_v37, %s7382_s18  ;;  %v3135_v46 = vmul.f32 %v16637_v45, %v3095_v3  ;;  %v3571_v45 = vsel %vm3569_vm10, %v16836_v17, %v16835_v27  ;;  %v16839_v3 = vld [vmem:[#allocation271_spill] sm:$0xff] }
 0x513   : > { %3726 = vperm.xlu2 %7076, %v3718_v14   ;;  %v2912_v34 = vadd.f32 %v2896_v33, %v2780_v55 }
 0x514   : > { %v11718_v9 = vpop.permute.xlu1 %4359 }
 0x515   : > { %16822 = vst [vmem:[#allocation288_spill] sm:$0xff] %v11718_v9  ;;  %4597 = vrot.lane.b32.xlu0 %v16220_v41, %s7383_s20  ;;  %v3379_v9 = vmul.f32 %v11505_v56, %v3354_v62  ;;  %v3044_v43 = vadd.f32 %v3028_v22, %v2912_v34  ;;  %v3160_v62 = vmul.f32 %v11478_v38, %v3135_v46  ;;  %v4378_v46 = vld [vmem:[%s15140_s6 + $0x3c0] sm:$0xff] }
 0x516   : > { %v11728_v16 = vpop.permute.xlu2 %3807  ;;  %v11730_v14 = vpop.permute.xlu0 %3990  ;;  %v3438_v22 = vsel %vm3437_vm11, %v16839_v3, %v16838_v39  ;;  %v3350_v34 = vmul.f32 %v16655_v48, %v16594_v31  ;;  %v4776_v39 = vld [vmem:[%s15140_s6 + $0x430] sm:$0xff] }
 0x517   : > { %16826 = vst [vmem:[#allocation133_spill] sm:$0xff] %v11728_v16  ;;  %v3511_v16 = vmul.f32 %v11514_v53, %v3486_v63  ;;  %v3395_v33 = vadd.f32 %v3379_v9, %v3312_v61  ;;  %v3292_v63 = vmul.f32 %v11494_v44, %v3267_v30  ;;  %v3176_v9 = vadd.f32 %v3160_v62, %v3044_v43  ;;  %v4644_v62 = vld [vmem:[%s15140_s6 + $0x410] sm:$0xff] }
 0x518   : > { %16827 = vst [vmem:[#allocation266_spill] sm:$0xff] %v11730_v14  ;;  %v3482_v61 = vmul.f32 %v11340_v20, %v3438_v22  ;;  %v3375_v43 = vmul.f32 %v11505_v56, %v3350_v34  ;;  %v16843_v22 = vld [vmem:[#allocation90_spill] sm:$0xff]  ;;  %v4777_v34 = vld [vmem:[%s15140_s6 + $0x438] sm:$0xff] }
 0x519   : > { %v3527_v23 = vadd.f32 %v3511_v16, %v3395_v33  ;;  %v3308_v30 = vadd.f32 %v3292_v63, %v3176_v9 }
 0x51a   : > { %4621 = vrot.lane.b32.xlu1 %v16646_v4, %s7383_s20 }
 0x51b   : > { %4137 = vperm.xlu2 %7076, %v4117_v13  }
 0x51c   : > { %v11754_v2 = vpop.permute.xlu1 %4264 }
 0x51d   : > { %16834 = vst [vmem:[#allocation279_spill] sm:$0xff] %v11754_v2  ;;  %4731 = vrot.lane.b32.xlu0 %v8648_v42, %s7384_s17 }
 0x51e   : > { %v11764_v40 = vpop.permute.xlu2 %3599  ;;  %v11766_v13 = vpop.permute.xlu0 %4401 }
 0x51f   : > { %16837 = vst [vmem:[#allocation244_spill] sm:$0xff] %v11766_v13  ;;  %v3618_v55 = vmul.f32 %v11764_v40, %v3571_v45  ;;  %v3507_v45 = vmul.f32 %v11514_v53, %v3482_v61 }
 0x521   : > { %v3643_v36 = vmul.f32 %v11554_v52, %v3618_v55 }
 0x522   : > { %4755 = vrot.lane.b32.xlu1 %v16550_v5, %s7384_s17 }
 0x523   : > { %v11784_v24 = vadd.f32 %v3643_v36, %v3527_v23  ;;  %3825 = vrot.lane.b32.xlu2 %v16793_v1, %s7377_s19  ;;  %v3391_v23 = vadd.f32 %v3375_v43, %v3308_v30  ;;  %v16844_v36 = vld [vmem:[#allocation118_spill] sm:$0xff] }
 0x524   : > { %v11788_v16 = vpop.permute.xlu1 %4081 }
 0x525   : > { %16840 = vst [vmem:[#allocation216_spill] sm:$0xff] %v11788_v16  ;;  %4386 = vperm.xlu0 %7074, %v4378_v46   ;;  %v3523_v61 = vadd.f32 %v3507_v45, %v3391_v23  ;;  %v16920_v16 = vld [vmem:[#allocation268_spill] sm:$0xff] }
 0x526   : > { %v11792_v33 = vpop.permute.xlu2 %3553 }
 0x527   : > { %16841 = vst [vmem:[#allocation221_spill] sm:$0xff] %v11792_v33  ;;  %v11794_v55 = vpop.permute.xlu0 %4089  ;;  %v3570_v63 = vsel %vm3569_vm10, %v11792_v33, %v16843_v22 }
 0x528   : > { %16842 = vst [vmem:[#allocation235_spill] sm:$0xff] %v11794_v55  ;;  %v3614_v9 = vmul.f32 %v16844_v36, %v3570_v63  ;;  %v12138_v55 = vld [vmem:[%s15139_s5 + $0x27] ss:$8 sm:$0xf] }
 0x52a   : > { %4660 = vperm.xlu1 %7075, %v4644_v62   ;;  %v3639_v46 = vmul.f32 %v11554_v52, %v3614_v9  ;;  %v4643_v52 = vld [vmem:[%s15140_s6 + $0x408] sm:$0xff] }
 0x52b   : > { %3959 = vrot.lane.b32.xlu2 %v16813_v37, %s7378_s14 }
 0x52c   : > { %v11810_v13 = vpop.permute.xlu1 %4215  ;;  %v11812_v53 = vadd.f32 %v3639_v46, %v3523_v61 }
 0x52d   : > { %16845 = vst [vmem:[#allocation91_spill] sm:$0xff] %v11810_v13  ;;  %4797 = vperm.xlu0 %7074, %v4777_v34   ;;  %v4116_v34 = vld [vmem:[%s15140_s6 + $0x390] sm:$0xff] }
 0x52e   : > { %16846 = vst [vmem:[#allocation87_spill] sm:$0xff] %v11812_v53  ;;  %v11814_v22 = vpop.permute.xlu2 %3687  ;;  %v4512_v53 = vld [vmem:[%s15140_s6 + $0x3f0] sm:$0xff] }
 0x52f   : > { %16847 = vst [vmem:[#allocation130_spill] sm:$0xff] %v11814_v22  ;;  %v11816_v30 = vpop.permute.xlu0 %4223 }
 0x532   : > { %4477 = vrot.lane.b32.xlu1 %v16594_v31, %s7382_s18 }
 0x533   : > { %4093 = vrot.lane.b32.xlu2 %v16646_v4, %s7379_s22 }
 0x534   : > { %v11822_v43 = vpop.permute.xlu1 %4349 }
 0x535   : > { %16848 = vst [vmem:[#allocation89_spill] sm:$0xff] %v11822_v43  ;;  %4485 = vrot.lane.b32.xlu0 %v16793_v1, %s7382_s18  ;;  %v16926_v43 = vld [vmem:[#allocation199_spill] sm:$0xff] }
 0x536   : > { %v11826_v45 = vpop.permute.xlu2 %3821 }
 0x537   : > { %16849 = vst [vmem:[#allocation82_spill] sm:$0xff] %v11826_v45  ;;  %v11828_v62 = vpop.permute.xlu0 %4357 }
 0x538   : > { %16850 = vst [vmem:[#allocation142_spill] sm:$0xff] %v11828_v62  ;;  %v16927_v62 = vld [vmem:[#allocation232_spill] sm:$0xff] }
 0x53a   : > { %4611 = vrot.lane.b32.xlu1 %v16615_v50, %s7383_s20 }
 0x53b   : > { %4227 = vrot.lane.b32.xlu2 %v16550_v5, %s7380_s23 }
 0x53c   : > { %v11834_v63 = vpop.permute.xlu1 %4483 }
 0x53d   : > { %16851 = vst [vmem:[#allocation84_spill] sm:$0xff] %v11834_v63  ;;  %4619 = vrot.lane.b32.xlu0 %v16813_v37, %s7383_s20 }
 0x53e   : > { %v11838_v23 = vpop.permute.xlu2 %3955 }
 0x53f   : > { %16852 = vst [vmem:[#allocation83_spill] sm:$0xff] %v11838_v23  ;;  %v11840_v9 = vpop.permute.xlu0 %4491 }
 0x540   : > { %16853 = vst [vmem:[#allocation253_spill] sm:$0xff] %v11840_v9 }
 0x542   : > { %4745 = vrot.lane.b32.xlu1 %v16641_v0, %s7384_s17 }
 0x543   : > { %4132 = vperm.xlu2 %7076, %v4116_v34  }
 0x544   : > { %v11847_v61 = vpop.permute.xlu1 %4259 }
 0x545   : > { %16854 = vst [vmem:[#allocation303_spill] sm:$0xff] %v11847_v61  ;;  %4753 = vrot.lane.b32.xlu0 %v16646_v4, %s7384_s17 }
 0x546   : > { %v11851_v46 = vpop.permute.xlu2 %3731 }
 0x547   : > { %v11853_v63 = vpop.permute.xlu0 %4396 }
 0x548   : > { %16855 = vst [vmem:[#allocation17_spill] sm:$0xff] %v11853_v63  ;;  %v16924_v63 = vld [vmem:[#allocation93_spill] sm:$0xff] }
 0x54a   : > { %4879 = vrot.lane.b32.xlu1 %v16251_v12, %s7385_s10 }
 0x54b   : > { %3949 = vrot.lane.b32.xlu2 %v16594_v31, %s7378_s14 }
 0x54c   : > { %v11859_v9 = vpop.permute.xlu1 %4197 }
 0x54d   : > { %16856 = vst [vmem:[#allocation45_spill] sm:$0xff] %v11859_v9  ;;  %4887 = vrot.lane.b32.xlu0 %v16550_v5, %s7385_s10 }
 0x54e   : > { %v11863_v34 = vpop.permute.xlu2 %3669 }
 0x54f   : > { %16857 = vst [vmem:[#allocation306_spill] sm:$0xff] %v11863_v34  ;;  %v11865_v23 = vpop.permute.xlu0 %4213 }
 0x550   : > { %16858 = vst [vmem:[#allocation304_spill] sm:$0xff] %v11865_v23 }
 0x552   : > { %4655 = vperm.xlu1 %7075, %v4643_v52  }
 0x553   : > { %4083 = vrot.lane.b32.xlu2 %v16615_v50, %s7379_s22 }
 0x554   : > { %v11875_v9 = vpop.permute.xlu1 %4331 }
 0x555   : > { %16859 = vst [vmem:[#allocation109_spill] sm:$0xff] %v11875_v9  ;;  %4792 = vperm.xlu0 %7074, %v4776_v39   ;;  %v16938_v9 = vld [vmem:[#allocation286_spill] sm:$0xff] }
 0x556   : > { %v11877_v56 = vpop.permute.xlu2 %3803 }
 0x557   : > { %16860 = vst [vmem:[#allocation105_spill] sm:$0xff] %v11877_v56  ;;  %v11879_v44 = vpop.permute.xlu0 %4347 }
 0x558   : > { %16861 = vst [vmem:[#allocation125_spill] sm:$0xff] %v11879_v44 }
 0x55a   : > { %4593 = vrot.lane.b32.xlu1 %v16654_v25, %s7383_s20 }
 0x55b   : > { %4217 = vrot.lane.b32.xlu2 %v16641_v0, %s7380_s23 }
 0x55c   : > { %v11885_v52 = vpop.permute.xlu1 %4465 }
 0x55d   : > { %16862 = vst [vmem:[#allocation165_spill] sm:$0xff] %v11885_v52  ;;  %4609 = vrot.lane.b32.xlu0 %v16594_v31, %s7383_s20 }
 0x55e   : > { %v11889_v38 = vpop.permute.xlu2 %3937 }
 0x55f   : > { %16863 = vst [vmem:[#allocation193_spill] sm:$0xff] %v11889_v38  ;;  %v11891_v48 = vpop.permute.xlu0 %4481 }
 0x560   : > { %16864 = vst [vmem:[#allocation140_spill] sm:$0xff] %v11891_v48  ;;  %v4989_v48 = vld [vmem:[%s15140_s6 + $0x20] sm:$0xff] }
 0x562   : > { %4727 = vrot.lane.b32.xlu1 %v16713_v21, %s7384_s17 }
 0x563   : > { %4351 = vrot.lane.b32.xlu2 %v16251_v12, %s7381_s21 }
 0x564   : > { %v11897_v39 = vpop.permute.xlu1 %4599 }
 0x565   : > { %16865 = vst [vmem:[#allocation309_spill] sm:$0xff] %v11897_v39  ;;  %4743 = vrot.lane.b32.xlu0 %v16615_v50, %s7384_s17 }
 0x566   : > { %v11901_v11 = vpop.permute.xlu2 %4071 }
 0x567   : > { %16866 = vst [vmem:[#allocation116_spill] sm:$0xff] %v11901_v11  ;;  %v11903_v29 = vpop.permute.xlu0 %4615  ;;  %v4775_v11 = vld [vmem:[%s15140_s6 + $0x428] sm:$0xff] }
 0x568   : > { %16867 = vst [vmem:[#allocation195_spill] sm:$0xff] %v11903_v29  ;;  %v4642_v29 = vld [vmem:[%s15140_s6 + $0x400] sm:$0xff] }
 0x56a   : > { %4861 = vrot.lane.b32.xlu1 %v16220_v41, %s7385_s10 }
 0x56b   : > { %4127 = vperm.xlu2 %7076, %v4115_v28  }
 0x56c   : > { %v11910_v6 = vpop.permute.xlu1 %4254 }
 0x56d   : > { %16868 = vst [vmem:[#allocation151_spill] sm:$0xff] %v11910_v6  ;;  %4877 = vrot.lane.b32.xlu0 %v16641_v0, %s7385_s10 }
 0x56e   : > { %v11914_v39 = vpop.permute.xlu2 %3726 }
 0x56f   : > { %16869 = vst [vmem:[#allocation34_spill] sm:$0xff] %v11914_v39  ;;  %v11916_v34 = vpop.permute.xlu0 %4391  ;;  %v3704_v39 = vsel %vm3701_vm9, %v16927_v62, %v16926_v43  ;;  %v16931_v62 = vld [vmem:[#allocation312_spill] sm:$0xff] }
 0x570   : > { %16870 = vst [vmem:[#allocation7_spill] sm:$0xff] %v11916_v34 }
 0x572   : > { %4650 = vperm.xlu1 %7075, %v4642_v29  }
 0x573   : > { %4065 = vrot.lane.b32.xlu2 %v16654_v25, %s7379_s22 }
 0x574   : > { %v11926_v28 = vpop.permute.xlu1 %4665 }
 0x575   : > { %16871 = vst [vmem:[#allocation28_spill] sm:$0xff] %v11926_v28  ;;  %4787 = vperm.xlu0 %7074, %v4775_v11  }
 0x576   : > { %v11928_v36 = vpop.permute.xlu2 %4137 }
 0x577   : > { %16872 = vst [vmem:[#allocation161_spill] sm:$0xff] %v11928_v36  ;;  %v11930_v33 = vpop.permute.xlu0 %4329  ;;  %v4774_v36 = vld [vmem:[%s15140_s6 + $0x420] sm:$0xff] }
 0x578   : > { %16873 = vst [vmem:[#allocation229_spill] sm:$0xff] %v11930_v33 }
 0x57a   : > { %4725 = vrot.lane.b32.xlu1 %v16654_v25, %s7384_s17 }
 0x57b   : > { %4199 = vrot.lane.b32.xlu2 %v16713_v21, %s7380_s23 }
 0x57c   : > { %v11936_v29 = vpop.permute.xlu1 %4353 }
 0x57d   : > { %16874 = vst [vmem:[#allocation255_spill] sm:$0xff] %v11936_v29  ;;  %4741 = vrot.lane.b32.xlu0 %v16594_v31, %s7384_s17 }
 0x57e   : > { %v11940_v20 = vpop.permute.xlu2 %3825 }
 0x57f   : > { %16875 = vst [vmem:[#allocation182_spill] sm:$0xff] %v11940_v20  ;;  %v11942_v3 = vpop.permute.xlu0 %4463 }
 0x580   : > { %16876 = vst [vmem:[#allocation208_spill] sm:$0xff] %v11942_v3  ;;  %v4907_v3 = vld [vmem:[%s15140_s6 + $0x448] sm:$0xff] }
 0x582   : > { %4859 = vrot.lane.b32.xlu1 %v16713_v21, %s7385_s10 }
 0x583   : > { %4333 = vrot.lane.b32.xlu2 %v16220_v41, %s7381_s21 }
 0x584   : > { %v11948_v11 = vpop.permute.xlu1 %4487 }
 0x585   : > { %16877 = vst [vmem:[#allocation203_spill] sm:$0xff] %v11948_v11  ;;  %4875 = vrot.lane.b32.xlu0 %v16615_v50, %s7385_s10 }
 0x586   : > { %v11952_v28 = vpop.permute.xlu2 %3959 }
 0x587   : > { %v11954_v33 = vpop.permute.xlu0 %4597 }
 0x588   : > { %16878 = vst [vmem:[#allocation228_spill] sm:$0xff] %v11954_v33  ;;  %v4114_v33 = vld [vmem:[%s15140_s6 + $0x380] sm:$0xff] }
 0x58a   : > { %4782 = vperm.xlu1 %7075, %v4774_v36  }
 0x58b   : > { %4467 = vrot.lane.b32.xlu2 %v8648_v42, %s7382_s18  ;;  %v16932_v42 = vld [vmem:[#allocation68_spill] sm:$0xff] }
 0x58c   : > { %v11964_v11 = vpop.permute.xlu1 %4621 }
 0x58d   : > { %16879 = vst [vmem:[#allocation291_spill] sm:$0xff] %v11964_v11  ;;  %4919 = vperm.xlu0 %7074, %v4907_v3   ;;  %v4513_v11 = vld [vmem:[%s15140_s6 + $0x3f8] sm:$0xff] }
 0x58e   : > { %v11966_v29 = vpop.permute.xlu2 %4093 }
 0x58f   : > { %16880 = vst [vmem:[#allocation107_spill] sm:$0xff] %v11966_v29  ;;  %v11968_v6 = vpop.permute.xlu0 %4731 }
 0x590   : > { %16881 = vst [vmem:[#allocation246_spill] sm:$0xff] %v11968_v6  ;;  %v4992_v6 = vld [vmem:[%s15140_s6 + $0x38] sm:$0xff] }
 0x592   : > { %4873 = vrot.lane.b32.xlu1 %v16594_v31, %s7385_s10 }
 0x593   : > { %4122 = vperm.xlu2 %7076, %v4114_v33  }
 0x594   : > { %v11975_v36 = vpop.permute.xlu1 %4755 }
 0x595   : > { %16882 = vst [vmem:[#allocation278_spill] sm:$0xff] %v11975_v36  ;;  %4881 = vrot.lane.b32.xlu0 %v16793_v1, %s7385_s10 }
 0x596   : > { %v11979_v23 = vpop.permute.xlu2 %4227 }
 0x597   : > { %16883 = vst [vmem:[#allocation283_spill] sm:$0xff] %v11979_v23  ;;  %v11981_v3 = vpop.permute.xlu0 %4386 }
 0x598   : > { %16884 = vst [vmem:[#allocation122_spill] sm:$0xff] %v11981_v3  ;;  %v16888_v3 = vld [vmem:[#allocation4_spill] sm:$0xff] }
 0x59a   : > { %5026 = vperm.xlu1 %7075, %v4992_v6  }
 0x59b   : > { %4533 = vperm.xlu2 %7076, %v4513_v11  }
 0x59c   : > { %v11989_v33 = vpop.permute.xlu1 %4660 }
 0x59d   : > { %16885 = vst [vmem:[#allocation73_spill] sm:$0xff] %v11989_v33  ;;  %3551 = vrot.lane.b32.xlu0 %v16675_v19, %s7375_s11  ;;  %v16892_v33 = vld [vmem:[#allocation11_spill] sm:$0xff] }
 0x59e   : > { %v11993_v36 = vpop.permute.xlu2 %4132 }
 0x59f   : > { %16886 = vst [vmem:[#allocation74_spill] sm:$0xff] %v11993_v36  ;;  %v11995_v23 = vpop.permute.xlu0 %4797  ;;  %v6948_v36 = vld [vmem:[%s15139_s5 + $0x41] ss:$8 sm:$0xf] }
 0x5a0   : > { %16887 = vst [vmem:[#allocation111_spill] sm:$0xff] %v11995_v23 }
 0x5a2   : > { %3549 = vrot.lane.b32.xlu1 %v16888_v3, %s7375_s11 }
 0x5a3   : > { %4221 = vrot.lane.b32.xlu2 %v16793_v1, %s7380_s23 }
 0x5a4   : > { %v12001_v52 = vpop.permute.xlu1 %4477 }
 0x5a5   : > { %16889 = vst [vmem:[#allocation31_spill] sm:$0xff] %v12001_v52  ;;  %3683 = vrot.lane.b32.xlu0 %v16675_v19, %s7376_s15 }
 0x5a6   : > { %v12005_v6 = vpop.permute.xlu2 %3949 }
 0x5a7   : > { %16890 = vst [vmem:[#allocation80_spill] sm:$0xff] %v12005_v6  ;;  %v12007_v11 = vpop.permute.xlu0 %4485 }
 0x5a8   : > { %16891 = vst [vmem:[#allocation78_spill] sm:$0xff] %v12007_v11 }
 0x5aa   : > { %3547 = vrot.lane.b32.xlu1 %v16892_v33, %s7375_s11 }
 0x5ab   : > { %4355 = vrot.lane.b32.xlu2 %v16813_v37, %s7381_s21 }
 0x5ac   : > { %v12013_v23 = vpop.permute.xlu1 %4611 }
 0x5ad   : > { %16893 = vst [vmem:[#allocation72_spill] sm:$0xff] %v12013_v23  ;;  %3681 = vrot.lane.b32.xlu0 %v16888_v3, %s7376_s15 }
 0x5ae   : > { %v12017_v1 = vpop.permute.xlu2 %4083 }
 0x5af   : > { %16894 = vst [vmem:[#allocation104_spill] sm:$0xff] %v12017_v1  ;;  %v12019_v52 = vpop.permute.xlu0 %4619 }
 0x5b0   : > { %16895 = vst [vmem:[#allocation50_spill] sm:$0xff] %v12019_v52 }
 0x5b2   : > { %5011 = vperm.xlu1 %7075, %v4989_v48  }
 0x5b3   : > { %4489 = vrot.lane.b32.xlu2 %v16646_v4, %s7382_s18 }
 0x5b4   : > { %v12026_v11 = vpop.permute.xlu1 %4745 }
 0x5b5   : > { %16896 = vst [vmem:[#allocation62_spill] sm:$0xff] %v12026_v11  ;;  %3679 = vrot.lane.b32.xlu0 %v16892_v33, %s7376_s15 }
 0x5b6   : > { %v12030_v23 = vpop.permute.xlu2 %4217 }
 0x5b7   : > { %16897 = vst [vmem:[#allocation49_spill] sm:$0xff] %v12030_v23  ;;  %v12032_v17 = vpop.permute.xlu0 %4753 }
 0x5b8   : > { %16898 = vst [vmem:[#allocation108_spill] sm:$0xff] %v12032_v17 }
 0x5ba   : > { %3947 = vrot.lane.b32.xlu1 %v16675_v19, %s7378_s14 }
 0x5bb   : > { %4623 = vrot.lane.b32.xlu2 %v16550_v5, %s7383_s20 }
 0x5bc   : > { %v12038_v52 = vpop.permute.xlu1 %4879 }
 0x5bd   : > { %16899 = vst [vmem:[#allocation37_spill] sm:$0xff] %v12038_v52  ;;  %3677 = vrot.lane.b32.xlu0 %v16656_v54, %s7376_s15 }
 0x5be   : > { %v12042_v48 = vpop.permute.xlu2 %4351 }
 0x5bf   : > { %16900 = vst [vmem:[#allocation173_spill] sm:$0xff] %v12042_v48  ;;  %v12044_v11 = vpop.permute.xlu0 %4887 }
 0x5c0   : > { %16901 = vst [vmem:[#allocation121_spill] sm:$0xff] %v12044_v11 }
 0x5c2   : > { %3945 = vrot.lane.b32.xlu1 %v16888_v3, %s7378_s14 }
 0x5c3   : > { %4528 = vperm.xlu2 %7076, %v4512_v53  }
 0x5c4   : > { %v12051_v17 = vpop.permute.xlu1 %4655 }
 0x5c5   : > { %16902 = vst [vmem:[#allocation26_spill] sm:$0xff] %v12051_v17  ;;  %4079 = vrot.lane.b32.xlu0 %v16675_v19, %s7379_s22 }
 0x5c6   : > { %v12055_v52 = vpop.permute.xlu2 %4127 }
 0x5c7   : > { %16903 = vst [vmem:[#allocation2_spill] sm:$0xff] %v12055_v52  ;;  %v12057_v5 = vpop.permute.xlu0 %4792 }
 0x5c8   : > { %16904 = vst [vmem:[#allocation25_spill] sm:$0xff] %v12057_v5  ;;  %v3355_v5 = vmul.f32 %v16828_v10, %v16813_v37  ;;  %v12133_v37 = vperm.slane %v11510_v15, 0 }
 0x5ca   : > { %3943 = vrot.lane.b32.xlu1 %v16892_v33, %s7378_s14 }
 0x5cb   : > { %4345 = vrot.lane.b32.xlu2 %v16594_v31, %s7381_s21 }
 0x5cc   : > { %v12063_v11 = vpop.permute.xlu1 %4593 }
 0x5cd   : > { %16905 = vst [vmem:[#allocation22_spill] sm:$0xff] %v12063_v11  ;;  %4077 = vrot.lane.b32.xlu0 %v16888_v3, %s7379_s22 }
 0x5ce   : > { %v12067_v53 = vpop.permute.xlu2 %4065 }
 0x5cf   : > { %16906 = vst [vmem:[#allocation132_spill] sm:$0xff] %v12067_v53  ;;  %v12069_v17 = vpop.permute.xlu0 %4609  ;;  %v4511_v53 = vld [vmem:[%s15140_s6 + $0x3e8] sm:$0xff] }
 0x5d0   : > { %16907 = vst [vmem:[#allocation67_spill] sm:$0xff] %v12069_v17 }
 0x5d2   : > { %3941 = vrot.lane.b32.xlu1 %v16656_v54, %s7378_s14 }
 0x5d3   : > { %4479 = vrot.lane.b32.xlu2 %v16615_v50, %s7382_s18 }
 0x5d4   : > { %v12075_v48 = vpop.permute.xlu1 %4727 }
 0x5d5   : > { %16908 = vst [vmem:[#allocation96_spill] sm:$0xff] %v12075_v48  ;;  %4075 = vrot.lane.b32.xlu0 %v16892_v33, %s7379_s22 }
 0x5d6   : > { %v12079_v31 = vpop.permute.xlu2 %4199 }
 0x5d7   : > { %16909 = vst [vmem:[#allocation14_spill] sm:$0xff] %v12079_v31  ;;  %v12081_v11 = vpop.permute.xlu0 %4743 }
 0x5d8   : > { %16910 = vst [vmem:[#allocation103_spill] sm:$0xff] %v12081_v11 }
 0x5da   : > { %4343 = vrot.lane.b32.xlu1 %v16675_v19, %s7381_s21 }
 0x5db   : > { %4613 = vrot.lane.b32.xlu2 %v16641_v0, %s7383_s20 }
 0x5dc   : > { %v12087_v17 = vpop.permute.xlu1 %4861 }
 0x5dd   : > { %16911 = vst [vmem:[#allocation86_spill] sm:$0xff] %v12087_v17  ;;  %4073 = vrot.lane.b32.xlu0 %v16656_v54, %s7379_s22 }
 0x5de   : > { %v12091_v50 = vpop.permute.xlu2 %4333 }
 0x5df   : > { %16912 = vst [vmem:[#allocation143_spill] sm:$0xff] %v12091_v50  ;;  %v12093_v48 = vpop.permute.xlu0 %4877 }
 0x5e0   : > { %16913 = vst [vmem:[#allocation139_spill] sm:$0xff] %v12093_v48  ;;  %v12111_v48 = vperm.slane %v11502_v57, 3  ;;  %v3443_v57 = vsel %vm3437_vm11, %v16920_v16, %v16825_v18  ;;  %v16921_v18 = vld [vmem:[#allocation210_spill] sm:$0xff] }
 0x5e1   : > { %v3485_v14 = vmul.f32 %v16829_v7, %v3443_v57  ;;  %v3447_v6 = vsel %vm3437_vm11, %v16921_v18, %v16920_v16  ;;  %v12156_v57 = vperm.slane %v11510_v15, 3 }
 0x5e2   : > { %4341 = vrot.lane.b32.xlu1 %v16888_v3, %s7381_s21  ;;  %16917 = vst [vmem:[#allocation157_spill] sm:$0xff] %v12111_v48  ;;  %v3380_v16 = vmul.f32 %v12111_v48, %v3355_v5  ;;  %v3848_v5 = vsel %vm15822_vm13, %v16932_v42, %v16931_v62  ;;  %v3484_v23 = vmul.f32 %v16829_v7, %v3447_v6 }
 0x5e3   : > { %4747 = vrot.lane.b32.xlu2 %v16251_v12, %s7384_s17  ;;  %v12116_v12 = vperm.slane %v11510_v15, 1  ;;  %v3887_v62 = vmul.f32 %v16937_v60, %v3848_v5 }
 0x5e4   : > { %v12099_v11 = vpop.permute.xlu1 %4650 }
 0x5e5   : > { %16914 = vst [vmem:[#allocation35_spill] sm:$0xff] %v12099_v11  ;;  %4475 = vrot.lane.b32.xlu0 %v16675_v19, %s7382_s18  ;;  %v16918_v11 = vld [vmem:[#allocation270_spill] sm:$0xff] }
 0x5e6   : > { %v12103_v0 = vpop.permute.xlu2 %4467 }
 0x5e7   : > { %16915 = vst [vmem:[#allocation207_spill] sm:$0xff] %v12103_v0  ;;  %v12105_v17 = vpop.permute.xlu0 %4787  ;;  %v16919_v0 = vld [vmem:[#allocation265_spill] sm:$0xff] }
 0x5e8   : > { %16916 = vst [vmem:[#allocation234_spill] sm:$0xff] %v12105_v17  ;;  %v3448_v17 = vsel %vm3437_vm11, %v16919_v0, %v16918_v11  ;;  %v3452_v10 = vsel %vm3437_vm11, %v16736_v59, %v16919_v0  ;;  %v16923_v0 = vld [vmem:[#allocation99_spill] sm:$0xff] }
 0x5e9   : > { %v3488_v50 = vmul.f32 %v16741_v35, %v3448_v17  ;;  %v12153_v20 = vsel %vm1902_vm12, %v16924_v63, %v16923_v0  ;;  %v3491_v17 = vmul.f32 %v16741_v35, %v3452_v10  ;;  %v12168_v63 = vperm.slane %v12138_v55, 2  ;;  %v6947_v10 = vld [vmem:[%s15139_s5 + $0x40] ss:$8 sm:$0xf] }
 0x5ea   : > { %4339 = vrot.lane.b32.xlu1 %v16892_v33, %s7381_s21  ;;  %16925 = vst [vmem:[#allocation220_spill] sm:$0xff] %v12153_v20  ;;  %v16930_v0 = vld [vmem:[#allocation285_spill] sm:$0xff]  ;;  %v12195_v58 = vperm.slane %v6947_v10, 3 }
 0x5eb   : > { %4523 = vperm.xlu2 %7076, %v4511_v53   ;;  %v16928_v53 = vld [vmem:[#allocation305_spill] sm:$0xff]  ;;  %v12177_v20 = vperm.slane %v16930_v0, 3  ;;  %v12193_v2 = vmul.f32 %v12133_v37, %v3488_v50  ;;  %v3516_v34 = vmul.f32 %v12156_v57, %v3491_v17  ;;  %v12214_v50 = vperm.slane %v16930_v0, 0 }
 0x5ec   : > { %v12147_v59 = vpop.permute.xlu1 %4725  ;;  %v3754_v15 = vmul.f32 %v16928_v53, %v3704_v39  ;;  %v16933_v39 = vld [vmem:[#allocation55_spill] sm:$0xff]  ;;  %16936 = vst [vmem:[#allocation120_spill] sm:$0xff] %v12195_v58  ;;  %v12216_v17 = vperm.slane %v6948_v36, 3 }
 0x5ed   : > { %16922 = vst [vmem:[#allocation150_spill] sm:$0xff] %v12147_v59  ;;  %4473 = vrot.lane.b32.xlu0 %v16888_v3, %s7382_s18  ;;  %v3359_v8 = vmul.f32 %v16933_v39, %v16646_v4  ;;  %v3583_v39 = vsel %vm3569_vm10, %v16835_v27, %v16938_v9  ;;  %v12203_v4 = vperm.slane %v6947_v10, 2  ;;  %v16942_v27 = vld [vmem:[#allocation311_spill] sm:$0xff]  ;;  %v16943_v10 = vld [vmem:[#allocation61_spill] sm:$0xff]  ;;  %v12231_v9 = vmul.f32 %v12195_v58, %v3887_v62  ;;  %v16952_v62 = vld [vmem:[#allocation138_spill] sm:$0xff] }
 0x5ee   : > { %v12174_v59 = vpop.permute.xlu2 %4122  ;;  %16935 = vst [vmem:[#allocation124_spill] sm:$0xff] %v12193_v2  ;;  %v12210_v6 = vmul.f32 %v12168_v63, %v3754_v15  ;;  %v3715_v5 = vsel %vm3701_vm9, %v16943_v10, %v16942_v27  ;;  %v16944_v15 = vld [vmem:[#allocation219_spill] sm:$0xff]  ;;  %v16947_v2 = vld [vmem:[#allocation97_spill] sm:$0xff]  ;;  %v12240_v27 = vperm.slane %v6948_v36, 2  ;;  %v16955_v36 = vld [vmem:[#allocation112_spill] sm:$0xff] }
 0x5ef   : > { %16929 = vst [vmem:[#allocation114_spill] sm:$0xff] %v12174_v59  ;;  %v12189_v29 = vpop.permute.xlu0 %4741  ;;  %v3510_v59 = vmul.f32 %v12116_v12, %v3485_v14  ;;  %v3451_v14 = vsel %vm3437_vm11, %v11284_v32, %v16921_v18  ;;  %v3384_v32 = vmul.f32 %v12111_v48, %v3359_v8  ;;  %v3509_v18 = vmul.f32 %v12133_v37, %v3484_v23  ;;  %v16953_v48 = vld [vmem:[#allocation299_spill] sm:$0xff] }
 0x5f0   : > { %16934 = vst [vmem:[#allocation9_spill] sm:$0xff] %v12189_v29  ;;  %v3444_v29 = vsel %vm3437_vm11, %v16918_v11, %v16944_v15  ;;  %v3487_v8 = vmul.f32 %v16829_v7, %v3451_v14  ;;  %v16951_v11 = vld [vmem:[#allocation110_spill] sm:$0xff]  ;;  %v3703_v7 = vsel %vm3701_vm9, %v11814_v22, %v16943_v10  ;;  %v16963_v22 = vld [vmem:[#allocation196_spill] sm:$0xff] }
 0x5f1   : > { %16939 = vst [vmem:[#allocation141_spill] sm:$0xff] %v12210_v6  ;;  %v3835_v15 = vsel %vm15822_vm13, %v16952_v62, %v16951_v11  ;;  %v12262_v14 = vadd.f32 %v3510_v59, %v16955_v36  ;;  %v3489_v6 = vmul.f32 %v16741_v35, %v3444_v29  ;;  %v16965_v36 = vld [vmem:[#allocation85_spill] sm:$0xff] }
 0x5f2   : > { %16940 = vst [vmem:[#allocation185_spill] sm:$0xff] %v12214_v50  ;;  %4337 = vrot.lane.b32.xlu1 %v16656_v54, %s7381_s21  ;;  %v16946_v50 = vld [vmem:[#allocation102_spill] sm:$0xff]  ;;  %v16968_v29 = vld [vmem:[#allocation181_spill] sm:$0xff] }
 0x5f3   : > { %16941 = vst [vmem:[#allocation211_spill] sm:$0xff] %v12216_v17  ;;  %v12237_v0 = vsel %vm3701_vm9, %v16947_v2, %v16946_v50  ;;  %4461 = vrot.lane.b32.xlu2 %v16654_v25, %s7382_s18  ;;  %v16958_v25 = vld [vmem:[#allocation310_spill] sm:$0xff] }
 0x5f4   : > { %16945 = vst [vmem:[#allocation156_spill] sm:$0xff] %v12231_v9  ;;  %v12245_v23 = vpop.permute.xlu1 %4859  ;;  %v16954_v9 = vld [vmem:[#allocation149_spill] sm:$0xff]  ;;  %v3882_v62 = vmul.f32 %v16958_v25, %v3835_v15  ;;  %v16959_v2 = vld [vmem:[#allocation242_spill] sm:$0xff]  ;;  %v3619_v15 = vmul.f32 %v11764_v40, %v3583_v39  ;;  %v3847_v39 = vsel %vm15822_vm13, %v16951_v11, %v11877_v56 }
 0x5f5   : > { %16948 = vst [vmem:[#allocation184_spill] sm:$0xff] %v12237_v0  ;;  %v3968_v50 = vsel %vm3965_vm4, %v16954_v9, %v16953_v48  ;;  %4471 = vrot.lane.b32.xlu0 %v16892_v33, %s7382_s18  ;;  %v3750_v9 = vmul.f32 %v11851_v46, %v3703_v7  ;;  %v16961_v48 = vld [vmem:[#allocation204_spill] sm:$0xff]  ;;  %v16964_v33 = vld [vmem:[#allocation267_spill] sm:$0xff]  ;;  %v3396_v7 = vadd.f32 %v3380_v16, %v16968_v29  ;;  %v16973_v29 = vld [vmem:[#allocation42_spill] sm:$0xff] }
 0x5f6   : > { %16949 = vst [vmem:[#allocation180_spill] sm:$0xff] %v12240_v27  ;;  %v4018_v0 = vmul.f32 %v16959_v2, %v3968_v50  ;;  %v12270_v44 = vpop.permute.xlu2 %4533  ;;  %v12273_v10 = vadd.f32 %v3509_v18, %v16961_v48  ;;  %v3449_v59 = vsel %vm3437_vm11, %v16964_v33, %v16963_v22  ;;  %v16967_v50 = vld [vmem:[#allocation275_spill] sm:$0xff]  ;;  %v3512_v48 = vmul.f32 %v12156_v57, %v3487_v8  ;;  %v16969_v18 = vld [vmem:[#allocation94_spill] sm:$0xff] }
 0x5f7   : > { %16950 = vst [vmem:[#allocation198_spill] sm:$0xff] %v12245_v23  ;;  %v12264_v23 = vpop.f32.mrf.mxu2  ;;  %v3445_v35 = vsel %vm3437_vm11, %v16963_v22, %v16967_v50  ;;  %v3751_v33 = vmul.f32 %v11851_v46, %v3715_v5  ;;  %v3907_v16 = vmul.f32 %v12203_v4, %v3882_v62  ;;  %v3775_v5 = vmul.f32 %v12168_v63, %v3750_v9 }
 0x5f8   : > { %16956 = vst [vmem:[#allocation206_spill] sm:$0xff] %v12262_v14  ;;  %v12281_v14 = vpop.permute.xlu0 %4875  ;;  %v12302_v8 = vmul.f32 %v12240_v27, %v4018_v0  ;;  %v3644_v62 = vmul.f32 %v12177_v20, %v3619_v15  ;;  %v3979_v0 = vsel %vm3965_vm4, %v11952_v28, %v16973_v29  ;;  %v3883_v56 = vmul.f32 %v16958_v25, %v3847_v39  ;;  %v16976_v15 = vld [vmem:[#allocation189_spill] sm:$0xff] }
 0x5f9   : > { %16957 = vst [vmem:[#allocation269_spill] sm:$0xff] %v12264_v23  ;;  %v3400_v23 = vadd.f32 %v3384_v32, %v16965_v36  ;;  %v16970_v32 = vld [vmem:[#allocation126_spill] sm:$0xff]  ;;  %v12310_v36 = vpop.f32.mrf.mxu3  ;;  %v3716_v25 = vsel %vm3701_vm9, %v16926_v43, %v11684_v26 }
 0x5fa   : > { %16960 = vst [vmem:[#allocation294_spill] sm:$0xff] %v12270_v44  ;;  %v3492_v44 = vmul.f32 %v16969_v18, %v3449_v59  ;;  %v3967_v22 = vsel %vm3965_vm4, %v16970_v32, %v11952_v28  ;;  %v12305_v59 = vmul.f32 %v12116_v12, %v3489_v6  ;;  %4739 = vrot.lane.b32.xlu1 %v16675_v19, %s7384_s17  ;;  %v16974_v32 = vld [vmem:[#allocation12_spill] sm:$0xff] }
 0x5fb   : > { %16962 = vst [vmem:[#allocation224_spill] sm:$0xff] %v12273_v10  ;;  %v3493_v10 = vmul.f32 %v16969_v18, %v3445_v35  ;;  %v12312_v11 = vadd.f32 %v3516_v34, %v3400_v23  ;;  %v12315_v35 = vperm.slane %v12138_v55, 3  ;;  %v3528_v6 = vadd.f32 %v3512_v48, %v3396_v7  ;;  %4595 = vrot.lane.b32.xlu2 %v16713_v21, %s7383_s20  ;;  %v6949_v7 = vld [vmem:[%s15139_s5 + $0x42] ss:$8 sm:$0xf] }
 0x5fc   : > { %16966 = vst [vmem:[#allocation194_spill] sm:$0xff] %v12281_v14  ;;  %v12323_v9 = vmul.f32 %v12133_v37, %v3492_v44  ;;  %v12329_v34 = vpop.permute.xlu1 %4782  ;;  %v16977_v14 = vld [vmem:[#allocation293_spill] sm:$0xff]  ;;  %v4099_v21 = vsel %vm4097_vm14, %v12017_v1, %v11630_v49  ;;  %v12383_v29 = vperm.slane %v6949_v7, 3 }
 0x5fd   : > { %16971 = vst [vmem:[#allocation282_spill] sm:$0xff] %v12310_v36  ;;  %v4014_v36 = vmul.f32 %v16974_v32, %v3967_v22  ;;  %v12332_v23 = vmul.f32 %v12116_v12, %v3493_v10  ;;  %v3584_v28 = vsel %vm3569_vm10, %v16977_v14, %v16976_v15  ;;  %v3776_v44 = vmul.f32 %v12315_v35, %v3751_v33 }
 0x5fe   : > { %16972 = vst [vmem:[#allocation44_spill] sm:$0xff] %v12315_v35  ;;  %4469 = vrot.lane.b32.xlu0 %v16656_v54, %s7382_s18  ;;  %v3791_v14 = vadd.f32 %v3775_v5, %v11784_v24  ;;  %v4015_v33 = vmul.f32 %v16974_v32, %v3979_v0  ;;  %v4146_v48 = vmul.f32 %v12055_v52, %v4099_v21  ;;  %v12354_v39 = vpop.permute.xlu2 %4221  ;;  %v6950_v0 = vld [vmem:[%s15139_s5 + $0x43] ss:$8 sm:$0xf] }
 0x5ff   : > { %16975 = vst [vmem:[#allocation238_spill] sm:$0xff] %v12329_v34  ;;  %v12348_v10 = vpop.f32.mrf.mxu2  ;;  %v4111_v22 = vsel %vm4097_vm14, %v11630_v49, %v11597_v51  ;;  %v3660_v1 = vadd.f32 %v3644_v62, %v3528_v6  ;;  %v4243_v24 = vsel %vm4229_vm8, %v11816_v30, %v12079_v31  ;;  %v3908_v21 = vmul.f32 %v12195_v58, %v3883_v56  ;;  %v16982_v62 = vld [vmem:[#allocation296_spill] sm:$0xff] }
 0x600   : > { %16978 = vst [vmem:[#allocation160_spill] sm:$0xff] %v12348_v10  ;;  %v12368_v5 = vpop.permute.xlu0 %4919  ;;  %v12374_v49 = vperm.slane %v6949_v7, 2  ;;  %v4039_v32 = vmul.f32 %v12240_v27, %v4014_v36  ;;  %v4147_v43 = vmul.f32 %v12055_v52, %v4111_v22  ;;  %v3623_v6 = vmul.f32 %v16982_v62, %v3584_v28  ;;  %v6951_v56 = vld [vmem:[%s15139_s5 + $0x44] ss:$8 sm:$0xf] }
 0x601   : > { %16979 = vst [vmem:[#allocation13_spill] sm:$0xff] %v12354_v39  ;;  %v3836_v31 = vsel %vm15822_vm13, %v11826_v45, %v16932_v42  ;;  %v3792_v51 = vadd.f32 %v3776_v44, %v3660_v1  ;;  %v3923_v34 = vadd.f32 %v3907_v16, %v3791_v14  ;;  %v4040_v10 = vmul.f32 %v12216_v17, %v4015_v33  ;;  %v12393_v28 = vpop.f32.mrf.mxu3 }
 0x602   : > { %16980 = vst [vmem:[#allocation183_spill] sm:$0xff] %v12368_v5  ;;  %v4171_v36 = vmul.f32 %v12374_v49, %v4146_v48  ;;  %v4279_v22 = vmul.f32 %v11847_v61, %v4243_v24  ;;  %4737 = vrot.lane.b32.xlu1 %v16888_v3, %s7384_s17  ;;  %v3755_v42 = vmul.f32 %v16928_v53, %v3716_v25  ;;  %v12396_v1 = vperm.slane %v6950_v0, 3 }
 0x603   : > { %16981 = vst [vmem:[#allocation248_spill] sm:$0xff] %v12374_v49  ;;  %v4231_v16 = vsel %vm4229_vm8, %v11810_v13, %v11816_v30  ;;  %v12402_v44 = vperm.slane %v6950_v0, 2  ;;  %v3924_v14 = vadd.f32 %v3908_v21, %v3792_v51  ;;  %v4055_v33 = vadd.f32 %v4039_v32, %v3923_v34  ;;  %4729 = vrot.lane.b32.xlu2 %v16220_v41, %s7384_s17  ;;  %v16990_v32 = vld [vmem:[#allocation299_spill] sm:$0xff] }
 0x604   : > { %16983 = vst [vmem:[#allocation273_spill] sm:$0xff] %v12383_v29  ;;  %v4278_v7 = vmul.f32 %v11847_v61, %v4231_v16  ;;  %v4172_v48 = vmul.f32 %v12383_v29, %v4147_v43  ;;  %v12408_v24 = vpop.permute.xlu1 %4873  ;;  %v3648_v25 = vmul.f32 %v12177_v20, %v3623_v6  ;;  %v12412_v45 = vperm.slane %v6951_v56, 3  ;;  %v16993_v61 = vld [vmem:[#allocation125_spill] sm:$0xff] }
 0x605   : > { %16984 = vst [vmem:[#allocation202_spill] sm:$0xff] %v12393_v28  ;;  %v3886_v30 = vmul.f32 %v16937_v60, %v3836_v31  ;;  %v3980_v41 = vsel %vm3965_vm4, %v16990_v32, %v11889_v38  ;;  %v4056_v34 = vadd.f32 %v4040_v10, %v3924_v14  ;;  %v4304_v0 = vmul.f32 %v12396_v1, %v4279_v22  ;;  %v16994_v60 = vld [vmem:[#allocation109_spill] sm:$0xff]  ;;  %v16995_v22 = vld [vmem:[#allocation7_spill] sm:$0xff] }
 0x606   : > { %16985 = vst [vmem:[#allocation171_spill] sm:$0xff] %v12396_v1  ;;  %4871 = vrot.lane.b32.xlu0 %v16675_v19, %s7385_s10  ;;  %v4187_v21 = vadd.f32 %v4171_v36, %v4055_v33  ;;  %v4356_v43 = vpop.permute.xlu2 %4355  ;;  %v3780_v6 = vmul.f32 %v12315_v35, %v3755_v42  ;;  %v12425_v16 = vperm.slane %v6951_v56, 2  ;;  %v4303_v10 = vmul.f32 %v12402_v44, %v4278_v7  ;;  %v16996_v42 = vld [vmem:[#allocation252_spill] sm:$0xff]  ;;  %v16997_v32 = vld [vmem:[#allocation243_spill] sm:$0xff]  ;;  %v17010_v28 = vld [vmem:[#allocation285_spill] sm:$0xff] }
 0x607   : > { %16986 = vst [vmem:[#allocation249_spill] sm:$0xff] %v12402_v44  ;;  %v12417_v51 = vpop.f32.mrf.mxu2  ;;  %v4363_v13 = vsel %vm4361_vm2, %v16993_v61, %v4356_v43  ;;  %v4375_v52 = vsel %vm4361_vm2, %v4356_v43, %v16994_v60  ;;  %v4188_v14 = vadd.f32 %v4172_v48, %v4056_v34  ;;  %v3664_v56 = vadd.f32 %v3648_v25, %v12312_v11  ;;  %v16998_v43 = vld [vmem:[#allocation11_spill] sm:$0xff]  ;;  %v17007_v60 = vld [vmem:[#allocation18_spill] sm:$0xff] }
 0x608   : > { %16987 = vst [vmem:[#allocation245_spill] sm:$0xff] %v12408_v24  ;;  %v12427_v31 = vpop.permute.xlu0 %4881  ;;  %v4410_v36 = vmul.f32 %v16995_v22, %v4363_v13  ;;  %v4411_v33 = vmul.f32 %v16995_v22, %v4375_v52  ;;  %v4244_v38 = vsel %vm4229_vm8, %v16997_v32, %v16996_v42  ;;  %v3911_v61 = vmul.f32 %v12203_v4, %v3886_v30  ;;  %v17000_v25 = vld [vmem:[#allocation279_spill] sm:$0xff]  ;;  %v17002_v42 = vld [vmem:[#allocation56_spill] sm:$0xff] }
 0x609   : > { %16988 = vst [vmem:[#allocation260_spill] sm:$0xff] %v12412_v45  ;;  %v4019_v24 = vmul.f32 %v16959_v2, %v3980_v41  ;;  %v4319_v7 = vadd.f32 %v4303_v10, %v4187_v21  ;;  %v12449_v48 = vpop.f32.mrf.mxu3  ;;  %v3796_v11 = vadd.f32 %v3780_v6, %v3664_v56  ;;  %v4283_v34 = vmul.f32 %v17000_v25, %v4244_v38  ;;  %v17001_v22 = vld [vmem:[#allocation107_spill] sm:$0xff]  ;;  %v17003_v41 = vld [vmem:[#allocation49_spill] sm:$0xff]  ;;  %v17004_v21 = vld [vmem:[#allocation236_spill] sm:$0xff] }
 0x60a   : > { %16989 = vst [vmem:[#allocation257_spill] sm:$0xff] %v12417_v51  ;;  %4735 = vrot.lane.b32.xlu1 %v16998_v43, %s7384_s17  ;;  %v4435_v13 = vmul.f32 %v12425_v16, %v4410_v36  ;;  %v4436_v52 = vmul.f32 %v12412_v45, %v4411_v33  ;;  %v4100_v30 = vsel %vm4097_vm14, %v17002_v42, %v17001_v22  ;;  %v17005_v10 = vld [vmem:[#allocation141_spill] sm:$0xff]  ;;  %v17006_v36 = vld [vmem:[#allocation74_spill] sm:$0xff] }
 0x60b   : > { %16991 = vst [vmem:[#allocation215_spill] sm:$0xff] %v12425_v16  ;;  %v4150_v33 = vmul.f32 %v17006_v36, %v4100_v30  ;;  %4863 = vrot.lane.b32.xlu2 %v17007_v60, %s7385_s10  ;;  %v17009_v42 = vld [vmem:[#allocation154_spill] sm:$0xff]  ;;  %v17011_v30 = vld [vmem:[#allocation175_spill] sm:$0xff] }
 0x60c   : > { %16992 = vst [vmem:[#allocation274_spill] sm:$0xff] %v12427_v31  ;;  %v4320_v31 = vadd.f32 %v4304_v0, %v4188_v14  ;;  %v4232_v0 = vsel %vm4229_vm8, %v17003_v41, %v16997_v32  ;;  %v3795_v14 = vadd.f32 %v17005_v10, %v17004_v21  ;;  %v12465_v6 = vpop.permute.xlu1 %5026  ;;  %v12467_v38 = vadd.f32 %v4435_v13, %v4319_v7  ;;  %v17012_v60 = vld [vmem:[#allocation131_spill] sm:$0xff]  ;;  %v17013_v10 = vld [vmem:[#allocation124_spill] sm:$0xff] }
 0x60d   : > { %16999 = vst [vmem:[#allocation261_spill] sm:$0xff] %v12449_v48  ;;  %v12473_v2 = vadd.f32 %v12305_v59, %v17009_v42  ;;  %v12476_v32 = vperm.slane %v17010_v28, 1  ;;  %v3533_v21 = vadd.f32 %v12323_v9, %v17011_v30  ;;  %v12484_v41 = vadd.f32 %v17013_v10, %v17012_v60  ;;  %v17015_v59 = vld [vmem:[#allocation36_spill] sm:$0xff]  ;;  %v17019_v48 = vld [vmem:[#allocation34_spill] sm:$0xff] }
 0x60e   : > { %17008 = vst [vmem:[#allocation281_spill] sm:$0xff] %v12465_v6  ;;  %v12469_v56 = vadd.f32 %v4436_v52, %v4320_v31  ;;  %4869 = vrot.lane.b32.xlu0 %v16888_v3, %s7385_s10  ;;  %v3927_v31 = vadd.f32 %v3911_v61, %v3795_v14  ;;  %v4044_v13 = vmul.f32 %v12216_v17, %v4019_v24  ;;  %v12494_v52 = vpop.permute.xlu2 %4489  ;;  %v17016_v30 = vld [vmem:[#allocation156_spill] sm:$0xff]  ;;  %v17017_v61 = vld [vmem:[#allocation153_spill] sm:$0xff]  ;;  %v4510_v3 = vld [vmem:[%s15140_s6 + $0x3e0] sm:$0xff] }
 0x60f   : > { %v12486_v7 = vpop.f32.mrf.mxu2  ;;  %v4112_v28 = vsel %vm4097_vm14, %v17001_v22, %v17015_v59  ;;  %v4282_v42 = vmul.f32 %v17000_v25, %v4232_v0  ;;  %v12497_v9 = vmul.f32 %v12396_v1, %v4283_v34  ;;  %v3928_v60 = vadd.f32 %v17016_v30, %v3796_v11  ;;  %v17018_v14 = vld [vmem:[#allocation184_spill] sm:$0xff]  ;;  %v17020_v59 = vld [vmem:[#allocation226_spill] sm:$0xff]  ;;  %v17021_v25 = vld [vmem:[#allocation287_spill] sm:$0xff] }
 0x610   : > { %17014 = vst [vmem:[#allocation227_spill] sm:$0xff] %v12486_v7  ;;  %v4151_v10 = vmul.f32 %v17006_v36, %v4112_v28  ;;  %v3552_v5 = vpop.permute.xlu0 %3551  ;;  %v3534_v24 = vadd.f32 %v12332_v23, %v17017_v61  ;;  %v3746_v51 = vmul.f32 %v17019_v48, %v17018_v14  ;;  %v4175_v22 = vmul.f32 %v12374_v49, %v4150_v33  ;;  %v17022_v11 = vld [vmem:[#allocation142_spill] sm:$0xff]  ;;  %v17023_v30 = vld [vmem:[#allocation89_spill] sm:$0xff]  ;;  %v17025_v23 = vld [vmem:[#allocation135_spill] sm:$0xff] }
 0x611   : > { %v3577_v0 = vsel %vm3569_vm10, %v3552_v5, %v17020_v59  ;;  %v3581_v34 = vsel %vm3569_vm10, %v17021_v25, %v3552_v5  ;;  %v4364_v28 = vsel %vm4361_vm2, %v17023_v30, %v17022_v11  ;;  %v17024_v36 = vld [vmem:[#allocation182_spill] sm:$0xff]  ;;  %v17026_v14 = vld [vmem:[#allocation292_spill] sm:$0xff]  ;;  %v4059_v5 = vadd.f32 %v12302_v8, %v3927_v31  ;;  %v17027_v7 = vld [vmem:[#allocation17_spill] sm:$0xff]  ;;  %v12530_v58 = vpop.f32.mrf.mxu3 }
 0x612   : > { %v3834_v61 = vsel %vm15822_vm13, %v17025_v23, %v17024_v36  ;;  %v3624_v33 = vmul.f32 %v17026_v14, %v3581_v34  ;;  %v3625_v6 = vmul.f32 %v17026_v14, %v3577_v0  ;;  %v4414_v19 = vmul.f32 %v17027_v7, %v4364_v28  ;;  %4867 = vrot.lane.b32.xlu1 %v16998_v43, %s7385_s10  ;;  %v17029_v23 = vld [vmem:[#allocation79_spill] sm:$0xff]  ;;  %v17030_v0 = vld [vmem:[#allocation80_spill] sm:$0xff]  ;;  %v17031_v36 = vld [vmem:[#allocation185_spill] sm:$0xff] }
 0x613   : > { %v4060_v1 = vadd.f32 %v4044_v13, %v3928_v60  ;;  %v4307_v30 = vmul.f32 %v12402_v44, %v4282_v42  ;;  %17028 = vst [vmem:[#allocation222_spill] sm:$0xff] %v12530_v58  ;;  %v4176_v34 = vmul.f32 %v12383_v29, %v4151_v10  ;;  %v3966_v17 = vsel %vm3965_vm4, %v17030_v0, %v17029_v23  ;;  %v17032_v13 = vld [vmem:[#allocation197_spill] sm:$0xff]  ;;  %v17033_v28 = vld [vmem:[#allocation143_spill] sm:$0xff] }
 0x614   : > { %v3649_v35 = vmul.f32 %v17031_v36, %v3624_v33  ;;  %v3650_v8 = vmul.f32 %v12476_v32, %v3625_v6  ;;  %v3771_v31 = vmul.f32 %v12168_v63, %v3746_v51  ;;  %v3878_v42 = vmul.f32 %v17032_v13, %v3834_v61  ;;  %4518 = vperm.xlu2 %7076, %v4510_v3   ;;  %v3550_v10 = vpop.permute.xlu1 %3549  ;;  %v17034_v29 = vld [vmem:[#allocation81_spill] sm:$0xff] }
 0x615   : > { %v4191_v60 = vadd.f32 %v4175_v22, %v4059_v5  ;;  %v4376_v43 = vsel %vm4361_vm2, %v17022_v11, %v17033_v28  ;;  %vm4493_vm13 = vcmp.lt.s32.totalorder %v9448_v47, 89  ;;  %v3576_v6 = vsel %vm3569_vm10, %v3550_v10, %v17034_v29  ;;  %v17036_v11 = vld [vmem:[#allocation266_spill] sm:$0xff] }
 0x616   : > { %v3665_v58 = vadd.f32 %v3649_v35, %v3533_v21  ;;  %v3666_v0 = vadd.f32 %v3650_v8, %v3534_v24  ;;  %v3580_v51 = vsel %vm3569_vm10, %v16976_v15, %v3550_v10  ;;  %4865 = vrot.lane.b32.xlu0 %v16656_v54, %s7385_s10  ;;  %v4010_v3 = vmul.f32 %v17036_v11, %v3966_v17  ;;  %v12559_v21 = vpop.permute.xlu2 %4623  ;;  %v5063_v17 = vld [vmem:[%s15140_s6 + $0x50] sm:$0xff]  ;;  %v17040_v10 = vld [vmem:[#allocation235_spill] sm:$0xff] }
 0x617   : > { %v12554_v22 = vpop.f32.mrf.mxu2  ;;  %v4323_v61 = vadd.f32 %v4307_v30, %v4191_v60  ;;  %v3620_v33 = vmul.f32 %v16982_v62, %v3580_v51  ;;  %v3621_v35 = vmul.f32 %v16982_v62, %v3576_v6  ;;  %17037 = vst [vmem:[#allocation297_spill] sm:$0xff] %v12559_v21  ;;  %v4192_v24 = vadd.f32 %v4176_v34, %v4060_v1  ;;  %v17038_v60 = vld [vmem:[#allocation307_spill] sm:$0xff] }
 0x618   : > { %17035 = vst [vmem:[#allocation247_spill] sm:$0xff] %v12554_v22  ;;  %v4415_v29 = vmul.f32 %v17027_v7, %v4376_v43  ;;  %v12563_v5 = vperm.slane %v12138_v55, 0  ;;  %v12566_v15 = vperm.slane %v12138_v55, 1  ;;  %v3684_v8 = vpop.permute.xlu0 %3683  ;;  %v17039_v43 = vld [vmem:[#allocation295_spill] sm:$0xff]  ;;  %v17041_v55 = vld [vmem:[#allocation216_spill] sm:$0xff]  ;;  %v4439_v51 = vmul.f32 %v12425_v16, %v4414_v19  ;;  %v4909_v22 = vld [vmem:[%s15140_s6 + $0x458] sm:$0xff] }
 0x619   : > { %v3645_v30 = vmul.f32 %v17031_v36, %v3620_v33  ;;  %v3646_v62 = vmul.f32 %v12476_v32, %v3621_v35  ;;  %v3709_v1 = vsel %vm3701_vm9, %v3684_v8, %v17038_v60  ;;  %v3713_v34 = vsel %vm3701_vm9, %v17039_v43, %v3684_v8  ;;  %v6952_v33 = vld [vmem:[%s15139_s5 + $0x45] ss:$8 sm:$0xf] }
 0x61a   : > { %v4098_v6 = vsel %vm4097_vm14, %v17041_v55, %v17040_v10  ;;  %v17042_v35 = vld [vmem:[#allocation5_spill] sm:$0xff]  ;;  %v17043_v8 = vld [vmem:[#allocation87_spill] sm:$0xff]  ;;  %v3903_v21 = vmul.f32 %v12203_v4, %v3878_v42  ;;  %5081 = vperm.xlu1 %7075, %v5063_v17   ;;  %v4440_v11 = vmul.f32 %v12412_v45, %v4415_v29  ;;  %v4455_v42 = vadd.f32 %v4439_v51, %v4323_v61 }
 0x61b   : > { %v3756_v7 = vmul.f32 %v17042_v35, %v3713_v34  ;;  %v3757_v28 = vmul.f32 %v17042_v35, %v3709_v1  ;;  %v3787_v54 = vadd.f32 %v3771_v31, %v17043_v8  ;;  %v3661_v55 = vadd.f32 %v3645_v30, %v12484_v41  ;;  %v5062_v10 = vld [vmem:[%s15140_s6 + $0x48] sm:$0xff]  ;;  %v12599_v34 = vpop.f32.mrf.mxu3 }
 0x61c   : > { %v3662_v19 = vadd.f32 %v3646_v62, %v12473_v2  ;;  %17044 = vst [vmem:[#allocation300_spill] sm:$0xff] %v12599_v34  ;;  %v4035_v1 = vmul.f32 %v12240_v27, %v4010_v3  ;;  %v4324_v41 = vadd.f32 %v12497_v9, %v4192_v24  ;;  %v12606_v30 = vperm.slane %v6952_v33, 2  ;;  %4929 = vperm.xlu2 %7076, %v4909_v22   ;;  %v3548_v17 = vpop.permute.xlu1 %3547  ;;  %v17047_v3 = vld [vmem:[#allocation298_spill] sm:$0xff]  ;;  %v17049_v9 = vld [vmem:[#allocation140_spill] sm:$0xff]  ;;  %v17050_v22 = vld [vmem:[#allocation165_spill] sm:$0xff] }
 0x61d   : > { %v3781_v23 = vmul.f32 %v12563_v5, %v3756_v7  ;;  %v3782_v31 = vmul.f32 %v12566_v15, %v3757_v28  ;;  %v12608_v2 = vperm.slane %v6952_v33, 3  ;;  %v3575_v29 = vsel %vm3569_vm10, %v3548_v17, %v17047_v3  ;;  %v17048_v7 = vld [vmem:[#allocation286_spill] sm:$0xff]  ;;  %v17052_v33 = vld [vmem:[#allocation304_spill] sm:$0xff] }
 0x61e   : > { %v3579_v28 = vsel %vm3569_vm10, %v17048_v7, %v3548_v17  ;;  %5076 = vperm.xlu0 %7074, %v5062_v10   ;;  %v4496_v61 = vsel %vm4493_vm13, %v17049_v9, %v12494_v52  ;;  %v12630_v24 = vpop.permute.xlu2 %4528  ;;  %v4456_v51 = vadd.f32 %v4440_v11, %v4324_v41  ;;  %v4230_v10 = vsel %vm4229_vm8, %v17052_v33, %v12354_v39  ;;  %v5220_v17 = vld [vmem:[%s15140_s6 + $0x78] sm:$0xff]  ;;  %v17058_v9 = vld [vmem:[#allocation206_spill] sm:$0xff] }
 0x61f   : > { %v12610_v62 = vadd.f32 %v3781_v23, %v3665_v58  ;;  %v12612_v8 = vadd.f32 %v3782_v31, %v3666_v0  ;;  %v4508_v58 = vsel %vm4493_vm13, %v12494_v52, %v17050_v22  ;;  %v3616_v23 = vmul.f32 %v11764_v40, %v3579_v28  ;;  %17051 = vst [vmem:[#allocation268_spill] sm:$0xff] %v12630_v24  ;;  %v12641_v7 = vpop.f32.mrf.mxu2  ;;  %v17055_v28 = vld [vmem:[#allocation232_spill] sm:$0xff] }
 0x620   : > { %v3617_v0 = vmul.f32 %v11764_v40, %v3575_v29  ;;  %v3682_v31 = vpop.permute.xlu0 %3681  ;;  %v4546_v3 = vmul.f32 %v12630_v24, %v4496_v61  ;;  %v4547_v52 = vmul.f32 %v12630_v24, %v4508_v58  ;;  %17053 = vst [vmem:[#allocation210_spill] sm:$0xff] %v12641_v7  ;;  %v17054_v40 = vld [vmem:[#allocation114_spill] sm:$0xff]  ;;  %v17057_v22 = vld [vmem:[#allocation224_spill] sm:$0xff]  ;;  %v17074_v7 = vld [vmem:[#allocation271_spill] sm:$0xff] }
 0x621   : > { %17045 = vst [vmem:[#allocation270_spill] sm:$0xff] %v12610_v62  ;;  %v4142_v29 = vmul.f32 %v17054_v40, %v4098_v6  ;;  %v3641_v11 = vmul.f32 %v17031_v36, %v3616_v23  ;;  %v3708_v33 = vsel %vm3701_vm9, %v3682_v31, %v17055_v28  ;;  %v17056_v62 = vld [vmem:[#allocation151_spill] sm:$0xff]  ;;  %v5219_v28 = vld [vmem:[%s15140_s6 + $0x70] sm:$0xff]  ;;  %v17097_v40 = vld [vmem:[#allocation137_spill] sm:$0xff] }
 0x622   : > { %17046 = vst [vmem:[#allocation265_spill] sm:$0xff] %v12612_v8  ;;  %v3642_v41 = vmul.f32 %v12476_v32, %v3617_v0  ;;  %v3712_v8 = vsel %vm3701_vm9, %v11684_v26, %v3682_v31  ;;  %v3753_v61 = vmul.f32 %v16928_v53, %v3708_v33  ;;  %v4571_v58 = vmul.f32 %v12606_v30, %v4546_v3 }
 0x623   : > { %v4572_v24 = vmul.f32 %v12608_v2, %v4547_v52  ;;  %v4274_v6 = vmul.f32 %v17056_v62, %v4230_v10  ;;  %v3657_v23 = vadd.f32 %v3641_v11, %v17057_v22  ;;  %v3752_v34 = vmul.f32 %v16928_v53, %v3712_v8  ;;  %5561 = vperm.xlu1 %7075, %v5220_v17   ;;  %v17062_v53 = vld [vmem:[#allocation220_spill] sm:$0xff]  ;;  %v17063_v8 = vld [vmem:[#allocation27_spill] sm:$0xff]  ;;  %v17064_v52 = vld [vmem:[#allocation101_spill] sm:$0xff] }
 0x624   : > { %v3658_v0 = vadd.f32 %v3642_v41, %v17058_v9  ;;  %v3778_v26 = vmul.f32 %v12566_v15, %v3753_v61  ;;  %v12665_v31 = vadd.f32 %v4571_v58, %v4455_v42  ;;  %v3919_v3 = vadd.f32 %v3903_v21, %v3787_v54  ;;  %v17061_v9 = vld [vmem:[#allocation20_spill] sm:$0xff]  ;;  %v12681_v21 = vpop.f32.mrf.mxu3 }
 0x625   : > { %v12663_v33 = vadd.f32 %v4572_v24, %v4456_v51  ;;  %v4167_v10 = vmul.f32 %v12374_v49, %v4142_v29  ;;  %v3777_v22 = vmul.f32 %v12563_v5, %v3752_v34  ;;  %4617 = vrot.lane.b32.xlu2 %v17061_v9, %s7383_s20  ;;  %v1959_v17 = vmul.f32 %v17063_v8, %v17062_v53  ;;  %v17065_v11 = vld [vmem:[#allocation100_spill] sm:$0xff]  ;;  %v17066_v24 = vld [vmem:[#allocation29_spill] sm:$0xff]  ;;  %v17067_v51 = vld [vmem:[#allocation95_spill] sm:$0xff] }
 0x626   : > { %17060 = vst [vmem:[#allocation199_spill] sm:$0xff] %v12665_v31  ;;  %v2038_v41 = vsel %vm2034_vm15, %v17065_v11, %v17064_v52  ;;  %v1779_v54 = vsel %vm1771_vm7, %v17067_v51, %v17066_v24  ;;  %v12683_v42 = vadd.f32 %v3778_v26, %v3662_v19  ;;  %5556 = vperm.xlu0 %7074, %v5219_v28   ;;  %v17070_v34 = vld [vmem:[#allocation146_spill] sm:$0xff]  ;;  %v17071_v29 = vld [vmem:[#allocation264_spill] sm:$0xff]  ;;  %v12692_v52 = vpop.permute.xlu2 %4345  ;;  %v17076_v28 = vld [vmem:[#allocation221_spill] sm:$0xff] }
 0x627   : > { %17059 = vst [vmem:[#allocation93_spill] sm:$0xff] %v12663_v33  ;;  %v3446_v61 = vsel %vm3437_vm11, %v17071_v29, %v17070_v34  ;;  %v4051_v58 = vadd.f32 %v4035_v1, %v3919_v3  ;;  %v4299_v53 = vmul.f32 %v12402_v44, %v4274_v6  ;;  %v12690_v31 = vadd.f32 %v3777_v22, %v3661_v55  ;;  %v17075_v19 = vld [vmem:[#allocation162_spill] sm:$0xff]  ;;  %v5218_v55 = vld [vmem:[%s15140_s6 + $0x68] sm:$0xff]  ;;  %v17082_v44 = vld [vmem:[#allocation152_spill] sm:$0xff] }
 0x628   : > { %17068 = vst [vmem:[#allocation305_spill] sm:$0xff] %v12681_v21  ;;  %v3442_v51 = vsel %vm3437_vm11, %v17070_v34, %v17074_v7  ;;  %v3480_v26 = vmul.f32 %v17075_v19, %v3446_v61  ;;  %v3680_v45 = vpop.permute.xlu0 %3679  ;;  %v17078_v1 = vld [vmem:[#allocation255_spill] sm:$0xff]  ;;  %v17079_v22 = vld [vmem:[#allocation130_spill] sm:$0xff]  ;;  %v2042_v49 = vsel %vm2034_vm15, %v17082_v44, %v17065_v11  ;;  %v5223_v44 = vld [vmem:[%s15140_s6 + $0x90] sm:$0xff]  ;;  %vm17144_vm15 = vcmp.lt.s32.totalorder %v9448_v47, 18 }
 0x629   : > { %17069 = vst [vmem:[#allocation68_spill] sm:$0xff] %v12683_v42  ;;  %v17077_v42 = vld [vmem:[#allocation289_spill] sm:$0xff]  ;;  %v4362_v6 = vsel %vm4361_vm2, %v12692_v52, %v17078_v1  ;;  %v4183_v3 = vadd.f32 %v4167_v10, %v4051_v58  ;;  %v3707_v7 = vsel %vm3701_vm9, %v3680_v45, %v17079_v22  ;;  %v17080_v34 = vld [vmem:[#allocation311_spill] sm:$0xff]  ;;  %v3481_v62 = vmul.f32 %v17075_v19, %v3442_v51  ;;  %v17084_v22 = vld [vmem:[#allocation6_spill] sm:$0xff] }
 0x62a   : > { %17072 = vst [vmem:[#allocation55_spill] sm:$0xff] %v12690_v31  ;;  %v3574_v21 = vsel %vm3569_vm10, %v17077_v42, %v17076_v28  ;;  %v3711_v61 = vsel %vm3701_vm9, %v17080_v34, %v3680_v45  ;;  %v17081_v28 = vld [vmem:[#allocation122_spill] sm:$0xff]  ;;  %v3749_v10 = vmul.f32 %v11851_v46, %v3707_v7  ;;  %v17083_v58 = vld [vmem:[#allocation21_spill] sm:$0xff]  ;;  %v17085_v33 = vld [vmem:[#allocation99_spill] sm:$0xff]  ;;  %v12729_v34 = vpop.f32.mrf.mxu2  ;;  %v3505_v51 = vmul.f32 %v12133_v37, %v3480_v26 }
 0x62b   : > { %17073 = vst [vmem:[#allocation61_spill] sm:$0xff] %v12692_v52  ;;  %v4406_v31 = vmul.f32 %v17081_v28, %v4362_v6  ;;  %v3748_v52 = vmul.f32 %v11851_v46, %v3711_v61  ;;  %v1827_v1 = vmul.f32 %v17083_v58, %v1779_v54  ;;  %v1906_v45 = vsel %vm1902_vm12, %v17085_v33, %v17084_v22  ;;  %v17087_v46 = vld [vmem:[#allocation118_spill] sm:$0xff]  ;;  %v17095_v22 = vld [vmem:[#allocation159_spill] sm:$0xff] }
 0x62c   : > { %17086 = vst [vmem:[#allocation219_spill] sm:$0xff] %v12729_v34  ;;  %v4315_v6 = vadd.f32 %v4299_v53, %v4183_v3  ;;  %5551 = vperm.xlu1 %7075, %v5218_v55   ;;  %v3613_v7 = vmul.f32 %v17087_v46, %v3574_v21  ;;  %v3774_v61 = vmul.f32 %v12566_v15, %v3749_v10  ;;  %v17088_v28 = vld [vmem:[#allocation98_spill] sm:$0xff]  ;;  %v17089_v53 = vld [vmem:[#allocation41_spill] sm:$0xff]  ;;  %v17096_v34 = vld [vmem:[#allocation88_spill] sm:$0xff]  ;;  %vm17137_vm12 = vcmp.lt.s32.totalorder %v9448_v47, 19 }
 0x62d   : > { %v4431_v11 = vmul.f32 %v12425_v16, %v4406_v31  ;;  %v3773_v54 = vmul.f32 %v12563_v5, %v3748_v52  ;;  %v1775_v33 = vsel %vm1771_vm7, %v17066_v24, %v17088_v28  ;;  %v17090_v55 = vld [vmem:[#allocation106_spill] sm:$0xff]  ;;  %v17091_v31 = vld [vmem:[#allocation284_spill] sm:$0xff]  ;;  %v3506_v10 = vmul.f32 %v12116_v12, %v3481_v62  ;;  %v12769_v12 = vpop.f32.mrf.mxu3  ;;  %vm17141_vm7 = vmmov %vm17137_vm12 }
 0x62e   : > { %v2174_v3 = vsel %vm2166_vm1, %v17090_v55, %v17089_v53  ;;  %v3578_v37 = vsel %vm3569_vm10, %v17091_v31, %v17077_v42  ;;  %v17092_v21 = vld [vmem:[#allocation10_spill] sm:$0xff]  ;;  %v12759_v28 = vadd.f32 %v3774_v61, %v3658_v0  ;;  %5592 = vperm.xlu0 %7074, %v5223_v44   ;;  %v1984_v55 = vmul.f32 %v17095_v22, %v1959_v17  ;;  %v12765_v27 = vpop.permute.xlu2 %4479  ;;  %v17098_v0 = vld [vmem:[#allocation147_spill] sm:$0xff]  ;;  %v17100_v17 = vld [vmem:[#allocation117_spill] sm:$0xff] }
 0x62f   : > { %4751 = vrot.lane.b32.xlu2 %v17092_v21, %s7384_s17  ;;  %v12753_v52 = vadd.f32 %v4431_v11, %v4315_v6  ;;  %v3612_v26 = vmul.f32 %v17087_v46, %v3578_v37  ;;  %v12757_v24 = vadd.f32 %v3773_v54, %v3657_v23  ;;  %v2091_v16 = vmul.f32 %v17096_v34, %v2042_v49  ;;  %v5222_v49 = vld [vmem:[%s15140_s6 + $0x88] sm:$0xff]  ;;  %v17106_v37 = vld [vmem:[#allocation77_spill] sm:$0xff] }
 0x630   : > { %17094 = vst [vmem:[#allocation112_spill] sm:$0xff] %v12759_v28  ;;  %v1852_v42 = vmul.f32 %v17097_v40, %v1827_v1  ;;  %v1960_v39 = vmul.f32 %v17063_v8, %v1906_v45  ;;  %v2092_v6 = vmul.f32 %v17096_v34, %v2038_v41  ;;  %v1828_v11 = vmul.f32 %v17083_v58, %v1775_v33  ;;  %v3678_v23 = vpop.permute.xlu0 %3677  ;;  %v17099_v40 = vld [vmem:[#allocation113_spill] sm:$0xff]  ;;  %v17102_v45 = vld [vmem:[#allocation306_spill] sm:$0xff]  ;;  %v17104_v33 = vld [vmem:[#allocation127_spill] sm:$0xff] }
 0x631   : > { %17093 = vst [vmem:[#allocation110_spill] sm:$0xff] %v12757_v24  ;;  %v3638_v62 = vmul.f32 %v12476_v32, %v3613_v7  ;;  %v3521_v44 = vadd.f32 %v3505_v51, %v17098_v0  ;;  %v2170_v8 = vsel %vm2166_vm1, %v17089_v53, %v17099_v40  ;;  %v2223_v41 = vmul.f32 %v17100_v17, %v2174_v3  ;;  %v17101_v1 = vld [vmem:[#allocation97_spill] sm:$0xff]  ;;  %v17105_v53 = vld [vmem:[#allocation123_spill] sm:$0xff]  ;;  %vm17148_vm1 = vmmov %vm17144_vm15 }
 0x632   : > { %v3706_v58 = vsel %vm3701_vm9, %v3678_v23, %v17101_v1  ;;  %v3710_v32 = vsel %vm3701_vm9, %v17102_v45, %v3678_v23  ;;  %v3637_v34 = vmul.f32 %v17031_v36, %v3612_v26  ;;  %v17103_v51 = vld [vmem:[#allocation145_spill] sm:$0xff]  ;;  %v2306_v3 = vsel %vm2298_vm0, %v17105_v53, %v17104_v33  ;;  %v17107_v40 = vld [vmem:[#allocation167_spill] sm:$0xff]  ;;  %v5221_v36 = vld [vmem:[%s15140_s6 + $0x80] sm:$0xff] }
 0x633   : > { %v3522_v7 = vadd.f32 %v3506_v10, %v17103_v51  ;;  %v3744_v54 = vmul.f32 %v17019_v48, %v3710_v32  ;;  %v3745_v61 = vmul.f32 %v17019_v48, %v3706_v58  ;;  %v2116_v22 = vmul.f32 %v17106_v37, %v2091_v16  ;;  %v17108_v32 = vld [vmem:[#allocation166_spill] sm:$0xff]  ;;  %v17109_v28 = vld [vmem:[#allocation155_spill] sm:$0xff] }
 0x634   : > { %v2000_v0 = vadd.f32 %v1984_v55, %v1852_v42  ;;  %v1985_v1 = vmul.f32 %v17107_v40, %v1960_v39  ;;  %5587 = vperm.xlu1 %7075, %v5222_v49   ;;  %v3653_v10 = vadd.f32 %v3637_v34, %v3521_v44  ;;  %v1853_v51 = vmul.f32 %v17108_v32, %v1828_v11  ;;  %v17110_v55 = vld [vmem:[#allocation178_spill] sm:$0xff]  ;;  %v1631_v42 = vpop.f32.mrf.mxu2  ;;  %v17124_v32 = vld [vmem:[#allocation3_spill] sm:$0xff] }
 0x635   : > { %v3654_v26 = vadd.f32 %v3638_v62, %v3522_v7  ;;  %v3769_v23 = vmul.f32 %v12563_v5, %v3744_v54  ;;  %v3770_v58 = vmul.f32 %v12566_v15, %v3745_v61  ;;  %v2224_v53 = vmul.f32 %v17100_v17, %v2170_v8  ;;  %v17111_v49 = vld [vmem:[#allocation30_spill] sm:$0xff]  ;;  %v17115_v17 = vld [vmem:[#allocation144_spill] sm:$0xff]  ;;  %v17118_v7 = vld [vmem:[#allocation33_spill] sm:$0xff] }
 0x636   : > { %v2248_v16 = vmul.f32 %v17109_v28, %v2223_v41  ;;  %v2302_v39 = vsel %vm2298_vm0, %v17104_v33, %v17110_v55  ;;  %v17112_v62 = vld [vmem:[#allocation134_spill] sm:$0xff]  ;;  %5582 = vperm.xlu0 %7074, %v5221_v36   ;;  %v2001_v11 = vadd.f32 %v1985_v1, %v1853_v51  ;;  %v2132_v8 = vadd.f32 %v2116_v22, %v2000_v0  ;;  %v17116_v28 = vld [vmem:[#allocation188_spill] sm:$0xff]  ;;  %v12824_v61 = vpop.permute.xlu2 %4613  ;;  %v17122_v0 = vld [vmem:[#allocation169_spill] sm:$0xff] }
 0x637   : > { %4885 = vrot.lane.b32.xlu2 %v17111_v49, %s7385_s10  ;;  %v2355_v44 = vmul.f32 %v17112_v62, %v2306_v3  ;;  %v12812_v5 = vadd.f32 %v3769_v23, %v3653_v10  ;;  %v12814_v15 = vadd.f32 %v3770_v58, %v3654_v26  ;;  %v2438_v41 = vsel %vm2430_vm5, %v17116_v28, %v17115_v17  ;;  %v17117_v34 = vld [vmem:[#allocation214_spill] sm:$0xff]  ;;  %v17120_v3 = vld [vmem:[#allocation201_spill] sm:$0xff]  ;;  %v5243_v22 = vld [vmem:[%s15140_s6 + $0x130] sm:$0xff]  ;;  %v1654_v58 = vpop.f32.mrf.mxu3 }
 0x638   : > { %v2570_v54 = vsel %vm2562_vm3, %v17118_v7, %v17117_v34  ;;  %17119 = vst [vmem:[#allocation85_spill] sm:$0xff] %v12824_v61  ;;  %v2356_v33 = vmul.f32 %v17112_v62, %v2302_v39  ;;  %v2487_v37 = vmul.f32 %v17120_v3, %v2438_v41  ;;  %v1632_v40 = vadd.f32 1e-06, %v1631_v42  ;;  %v12828_v36 = vpop.permute.xlu0 %4079  ;;  %v17123_v26 = vld [vmem:[#allocation170_spill] sm:$0xff]  ;;  %v4908_v55 = vld [vmem:[%s15140_s6 + $0x450] sm:$0xff]  ;;  %v17127_v41 = vld [vmem:[#allocation39_spill] sm:$0xff] }
 0x639   : > { %17113 = vst [vmem:[#allocation204_spill] sm:$0xff] %v12812_v5  ;;  %v2117_v1 = vmul.f32 %v17122_v0, %v2092_v6  ;;  %v2249_v10 = vmul.f32 %v17123_v26, %v2224_v53  ;;  %v2264_v23 = vadd.f32 %v2248_v16, %v2132_v8  ;;  %v2619_v51 = vmul.f32 %v17124_v32, %v2570_v54  ;;  %v17125_v39 = vld [vmem:[#allocation128_spill] sm:$0xff]  ;;  %v5242_v53 = vld [vmem:[%s15140_s6 + $0x128] sm:$0xff]  ;;  %v17131_v26 = vld [vmem:[#allocation158_spill] sm:$0xff] }
 0x63a   : > { %17114 = vst [vmem:[#allocation196_spill] sm:$0xff] %v12814_v15  ;;  %v2380_v42 = vmul.f32 %v17125_v39, %v2355_v44  ;;  %v17126_v49 = vld [vmem:[#allocation148_spill] sm:$0xff]  ;;  %v2566_v6 = vsel %vm2562_vm3, %v17117_v34, %v17127_v41  ;;  %v17129_v7 = vld [vmem:[#allocation19_spill] sm:$0xff]  ;;  %7205 = vrcp.f32 %v1632_v40  ;;  %vm17153_vm0 = vcmp.lt.s32.totalorder %v9448_v47, 2 }
 0x63b   : > { %17121 = vst [vmem:[#allocation275_spill] sm:$0xff] %v12828_v36  ;;  %v2434_v62 = vsel %vm2430_vm5, %v17115_v17, %v17126_v49  ;;  %v2133_v28 = vadd.f32 %v2117_v1, %v2001_v11  ;;  %v17128_v16 = vld [vmem:[#allocation172_spill] sm:$0xff]  ;;  %v2512_v54 = vmul.f32 %v17129_v7, %v2487_v37  ;;  %v1655_v11 = vadd.f32 1e-06, %v1654_v58  ;;  %v17130_v1 = vld [vmem:[#allocation163_spill] sm:$0xff]  ;;  %vm17156_vm5 = vmmov %vm17153_vm0 }
 0x63c   : > { %5656 = vperm.xlu1 %7075, %v5243_v22   ;;  %v2381_v8 = vmul.f32 %v17128_v16, %v2356_v33  ;;  %v2488_v44 = vmul.f32 %v17120_v3, %v2434_v62  ;;  %v2396_v17 = vadd.f32 %v2380_v42, %v2264_v23  ;;  %v2702_v34 = vsel %vm2694_vm6, %v17131_v26, %v17130_v1  ;;  %v17132_v39 = vld [vmem:[#allocation168_spill] sm:$0xff]  ;;  %v17134_v3 = vld [vmem:[#allocation174_spill] sm:$0xff]  ;;  %v17135_v58 = vld [vmem:[#allocation191_spill] sm:$0xff] }
 0x63d   : > { %v2265_v0 = vadd.f32 %v2249_v10, %v2133_v28  ;;  %v2620_v22 = vmul.f32 %v17124_v32, %v2566_v6  ;;  %v2644_v49 = vmul.f32 %v17132_v39, %v2619_v51  ;;  %v17133_v41 = vld [vmem:[#allocation240_spill] sm:$0xff]  ;;  %v2751_v37 = vmul.f32 %v17134_v3, %v2702_v34  ;;  %v5240_v6 = vld [vmem:[%s15140_s6 + $0x118] sm:$0xff]  ;;  %v17140_v16 = vld [vmem:[#allocation251_spill] sm:$0xff] }
 0x63e   : > { %v2698_v33 = vsel %vm2694_vm6, %v17130_v1, %v17133_v41  ;;  %5651 = vperm.xlu0 %7074, %v5242_v53   ;;  %v12865_v10 = vpop.permute.xlu2 %4747  ;;  %v17138_v62 = vld [vmem:[#allocation192_spill] sm:$0xff]  ;;  %v2528_v28 = vadd.f32 %v2512_v54, %v2396_v17  ;;  %7207 = vrcp.f32 %v1655_v11  ;;  %v17146_v34 = vld [vmem:[#allocation263_spill] sm:$0xff]  ;;  %v17147_v41 = vld [vmem:[#allocation213_spill] sm:$0xff]  ;;  %vm17165_vm3 = vcmp.lt.s32.totalorder %v9448_v47, 1 }
 0x63f   : > { %4924 = vperm.xlu2 %7076, %v4908_v55   ;;  %v2397_v23 = vadd.f32 %v2381_v8, %v2265_v0  ;;  %v17136_v55 = vld [vmem:[#allocation186_spill] sm:$0xff]  ;;  %v2513_v32 = vmul.f32 %v17138_v62, %v2488_v44  ;;  %v2752_v53 = vmul.f32 %v17134_v3, %v2698_v33  ;;  %v17142_v7 = vld [vmem:[#allocation276_spill] sm:$0xff]  ;;  %v17143_v0 = vld [vmem:[#allocation205_spill] sm:$0xff] }
 0x640   : > { %v2830_v42 = vsel %vm17137_vm12, %v17136_v55, %v17135_v58  ;;  %v12872_v51 = vpop.permute.xlu0 %4077  ;;  %v2834_v8 = vsel %vm17141_vm7, %v17140_v16, %v17136_v55  ;;  %v2966_v44 = vsel %vm17144_vm15, %v17143_v0, %v17142_v7  ;;  %v12886_v54 = vpop.eup %7205  ;;  %v17145_v17 = vld [vmem:[#allocation212_spill] sm:$0xff]  ;;  %v2660_v26 = vadd.f32 %v2644_v49, %v2528_v28  ;;  %v17149_v55 = vld [vmem:[#allocation187_spill] sm:$0xff]  ;;  %v17150_v0 = vld [vmem:[#allocation218_spill] sm:$0xff] }
 0x641   : > { %17139 = vst [vmem:[#allocation181_spill] sm:$0xff] %v12872_v51  ;;  %v2645_v1 = vmul.f32 %v17145_v17, %v2620_v22  ;;  %v2883_v39 = vmul.f32 %v17146_v34, %v2834_v8  ;;  %v2962_v33 = vsel %vm17148_vm1, %v17142_v7, %v17147_v41  ;;  %v2884_v3 = vmul.f32 %v17146_v34, %v2830_v42  ;;  %v5239_v58 = vld [vmem:[%s15140_s6 + $0x110] sm:$0xff]  ;;  %v17151_v49 = vld [vmem:[#allocation190_spill] sm:$0xff]  ;;  %v17154_v7 = vld [vmem:[#allocation233_spill] sm:$0xff] }
 0x642   : > { %v2776_v62 = vmul.f32 %v17149_v55, %v2751_v37  ;;  %v2529_v16 = vadd.f32 %v2513_v32, %v2397_v23  ;;  %v3015_v22 = vmul.f32 %v17150_v0, %v2966_v44  ;;  %v17152_v28 = vld [vmem:[#allocation230_spill] sm:$0xff]  ;;  %v12905_v17 = vmul.f32 %v12886_v54, %v1632_v40  ;;  %v17155_v23 = vld [vmem:[#allocation225_spill] sm:$0xff]  ;;  %v17157_v44 = vld [vmem:[#allocation179_spill] sm:$0xff] }
 0x643   : > { %v3094_v8 = vsel %vm17153_vm0, %v17152_v28, %v17151_v49  ;;  %v2777_v42 = vmul.f32 %v17154_v7, %v2752_v53  ;;  %v3098_v32 = vsel %vm17156_vm5, %v17155_v23, %v17152_v28  ;;  %v2908_v41 = vmul.f32 %v17157_v44, %v2883_v39  ;;  %v17158_v40 = vld [vmem:[#allocation254_spill] sm:$0xff]  ;;  %v17159_v53 = vld [vmem:[#allocation239_spill] sm:$0xff]  ;;  %v17163_v39 = vld [vmem:[#allocation256_spill] sm:$0xff] }
 0x644   : > { %5641 = vperm.xlu1 %7075, %v5240_v6   ;;  %v3016_v6 = vmul.f32 %v17150_v0, %v2962_v33  ;;  %v2661_v34 = vadd.f32 %v2645_v1, %v2529_v16  ;;  %v2792_v37 = vadd.f32 %v2776_v62, %v2660_v26  ;;  %v12916_v55 = vpop.eup %7207  ;;  %v2909_v49 = vmul.f32 %v17158_v40, %v2884_v3  ;;  %v17160_v33 = vld [vmem:[#allocation208_spill] sm:$0xff]  ;;  %v17161_v0 = vld [vmem:[#allocation203_spill] sm:$0xff]  ;;  %v17166_v3 = vld [vmem:[#allocation237_spill] sm:$0xff] }
 0x645   : > { %v3148_v7 = vmul.f32 %v17159_v53, %v3094_v8  ;;  %v4507_v1 = vsel %vm4493_vm13, %v17161_v0, %v17160_v33  ;;  %v4495_v26 = vsel %vm4493_vm13, %v12765_v27, %v17161_v0  ;;  %v3040_v28 = vmul.f32 %v17166_v3, %v3015_v22  ;;  %v5237_v23 = vld [vmem:[%s15140_s6 + $0x100] sm:$0xff]  ;;  %v17168_v33 = vld [vmem:[#allocation272_spill] sm:$0xff]  ;;  %vm17171_vm6 = vmmov %vm17165_vm3 }
 0x646   : > { %5636 = vperm.xlu0 %7074, %v5239_v58   ;;  %v12928_v62 = vpop.permute.xlu2 %4523  ;;  %v17164_v58 = vld [vmem:[#allocation250_spill] sm:$0xff]  ;;  %v3147_v0 = vmul.f32 %v17159_v53, %v3098_v32  ;;  %v2793_v24 = vadd.f32 %v2777_v42, %v2661_v34  ;;  %v3041_v15 = vmul.f32 %v17168_v33, %v3016_v6  ;;  %v17169_v5 = vld [vmem:[#allocation92_spill] sm:$0xff]  ;;  %v17172_v32 = vld [vmem:[#allocation71_spill] sm:$0xff]  ;;  %vm17187_vm12 = vcmp.lt.s32.totalorder %v9448_v47, 109 }
 0x647   : > { %4749 = vrot.lane.b32.xlu2 %v17061_v9, %s7384_s17  ;;  %17162 = vst [vmem:[#allocation94_spill] sm:$0xff] %v12928_v62  ;;  %v3226_v16 = vsel %vm17165_vm3, %v17164_v58, %v17163_v39  ;;  %v4542_v44 = vmul.f32 %v12928_v62, %v4495_v26  ;;  %v4543_v40 = vmul.f32 %v12928_v62, %v4507_v1  ;;  %v17170_v22 = vld [vmem:[#allocation38_spill] sm:$0xff]  ;;  %v5236_v34 = vld [vmem:[%s15140_s6 + $0xf8] sm:$0xff]  ;;  %vm4757_vm7 = vcmp.lt.s32.totalorder %v9448_v47, 87 }
 0x648   : > { %v12935_v8 = vpop.permute.xlu0 %4075  ;;  %v3280_v51 = vmul.f32 %v17169_v5, %v3226_v16  ;;  %v2924_v39 = vadd.f32 %v2908_v41, %v2792_v37  ;;  %v3230_v3 = vsel %vm17171_vm6, %v17170_v22, %v17164_v58  ;;  %v12952_v26 = vmul.f32 %v12916_v55, %v1655_v11  ;;  %v17173_v37 = vld [vmem:[#allocation259_spill] sm:$0xff]  ;;  %v17175_v58 = vld [vmem:[#allocation209_spill] sm:$0xff] }
 0x649   : > { %17167 = vst [vmem:[#allocation189_spill] sm:$0xff] %v12935_v8  ;;  %v4567_v8 = vmul.f32 %v12606_v30, %v4542_v44  ;;  %v4568_v36 = vmul.f32 %v12608_v2, %v4543_v40  ;;  %v2925_v1 = vadd.f32 %v2909_v49, %v2793_v24  ;;  %v3173_v42 = vmul.f32 %v17172_v32, %v3148_v7  ;;  %v17174_v7 = vld [vmem:[#allocation164_spill] sm:$0xff]  ;;  %v17177_v44 = vld [vmem:[#allocation262_spill] sm:$0xff] }
 0x64a   : > { %v3279_v6 = vmul.f32 %v17169_v5, %v3230_v3  ;;  %v3351_v41 = vmul.f32 %v17173_v37, %v17061_v9  ;;  %v3056_v53 = vadd.f32 %v3040_v28, %v2924_v39  ;;  %v3305_v5 = vmul.f32 %v17174_v7, %v3280_v51  ;;  %v17178_v28 = vld [vmem:[#allocation32_spill] sm:$0xff]  ;;  %v17224_v3 = vld [vmem:[#allocation266_spill] sm:$0xff] }
 0x64b   : > { %v12962_v33 = vadd.f32 %v4567_v8, %v12467_v38  ;;  %v12965_v11 = vadd.f32 %v4568_v36, %v12469_v56  ;;  %v3057_v49 = vadd.f32 %v3041_v15, %v2925_v1  ;;  %v3172_v16 = vmul.f32 %v17175_v58, %v3147_v0  ;;  %v17179_v8 = vld [vmem:[#allocation267_spill] sm:$0xff]  ;;  %v17180_v40 = vld [vmem:[#allocation280_spill] sm:$0xff]  ;;  %v17181_v15 = vld [vmem:[#allocation290_spill] sm:$0xff] }
 0x64c   : > { %5626 = vperm.xlu1 %7075, %v5237_v23   ;;  %v17176_v23 = vld [vmem:[#allocation23_spill] sm:$0xff]  ;;  %v3363_v38 = vmul.f32 %v17177_v44, %v17178_v28  ;;  %v3453_v56 = vsel %vm3437_vm11, %v17180_v40, %v17179_v8  ;;  %v3585_v36 = vsel %vm3569_vm10, %v17181_v15, %v17021_v25  ;;  %v17182_v51 = vld [vmem:[#allocation200_spill] sm:$0xff]  ;;  %v17183_v1 = vld [vmem:[#allocation157_spill] sm:$0xff]  ;;  %vm4889_vm15 = vcmp.lt.s32.totalorder %v9448_v47, 86 }
 0x64d   : > { %v3362_v9 = vmul.f32 %v17177_v44, %v17176_v23  ;;  %v3304_v0 = vmul.f32 %v17182_v51, %v3279_v6  ;;  %v3495_v39 = vmul.f32 %v16969_v18, %v3453_v56  ;;  %v3376_v32 = vmul.f32 %v17183_v1, %v3351_v41  ;;  %v5234_v25 = vld [vmem:[%s15140_s6 + $0xe8] sm:$0xff]  ;;  %v17185_v6 = vld [vmem:[#allocation76_spill] sm:$0xff]  ;;  %v17189_v44 = vld [vmem:[#allocation277_spill] sm:$0xff] }
 0x64e   : > { %6161 = vperm.xlu0 %7074, %v5236_v34   ;;  %v12986_v22 = vpop.permute.xlu2 %4461  ;;  %v3188_v37 = vadd.f32 %v3172_v16, %v3056_v53  ;;  %v3627_v7 = vmul.f32 %v17026_v14, %v3585_v36  ;;  %v3573_v53 = vsel %vm3569_vm10, %v17020_v59, %v17181_v15  ;;  %v17188_v16 = vld [vmem:[#allocation217_spill] sm:$0xff]  ;;  %v3450_v28 = vsel %vm3437_vm11, %v17189_v44, %v17071_v29  ;;  %v17190_v8 = vld [vmem:[#allocation308_spill] sm:$0xff]  ;;  %v5233_v59 = vld [vmem:[%s15140_s6 + $0xe0] sm:$0xff] }
 0x64f   : > { %4883 = vrot.lane.b32.xlu2 %v17092_v21, %s7385_s10  ;;  %v3189_v21 = vadd.f32 %v3173_v42, %v3057_v49  ;;  %v3441_v42 = vsel %vm3437_vm11, %v16967_v50, %v17180_v40  ;;  %v17186_v49 = vld [vmem:[#allocation302_spill] sm:$0xff]  ;;  %v3387_v23 = vmul.f32 %v17188_v16, %v3362_v9  ;;  %v3388_v56 = vmul.f32 %v17183_v1, %v3363_v38  ;;  %v17193_v51 = vld [vmem:[#allocation231_spill] sm:$0xff]  ;;  %vm17196_vm11 = vmmov %vm17187_vm12 }
 0x650   : > { %v12991_v34 = vpop.permute.xlu0 %4073  ;;  %v3837_v58 = vsel %vm17187_vm12, %v17186_v49, %v17185_v6  ;;  %v3494_v40 = vmul.f32 %v16969_v18, %v3441_v42  ;;  %v3320_v36 = vadd.f32 %v3304_v0, %v3188_v37  ;;  %v3652_v9 = vmul.f32 %v12177_v20, %v3627_v7  ;;  %v17191_v29 = vld [vmem:[#allocation70_spill] sm:$0xff]  ;;  %v17194_v0 = vld [vmem:[#allocation119_spill] sm:$0xff]  ;;  %v17195_v7 = vld [vmem:[#allocation133_spill] sm:$0xff] }
 0x651   : > { %17184 = vst [vmem:[#allocation293_spill] sm:$0xff] %v12991_v34  ;;  %v3321_v41 = vadd.f32 %v3305_v5, %v3189_v21  ;;  %v3890_v50 = vmul.f32 %v17190_v8, %v3837_v58  ;;  %v3483_v5 = vmul.f32 %v17075_v19, %v3450_v28  ;;  %v3520_v21 = vmul.f32 %v12156_v57, %v3495_v39  ;;  %v17192_v18 = vld [vmem:[#allocation90_spill] sm:$0xff]  ;;  %v17198_v42 = vld [vmem:[#allocation43_spill] sm:$0xff] }
 0x652   : > { %v3717_v15 = vsel %vm3701_vm9, %v17191_v29, %v17039_v43  ;;  %v3582_v38 = vsel %vm3569_vm10, %v17192_v18, %v17091_v31  ;;  %v3626_v19 = vmul.f32 %v17026_v14, %v3573_v53  ;;  %v3981_v39 = vsel %vm3965_vm4, %v17194_v0, %v17193_v51  ;;  %v17199_v53 = vld [vmem:[#allocation313_spill] sm:$0xff]  ;;  %v17207_v18 = vld [vmem:[#allocation182_spill] sm:$0xff]  ;;  %vm17208_vm10 = vmmov %vm17196_vm11 }
 0x653   : > { %v3404_v1 = vadd.f32 %v3388_v56, %v3321_v41  ;;  %v3759_v37 = vmul.f32 %v17042_v35, %v3717_v15  ;;  %v3849_v43 = vsel %vm17196_vm11, %v17185_v6, %v17195_v7  ;;  %v13043_v31 = vmul.f32 %v12203_v4, %v3890_v50  ;;  %v17201_v4 = vld [vmem:[#allocation75_spill] sm:$0xff] }
 0x654   : > { %6151 = vperm.xlu1 %7075, %v5234_v25   ;;  %v17197_v25 = vld [vmem:[#allocation15_spill] sm:$0xff]  ;;  %v3615_v14 = vmul.f32 %v17087_v46, %v3582_v38  ;;  %v4023_v58 = vmul.f32 %v17198_v42, %v3981_v39  ;;  %v3519_v16 = vmul.f32 %v17199_v53, %v3494_v40  ;;  %v3508_v41 = vmul.f32 %v12156_v57, %v3483_v5  ;;  %v17202_v40 = vld [vmem:[#allocation102_spill] sm:$0xff] }
 0x655   : > { %v3536_v44 = vadd.f32 %v3520_v21, %v3404_v1  ;;  %v3403_v28 = vadd.f32 %v3387_v23, %v3320_v36  ;;  %v3705_v6 = vsel %vm3701_vm9, %v17038_v60, %v17191_v29  ;;  %v3651_v50 = vmul.f32 %v17201_v4, %v3626_v19  ;;  %v5226_v23 = vld [vmem:[%s15140_s6 + $0xa8] sm:$0xff]  ;;  %v17204_v60 = vld [vmem:[#allocation136_spill] sm:$0xff] }
 0x656   : > { %6146 = vperm.xlu0 %7074, %v5233_v59   ;;  %v13053_v56 = vpop.permute.xlu2 %4595  ;;  %v3758_v46 = vmul.f32 %v17042_v35, %v3705_v6  ;;  %v3891_v15 = vmul.f32 %v17190_v8, %v3849_v43  ;;  %v3714_v57 = vsel %vm3701_vm9, %v17202_v40, %v17102_v45  ;;  %v3392_v36 = vadd.f32 %v3376_v32, %v17204_v60  ;;  %v17205_v21 = vld [vmem:[#allocation44_spill] sm:$0xff]  ;;  %v17206_v35 = vld [vmem:[#allocation129_spill] sm:$0xff]  ;;  %v17209_v39 = vld [vmem:[#allocation83_spill] sm:$0xff] }
 0x657   : > { %4857 = vrot.lane.b32.xlu2 %v17197_v25, %s7385_s10  ;;  %17200 = vst [vmem:[#allocation296_spill] sm:$0xff] %v13053_v56  ;;  %v3784_v59 = vmul.f32 %v17205_v21, %v3759_v37  ;;  %v3747_v29 = vmul.f32 %v17019_v48, %v3714_v57  ;;  %v3846_v38 = vsel %vm17208_vm10, %v17207_v18, %v17206_v35  ;;  %vm4625_vm9 = vcmp.lt.s32.totalorder %v9448_v47, 88  ;;  %v4906_v32 = vld [vmem:[%s15140_s6 + $0x440] sm:$0xff]  ;;  %v17210_v48 = vld [vmem:[#allocation211_spill] sm:$0xff]  ;;  %v17211_v43 = vld [vmem:[#allocation301_spill] sm:$0xff] }
 0x658   : > { %v13062_v5 = vpop.permute.xlu0 %4475  ;;  %v3640_v19 = vmul.f32 %v12177_v20, %v3615_v14  ;;  %v3535_v45 = vadd.f32 %v3519_v16, %v3403_v28  ;;  %v3969_v1 = vsel %vm3965_vm4, %v17209_v39, %v17194_v0  ;;  %v4048_v37 = vmul.f32 %v17210_v48, %v4023_v58  ;;  %v17212_v25 = vld [vmem:[#allocation177_spill] sm:$0xff]  ;;  %v5227_v0 = vld [vmem:[%s15140_s6 + $0xb0] sm:$0xff]  ;;  %v17215_v60 = vld [vmem:[#allocation291_spill] sm:$0xff] }
 0x659   : > { %17203 = vst [vmem:[#allocation299_spill] sm:$0xff] %v13062_v5  ;;  %v4101_v53 = vsel %vm4097_vm14, %v17212_v25, %v17211_v43  ;;  %v3524_v20 = vadd.f32 %v3508_v41, %v3392_v36  ;;  %v3668_v14 = vadd.f32 %v3652_v9, %v3536_v44  ;;  %v13091_v16 = vld [vmem:[%s15139_s5 + $0x46] ss:$8 sm:$0xf]  ;;  %v3783_v58 = vmul.f32 %v12168_v63, %v3758_v46 }
 0x65a   : > { %v3667_v28 = vadd.f32 %v3651_v50, %v3535_v45  ;;  %v17213_v6 = vld [vmem:[#allocation120_spill] sm:$0xff]  ;;  %v3879_v40 = vmul.f32 %v17032_v13, %v3846_v38  ;;  %v4022_v9 = vmul.f32 %v17198_v42, %v3969_v1  ;;  %v3772_v41 = vmul.f32 %v17205_v21, %v3747_v29  ;;  %v17217_v46 = vld [vmem:[#allocation73_spill] sm:$0xff]  ;;  %v17219_v18 = vld [vmem:[#allocation283_spill] sm:$0xff] }
 0x65b   : > { %v3916_v4 = vmul.f32 %v17213_v6, %v3891_v15  ;;  %v3800_v57 = vadd.f32 %v3784_v59, %v3668_v14  ;;  %v17214_v44 = vld [vmem:[#allocation228_spill] sm:$0xff]  ;;  %v13110_v50 = vperm.slane %v13091_v16, 3  ;;  %v17221_v38 = vld [vmem:[#allocation79_spill] sm:$0xff]  ;;  %v17222_v1 = vld [vmem:[#allocation161_spill] sm:$0xff]  ;;  %v3656_v14 = vadd.f32 %v3640_v19, %v3524_v20 }
 0x65c   : > { %6595 = vperm.xlu1 %7075, %v5226_v23   ;;  %v4640_v23 = vsel %vm4625_vm9, %v17215_v60, %v17214_v44  ;;  %v17216_v36 = vld [vmem:[#allocation116_spill] sm:$0xff]  ;;  %v3904_v44 = vmul.f32 %v17213_v6, %v3879_v40  ;;  %v5229_v19 = vld [vmem:[%s15140_s6 + $0xc0] sm:$0xff]  ;;  %v17229_v6 = vld [vmem:[#allocation223_spill] sm:$0xff]  ;;  %vm17339_vm1 = vcmask 261120  }
 0x65d   : > { %v4113_v63 = vsel %vm4097_vm14, %v17211_v43, %v17216_v36  ;;  %v4679_v15 = vmul.f32 %v17217_v46, %v4640_v23  ;;  %v17218_v59 = vld [vmem:[#allocation176_spill] sm:$0xff]  ;;  %v3788_v49 = vadd.f32 %v3772_v41, %v3656_v14  ;;  %v4233_v40 = vsel %vm4229_vm8, %v17229_v6, %v17219_v18  ;;  %v5230_v34 = vld [vmem:[%s15140_s6 + $0xc8] sm:$0xff]  ;;  %v17236_v13 = vld [vmem:[#allocation114_spill] sm:$0xff] }
 0x65e   : > { %v4245_v21 = vsel %vm4229_vm8, %v17219_v18, %v17218_v59  ;;  %6600 = vperm.xlu0 %7074, %v5227_v0   ;;  %v17220_v29 = vld [vmem:[#allocation40_spill] sm:$0xff]  ;;  %v13128_v23 = vpop.permute.xlu2 %4729  ;;  %v3932_v0 = vadd.f32 %v3916_v4, %v3800_v57  ;;  %v17235_v18 = vld [vmem:[#allocation13_spill] sm:$0xff]  ;;  %vm17340_vm0 = vmmov %vm17339_vm1 }
 0x65f   : > { %4914 = vperm.xlu2 %7076, %v4906_v32   ;;  %v3978_v45 = vsel %vm3965_vm4, %v17221_v38, %v17220_v29  ;;  %v4155_v32 = vmul.f32 %v17222_v1, %v4113_v63  ;;  %v13126_v43 = vld [vmem:[%s15139_s5 + $0x47] ss:$8 sm:$0xf]  ;;  %17223 = vst [vmem:[#allocation243_spill] sm:$0xff] %v13128_v23  ;;  %v3799_v38 = vadd.f32 %v3783_v58, %v3667_v28  ;;  %vm17342_vm5 = vmmov %vm17340_vm0 }
 0x660   : > { %v4011_v24 = vmul.f32 %v17224_v3, %v3978_v45  ;;  %v13132_v59 = vpop.permute.xlu0 %4473  ;;  %v17226_v20 = vld [vmem:[#allocation108_spill] sm:$0xff]  ;;  %v4704_v4 = vmul.f32 %v13110_v50, %v4679_v15  ;;  %v13149_v57 = vperm.slane %v13126_v43, 3  ;;  %v17230_v28 = vld [vmem:[#allocation25_spill] sm:$0xff]  ;;  %v17233_v15 = vld [vmem:[#allocation235_spill] sm:$0xff] }
 0x661   : > { %17225 = vst [vmem:[#allocation107_spill] sm:$0xff] %v13132_v59  ;;  %v4772_v63 = vsel %vm4757_vm7, %v17226_v20, %v13128_v23  ;;  %v17227_v8 = vld [vmem:[#allocation180_spill] sm:$0xff]  ;;  %v17234_v59 = vld [vmem:[#allocation45_spill] sm:$0xff]  ;;  %v17238_v29 = vld [vmem:[#allocation171_spill] sm:$0xff] }
 0x662   : > { %v4047_v7 = vmul.f32 %v17227_v8, %v4022_v9  ;;  %v17228_v5 = vld [vmem:[#allocation8_spill] sm:$0xff]  ;;  %v4811_v58 = vmul.f32 %v17230_v28, %v4772_v63  ;;  %v4154_v8 = vmul.f32 %v17222_v1, %v4101_v53  ;;  %v17231_v9 = vld [vmem:[#allocation273_spill] sm:$0xff]  ;;  %v4242_v6 = vsel %vm4229_vm8, %v17235_v18, %v17234_v59  ;;  %vm17343_vm3 = vmmov %vm17340_vm0 }
 0x663   : > { %v4287_v45 = vmul.f32 %v17228_v5, %v4245_v21  ;;  %v4991_v23 = vld [vmem:[%s15140_s6 + $0x30] sm:$0xff]  ;;  %v4180_v41 = vmul.f32 %v17231_v9, %v4155_v32  ;;  %v3920_v63 = vadd.f32 %v3904_v44, %v3788_v49  ;;  %v17237_v35 = vld [vmem:[#allocation93_spill] sm:$0xff]  ;;  %v4064_v1 = vadd.f32 %v4048_v37, %v3932_v0  ;;  %v17241_v44 = vld [vmem:[#allocation151_spill] sm:$0xff] }
 0x664   : > { %v17232_v21 = vld [vmem:[#allocation132_spill] sm:$0xff]  ;;  %6626 = vperm.xlu1 %7075, %v5229_v19   ;;  %v4720_v32 = vadd.f32 %v4704_v4, %v17237_v35  ;;  %v4836_v3 = vmul.f32 %v13149_v57, %v4811_v58  ;;  %v17239_v19 = vld [vmem:[#allocation258_spill] sm:$0xff]  ;;  %v4036_v49 = vmul.f32 %v17210_v48, %v4011_v24  ;;  %v17245_v58 = vld [vmem:[#allocation255_spill] sm:$0xff] }
 0x665   : > { %v4110_v14 = vsel %vm4097_vm14, %v17233_v15, %v17232_v21  ;;  %v3931_v15 = vadd.f32 %v13043_v31, %v3799_v38  ;;  %v4286_v21 = vmul.f32 %v17228_v5, %v4233_v40  ;;  %v4312_v36 = vmul.f32 %v17238_v29, %v4287_v45  ;;  %v17240_v18 = vld [vmem:[#allocation288_spill] sm:$0xff]  ;;  %v17246_v24 = vld [vmem:[#allocation173_spill] sm:$0xff]  ;;  %vm17356_vm6 = vmmov %vm17340_vm0 }
 0x666   : > { %v4143_v53 = vmul.f32 %v17236_v13, %v4110_v14  ;;  %v4377_v59 = vsel %vm4361_vm2, %v17240_v18, %v17239_v19  ;;  %v4275_v14 = vmul.f32 %v17241_v44, %v4242_v6  ;;  %6631 = vperm.xlu0 %7074, %v5230_v34   ;;  %v13180_v35 = vadd.f32 %v4836_v3, %v4720_v32  ;;  %v17242_v37 = vld [vmem:[#allocation244_spill] sm:$0xff]  ;;  %v13184_v45 = vpop.permute.xlu2 %4863  ;;  %v17249_v6 = vld [vmem:[#allocation249_spill] sm:$0xff]  ;;  %v17250_v32 = vld [vmem:[#allocation207_spill] sm:$0xff] }
 0x667   : > { %5021 = vperm.xlu2 %7076, %v4991_v23   ;;  %v4419_v0 = vmul.f32 %v17242_v37, %v4377_v59  ;;  %v4063_v31 = vadd.f32 %v4047_v7, %v3931_v15  ;;  %v17243_v38 = vld [vmem:[#allocation248_spill] sm:$0xff]  ;;  %v4196_v40 = vadd.f32 %v4180_v41, %v4064_v1  ;;  %v17244_v23 = vld [vmem:[#allocation229_spill] sm:$0xff]  ;;  %v4052_v13 = vadd.f32 %v4036_v49, %v3920_v63  ;;  %v17248_v59 = vld [vmem:[#allocation122_spill] sm:$0xff] }
 0x668   : > { %v4179_v4 = vmul.f32 %v17243_v38, %v4154_v8  ;;  %v4374_v5 = vsel %vm4361_vm2, %v17245_v58, %v17244_v23  ;;  %v4365_v3 = vsel %vm4361_vm2, %v17246_v24, %v17240_v18  ;;  %v4168_v34 = vmul.f32 %v17231_v9, %v4143_v53  ;;  %v13195_v48 = vpop.permute.xlu0 %4471  ;;  %v5232_v7 = vld [vmem:[%s15140_s6 + $0xd8] sm:$0xff]  ;;  %v17263_v23 = vld [vmem:[#allocation31_spill] sm:$0xff]  ;;  %vm17357_vm12 = vmmov %vm17340_vm0 }
 0x669   : > { %17247 = vst [vmem:[#allocation236_spill] sm:$0xff] %v13195_v48  ;;  %v4407_v1 = vmul.f32 %v17248_v59, %v4374_v5  ;;  %v4311_v8 = vmul.f32 %v17249_v6, %v4286_v21  ;;  %v4328_v41 = vadd.f32 %v4312_v36, %v4196_v40  ;;  %v4499_v63 = vsel %vm4493_vm13, %v13195_v48, %v12765_v27  ;;  %v17251_v15 = vld [vmem:[#allocation253_spill] sm:$0xff]  ;;  %v4990_v36 = vld [vmem:[%s15140_s6 + $0x28] sm:$0xff]  ;;  %v17255_v27 = vld [vmem:[#allocation260_spill] sm:$0xff] }
 0x66a   : > { %v4509_v9 = vsel %vm4493_vm13, %v17251_v15, %v17250_v32  ;;  %v4300_v53 = vmul.f32 %v17238_v29, %v4275_v14  ;;  %v17252_v18 = vld [vmem:[#allocation309_spill] sm:$0xff]  ;;  %v13216_v21 = vmul.f32 %v12928_v62, %v4499_v63  ;;  %v4444_v38 = vmul.f32 %v17255_v27, %v4419_v0  ;;  %v17256_v6 = vld [vmem:[#allocation294_spill] sm:$0xff]  ;;  %v17257_v29 = vld [vmem:[#allocation84_spill] sm:$0xff] }
 0x66b   : > { %v17253_v49 = vld [vmem:[#allocation297_spill] sm:$0xff]  ;;  %v4195_v40 = vadd.f32 %v4179_v4, %v4063_v31  ;;  %v4418_v58 = vmul.f32 %v17242_v37, %v4365_v3  ;;  %v4551_v44 = vmul.f32 %v17256_v6, %v4509_v9  ;;  %v4497_v14 = vsel %vm4493_vm13, %v17257_v29, %v17251_v15  ;;  %v17259_v63 = vld [vmem:[#allocation278_spill] sm:$0xff]  ;;  %v17260_v59 = vld [vmem:[#allocation195_spill] sm:$0xff] }
 0x66c   : > { %v4641_v5 = vsel %vm4625_vm9, %v17253_v49, %v17252_v18  ;;  %17254 = vst [vmem:[#allocation141_spill] sm:$0xff] %v13216_v21  ;;  %6641 = vperm.xlu1 %7075, %v5232_v7   ;;  %v17258_v18 = vld [vmem:[#allocation246_spill] sm:$0xff]  ;;  %v4184_v62 = vadd.f32 %v4168_v34, %v4052_v13  ;;  %v4629_v0 = vsel %vm4625_vm9, %v17260_v59, %v17253_v49  ;;  %v17261_v7 = vld [vmem:[#allocation28_spill] sm:$0xff]  ;;  %v17264_v49 = vld [vmem:[#allocation215_spill] sm:$0xff] }
 0x66d   : > { %v4773_v21 = vsel %vm4757_vm7, %v17259_v63, %v17258_v18  ;;  %v4432_v31 = vmul.f32 %v17255_v27, %v4407_v1  ;;  %v4327_v4 = vadd.f32 %v4311_v8, %v4195_v40  ;;  %v4550_v3 = vmul.f32 %v17256_v6, %v4497_v14  ;;  %v17262_v48 = vld [vmem:[#allocation78_spill] sm:$0xff]  ;;  %vm17376_vm11 = vmmov %vm17340_vm0 }
 0x66e   : > { %v4683_v9 = vmul.f32 %v17261_v7, %v4641_v5  ;;  %v4460_v15 = vadd.f32 %v4444_v38, %v4328_v41  ;;  %v4494_v18 = vsel %vm4493_vm13, %v17263_v23, %v17262_v48  ;;  %v4316_v13 = vadd.f32 %v4300_v53, %v4184_v62  ;;  %v13254_v5 = vpop.permute.xlu2 %4518 }
 0x66f   : > { %5016 = vperm.xlu2 %7076, %v4990_v36   ;;  %v4761_v34 = vsel %vm4757_vm7, %v12865_v10, %v17259_v63  ;;  %v4443_v1 = vmul.f32 %v17264_v49, %v4418_v58  ;;  %v4576_v8 = vmul.f32 %v12608_v2, %v4551_v44  ;;  %v4682_v27 = vmul.f32 %v17261_v7, %v4629_v0  ;;  %v17266_v36 = vld [vmem:[#allocation111_spill] sm:$0xff] }
 0x670   : > { %v4506_v41 = vsel %vm4493_vm13, %v17262_v48, %v12986_v22  ;;  %17265 = vst [vmem:[#allocation18_spill] sm:$0xff] %v13254_v5  ;;  %v4815_v62 = vmul.f32 %v17266_v36, %v4773_v21  ;;  %v13258_v53 = vperm.slane %v13091_v16, 2  ;;  %v13260_v38 = vpop.permute.xlu0 %4469  ;;  %v4538_v40 = vmul.f32 %v13254_v5, %v4494_v18 }
 0x671   : > { %v4539_v44 = vmul.f32 %v13254_v5, %v4506_v41  ;;  %v4575_v58 = vmul.f32 %v12606_v30, %v4550_v3  ;;  %v4708_v14 = vmul.f32 %v13110_v50, %v4683_v9  ;;  %v4814_v63 = vmul.f32 %v17266_v36, %v4761_v34  ;;  %v6955_v41 = vld [vmem:[%s15139_s5 + $0x60] ss:$8 sm:$0xf] }
 0x672   : > { %v4502_v48 = vsel %vm4493_vm13, %v12986_v22, %v13260_v38  ;;  %v4448_v21 = vadd.f32 %v4432_v31, %v4316_v13  ;;  %v4563_v0 = vmul.f32 %v12606_v30, %v4538_v40  ;;  %v4459_v49 = vadd.f32 %v4443_v1, %v4327_v4  ;;  %v17268_v13 = vld [vmem:[#allocation24_spill] sm:$0xff] }
 0x673   : > { %v13272_v16 = vmul.f32 %v13254_v5, %v4502_v48  ;;  %v4564_v18 = vmul.f32 %v12608_v2, %v4539_v44  ;;  %v13277_v3 = vperm.slane %v13126_v43, 2  ;;  %v4592_v9 = vadd.f32 %v4576_v8, %v4460_v15  ;;  %v17312_v5 = vld [vmem:[#allocation261_spill] sm:$0xff] }
 0x674   : > { %v4707_v34 = vmul.f32 %v13258_v53, %v4682_v27  ;;  %v13285_v22 = vadd.f32 %v4563_v0, %v12753_v52  ;;  %v4591_v30 = vadd.f32 %v4575_v58, %v4459_v49  ;;  %v17269_v15 = vsub.f32 2.0, %v12905_v17  ;;  %v17271_v58 = vld [vmem:[#allocation121_spill] sm:$0xff] }
 0x675   : > { %17267 = vst [vmem:[#allocation154_spill] sm:$0xff] %v13272_v16  ;;  %v13287_v31 = vadd.f32 %v4564_v18, %v4448_v21  ;;  %v4724_v2 = vadd.f32 %v4708_v14, %v4592_v9  ;;  %v4839_v4 = vmul.f32 %v13277_v3, %v4814_v63  ;;  %v17270_v8 = vsub.f32 2.0, %v12952_v26  ;;  %v17272_v14 = vld [vmem:[#allocation37_spill] sm:$0xff] }
 0x676   : > { %v1727_v1 = vmul.f32 %v12886_v54, %v17269_v15  ;;  %v13298_v40 = vperm.slane %v6955_v41, 2  ;;  %v13300_v52 = vperm.slane %v6955_v41, 3  ;;  %v4840_v44 = vmul.f32 %v13149_v57, %v4815_v62  ;;  %v4930_v17 = vpop.permute.xlu2 %4929 }
 0x677   : > { %3815 = vrot.lane.b32.xlu2 %v17268_v13, %s7377_s19  ;;  %v1728_v27 = vmul.f32 %v12916_v55, %v17270_v8  ;;  %v4893_v63 = vsel %vm4889_vm15, %v17272_v14, %v17271_v58  ;;  %v4723_v48 = vadd.f32 %v4707_v34, %v4591_v30  ;;  %v4905_v54 = vsel %vm4889_vm15, %v17271_v58, %v13184_v45 }
 0x678   : > { %v4872_v26 = vpop.permute.xlu0 %4871  ;;  %v13311_v55 = vperm.slane %v6955_v41, 0  ;;  %v13313_v21 = vperm.slane %v6955_v41, 1  ;;  %v4946_v0 = vmul.f32 %v4930_v17, %v4893_v63  ;;  %v4947_v18 = vmul.f32 %v4930_v17, %v4905_v54  ;;  %v17275_v41 = vld [vmem:[#allocation227_spill] sm:$0xff]  ;;  %v17276_v63 = vld [vmem:[#allocation222_spill] sm:$0xff] }
 0x679   : > { %v4856_v62 = vadd.f32 %v4840_v44, %v4724_v2  ;;  %v4855_v49 = vadd.f32 %v4839_v4, %v4723_v48  ;;  %v4897_v9 = vsel %vm4889_vm15, %v4872_v26, %v17272_v14  ;;  %v4901_v34 = vsel %vm4889_vm15, %v13184_v45, %v4872_v26  ;;  %v17279_v45 = vld [vmem:[#allocation4_spill] sm:$0xff] }
 0x67a   : > { %17273 = vst [vmem:[#allocation285_spill] sm:$0xff] %v13311_v55  ;;  %v4944_v30 = vmul.f32 %v4930_v17, %v4901_v34  ;;  %v4945_v15 = vmul.f32 %v4930_v17, %v4897_v9  ;;  %v4971_v8 = vmul.f32 %v13298_v40, %v4946_v0  ;;  %v4972_v58 = vmul.f32 %v13300_v52, %v4947_v18  ;;  %v17280_v0 = vld [vmem:[#allocation281_spill] sm:$0xff] }
 0x67b   : > { %17274 = vst [vmem:[#allocation175_spill] sm:$0xff] %v13313_v21  ;;  %v1735_v7 = vmul.f32 %v1727_v1, %v17275_v41  ;;  %v1736_v54 = vmul.f32 %v1728_v27, %v17276_v63  ;;  %v17281_v27 = vld [vmem:[#allocation66_spill] sm:$0xff]  ;;  %v17282_v34 = vld [vmem:[#allocation69_spill] sm:$0xff]  ;;  %v13345_v41 = vpop.f32.mrf.mxu1  ;;  %v17287_v63 = vld [vmem:[#allocation16_spill] sm:$0xff] }
 0x67c   : > { %v13326_v2 = vmul.f32 %v13311_v55, %v4944_v30  ;;  %v13329_v4 = vmul.f32 %v13313_v21, %v4945_v15  ;;  %v4987_v44 = vadd.f32 %v4971_v8, %v4855_v49  ;;  %v4988_v14 = vadd.f32 %v4972_v58, %v4856_v62  ;;  %v17283_v49 = vld [vmem:[#allocation11_spill] sm:$0xff]  ;;  %17286 = vst [vmem:[#allocation153_spill] sm:$0xff] %v13345_v41  ;;  %v17293_v41 = vld [vmem:[#allocation86_spill] sm:$0xff] }
 0x67d   : > { %v17284_v15 = vld [vmem:[#allocation219_spill] sm:$0xff]  ;;  %v1652_v58 = vadd.f32 1e-06, %v12769_v12  ;;  %v4628_v12 = vsel %vm4625_vm9, %v12824_v61, %v17215_v60 }
 0x67e   : > { %17277 = vst [vmem:[#allocation131_spill] sm:$0xff] %v13326_v2  ;;  %v5007_v48 = vadd.f32 %v4987_v44, %v1735_v7  ;;  %v5008_v17 = vadd.f32 %v4988_v14, %v1736_v54  ;;  %v1629_v8 = vadd.f32 1e-06, %v17284_v15  ;;  %v13342_v7 = vpop.f32.mrf.mxu0  ;;  %v17288_v44 = vld [vmem:[#allocation210_spill] sm:$0xff]  ;;  %v4678_v15 = vmul.f32 %v17217_v46, %v4628_v12 }
 0x67f   : > { %17278 = vst [vmem:[#allocation124_spill] sm:$0xff] %v13329_v4  ;;  %3813 = vrot.lane.b32.xlu2 %v17279_v45, %s7377_s19  ;;  %v13333_v26 = vpop.permute.xlu2 %4617  ;;  %v1508_v14 = vadd.f32 1e-06, %v17288_v44  ;;  %v17292_v44 = vld [vmem:[#allocation139_spill] sm:$0xff] }
 0x680   : > { %v5043_v18 = vadd.f32 %v17280_v0, %v5007_v48  ;;  %v5044_v1 = vadd.f32 %v17280_v0, %v5008_v17  ;;  %17285 = vst [vmem:[#allocation156_spill] sm:$0xff] %v13342_v7  ;;  %7209 = vrcp.f32 %v1629_v8  ;;  %v17289_v48 = vld [vmem:[#allocation305_spill] sm:$0xff]  ;;  %v4703_v61 = vmul.f32 %v13258_v53, %v4678_v15 }
 0x681   : > { %7211 = vrcp.f32 %v1652_v58  ;;  %v1531_v17 = vadd.f32 1e-06, %v17289_v48 }
 0x682   : > { %v5059_v9 = vmul.f32 %v5043_v18, %v17281_v27  ;;  %v5060_v30 = vmul.f32 %v5044_v1, %v17282_v34  ;;  %7213 = vrcp.f32 %v1508_v14 }
 0x683   : > { %v13353_v27 = vpop.f32.mrf.mxu1  ;;  %7215 = vrcp.f32 %v1531_v17 }
 0x684   : > { %5171 = vmatpush.msra.mxu2 %v5059_v9  ;;  %5200 = vmatpush.msra.mxu3 %v5060_v30  ;;  %17291 = vst [vmem:[#allocation34_spill] sm:$0xff] %v13353_v27  ;;  %v4870_v9 = vpop.permute.xlu0 %4869 }
 0x685   : > { %v4896_v48 = vsel %vm4889_vm15, %v4870_v9, %v17292_v44  ;;  %v4900_v7 = vsel %vm4889_vm15, %v17293_v41, %v4870_v9 }
 0x686   : > { %v13351_v18 = vpop.f32.mrf.mxu0  ;;  %v7210_v1 = vpop.eup %7209 }
 0x687   : > { %3811 = vrot.lane.b32.xlu2 %v17283_v49, %s7377_s19  ;;  %17290 = vst [vmem:[#allocation184_spill] sm:$0xff] %v13351_v18  ;;  %v7212_v34 = vpop.eup %7211  ;;  %v1707_v30 = vmul.f32 %v7210_v1, %v1629_v8 }
 0x688   : > { %v1708_v60 = vmul.f32 %v7212_v34, %v1652_v58  ;;  %v7214_v8 = vpop.eup %7213  ;;  %v17298_v58 = vld [vmem:[#allocation62_spill] sm:$0xff] }
 0x689   : > { %v4752_v62 = vpop.permute.xlu2 %4751  ;;  %v1715_v46 = vsub.f32 2.0, %v1707_v30  ;;  %v7216_v59 = vpop.eup %7215 }
 0x68a   : > { %v1716_v9 = vsub.f32 2.0, %v1708_v60  ;;  %v17299_v60 = vld [vmem:[#allocation247_spill] sm:$0xff] }
 0x68b   : > { %v13377_v16 = vpop.f32.mrf.mxu1 }
 0x68c   : > { %17297 = vst [vmem:[#allocation292_spill] sm:$0xff] %v13377_v16  ;;  %v17300_v16 = vld [vmem:[#allocation300_spill] sm:$0xff]  ;;  %v1724_v36 = vmul.f32 %v7212_v34, %v1716_v9 }
 0x68e   : > { %v13374_v12 = vpop.f32.mrf.mxu0 }
 0x68f   : > { %3809 = vrot.lane.b32.xlu2 %v17287_v63, %s7377_s19  ;;  %17296 = vst [vmem:[#allocation142_spill] sm:$0xff] %v13374_v12  ;;  %v1671_v12 = vmul.f32 %v7214_v8, %v1508_v14 }
 0x691   : > { %v4886_v54 = vpop.permute.xlu2 %4885 }
 0x696   : > { %v13416_v9 = vpop.f32.mrf.mxu0 }
 0x697   : > { %4211 = vrot.lane.b32.xlu2 %v17268_v13, %s7380_s23  ;;  %17307 = vst [vmem:[#allocation185_spill] sm:$0xff] %v13416_v9 }
 0x699   : > { %v4925_v27 = vpop.permute.xlu2 %4924 }
 0x69a   : > { %v4940_v18 = vmul.f32 %v4925_v27, %v4900_v7  ;;  %v4941_v0 = vmul.f32 %v4925_v27, %v4896_v48  ;;  %v4760_v7 = vsel %vm4757_vm7, %v17298_v58, %v17226_v20  ;;  %v17301_v20 = vld [vmem:[#allocation50_spill] sm:$0xff]  ;;  %v1672_v58 = vmul.f32 %v7216_v59, %v1531_v17 }
 0x69b   : > { %v4810_v30 = vmul.f32 %v17230_v28, %v4760_v7 }
 0x69c   : > { %v13369_v4 = vmul.f32 %v13311_v55, %v4940_v18  ;;  %v13372_v2 = vmul.f32 %v13313_v21, %v4941_v0  ;;  %v4892_v0 = vsel %vm4889_vm15, %v17292_v44, %v4886_v54  ;;  %v4904_v18 = vsel %vm4889_vm15, %v4886_v54, %v17293_v41  ;;  %v17302_v54 = vld [vmem:[#allocation199_spill] sm:$0xff] }
 0x69d   : > { %v4942_v15 = vmul.f32 %v4925_v27, %v4892_v0  ;;  %v4943_v48 = vmul.f32 %v4925_v27, %v4904_v18  ;;  %v4639_v44 = vsel %vm4625_vm9, %v17301_v20, %v13053_v56  ;;  %v1723_v41 = vmul.f32 %v7210_v1, %v1715_v46  ;;  %v17303_v0 = vld [vmem:[#allocation72_spill] sm:$0xff]  ;;  %v17304_v18 = vld [vmem:[#allocation103_spill] sm:$0xff]  ;;  %v17306_v46 = vld [vmem:[#allocation26_spill] sm:$0xff] }
 0x69e   : > { %17294 = vst [vmem:[#allocation226_spill] sm:$0xff] %v13369_v4  ;;  %v13394_v4 = vadd.f32 1e-06, %v17300_v16  ;;  %v4719_v7 = vadd.f32 %v4703_v61, %v17302_v54  ;;  %v4627_v27 = vsel %vm4625_vm9, %v17303_v0, %v17301_v20  ;;  %v4759_v16 = vsel %vm4757_vm7, %v17304_v18, %v4752_v62  ;;  %v13418_v20 = vpop.permute.xlu1 %5011  ;;  %v17309_v0 = vld [vmem:[#allocation234_spill] sm:$0xff] }
 0x69f   : > { %17295 = vst [vmem:[#allocation287_spill] sm:$0xff] %v13372_v2  ;;  %4209 = vrot.lane.b32.xlu2 %v17279_v45, %s7380_s23  ;;  %v1505_v2 = vadd.f32 1e-06, %v17299_v60  ;;  %v17305_v60 = vld [vmem:[#allocation96_spill] sm:$0xff]  ;;  %v4835_v14 = vmul.f32 %v13277_v3, %v4810_v30  ;;  %v4675_v17 = vmul.f32 %v17306_v46, %v4639_v44  ;;  %v4967_v61 = vmul.f32 %v13298_v40, %v4942_v15  ;;  %v17311_v44 = vld [vmem:[#allocation257_spill] sm:$0xff] }
 0x6a0   : > { %v4771_v56 = vsel %vm4757_vm7, %v4752_v62, %v17305_v60  ;;  %v4968_v1 = vmul.f32 %v13300_v52, %v4943_v48  ;;  %v4674_v34 = vmul.f32 %v17306_v46, %v4627_v27  ;;  %17308 = vst [vmem:[#allocation81_spill] sm:$0xff] %v13418_v20  ;;  %v4806_v18 = vmul.f32 %v17309_v0, %v4759_v16  ;;  %v13422_v60 = vpop.f32.mrf.mxu1 }
 0x6a1   : > { %v4750_v28 = vpop.permute.xlu2 %4749  ;;  %7217 = vrcp.f32 %v1505_v2  ;;  %v4851_v54 = vadd.f32 %v4835_v14, %v4719_v7  ;;  %v4807_v62 = vmul.f32 %v17309_v0, %v4771_v56  ;;  %17310 = vst [vmem:[#allocation307_spill] sm:$0xff] %v13422_v60  ;;  %v1679_v30 = vsub.f32 2.0, %v1671_v12 }
 0x6a2   : > { %7219 = vrcp.f32 %v13394_v4  ;;  %v1680_v15 = vsub.f32 2.0, %v1672_v58  ;;  %v1731_v48 = vmul.f32 %v1723_v41, %v17311_v44  ;;  %v1732_v27 = vmul.f32 %v1724_v36, %v17312_v5 }
 0x6a3   : > { %v4700_v46 = vmul.f32 %v13110_v50, %v4675_v17  ;;  %v4983_v7 = vadd.f32 %v4967_v61, %v4851_v54  ;;  %v4984_v16 = vadd.f32 %v4968_v1, %v13180_v35  ;;  %v4699_v56 = vmul.f32 %v13258_v53, %v4674_v34  ;;  %v17313_v17 = vld [vmem:[#allocation194_spill] sm:$0xff]  ;;  %v17315_v54 = vld [vmem:[#allocation183_spill] sm:$0xff] }
 0x6a4   : > { %v4831_v14 = vmul.f32 %v13277_v3, %v4806_v18  ;;  %v4832_v0 = vmul.f32 %v13149_v57, %v4807_v62  ;;  %v1687_v5 = vmul.f32 %v7214_v8, %v1679_v30  ;;  %v1688_v36 = vmul.f32 %v7216_v59, %v1680_v15  ;;  %v17314_v61 = vld [vmem:[#allocation198_spill] sm:$0xff]  ;;  %v17316_v59 = vld [vmem:[#allocation67_spill] sm:$0xff]  ;;  %v13452_v30 = vpop.f32.mrf.mxu0 }
 0x6a5   : > { %v13434_v58 = vadd.f32 %v4983_v7, %v1731_v48  ;;  %v13436_v41 = vadd.f32 %v4984_v16, %v1732_v27  ;;  %v4716_v18 = vadd.f32 %v4700_v46, %v12965_v11  ;;  %v4715_v34 = vadd.f32 %v4699_v56, %v12962_v33  ;;  %v17317_v56 = vld [vmem:[#allocation22_spill] sm:$0xff] }
 0x6a6   : > { %v4626_v8 = vsel %vm4625_vm9, %v17316_v59, %v13333_v26 }
 0x6a7   : > { %4207 = vrot.lane.b32.xlu2 %v17283_v49, %s7380_s23  ;;  %v7218_v1 = vpop.eup %7217  ;;  %v4847_v15 = vadd.f32 %v4831_v14, %v4715_v34  ;;  %v4848_v7 = vadd.f32 %v4832_v0, %v4716_v18  ;;  %v17320_v34 = vld [vmem:[#allocation35_spill] sm:$0xff] }
 0x6a8   : > { %v7220_v27 = vpop.eup %7219  ;;  %v13456_v46 = vpop.f32.mrf.mxu1  ;;  %v1667_v33 = vmul.f32 %v7218_v1, %v1505_v2  ;;  %v4670_v2 = vmul.f32 %v17320_v34, %v4626_v8 }
 0x6a9   : > { %v4884_v12 = vpop.permute.xlu2 %4883  ;;  %v1668_v18 = vmul.f32 %v7220_v27, %v13394_v4 }
 0x6aa   : > { %v4891_v44 = vsel %vm4889_vm15, %v17313_v17, %v4884_v12  ;;  %v4903_v35 = vsel %vm4889_vm15, %v4884_v12, %v17314_v61  ;;  %v4638_v12 = vsel %vm4625_vm9, %v13333_v26, %v17317_v56  ;;  %v13464_v17 = vpop.permute.xlu1 %3947  ;;  %v17322_v26 = vld [vmem:[#allocation150_spill] sm:$0xff]  ;;  %v1675_v4 = vsub.f32 2.0, %v1667_v33  ;;  %v17325_v33 = vld [vmem:[#allocation245_spill] sm:$0xff] }
 0x6ab   : > { %v4938_v62 = vmul.f32 %v17315_v54, %v4891_v44  ;;  %v4939_v48 = vmul.f32 %v17315_v54, %v4903_v35  ;;  %v17318_v44 = vld [vmem:[#allocation160_spill] sm:$0xff]  ;;  %v17319_v54 = vld [vmem:[#allocation202_spill] sm:$0xff]  ;;  %v4695_v8 = vmul.f32 %v13258_v53, %v4670_v2 }
 0x6ac   : > { %v1695_v35 = vmul.f32 %v1687_v5, %v17318_v44  ;;  %v1696_v59 = vmul.f32 %v1688_v36, %v17319_v54  ;;  %v4770_v5 = vsel %vm4757_vm7, %v4750_v28, %v17322_v26  ;;  %v4671_v36 = vmul.f32 %v17320_v34, %v4638_v12  ;;  %v17323_v61 = vld [vmem:[#allocation238_spill] sm:$0xff]  ;;  %v1461_v60 = vpop.f32.mrf.mxu0  ;;  %v17380_v26 = vld [vmem:[#allocation129_spill] sm:$0xff] }
 0x6ad   : > { %v4963_v16 = vmul.f32 %v13298_v40, %v4938_v62  ;;  %v4964_v11 = vmul.f32 %v13300_v52, %v4939_v48  ;;  %v17321_v62 = vld [vmem:[#allocation9_spill] sm:$0xff] }
 0x6ae   : > { %v4758_v48 = vsel %vm4757_vm7, %v17321_v62, %v4750_v28  ;;  %v4866_v62 = vpop.permute.xlu0 %4865 }
 0x6af   : > { %4205 = vrot.lane.b32.xlu2 %v17287_v63, %s7380_s23  ;;  %v4979_v0 = vadd.f32 %v4963_v16, %v4847_v15  ;;  %v4980_v14 = vadd.f32 %v4964_v11, %v4848_v7  ;;  %v4802_v15 = vmul.f32 %v17323_v61, %v4758_v48  ;;  %v4803_v7 = vmul.f32 %v17323_v61, %v4770_v5 }
 0x6b0   : > { %v1676_v16 = vsub.f32 2.0, %v1668_v18  ;;  %v4696_v11 = vmul.f32 %v13110_v50, %v4671_v36  ;;  %v4711_v50 = vadd.f32 %v4695_v8, %v13285_v22 }
 0x6b1   : > { %v4858_v54 = vpop.permute.xlu2 %4857  ;;  %v4999_v44 = vadd.f32 %v4979_v0, %v1695_v35  ;;  %v5000_v56 = vadd.f32 %v4980_v14, %v1696_v59  ;;  %v4827_v9 = vmul.f32 %v13277_v3, %v4802_v15  ;;  %v4828_v28 = vmul.f32 %v13149_v57, %v4803_v7  ;;  %v13485_v35 = vpop.f32.mrf.mxu1  ;;  %v17324_v0 = vld [vmem:[#allocation274_spill] sm:$0xff] }
 0x6b2   : > { %v1683_v59 = vmul.f32 %v7218_v1, %v1675_v4  ;;  %v1684_v12 = vmul.f32 %v7220_v27, %v1676_v16  ;;  %v4890_v53 = vsel %vm4889_vm15, %v17325_v33, %v17324_v0  ;;  %v13492_v14 = vpop.permute.xlu1 %3945  ;;  %v4712_v3 = vadd.f32 %v4696_v11, %v13287_v31  ;;  %v17328_v4 = vld [vmem:[#allocation269_spill] sm:$0xff] }
 0x6b3   : > { %v4894_v57 = vsel %vm4889_vm15, %v4866_v62, %v17325_v33  ;;  %v4902_v1 = vsel %vm4889_vm15, %v17324_v0, %v4858_v54  ;;  %v4843_v5 = vadd.f32 %v4827_v9, %v4711_v50 }
 0x6b4   : > { %v4844_v36 = vadd.f32 %v4828_v28, %v4712_v3  ;;  %v1691_v16 = vmul.f32 %v1683_v59, %v17328_v4  ;;  %v1582_v33 = vpop.f32.mrf.mxu0 }
 0x6b7   : > { %4607 = vrot.lane.b32.xlu2 %v17268_v13, %s7383_s20  ;;  %v4898_v13 = vsel %vm4889_vm15, %v4858_v54, %v4866_v62  ;;  %v17329_v54 = vld [vmem:[#allocation282_spill] sm:$0xff] }
 0x6b8   : > { %v1692_v8 = vmul.f32 %v1684_v12, %v17329_v54  ;;  %v17331_v12 = vld [vmem:[#allocation60_spill] sm:$0xff] }
 0x6b9   : > { %v4915_v27 = vpop.permute.xlu2 %4914  ;;  %v1605_v50 = vpop.f32.mrf.mxu1 }
 0x6ba   : > { %v4932_v18 = vmul.f32 %v4915_v27, %v4898_v13  ;;  %v4933_v2 = vmul.f32 %v4915_v27, %v4894_v57  ;;  %v4934_v48 = vmul.f32 %v4915_v27, %v4890_v53  ;;  %v4935_v22 = vmul.f32 %v4915_v27, %v4902_v1  ;;  %v13521_v59 = vpop.permute.xlu1 %3943  ;;  %v17332_v57 = vld [vmem:[#allocation63_spill] sm:$0xff] }
 0x6bc   : > { %v13504_v31 = vmul.f32 %v13311_v55, %v4932_v18  ;;  %v13507_v15 = vmul.f32 %v13313_v21, %v4933_v2  ;;  %v4959_v7 = vmul.f32 %v13298_v40, %v4934_v48  ;;  %v4960_v62 = vmul.f32 %v13300_v52, %v4935_v22  ;;  %v1585_v18 = vpop.f32.mrf.mxu0  ;;  %v17334_v48 = vld [vmem:[#allocation54_spill] sm:$0xff]  ;;  %v17383_v21 = vld [vmem:[#allocation12_spill] sm:$0xff] }
 0x6be   : > { %17326 = vst [vmem:[#allocation295_spill] sm:$0xff] %v13504_v31  ;;  %v4975_v11 = vadd.f32 %v4959_v7, %v4843_v5  ;;  %v4976_v0 = vadd.f32 %v4960_v62, %v4844_v36  ;;  %v17335_v5 = vld [vmem:[#allocation57_spill] sm:$0xff]  ;;  %v1586_v62 = vadd.f32 1e-06, %v1585_v18 }
 0x6bf   : > { %17327 = vst [vmem:[#allocation5_spill] sm:$0xff] %v13507_v15  ;;  %4605 = vrot.lane.b32.xlu2 %v17279_v45, %s7383_s20  ;;  %v17371_v15 = vld [vmem:[#allocation56_spill] sm:$0xff]  ;;  %v17372_v31 = vld [vmem:[#allocation181_spill] sm:$0xff] }
 0x6c0   : > { %v4995_v9 = vadd.f32 %v4975_v11, %v1691_v16  ;;  %v4996_v28 = vadd.f32 %v4976_v0, %v1692_v8  ;;  %v1462_v8 = vadd.f32 1e-06, %v1461_v60  ;;  %v1583_v11 = vadd.f32 1e-06, %v1582_v33  ;;  %v13556_v60 = vld [vmem:[%s15135_s1 + $0x88] sm:$0xff] }
 0x6c1   : > { %v13515_v53 = vpop.permute.xlu2 %5021  ;;  %v1608_v2 = vpop.f32.mrf.mxu1  ;;  %7221 = vrcp.f32 %v1586_v62  ;;  %17341 = vst [vmem:[#allocation232_spill] sm:$0xff] %v13556_v60 }
 0x6c2   : > { %17330 = vst [vmem:[#allocation87_spill] sm:$0xff] %v13515_v53  ;;  %v5039_v40 = vadd.f32 %v13515_v53, %v13434_v58  ;;  %v5040_v52 = vadd.f32 %v13515_v53, %v13436_v41  ;;  %v5031_v27 = vadd.f32 %v13418_v20, %v4995_v9  ;;  %v5032_v41 = vadd.f32 %v13418_v20, %v4996_v28  ;;  %v13535_v7 = vpop.permute.xlu1 %3941  ;;  %v17369_v20 = vld [vmem:[#allocation126_spill] sm:$0xff]  ;;  %v17384_v53 = vld [vmem:[#allocation104_spill] sm:$0xff] }
 0x6c3   : > { %v1609_v54 = vadd.f32 1e-06, %v1608_v2  ;;  %v1606_v9 = vadd.f32 1e-06, %v1605_v50  ;;  %v1485_v28 = vadd.f32 1e-06, %v13485_v35 }
 0x6c4   : > { %v5055_v3 = vmul.f32 %v5039_v40, %v17331_v12  ;;  %v5056_v13 = vmul.f32 %v5040_v52, %v17332_v57 }
 0x6c5   : > { %7223 = vrcp.f32 %v1609_v54 }
 0x6c6   : > { %5172 = vmatpush.msra.mxu2 %v5055_v3  ;;  %5201 = vmatpush.msra.mxu3 %v5056_v13  ;;  %7225 = vrcp.f32 %v1462_v8 }
 0x6c7   : > { %4603 = vrot.lane.b32.xlu2 %v17283_v49, %s7383_s20  ;;  %v17336_v49 = vld [vmem:[#allocation48_spill] sm:$0xff]  ;;  %7227 = vrcp.f32 %v1583_v11  ;;  %v7222_v40 = vpop.eup %7221 }
 0x6c8   : > { %v5047_v4 = vmul.f32 %v5031_v27, %v17336_v49  ;;  %7229 = vrcp.f32 %v1606_v9  ;;  %v1709_v3 = vmul.f32 %v7222_v40, %v1586_v62  ;;  %v13586_v27 = vld [vmem:[%s15135_s1 + $0x90] sm:$0xff]  ;;  %v17354_v49 = vld [vmem:[#allocation193_spill] sm:$0xff] }
 0x6c9   : > { %v13527_v45 = vpop.permute.xlu2 %5016  ;;  %7231 = vrcp.f32 %v1485_v28  ;;  %17349 = vst [vmem:[#allocation101_spill] sm:$0xff] %v13586_v27 }
 0x6ca   : > { %17333 = vst [vmem:[#allocation298_spill] sm:$0xff] %v13527_v45  ;;  %v5035_v1 = vadd.f32 %v13527_v45, %v4999_v44  ;;  %v5036_v58 = vadd.f32 %v13527_v45, %v5000_v56  ;;  %v17337_v44 = vld [vmem:[#allocation51_spill] sm:$0xff]  ;;  %v13542_v56 = vld [vmem:[%s15135_s1 + $0x80] sm:$0xff]  ;;  %v13558_v33 = vpop.permute.xlu1 %4343 }
 0x6cb   : > { %v5048_v16 = vmul.f32 %v5032_v41, %v17337_v44  ;;  %17338 = vst [vmem:[#allocation286_spill] sm:$0xff] %v13542_v56  ;;  %v7224_v52 = vpop.eup %7223 }
 0x6cc   : > { %v5051_v22 = vmul.f32 %v5035_v1, %v17334_v48  ;;  %v5052_v36 = vmul.f32 %v5036_v58, %v17335_v5  ;;  %v13568_v35 = vpop.eup %7225  ;;  %v1710_v13 = vmul.f32 %v7224_v52, %v1609_v54  ;;  %v13578_v1 = vadd.f32 1e-06, %v13452_v30 }
 0x6cd   : > { %17344 = vst [vmem:[#allocation224_spill] sm:$0xff] %v13568_v35  ;;  %v13570_v12 = vpop.eup %7227  ;;  %v13581_v58 = vmul.f32 %v13568_v35, %v1462_v8  ;;  %v1717_v48 = vsub.f32 2.0, %v1709_v3  ;;  %v3977_v30 = vsel %vm3965_vm4, %v17193_v51, %v13464_v17  ;;  %v3973_v5 = vsel %vm3965_vm4, %v13464_v17, %v17209_v39 }
 0x6ce   : > { %5173 = vmatpush.msra.mxu2 %v5051_v22  ;;  %5202 = vmatpush.msra.mxu3 %v5052_v36  ;;  %17345 = vst [vmem:[#allocation206_spill] sm:$0xff] %v13570_v12  ;;  %v13572_v57 = vpop.eup %7229  ;;  %v13591_v18 = vmul.f32 %v13570_v12, %v1583_v11  ;;  %v1718_v22 = vsub.f32 2.0, %v1710_v13  ;;  %v17353_v36 = vld [vmem:[#allocation149_spill] sm:$0xff]  ;;  %7233 = vrcp.f32 %v13578_v1  ;;  %v13614_v51 = vadd.f32 1e-06, %v13456_v46 }
 0x6cf   : > { %4601 = vrot.lane.b32.xlu2 %v17287_v63, %s7383_s20  ;;  %17346 = vst [vmem:[#allocation20_spill] sm:$0xff] %v13572_v57  ;;  %v13588_v41 = vpop.eup %7231  ;;  %v13594_v2 = vmul.f32 %v13572_v57, %v1606_v9  ;;  %v3972_v62 = vsel %vm3965_vm4, %v13492_v14, %v17353_v36  ;;  %v7330_v46 = vld [vmem:[%s15139_s5 + $0x41] ss:$8 sm:$0xf]  ;;  %v4020_v54 = vmul.f32 %v17198_v42, %v3977_v30 }
 0x6d0   : > { %5174 = vmatpush.msra.mxu2 %v5047_v4  ;;  %5203 = vmatpush.msra.mxu3 %v5048_v16  ;;  %17347 = vst [vmem:[#allocation220_spill] sm:$0xff] %v13578_v1  ;;  %v3976_v4 = vsel %vm3965_vm4, %v17354_v49, %v13492_v14  ;;  %v13626_v17 = vmul.f32 %v13588_v41, %v1485_v28  ;;  %v13631_v14 = vperm.slane %v7330_v46, 0  ;;  %v13634_v8 = vperm.slane %v7330_v46, 1  ;;  %v17359_v9 = vld [vmem:[#allocation242_spill] sm:$0xff]  ;;  %v17364_v46 = vld [vmem:[#allocation40_spill] sm:$0xff] }
 0x6d1   : > { %v13546_v0 = vpop.permute.xlu2 %3815  ;;  %6964 = vmatmul.msk.f32.vlgmr.msra.gmra.mxu2 %vm17339_vm1, %v13542_v56  ;;  %6968 = vmatmul.msk.f32.vlgmr.msra.gmra.mxu3 %vm17340_vm0, %v13542_v56  ;;  %17348 = vst [vmem:[#allocation27_spill] sm:$0xff] %v13581_v58  ;;  %v4021_v11 = vmul.f32 %v17198_v42, %v3973_v5  ;;  %v4016_v3 = vmul.f32 %v17359_v9, %v3976_v4  ;;  %v5061_v30 = vld [vmem:[%s15140_s6 + $0x40] sm:$0xff]  ;;  %vm17381_vm1 = vmmov %vm17208_vm10  ;;  %v17387_v58 = vld [vmem:[#allocation204_spill] sm:$0xff] }
 0x6d2   : > { %17350 = vst [vmem:[#allocation100_spill] sm:$0xff] %v13588_v41  ;;  %v13616_v44 = vpop.permute.xlu1 %4341  ;;  %v4017_v13 = vmul.f32 %v17359_v9, %v3972_v62  ;;  %v13641_v36 = vmul.f32 %v7222_v40, %v1717_v48  ;;  %v13643_v49 = vmul.f32 %v7224_v52, %v1718_v22  ;;  %v7331_v42 = vld [vmem:[%s15139_s5 + $0x42] ss:$8 sm:$0xf]  ;;  %v13664_v22 = vmul.f32 %v13631_v14, %v4020_v54 }
 0x6d3   : > { %17351 = vst [vmem:[#allocation29_spill] sm:$0xff] %v13591_v18  ;;  %v13651_v5 = vperm.slane %v7331_v42, 0  ;;  %v13653_v4 = vperm.slane %v7331_v42, 1  ;;  %v17362_v62 = vld [vmem:[#allocation275_spill] sm:$0xff]  ;;  %v17363_v52 = vld [vmem:[#allocation116_spill] sm:$0xff]  ;;  %v3974_v9 = vsel %vm3965_vm4, %v17364_v46, %v13535_v7  ;;  %v13688_v46 = vmul.f32 %v13631_v14, %v4016_v3  ;;  %v17370_v3 = vld [vmem:[#allocation42_spill] sm:$0xff] }
 0x6d4   : > { %17352 = vst [vmem:[#allocation95_spill] sm:$0xff] %v13594_v2  ;;  %v4105_v40 = vsel %vm4097_vm14, %v17362_v62, %v17212_v25  ;;  %v4109_v48 = vsel %vm4097_vm14, %v17363_v52, %v17362_v62  ;;  %v7332_v42 = vld [vmem:[%s15139_s5 + $0x44] ss:$8 sm:$0xf]  ;;  %v13682_v54 = vpop.eup %7233  ;;  %v13685_v52 = vmul.f32 %v13634_v8, %v4021_v11  ;;  %v13691_v28 = vmul.f32 %v13634_v8, %v4017_v13 }
 0x6d5   : > { %17355 = vst [vmem:[#allocation146_spill] sm:$0xff] %v13614_v51  ;;  %v13673_v39 = vperm.slane %v7332_v42, 0  ;;  %v13675_v25 = vperm.slane %v7332_v42, 1  ;;  %v13680_v62 = vld [vmem:[%s15135_s1 + $0x98] sm:$0xff]  ;;  %v3971_v11 = vsel %vm3965_vm4, %v13521_v59, %v17369_v20  ;;  %v3975_v13 = vsel %vm3965_vm4, %v17370_v3, %v13521_v59  ;;  %v17385_v41 = vld [vmem:[#allocation74_spill] sm:$0xff]  ;;  %v17388_v51 = vld [vmem:[#allocation196_spill] sm:$0xff] }
 0x6d6   : > { %17358 = vst [vmem:[#allocation264_spill] sm:$0xff] %v13626_v17  ;;  %v7333_v20 = vld [vmem:[%s15139_s5 + $0x45] ss:$8 sm:$0xf]  ;;  %v4012_v55 = vmul.f32 %v17383_v21, %v3975_v13 }
 0x6d7   : > { %4733 = vrot.lane.b32.xlu2 %v17287_v63, %s7384_s17  ;;  %v5064_v63 = vld [vmem:[%s15140_s6 + $0x58] sm:$0xff]  ;;  %17360 = vst [vmem:[#allocation271_spill] sm:$0xff] %v13641_v36  ;;  %v17413_v2 = vld [vmem:[#allocation208_spill] sm:$0xff] }
 0x6d8   : > { %17361 = vst [vmem:[#allocation162_spill] sm:$0xff] %v13643_v49  ;;  %v17377_v59 = vld [vmem:[#allocation189_spill] sm:$0xff] }
 0x6d9   : > { %v13562_v50 = vpop.permute.xlu2 %3813  ;;  %6965 = vmatmul.msk.f32.gmra.mxu2 %vm17342_vm5, %v13556_v60  ;;  %6969 = vmatmul.msk.f32.gmra.mxu3 %vm17343_vm3, %v13556_v60  ;;  %17365 = vst [vmem:[#allocation221_spill] sm:$0xff] %v13680_v62  ;;  %v17378_v3 = vld [vmem:[#allocation241_spill] sm:$0xff] }
 0x6da   : > { %17366 = vst [vmem:[#allocation289_spill] sm:$0xff] %v13682_v54  ;;  %v4340_v34 = vpop.permute.xlu1 %4339 }
 0x6df   : > { %5086 = vperm.xlu2 %7076, %v5064_v63   ;;  %v17367_v63 = vld [vmem:[#allocation80_spill] sm:$0xff] }
 0x6e0   : > { %v3970_v42 = vsel %vm3965_vm4, %v13535_v7, %v17367_v63  ;;  %v4104_v7 = vsel %vm4097_vm14, %v17372_v31, %v17371_v15  ;;  %v17373_v63 = vld [vmem:[#allocation36_spill] sm:$0xff]  ;;  %vm17375_vm4 = vmmov %vm17340_vm0 }
 0x6e1   : > { %v13618_v16 = vpop.permute.xlu2 %3811  ;;  %6966 = vmatmul.msk.f32.gmra.mxu2 %vm17356_vm6, %v13586_v27  ;;  %6970 = vmatmul.msk.f32.gmra.mxu3 %vm17357_vm12, %v13586_v27  ;;  %v17368_v27 = vld [vmem:[#allocation161_spill] sm:$0xff]  ;;  %vm17390_vm0 = vmmov %vm17381_vm1 }
 0x6e2   : > { %v4152_v60 = vmul.f32 %v17368_v27, %v4109_v48  ;;  %v4153_v56 = vmul.f32 %v17368_v27, %v4105_v40  ;;  %v4108_v27 = vsel %vm4097_vm14, %v17373_v63, %v17372_v31  ;;  %v13719_v48 = vperm.slane %v7333_v20, 0  ;;  %vm17392_vm5 = vmmov %vm17390_vm0 }
 0x6e3   : > { %v4107_v31 = vsel %vm4097_vm14, %v17378_v3, %v17377_v59  ;;  %v4148_v35 = vmul.f32 %v17385_v41, %v4108_v27  ;;  %vm17402_vm3 = vmmov %vm17390_vm0 }
 0x6e4   : > { %v13764_v13 = vmul.f32 %v13651_v5, %v4152_v60  ;;  %v13777_v60 = vmul.f32 %v13631_v14, %v4012_v55  ;;  %vm17426_vm6 = vmmov %vm17390_vm0 }
 0x6e5   : > { %vm17528_vm12 = vmmov %vm17375_vm4 }
 0x6e7   : > { %5071 = vperm.xlu2 %7076, %v5061_v30   ;;  %v17374_v30 = vld [vmem:[#allocation266_spill] sm:$0xff] }
 0x6e8   : > { %v4008_v40 = vmul.f32 %v17374_v30, %v3974_v9  ;;  %v4009_v15 = vmul.f32 %v17374_v30, %v3970_v42  ;;  %v17379_v9 = vld [vmem:[#allocation135_spill] sm:$0xff]  ;;  %v17382_v30 = vld [vmem:[#allocation197_spill] sm:$0xff] }
 0x6e9   : > { %v3810_v61 = vpop.permute.xlu2 %3809  ;;  %6967 = vmatmul.msk.f32.gmra.mxu2 %vm17375_vm4, %v13680_v62  ;;  %6971 = vmatmul.msk.f32.gmra.mxu3 %vm17376_vm11, %v13680_v62  ;;  %v7334_v62 = vld [vmem:[%s15139_s5 + $0x40] ss:$8 sm:$0xf]  ;;  %vm17530_vm11 = vmmov %vm17375_vm4 }
 0x6ea   : > { %v3838_v63 = vsel %vm17208_vm10, %v3810_v61, %v17379_v9  ;;  %v3842_v45 = vsel %vm17381_vm1, %v17380_v26, %v3810_v61  ;;  %v13739_v54 = vperm.slane %v7334_v62, 0  ;;  %v13741_v42 = vperm.slane %v7334_v62, 1  ;;  %v5224_v62 = vld [vmem:[%s15140_s6 + $0x98] sm:$0xff]  ;;  %vm17531_vm10 = vmmov %vm17375_vm4 }
 0x6eb   : > { %v3876_v1 = vmul.f32 %v17382_v30, %v3842_v45  ;;  %v3877_v3 = vmul.f32 %v17382_v30, %v3838_v63  ;;  %v4013_v9 = vmul.f32 %v17383_v21, %v3971_v11  ;;  %v4103_v61 = vsel %vm4097_vm14, %v17377_v59, %v17384_v53  ;;  %v17386_v59 = vld [vmem:[#allocation2_spill] sm:$0xff]  ;;  %vm17532_vm1 = vmmov %vm17375_vm4 }
 0x6ec   : > { %v13751_v26 = vperm.slane %v7333_v20, 1  ;;  %v4373_v45 = vsel %vm4361_vm2, %v17239_v19, %v13558_v33  ;;  %v4149_v53 = vmul.f32 %v17385_v41, %v4104_v7  ;;  %v4033_v20 = vmul.f32 %v13631_v14, %v4008_v40 }
 0x6ed   : > { %v3901_v21 = vmul.f32 %v13739_v54, %v3876_v1  ;;  %v3902_v11 = vmul.f32 %v13741_v42, %v3877_v3  ;;  %v4144_v63 = vmul.f32 %v17386_v59, %v4107_v31  ;;  %v4034_v27 = vmul.f32 %v13634_v8, %v4009_v15  ;;  %v17391_v31 = vld [vmem:[#allocation105_spill] sm:$0xff] }
 0x6ee   : > { %v4145_v30 = vmul.f32 %v17386_v59, %v4103_v61  ;;  %v13774_v3 = vmul.f32 %v13653_v4, %v4153_v56  ;;  %v13780_v41 = vmul.f32 %v13634_v8, %v4013_v9  ;;  %v4416_v7 = vmul.f32 %v17242_v37, %v4373_v45  ;;  %v17389_v8 = vld [vmem:[#allocation138_spill] sm:$0xff]  ;;  %v17393_v9 = vld [vmem:[#allocation216_spill] sm:$0xff]  ;;  %v17394_v61 = vld [vmem:[#allocation293_spill] sm:$0xff] }
 0x6ef   : > { %5597 = vperm.xlu2 %7076, %v5224_v62   ;;  %v3917_v19 = vadd.f32 %v3901_v21, %v17387_v58  ;;  %v3918_v1 = vadd.f32 %v3902_v11, %v17388_v51  ;;  %v13784_v40 = vmul.f32 %v13651_v5, %v4148_v35  ;;  %v4369_v58 = vsel %vm4361_vm2, %v13558_v33, %v17246_v24  ;;  %v17395_v45 = vld [vmem:[#allocation132_spill] sm:$0xff] }
 0x6f0   : > { %v13797_v55 = vmul.f32 %v13653_v4, %v4149_v53  ;;  %v13800_v14 = vmul.f32 %v13651_v5, %v4144_v63  ;;  %v3839_v35 = vsel %vm17390_vm0, %v13618_v16, %v17389_v8  ;;  %v3843_v24 = vsel %vm17392_vm5, %v17391_v31, %v13618_v16  ;;  %v17404_v8 = vld [vmem:[#allocation114_spill] sm:$0xff] }
 0x6f1   : > { %v13790_v51 = vadd.f32 %v4033_v20, %v3917_v19  ;;  %v13792_v56 = vadd.f32 %v4034_v27, %v3918_v1  ;;  %v13794_v15 = vpop.permute.xlu2 %4211  ;;  %v13811_v33 = vmul.f32 %v13653_v4, %v4145_v30  ;;  %v4102_v62 = vsel %vm4097_vm14, %v17394_v61, %v17393_v9  ;;  %v17397_v20 = vld [vmem:[#allocation299_spill] sm:$0xff]  ;;  %v5217_v27 = vld [vmem:[%s15140_s6 + $0x60] sm:$0xff]  ;;  %v4338_v30 = vpop.permute.xlu1 %4337  ;;  %v17401_v1 = vld [vmem:[#allocation133_spill] sm:$0xff] }
 0x6f2   : > { %v4106_v21 = vsel %vm4097_vm14, %v17395_v45, %v17394_v61  ;;  %v13822_v11 = vperm.slane %v13126_v43, 0  ;;  %v4417_v53 = vmul.f32 %v17242_v37, %v4369_v58  ;;  %v13826_v16 = vmul.f32 %v13673_v39, %v4416_v7  ;;  %v17399_v19 = vld [vmem:[#allocation302_spill] sm:$0xff]  ;;  %vm17400_vm14 = vmmov %vm17390_vm0  ;;  %v17405_v61 = vld [vmem:[#allocation89_spill] sm:$0xff] }
 0x6f3   : > { %v4505_v59 = vsel %vm4493_vm13, %v17250_v32, %v17397_v20  ;;  %v13833_v63 = vperm.slane %v13126_v43, 1  ;;  %v3841_v37 = vsel %vm17400_vm14, %v13546_v0, %v17399_v19  ;;  %v3845_v7 = vsel %vm17402_vm3, %v17401_v1, %v13546_v0  ;;  %v17403_v58 = vld [vmem:[#allocation310_spill] sm:$0xff]  ;;  %v17406_v0 = vld [vmem:[#allocation143_spill] sm:$0xff]  ;;  %v17408_v1 = vld [vmem:[#allocation109_spill] sm:$0xff] }
 0x6f4   : > { %17396 = vst [vmem:[#allocation130_spill] sm:$0xff] %v13822_v11  ;;  %v3880_v32 = vmul.f32 %v17403_v58, %v3843_v24  ;;  %v3881_v43 = vmul.f32 %v17403_v58, %v3839_v35  ;;  %v4140_v31 = vmul.f32 %v17404_v8, %v4106_v21  ;;  %v4141_v9 = vmul.f32 %v17404_v8, %v4102_v62  ;;  %v17407_v21 = vld [vmem:[#allocation125_spill] sm:$0xff] }
 0x6f5   : > { %17398 = vst [vmem:[#allocation311_spill] sm:$0xff] %v13833_v63  ;;  %v4368_v45 = vsel %vm4361_vm2, %v13616_v44, %v17405_v61  ;;  %v4501_v19 = vsel %vm4493_vm13, %v17397_v20, %v17257_v29  ;;  %v4372_v24 = vsel %vm4361_vm2, %v17406_v0, %v13616_v44  ;;  %v4548_v35 = vmul.f32 %v17256_v6, %v4505_v59  ;;  %v17409_v8 = vld [vmem:[#allocation61_spill] sm:$0xff]  ;;  %v17411_v44 = vld [vmem:[#allocation308_spill] sm:$0xff] }
 0x6f6   : > { %v4367_v62 = vsel %vm4361_vm2, %v4340_v34, %v17407_v21  ;;  %v4371_v58 = vsel %vm4361_vm2, %v17408_v1, %v4340_v34  ;;  %v4366_v29 = vsel %vm4361_vm2, %v4338_v30, %v17409_v8  ;;  %v17410_v20 = vld [vmem:[#allocation229_spill] sm:$0xff]  ;;  %v3888_v0 = vmul.f32 %v17411_v44, %v3845_v7  ;;  %v17412_v21 = vld [vmem:[#allocation236_spill] sm:$0xff] }
 0x6f7   : > { %5546 = vperm.xlu2 %7076, %v5217_v27   ;;  %v4370_v61 = vsel %vm4361_vm2, %v17410_v20, %v4338_v30  ;;  %v3889_v59 = vmul.f32 %v17411_v44, %v3841_v37  ;;  %v4549_v57 = vmul.f32 %v17256_v6, %v4501_v19  ;;  %v4503_v34 = vsel %vm4493_vm13, %v17413_v2, %v17412_v21  ;;  %v17414_v37 = vld [vmem:[#allocation7_spill] sm:$0xff]  ;;  %v17415_v2 = vld [vmem:[#allocation17_spill] sm:$0xff]  ;;  %v17417_v21 = vld [vmem:[#allocation94_spill] sm:$0xff] }
 0x6f8   : > { %v3905_v27 = vmul.f32 %v13739_v54, %v3880_v32  ;;  %v3906_v1 = vmul.f32 %v13741_v42, %v3881_v43  ;;  %v13887_v17 = vmul.f32 %v13675_v25, %v4417_v53  ;;  %v13890_v30 = vmul.f32 %v13651_v5, %v4140_v31  ;;  %v17416_v32 = vld [vmem:[#allocation122_spill] sm:$0xff]  ;;  %vm17424_vm2 = vmmov %vm17390_vm0 }
 0x6f9   : > { %v13884_v8 = vpop.permute.xlu2 %4209  ;;  %v4408_v7 = vmul.f32 %v17414_v37, %v4371_v58  ;;  %v4409_v6 = vmul.f32 %v17414_v37, %v4367_v62  ;;  %v13895_v19 = vmul.f32 %v13653_v4, %v4141_v9  ;;  %v13898_v20 = vmul.f32 %v17415_v2, %v4372_v24  ;;  %v5244_v4 = vld [vmem:[%s15140_s6 + $0x138] sm:$0xff]  ;;  %v17418_v62 = vld [vmem:[#allocation110_spill] sm:$0xff]  ;;  %v17420_v37 = vld [vmem:[#allocation140_spill] sm:$0xff] }
 0x6fa   : > { %v4404_v43 = vmul.f32 %v17416_v32, %v4370_v61  ;;  %v4405_v44 = vmul.f32 %v17416_v32, %v4366_v29  ;;  %v13903_v53 = vmul.f32 %v17415_v2, %v4368_v45  ;;  %v4540_v5 = vmul.f32 %v17417_v21, %v4503_v34  ;;  %v17419_v45 = vld [vmem:[#allocation112_spill] sm:$0xff]  ;;  %vm17533_vm0 = vmmov %vm17532_vm1 }
 0x6fb   : > { %v3913_v31 = vmul.f32 %v13739_v54, %v3888_v0  ;;  %v3914_v58 = vmul.f32 %v13741_v42, %v3889_v59  ;;  %v13912_v9 = vmul.f32 %v13719_v48, %v4548_v35  ;;  %v13915_v24 = vmul.f32 %v13751_v26, %v4549_v57  ;;  %v17421_v59 = vld [vmem:[#allocation107_spill] sm:$0xff]  ;;  %v17422_v35 = vld [vmem:[#allocation165_spill] sm:$0xff]  ;;  %v17425_v21 = vld [vmem:[#allocation312_spill] sm:$0xff] }
 0x6fc   : > { %v3921_v29 = vadd.f32 %v3905_v27, %v17418_v62  ;;  %v3922_v61 = vadd.f32 %v3906_v1, %v17419_v45  ;;  %v4433_v34 = vmul.f32 %v13673_v39, %v4408_v7  ;;  %v4434_v0 = vmul.f32 %v13675_v25, %v4409_v6  ;;  %v4740_v7 = vpop.permute.xlu1 %4739  ;;  %v17423_v6 = vld [vmem:[#allocation82_spill] sm:$0xff]  ;;  %vm17534_vm5 = vmmov %vm17533_vm0 }
 0x6fd   : > { %v13925_v2 = vsel %vm4493_vm13, %v17421_v59, %v17420_v37  ;;  %v13931_v57 = vsel %vm4493_vm13, %v17422_v35, %v17421_v59  ;;  %v13934_v27 = vmul.f32 %v13673_v39, %v4404_v43  ;;  %v13937_v1 = vmul.f32 %v13675_v25, %v4405_v44  ;;  %v17427_v37 = vld [vmem:[#allocation141_spill] sm:$0xff]  ;;  %v17428_v59 = vld [vmem:[#allocation270_spill] sm:$0xff]  ;;  %vm17535_vm14 = vmmov %vm17533_vm0 }
 0x6fe   : > { %v3840_v32 = vsel %vm17424_vm2, %v13562_v50, %v17423_v6  ;;  %v3844_v62 = vsel %vm17426_vm6, %v17425_v21, %v13562_v50  ;;  %v4565_v45 = vmul.f32 %v13719_v48, %v4540_v5  ;;  %v4566_v43 = vmul.f32 %v13751_v26, %v17427_v37  ;;  %v17429_v35 = vld [vmem:[#allocation265_spill] sm:$0xff]  ;;  %v17430_v6 = vld [vmem:[#allocation223_spill] sm:$0xff]  ;;  %v17431_v50 = vld [vmem:[#allocation176_spill] sm:$0xff] }
 0x6ff   : > { %5661 = vperm.xlu2 %7076, %v5244_v4   ;;  %v3929_v44 = vadd.f32 %v3913_v31, %v17428_v59  ;;  %v3930_v12 = vadd.f32 %v3914_v58, %v17429_v35  ;;  %v4053_v18 = vadd.f32 %v13777_v60, %v3921_v29  ;;  %v4054_v49 = vadd.f32 %v13780_v41, %v3922_v61  ;;  %v17432_v21 = vld [vmem:[#allocation115_spill] sm:$0xff]  ;;  %v17434_v41 = vld [vmem:[#allocation14_spill] sm:$0xff]  ;;  %vm17536_vm3 = vmmov %vm17533_vm0 }
 0x700   : > { %v4237_v36 = vsel %vm4229_vm8, %v13794_v15, %v17430_v6  ;;  %v4241_v5 = vsel %vm4229_vm8, %v17431_v50, %v13794_v15  ;;  %v3884_v37 = vmul.f32 %v17432_v21, %v3844_v62  ;;  %v3885_v31 = vmul.f32 %v17432_v21, %v3840_v32  ;;  %v17433_v58 = vld [vmem:[#allocation91_spill] sm:$0xff]  ;;  %v17436_v21 = vld [vmem:[#allocation8_spill] sm:$0xff]  ;;  %vm17537_vm2 = vmmov %vm17533_vm0 }
 0x701   : > { %v4208_v4 = vpop.permute.xlu2 %4207  ;;  %v7335_v61 = vld [vmem:[%s15139_s5 + $0x43] ss:$8 sm:$0xf]  ;;  %v4061_v32 = vadd.f32 %v13664_v22, %v3929_v44  ;;  %v4062_v50 = vadd.f32 %v13685_v52, %v3930_v12  ;;  %v4285_v63 = vmul.f32 %v17436_v21, %v4237_v36  ;;  %v4765_v22 = vsel %vm4757_vm7, %v4740_v7, %v12865_v10  ;;  %vm17538_vm6 = vmmov %vm17533_vm0 }
 0x702   : > { %v4235_v60 = vsel %vm4229_vm8, %v4208_v4, %v17433_v58  ;;  %v4239_v29 = vsel %vm4229_vm8, %v17434_v41, %v4208_v4  ;;  %v4289_v59 = vperm.slane %v7335_v61, 0  ;;  %v4290_v35 = vperm.slane %v7335_v61, 1  ;;  %v17435_v15 = vld [vmem:[#allocation303_spill] sm:$0xff]  ;;  %v5241_v4 = vld [vmem:[%s15140_s6 + $0x120] sm:$0xff] }
 0x703   : > { %v4276_v6 = vmul.f32 %v17435_v15, %v4239_v29  ;;  %v4277_v62 = vmul.f32 %v17435_v15, %v4235_v60  ;;  %v4284_v58 = vmul.f32 %v17436_v21, %v4241_v5  ;;  %v4185_v41 = vadd.f32 %v13800_v14, %v4053_v18  ;;  %v17437_v44 = vld [vmem:[#allocation246_spill] sm:$0xff]  ;;  %v17444_v21 = vld [vmem:[#allocation45_spill] sm:$0xff] }
 0x704   : > { %v4186_v61 = vadd.f32 %v13811_v33, %v4054_v49  ;;  %v4498_v12 = vsel %vm4493_vm13, %v13260_v38, %v17263_v23  ;;  %v3909_v36 = vmul.f32 %v13739_v54, %v3884_v37  ;;  %v3910_v52 = vmul.f32 %v13741_v42, %v3885_v31  ;;  %v17438_v49 = vld [vmem:[#allocation18_spill] sm:$0xff]  ;;  %v13999_v23 = vpop.permute.xlu1 %4737  ;;  %v17439_v38 = vld [vmem:[#allocation49_spill] sm:$0xff]  ;;  %v17440_v42 = vld [vmem:[#allocation252_spill] sm:$0xff] }
 0x705   : > { %v4301_v11 = vmul.f32 %v4289_v59, %v4276_v6  ;;  %v4302_v29 = vmul.f32 %v4290_v35, %v4277_v62  ;;  %v4769_v18 = vsel %vm4757_vm7, %v17437_v44, %v4740_v7  ;;  %v4537_v14 = vmul.f32 %v17438_v49, %v4498_v12  ;;  %vm17521_vm13 = vmmov %vm17375_vm4 }
 0x706   : > { %v4193_v10 = vadd.f32 %v13764_v13, %v4061_v32  ;;  %v4194_v60 = vadd.f32 %v13774_v3, %v4062_v50  ;;  %v4309_v15 = vmul.f32 %v4289_v59, %v4284_v58  ;;  %v4310_v6 = vmul.f32 %v4290_v35, %v4285_v63  ;;  %v17441_v13 = vld [vmem:[#allocation55_spill] sm:$0xff]  ;;  %v17442_v3 = vld [vmem:[#allocation68_spill] sm:$0xff] }
 0x707   : > { %5646 = vperm.xlu2 %7076, %v5241_v4   ;;  %v4317_v33 = vadd.f32 %v4301_v11, %v4185_v41  ;;  %v4318_v5 = vadd.f32 %v4302_v29, %v4186_v61  ;;  %v4236_v54 = vsel %vm4229_vm8, %v13884_v8, %v17439_v38  ;;  %v4240_v7 = vsel %vm4229_vm8, %v17440_v42, %v13884_v8  ;;  %v17443_v63 = vld [vmem:[#allocation304_spill] sm:$0xff]  ;;  %v17445_v4 = vld [vmem:[#allocation151_spill] sm:$0xff] }
 0x708   : > { %v3925_v62 = vadd.f32 %v3909_v36, %v17441_v13  ;;  %v3926_v32 = vadd.f32 %v3910_v52, %v17442_v3  ;;  %v5238_v36 = vld [vmem:[%s15140_s6 + $0x108] sm:$0xff]  ;;  %v4181_v52 = vadd.f32 %v13890_v30, %v13790_v51  ;;  %v4182_v44 = vadd.f32 %v13895_v19, %v13792_v56 }
 0x709   : > { %v4449_v11 = vadd.f32 %v4433_v34, %v4317_v33  ;;  %v4450_v37 = vadd.f32 %v4434_v0, %v4318_v5  ;;  %v4206_v31 = vpop.permute.xlu2 %4205  ;;  %v17446_v0 = vld [vmem:[#allocation279_spill] sm:$0xff]  ;;  %v4325_v49 = vadd.f32 %v4309_v15, %v4193_v10  ;;  %v4326_v33 = vadd.f32 %v4310_v6, %v4194_v60 }
 0x70a   : > { %v4234_v50 = vsel %vm4229_vm8, %v4206_v31, %v17443_v63  ;;  %v4238_v58 = vsel %vm4229_vm8, %v17444_v21, %v4206_v31  ;;  %v4280_v29 = vmul.f32 %v17446_v0, %v4240_v7  ;;  %v4281_v12 = vmul.f32 %v17446_v0, %v4236_v54  ;;  %v17449_v31 = vld [vmem:[#allocation195_spill] sm:$0xff]  ;;  %vm17522_vm8 = vmmov %vm17375_vm4 }
 0x70b   : > { %v4272_v41 = vmul.f32 %v17445_v4, %v4238_v58  ;;  %v4273_v61 = vmul.f32 %v17445_v4, %v4234_v50  ;;  %v14019_v8 = vadd.f32 %v4565_v45, %v4449_v11  ;;  %v14021_v34 = vadd.f32 %v4566_v43, %v4450_v37  ;;  %v17447_v43 = vld [vmem:[#allocation111_spill] sm:$0xff]  ;;  %v17448_v11 = vld [vmem:[#allocation154_spill] sm:$0xff]  ;;  %v5235_v4 = vld [vmem:[%s15140_s6 + $0xf0] sm:$0xff] }
 0x70c   : > { %v4812_v38 = vmul.f32 %v17447_v43, %v4769_v18  ;;  %v4813_v42 = vmul.f32 %v17447_v43, %v4765_v22  ;;  %v4057_v54 = vadd.f32 %v13688_v46, %v3925_v62  ;;  %v4058_v7 = vadd.f32 %v13691_v28, %v3926_v32  ;;  %v7336_v18 = vld [vmem:[%s15139_s5 + $0x46] ss:$8 sm:$0xf] }
 0x70d   : > { %v4297_v45 = vmul.f32 %v4289_v59, %v4272_v41  ;;  %v4298_v5 = vmul.f32 %v4290_v35, %v4273_v61  ;;  %v4561_v37 = vmul.f32 %v13719_v48, %v17448_v11  ;;  %v4562_v51 = vmul.f32 %v13751_v26, %v4537_v14  ;;  %v17450_v62 = vld [vmem:[#allocation309_spill] sm:$0xff]  ;;  %v17451_v32 = vld [vmem:[#allocation28_spill] sm:$0xff]  ;;  %v17460_v43 = vld [vmem:[#allocation162_spill] sm:$0xff] }
 0x70e   : > { %v4305_v19 = vmul.f32 %v4289_v59, %v4280_v29  ;;  %v4306_v10 = vmul.f32 %v4290_v35, %v4281_v12  ;;  %v14042_v60 = vperm.slane %v7336_v18, 0  ;;  %v14044_v22 = vperm.slane %v7336_v18, 1  ;;  %v17453_v12 = vld [vmem:[#allocation130_spill] sm:$0xff] }
 0x70f   : > { %5631 = vperm.xlu2 %7076, %v5238_v36   ;;  %v4313_v30 = vadd.f32 %v4297_v45, %v4181_v52  ;;  %v4314_v56 = vadd.f32 %v4298_v5, %v4182_v44  ;;  %v4457_v28 = vadd.f32 %v13826_v16, %v4325_v49  ;;  %v4458_v46 = vadd.f32 %v13887_v17, %v4326_v33  ;;  %v4736_v16 = vpop.permute.xlu1 %4735  ;;  %v17454_v52 = vld [vmem:[#allocation311_spill] sm:$0xff]  ;;  %v17455_v49 = vld [vmem:[#allocation62_spill] sm:$0xff] }
 0x710   : > { %v4189_v59 = vadd.f32 %v13784_v40, %v4057_v54  ;;  %v4190_v35 = vadd.f32 %v13797_v55, %v4058_v7  ;;  %v17452_v40 = vld [vmem:[#allocation268_spill] sm:$0xff]  ;;  %v4837_v36 = vmul.f32 %v17453_v12, %v4812_v38  ;;  %v4838_v44 = vmul.f32 %v17454_v52, %v4813_v42  ;;  %v17458_v5 = vld [vmem:[#allocation271_spill] sm:$0xff] }
 0x711   : > { %v4445_v15 = vadd.f32 %v13934_v27, %v4313_v30  ;;  %v4446_v14 = vadd.f32 %v13937_v1, %v4314_v56  ;;  %v4608_v6 = vpop.permute.xlu2 %4607  ;;  %v4544_v55 = vmul.f32 %v17452_v40, %v13931_v57  ;;  %v4545_v50 = vmul.f32 %v17452_v40, %v13925_v2  ;;  %v17461_v56 = vld [vmem:[#allocation25_spill] sm:$0xff] }
 0x712   : > { %v4633_v13 = vsel %vm4625_vm9, %v4608_v6, %v17449_v31  ;;  %v4637_v3 = vsel %vm4625_vm9, %v17450_v62, %v4608_v6  ;;  %v4321_v21 = vadd.f32 %v4305_v19, %v4189_v59  ;;  %v4322_v58 = vadd.f32 %v4306_v10, %v4190_v35  ;;  %v17462_v10 = vld [vmem:[#allocation85_spill] sm:$0xff]  ;;  %v17469_v62 = vld [vmem:[#allocation206_spill] sm:$0xff] }
 0x713   : > { %v4680_v17 = vmul.f32 %v17451_v32, %v4637_v3  ;;  %v4681_v27 = vmul.f32 %v17451_v32, %v4633_v13  ;;  %v14060_v63 = vadd.f32 %v4561_v37, %v4445_v15  ;;  %v14062_v1 = vadd.f32 %v4562_v51, %v4446_v14  ;;  %v17464_v15 = vld [vmem:[#allocation131_spill] sm:$0xff]  ;;  %v17467_v31 = vld [vmem:[#allocation29_spill] sm:$0xff]  ;;  %v17470_v32 = vld [vmem:[#allocation96_spill] sm:$0xff] }
 0x714   : > { %v4589_v41 = vadd.f32 %v13912_v9, %v4457_v28  ;;  %v4590_v61 = vadd.f32 %v13915_v24, %v4458_v46  ;;  %v4437_v57 = vmul.f32 %v13673_v39, %v13898_v20  ;;  %v4438_v2 = vmul.f32 %v13675_v25, %v13903_v53  ;;  %v17456_v24 = vld [vmem:[#allocation243_spill] sm:$0xff]  ;;  %v17457_v20 = vld [vmem:[#allocation185_spill] sm:$0xff]  ;;  %v17463_v28 = vld [vmem:[#allocation228_spill] sm:$0xff] }
 0x715   : > { %v4705_v0 = vmul.f32 %v14042_v60, %v4680_v17  ;;  %v4706_v29 = vmul.f32 %v14044_v22, %v4681_v27  ;;  %v4764_v9 = vsel %vm4757_vm7, %v13999_v23, %v17455_v49  ;;  %v4768_v33 = vsel %vm4757_vm7, %v17456_v24, %v13999_v23  ;;  %v17459_v53 = vld [vmem:[#allocation307_spill] sm:$0xff]  ;;  %v5225_v27 = vld [vmem:[%s15140_s6 + $0xa0] sm:$0xff] }
 0x716   : > { %v1733_v25 = vmul.f32 %v17458_v5, %v17457_v20  ;;  %v1734_v38 = vmul.f32 %v17460_v43, %v17459_v53  ;;  %v4453_v42 = vadd.f32 %v4437_v57, %v4321_v21  ;;  %v4454_v54 = vadd.f32 %v4438_v2, %v4322_v58  ;;  %v17472_v2 = vld [vmem:[#allocation103_spill] sm:$0xff]  ;;  %v17478_v43 = vld [vmem:[#allocation234_spill] sm:$0xff] }
 0x717   : > { %6156 = vperm.xlu2 %7076, %v5235_v4   ;;  %v4721_v45 = vadd.f32 %v4705_v0, %v4589_v41  ;;  %v4722_v39 = vadd.f32 %v4706_v29, %v4590_v61  ;;  %v4569_v7 = vmul.f32 %v13719_v48, %v4544_v55  ;;  %v4570_v11 = vmul.f32 %v13751_v26, %v4545_v50  ;;  %v17465_v48 = vld [vmem:[#allocation124_spill] sm:$0xff]  ;;  %v17466_v26 = vld [vmem:[#allocation73_spill] sm:$0xff]  ;;  %v4868_v50 = vpop.permute.xlu1 %4867  ;;  %v17475_v20 = vld [vmem:[#allocation95_spill] sm:$0xff] }
 0x718   : > { %v4808_v23 = vmul.f32 %v17461_v56, %v4768_v33  ;;  %v4809_v19 = vmul.f32 %v17461_v56, %v4764_v9  ;;  %v17468_v13 = vsub.f32 2.0, %v17467_v31  ;;  %v4767_v17 = vsel %vm4757_vm7, %v17470_v32, %v4736_v16  ;;  %v17471_v61 = vld [vmem:[#allocation264_spill] sm:$0xff]  ;;  %v17473_v9 = vld [vmem:[#allocation281_spill] sm:$0xff] }
 0x719   : > { %v4853_v37 = vadd.f32 %v4837_v36, %v4721_v45  ;;  %v4854_v51 = vadd.f32 %v4838_v44, %v4722_v39  ;;  %v4606_v30 = vpop.permute.xlu2 %4605  ;;  %v4585_v40 = vadd.f32 %v4569_v7, %v4453_v42  ;;  %v4586_v55 = vadd.f32 %v4570_v11, %v4454_v54  ;;  %v17474_v45 = vld [vmem:[#allocation142_spill] sm:$0xff]  ;;  %v17488_v31 = vld [vmem:[#allocation292_spill] sm:$0xff]  ;;  %v5228_v32 = vld [vmem:[%s15140_s6 + $0xb8] sm:$0xff] }
 0x71a   : > { %v4632_v18 = vsel %vm4625_vm9, %v4606_v30, %v17462_v10  ;;  %v4636_v46 = vsel %vm4625_vm9, %v17463_v28, %v4606_v30  ;;  %v1721_v3 = vmul.f32 %v17469_v62, %v17468_v13  ;;  %v1678_v0 = vsub.f32 2.0, %v17471_v61  ;;  %v17479_v42 = vld [vmem:[#allocation198_spill] sm:$0xff]  ;;  %v17481_v30 = vld [vmem:[#allocation64_spill] sm:$0xff]  ;;  %v17489_v62 = vld [vmem:[#allocation183_spill] sm:$0xff] }
 0x71b   : > { %v4985_v14 = vadd.f32 %v17464_v15, %v4853_v37  ;;  %v4986_v6 = vadd.f32 %v17465_v48, %v4854_v51  ;;  %v4676_v59 = vmul.f32 %v17466_v26, %v4636_v46  ;;  %v4677_v35 = vmul.f32 %v17466_v26, %v4632_v18  ;;  %v17480_v37 = vld [vmem:[#allocation65_spill] sm:$0xff]  ;;  %v17483_v18 = vld [vmem:[#allocation72_spill] sm:$0xff]  ;;  %v17486_v48 = vld [vmem:[#allocation26_spill] sm:$0xff] }
 0x71c   : > { %v4833_v29 = vmul.f32 %v17453_v12, %v4808_v23  ;;  %v4834_v57 = vmul.f32 %v17454_v52, %v4809_v19  ;;  %v4763_v36 = vsel %vm4757_vm7, %v4736_v16, %v17472_v2  ;;  %v1729_v39 = vmul.f32 %v1721_v3, %v17474_v45  ;;  %v17482_v19 = vld [vmem:[#allocation194_spill] sm:$0xff]  ;;  %v17484_v46 = vld [vmem:[#allocation296_spill] sm:$0xff]  ;;  %v17496_v45 = vld [vmem:[#allocation285_spill] sm:$0xff] }
 0x71d   : > { %v4701_v21 = vmul.f32 %v14042_v60, %v4676_v59  ;;  %v4702_v58 = vmul.f32 %v14044_v22, %v4677_v35  ;;  %v5005_v4 = vadd.f32 %v4985_v14, %v1733_v25  ;;  %v5006_v41 = vadd.f32 %v4986_v6, %v1734_v38  ;;  %v17477_v25 = vld [vmem:[#allocation20_spill] sm:$0xff]  ;;  %v17485_v14 = vld [vmem:[#allocation146_spill] sm:$0xff] }
 0x71e   : > { %v17476_v5 = vsub.f32 2.0, %v17475_v20  ;;  %v4804_v38 = vmul.f32 %v17478_v43, %v4767_v17  ;;  %v4899_v54 = vsel %vm4889_vm15, %v17479_v42, %v4868_v50  ;;  %v4805_v23 = vmul.f32 %v17478_v43, %v4763_v36  ;;  %v17487_v59 = vld [vmem:[#allocation226_spill] sm:$0xff]  ;;  %v17490_v17 = vld [vmem:[#allocation287_spill] sm:$0xff] }
 0x71f   : > { %6590 = vperm.xlu2 %7076, %v5225_v27   ;;  %v4717_v44 = vadd.f32 %v4701_v21, %v4585_v40  ;;  %v4718_v49 = vadd.f32 %v4702_v58, %v4586_v55  ;;  %v5041_v24 = vadd.f32 %v17473_v9, %v5005_v4  ;;  %v5042_v33 = vadd.f32 %v17473_v9, %v5006_v41  ;;  %v17491_v58 = vld [vmem:[#allocation27_spill] sm:$0xff]  ;;  %v17493_v41 = vld [vmem:[#allocation224_spill] sm:$0xff] }
 0x720   : > { %v1722_v53 = vmul.f32 %v17477_v25, %v17476_v5  ;;  %v4895_v10 = vsel %vm4889_vm15, %v4868_v50, %v17482_v19  ;;  %7235 = vrcp.f32 %v17485_v14  ;;  %v4936_v3 = vmul.f32 %v17489_v62, %v4899_v54  ;;  %v17497_v25 = vld [vmem:[#allocation175_spill] sm:$0xff]  ;;  %vm17527_vm15 = vmmov %vm17375_vm4 }
 0x721   : > { %v4849_v16 = vadd.f32 %v4833_v29, %v4717_v44  ;;  %v4850_v7 = vadd.f32 %v4834_v57, %v4718_v49  ;;  %v4604_v11 = vpop.permute.xlu2 %4603  ;;  %v5057_v51 = vmul.f32 %v5041_v24, %v17480_v37  ;;  %v5058_v56 = vmul.f32 %v5042_v33, %v17481_v30  ;;  %v17494_v29 = vld [vmem:[#allocation100_spill] sm:$0xff]  ;;  %v17495_v24 = vld [vmem:[#allocation87_spill] sm:$0xff] }
 0x722   : > { %v4631_v28 = vsel %vm4625_vm9, %v4604_v11, %v17483_v18  ;;  %v4635_v15 = vsel %vm4625_vm9, %v17484_v46, %v4604_v11  ;;  %v1730_v13 = vmul.f32 %v1722_v53, %v17488_v31  ;;  %v4937_v40 = vmul.f32 %v17489_v62, %v4895_v10  ;;  %v17498_v42 = vld [vmem:[#allocation59_spill] sm:$0xff]  ;;  %v17501_v11 = vld [vmem:[#allocation58_spill] sm:$0xff]  ;;  %v17504_v18 = vld [vmem:[#allocation220_spill] sm:$0xff] }
 0x723   : > { %v4672_v6 = vmul.f32 %v17486_v48, %v4635_v15  ;;  %v4673_v26 = vmul.f32 %v17486_v48, %v4631_v28  ;;  %5113 = vmatpush.msra.mxu0 %v5057_v51  ;;  %5142 = vmatpush.msra.mxu1 %v5058_v56  ;;  %v4981_v35 = vadd.f32 %v17487_v59, %v4849_v16  ;;  %v17492_v4 = vsub.f32 2.0, %v17491_v58  ;;  %v17499_v16 = vld [vmem:[#allocation67_spill] sm:$0xff]  ;;  %v17502_v51 = vld [vmem:[#allocation184_spill] sm:$0xff]  ;;  %v17503_v56 = vld [vmem:[#allocation34_spill] sm:$0xff] }
 0x724   : > { %v4982_v27 = vadd.f32 %v17490_v17, %v4850_v7  ;;  %v1686_v57 = vmul.f32 %v17494_v29, %v1678_v0  ;;  %v4829_v2 = vmul.f32 %v17453_v12, %v4804_v38  ;;  %v4830_v44 = vmul.f32 %v17454_v52, %v4805_v23  ;;  %v17500_v7 = vld [vmem:[#allocation22_spill] sm:$0xff]  ;;  %v17505_v28 = vld [vmem:[#allocation289_spill] sm:$0xff]  ;;  %v5231_v48 = vld [vmem:[%s15140_s6 + $0xd0] sm:$0xff] }
 0x725   : > { %v4697_v55 = vmul.f32 %v14042_v60, %v4672_v6  ;;  %v4698_v50 = vmul.f32 %v14044_v22, %v4673_v26  ;;  %v5001_v21 = vadd.f32 %v4981_v35, %v1729_v39  ;;  %v1685_v61 = vmul.f32 %v17493_v41, %v17492_v4  ;;  %v17506_v6 = vld [vmem:[#allocation35_spill] sm:$0xff]  ;;  %v17510_v4 = vld [vmem:[#allocation9_spill] sm:$0xff] }
 0x726   : > { %v5002_v36 = vadd.f32 %v4982_v27, %v1730_v13  ;;  %v4961_v39 = vmul.f32 %v17496_v45, %v4936_v3  ;;  %v7236_v5 = vpop.eup %7235  ;;  %v4962_v53 = vmul.f32 %v17497_v25, %v4937_v40  ;;  %v1694_v23 = vmul.f32 %v1686_v57, %v17503_v56  ;;  %v17507_v13 = vld [vmem:[#allocation298_spill] sm:$0xff]  ;;  %v17513_v45 = vld [vmem:[#allocation156_spill] sm:$0xff] }
 0x727   : > { %6605 = vperm.xlu2 %7076, %v5228_v32   ;;  %v4713_v49 = vadd.f32 %v4697_v55, %v14019_v8  ;;  %v4714_v9 = vadd.f32 %v4698_v50, %v14021_v34  ;;  %v5037_v33 = vadd.f32 %v17495_v24, %v5001_v21  ;;  %v1693_v30 = vmul.f32 %v1685_v61, %v17502_v51  ;;  %v17508_v55 = vld [vmem:[#allocation53_spill] sm:$0xff]  ;;  %v17509_v21 = vld [vmem:[#allocation52_spill] sm:$0xff]  ;;  %v17511_v61 = vld [vmem:[#allocation150_spill] sm:$0xff] }
 0x728   : > { %v5038_v20 = vadd.f32 %v17495_v24, %v5002_v36  ;;  %v1665_v46 = vmul.f32 %v17505_v28, %v17504_v18  ;;  %v1666_v15 = vmul.f32 %v7236_v5, %v17485_v14  ;;  %v17512_v57 = vld [vmem:[#allocation238_spill] sm:$0xff] }
 0x729   : > { %v4845_v0 = vadd.f32 %v4829_v2, %v4713_v49  ;;  %v4846_v43 = vadd.f32 %v4830_v44, %v4714_v9  ;;  %v4602_v38 = vpop.permute.xlu2 %4601  ;;  %v5053_v54 = vmul.f32 %v5037_v33, %v17498_v42 }
 0x72a   : > { %v4630_v8 = vsel %vm4625_vm9, %v4602_v38, %v17499_v16  ;;  %v4634_v34 = vsel %vm4625_vm9, %v17500_v7, %v4602_v38  ;;  %v5054_v37 = vmul.f32 %v5038_v20, %v17501_v11  ;;  %v1673_v32 = vsub.f32 2.0, %v1665_v46  ;;  %v17514_v20 = vld [vmem:[#allocation153_spill] sm:$0xff]  ;;  %v17518_v16 = vld [vmem:[#allocation47_spill] sm:$0xff]  ;;  %v17520_v7 = vld [vmem:[#allocation286_spill] sm:$0xff] }
 0x72b   : > { %5114 = vmatpush.msra.mxu0 %v5053_v54  ;;  %v4977_v19 = vadd.f32 %v4961_v39, %v4845_v0  ;;  %v4978_v10 = vadd.f32 %v4962_v53, %v4846_v43  ;;  %v4668_v26 = vmul.f32 %v17506_v6, %v4634_v34  ;;  %v4669_v59 = vmul.f32 %v17506_v6, %v4630_v8  ;;  %v17515_v53 = vld [vmem:[#allocation295_spill] sm:$0xff]  ;;  %v17516_v43 = vld [vmem:[#allocation5_spill] sm:$0xff]  ;;  %v17519_v8 = vld [vmem:[#allocation46_spill] sm:$0xff] }
 0x72c   : > { %5143 = vmatpush.msra.mxu1 %v5054_v37  ;;  %v1674_v17 = vsub.f32 2.0, %v1666_v15  ;;  %v17517_v54 = vld [vmem:[#allocation81_spill] sm:$0xff]  ;;  %v17523_v34 = vld [vmem:[#allocation232_spill] sm:$0xff]  ;;  %vm17524_vm9 = vmmov %vm17375_vm4 }
 0x72d   : > { %v4997_v35 = vadd.f32 %v4977_v19, %v1693_v30  ;;  %v4998_v31 = vadd.f32 %v4978_v10, %v1694_v23  ;;  %v4693_v14 = vmul.f32 %v14042_v60, %v4668_v26  ;;  %v4694_v27 = vmul.f32 %v14044_v22, %v4669_v59  ;;  %v17526_v11 = vld [vmem:[#allocation101_spill] sm:$0xff] }
 0x72e   : > { %v1681_v60 = vmul.f32 %v17505_v28, %v1673_v32  ;;  %v1682_v22 = vmul.f32 %v7236_v5, %v1674_v17  ;;  %v17529_v30 = vld [vmem:[#allocation221_spill] sm:$0xff]  ;;  %v14234_v28 = vpop.permute.xlu1 %5081 }
 0x72f   : > { %6636 = vperm.xlu2 %7076, %v5231_v48   ;;  %v5033_v62 = vadd.f32 %v17507_v13, %v4997_v35  ;;  %v5034_v3 = vadd.f32 %v17507_v13, %v4998_v31  ;;  %v4709_v44 = vadd.f32 %v4693_v14, %v14060_v63  ;;  %v4710_v49 = vadd.f32 %v4694_v27, %v14062_v1  ;;  %v14240_v35 = vpop.permute.xlu0 %5076  ;;  %v7338_v17 = vld [vmem:[%s7446_s8 + $0x78] sm:$0xff] }
 0x730   : > { %v1689_v39 = vmul.f32 %v1681_v60, %v17513_v45  ;;  %v1690_v25 = vmul.f32 %v1682_v22, %v17514_v20 }
 0x731   : > { %v4734_v40 = vpop.permute.xlu2 %4733  ;;  %v5049_v50 = vmul.f32 %v5033_v62, %v17508_v55  ;;  %v5050_v58 = vmul.f32 %v5034_v3, %v17509_v21  ;;  %v7337_v3 = vld [vmem:[%s7446_s8 + $0x70] sm:$0xff]  ;;  %v7340_v21 = vld [vmem:[%s7446_s8 + $0x58] sm:$0xff] }
 0x732   : > { %v4762_v41 = vsel %vm4757_vm7, %v4734_v40, %v17510_v4  ;;  %v4766_v29 = vsel %vm4757_vm7, %v17511_v61, %v4734_v40  ;;  %vm17525_vm7 = vmmov %vm17375_vm4  ;;  %v7339_v55 = vld [vmem:[%s7446_s8 + $0x50] sm:$0xff]  ;;  %v7342_v61 = vld [vmem:[%s7446_s8 + $0x38] sm:$0xff] }
 0x733   : > { %v4800_v2 = vmul.f32 %v17512_v57, %v4766_v29  ;;  %v4801_v36 = vmul.f32 %v17512_v57, %v4762_v41  ;;  %5115 = vmatpush.msra.mxu0 %v5049_v50  ;;  %5144 = vmatpush.msra.mxu1 %v5050_v58  ;;  %v7341_v4 = vld [vmem:[%s7446_s8 + $0x30] sm:$0xff] }
 0x734   : > { %v7343_v57 = vld [vmem:[%s7446_s8 + $0x10] sm:$0xff] }
 0x735   : > { %v4825_v9 = vmul.f32 %v17453_v12, %v4800_v2  ;;  %v4826_v24 = vmul.f32 %v17454_v52, %v4801_v36  ;;  %v7344_v36 = vld [vmem:[%s7446_s8 + $0x18] sm:$0xff] }
 0x737   : > { %v4841_v33 = vadd.f32 %v4825_v9, %v4709_v44  ;;  %v4842_v47 = vadd.f32 %v4826_v24, %v4710_v49  ;;  %v15892_v49 = vmov 1.0  }
 0x739   : > { %v4973_v0 = vadd.f32 %v17515_v53, %v4841_v33  ;;  %v4974_v38 = vadd.f32 %v17516_v43, %v4842_v47  ;;  %v14232_v18 = vpop.permute.xlu2 %5086 }
 0x73b   : > { %v4993_v42 = vadd.f32 %v4973_v0, %v1689_v39  ;;  %v4994_v5 = vadd.f32 %v4974_v38, %v1690_v25 }
 0x73d   : > { %v5029_v63 = vadd.f32 %v17517_v54, %v4993_v42  ;;  %v5030_v1 = vadd.f32 %v17517_v54, %v4994_v5 }
 0x73f   : > { %v5045_v12 = vmul.f32 %v5029_v63, %v17518_v16  ;;  %v5046_v52 = vmul.f32 %v5030_v1, %v17519_v8 }
 0x741   : > { %5116 = vmatpush.msra.mxu0 %v5045_v12  ;;  %5145 = vmatpush.msra.mxu1 %v5046_v52  ;;  %v14242_v31 = vpop.permute.xlu2 %5071  ;;  %v7345_v52 = vld [vmem:[%s7446_s8 + $0x60] sm:$0xff] }
 0x742   : > { %6956 = vmatmul.msk.f32.vlgmr.msra.gmra.mxu0 %vm17521_vm13, %v17520_v7  ;;  %6960 = vmatmul.msk.f32.vlgmr.msra.gmra.mxu1 %vm17522_vm8, %v17520_v7 }
 0x74a   : > { %6957 = vmatmul.msk.f32.gmra.mxu0 %vm17524_vm9, %v17523_v34  ;;  %6961 = vmatmul.msk.f32.gmra.mxu1 %vm17525_vm7, %v17523_v34  ;;  %v7346_v34 = vld [vmem:[%s7446_s8 + $0x68] sm:$0xff] }
 0x752   : > { %6958 = vmatmul.msk.f32.gmra.mxu0 %vm17527_vm15, %v17526_v11  ;;  %6962 = vmatmul.msk.f32.gmra.mxu1 %vm17528_vm12, %v17526_v11 }
 0x754   : > { %v5176_v37 = vpop.f32.mrf.mxu2  ;;  %v5205_v51 = vpop.f32.mrf.mxu3 }
 0x755   : > { %v5177_v27 = vadd.f32 %v5176_v37, %v14242_v31  ;;  %v5206_v40 = vadd.f32 %v5205_v51, %v14242_v31 }
 0x757   : > { %v14271_v2 = vadd.f32 %v7343_v57, %v5177_v27  ;;  %v14274_v60 = vadd.f32 %v7344_v36, %v5206_v40 }
 0x759   : > { %v5350_v45 = vmul.f32 %v14271_v2, %v14271_v2  ;;  %v5351_v39 = vmul.f32 %v14274_v60, %v14274_v60 }
 0x75a   : > { %6959 = vmatmul.msk.f32.gmra.mxu0 %vm17375_vm4, %v17529_v30  ;;  %6963 = vmatmul.msk.f32.gmra.mxu1 %vm17530_vm11, %v17529_v30  ;;  %v7347_v30 = vld [vmem:[%s7446_s8 + $0x40] sm:$0xff]  ;;  %vm17539_vm4 = vmmov %vm17533_vm0 }
 0x75b   : > { %vm17540_vm11 = vmmov %vm17533_vm0 }
 0x75c   : > { %v5179_v56 = vpop.f32.mrf.mxu2  ;;  %v5208_v23 = vpop.f32.mrf.mxu3 }
 0x75d   : > { %v5180_v13 = vadd.f32 %v5179_v56, %v14240_v35  ;;  %v5209_v62 = vadd.f32 %v5208_v23, %v14240_v35  ;;  %v7348_v23 = vld [vmem:[%s7446_s8 + $0x48] sm:$0xff] }
 0x75f   : > { %v14263_v41 = vadd.f32 %v7341_v4, %v5180_v13  ;;  %v14266_v29 = vadd.f32 %v7342_v61, %v5209_v62 }
 0x761   : > { %v5354_v33 = vmul.f32 %v14263_v41, %v14263_v41  ;;  %v5355_v47 = vmul.f32 %v14266_v29, %v14266_v29 }
 0x764   : > { %v5182_v19 = vpop.f32.mrf.mxu2  ;;  %v5211_v10 = vpop.f32.mrf.mxu3 }
 0x765   : > { %v5183_v48 = vadd.f32 %v5182_v19, %v14234_v28  ;;  %v5212_v6 = vadd.f32 %v5211_v10, %v14234_v28  ;;  %v7349_v10 = vld [vmem:[%s7446_s8 + $0x20] sm:$0xff] }
 0x767   : > { %v14255_v50 = vadd.f32 %v7339_v55, %v5183_v48  ;;  %v14258_v58 = vadd.f32 %v7340_v21, %v5212_v6  ;;  %v7352_v6 = vld [vmem:[%s7446_s8 + $0x8] sm:$0xff] }
 0x769   : > { %v5358_v9 = vmul.f32 %v14255_v50, %v14255_v50  ;;  %v5359_v24 = vmul.f32 %v14258_v58, %v14258_v58 }
 0x76c   : > { %v5185_v46 = vpop.f32.mrf.mxu2  ;;  %v5214_v15 = vpop.f32.mrf.mxu3 }
 0x76d   : > { %v5186_v26 = vadd.f32 %v5185_v46, %v14232_v18  ;;  %v5215_v59 = vadd.f32 %v5214_v15, %v14232_v18  ;;  %v7351_v15 = vld [vmem:[%s7446_s8] sm:$0xff] }
 0x76f   : > { %v14247_v32 = vadd.f32 %v7337_v3, %v5186_v26  ;;  %v14250_v14 = vadd.f32 %v7338_v17, %v5215_v59 }
 0x771   : > { %5316 = vmatpush.msrb.mxu2 %v14247_v32  ;;  %5336 = vmatpush.msrb.mxu3 %v14250_v14  ;;  %v5362_v22 = vmul.f32 %v14247_v32, %v14247_v32  ;;  %v5363_v44 = vmul.f32 %v14250_v14, %v14250_v14 }
 0x773   : > { %5317 = vmatpush.msrb.mxu2 %v14255_v50  ;;  %5337 = vmatpush.msrb.mxu3 %v14258_v58 }
 0x775   : > { %5318 = vmatpush.msrb.mxu2 %v14263_v41  ;;  %5338 = vmatpush.msrb.mxu3 %v14266_v29 }
 0x777   : > { %5319 = vmatpush.msrb.mxu2 %v14271_v2  ;;  %5339 = vmatpush.msrb.mxu3 %v14274_v60 }
 0x778   : > { %6974 = vmatmul.msk.f32.vlgmr.msrb.gmra.mxu2 %vm17531_vm10, %v15892_v49  ;;  %6975 = vmatmul.msk.f32.vlgmr.msrb.gmra.mxu3 %vm17532_vm1, %v15892_v49  ;;  %vm17541_vm10 = vmmov %vm17533_vm0 }
 0x779   : > { %5416 = vmatpush.msra.mxu2 %v5362_v22  ;;  %5436 = vmatpush.msra.mxu3 %v5363_v44  ;;  %vm17542_vm1 = vmmov %vm17533_vm0 }
 0x77b   : > { %5417 = vmatpush.msra.mxu2 %v5358_v9  ;;  %5437 = vmatpush.msra.mxu3 %v5359_v24 }
 0x77d   : > { %5418 = vmatpush.msra.mxu2 %v5354_v33  ;;  %5438 = vmatpush.msra.mxu3 %v5355_v47 }
 0x77f   : > { %5419 = vmatpush.msra.mxu2 %v5350_v45  ;;  %5439 = vmatpush.msra.mxu3 %v5351_v39 }
 0x780   : > { %6978 = vmatmul.msk.f32.vlgmr.msra.gmra.mxu2 %vm17533_vm0, %v15892_v49  ;;  %6979 = vmatmul.msk.f32.vlgmr.msra.gmra.mxu3 %vm17534_vm5, %v15892_v49  ;;  %vm17543_vm5 = vmmov %vm17533_vm0 }
 0x7bf   : > { %v5118_v20 = vpop.f32.mrf.mxu0  ;;  %v5147_v25 = vpop.f32.mrf.mxu1 }
 0x7c0   : > { %v5119_v37 = vadd.f32 %v5118_v20, %v14242_v31  ;;  %v5148_v51 = vadd.f32 %v5147_v25, %v14242_v31 }
 0x7c2   : > { %v14335_v48 = vadd.f32 %v7351_v15, %v5119_v37  ;;  %v14338_v26 = vadd.f32 %v7352_v6, %v5148_v51 }
 0x7c4   : > { %v5348_v17 = vmul.f32 %v14335_v48, %v14335_v48  ;;  %v5349_v27 = vmul.f32 %v14338_v26, %v14338_v26 }
 0x7c7   : > { %v5121_v53 = vpop.f32.mrf.mxu0  ;;  %v5150_v0 = vpop.f32.mrf.mxu1 }
 0x7c8   : > { %v5122_v12 = vadd.f32 %v5121_v53, %v14240_v35  ;;  %v5151_v8 = vadd.f32 %v5150_v0, %v14240_v35  ;;  %v14368_v0 = vpop.permute.xlu1 %5561 }
 0x7cf   : > { %v5124_v43 = vpop.f32.mrf.mxu0  ;;  %v5153_v38 = vpop.f32.mrf.mxu1 }
 0x7d0   : > { %v5125_v54 = vadd.f32 %v5124_v43, %v14234_v28  ;;  %v5154_v63 = vadd.f32 %v5153_v38, %v14234_v28  ;;  %v7350_v28 = vld [vmem:[%s7446_s8 + $0x28] sm:$0xff] }
 0x7d1   : > { %v14330_v46 = vadd.f32 %v7350_v28, %v5151_v8 }
 0x7d2   : > { %v14319_v56 = vadd.f32 %v7347_v30, %v5125_v54  ;;  %v14322_v19 = vadd.f32 %v7348_v23, %v5154_v63  ;;  %v14374_v30 = vpop.permute.xlu1 %5551 }
 0x7d3   : > { %v5353_v3 = vmul.f32 %v14330_v46, %v14330_v46 }
 0x7d4   : > { %v5356_v31 = vmul.f32 %v14319_v56, %v14319_v56  ;;  %v5357_v13 = vmul.f32 %v14322_v19, %v14322_v19 }
 0x7d7   : > { %v5127_v42 = vpop.f32.mrf.mxu0  ;;  %v5156_v5 = vpop.f32.mrf.mxu1 }
 0x7d8   : > { %v5128_v1 = vadd.f32 %v5127_v42, %v14232_v18  ;;  %v5157_v16 = vadd.f32 %v5156_v5, %v14232_v18  ;;  %v14327_v18 = vadd.f32 %v7349_v10, %v5122_v12  ;;  %v14370_v42 = vpop.permute.xlu0 %5556 }
 0x7da   : > { %v14311_v7 = vadd.f32 %v7345_v52, %v5128_v1  ;;  %v14314_v11 = vadd.f32 %v7346_v34, %v5157_v16  ;;  %v5352_v62 = vmul.f32 %v14327_v18, %v14327_v18  ;;  %v14372_v52 = vpop.permute.xlu2 %5597 }
 0x7dc   : > { %5276 = vmatpush.msrb.mxu0 %v14311_v7  ;;  %5296 = vmatpush.msrb.mxu1 %v14314_v11  ;;  %v5360_v59 = vmul.f32 %v14311_v7, %v14311_v7  ;;  %v5361_v35 = vmul.f32 %v14314_v11, %v14314_v11 }
 0x7de   : > { %5277 = vmatpush.msrb.mxu0 %v14319_v56  ;;  %5297 = vmatpush.msrb.mxu1 %v14322_v19 }
 0x7e0   : > { %5278 = vmatpush.msrb.mxu0 %v14327_v18  ;;  %5298 = vmatpush.msrb.mxu1 %v14330_v46 }
 0x7e2   : > { %5279 = vmatpush.msrb.mxu0 %v14335_v48  ;;  %5299 = vmatpush.msrb.mxu1 %v14338_v26 }
 0x7e3   : > { %6972 = vmatmul.msk.f32.vlgmr.msrb.gmra.mxu0 %vm17535_vm14, %v15892_v49  ;;  %6973 = vmatmul.msk.f32.vlgmr.msrb.gmra.mxu1 %vm17536_vm3, %v15892_v49  ;;  %vm17544_vm14 = vmmov %vm17533_vm0 }
 0x7e4   : > { %5376 = vmatpush.msra.mxu0 %v5360_v59  ;;  %5396 = vmatpush.msra.mxu1 %v5361_v35  ;;  %v14379_v35 = vpop.permute.xlu0 %5592  ;;  %vm17545_vm3 = vmmov %vm17533_vm0 }
 0x7e6   : > { %5377 = vmatpush.msra.mxu0 %v5356_v31  ;;  %5397 = vmatpush.msra.mxu1 %v5357_v13 }
 0x7e8   : > { %5378 = vmatpush.msra.mxu0 %v5352_v62  ;;  %5398 = vmatpush.msra.mxu1 %v5353_v3 }
 0x7ea   : > { %5379 = vmatpush.msra.mxu0 %v5348_v17  ;;  %5399 = vmatpush.msra.mxu1 %v5349_v27 }
 0x7eb   : > { %6976 = vmatmul.msk.f32.vlgmr.msra.gmra.mxu0 %vm17537_vm2, %v15892_v49  ;;  %6977 = vmatmul.msk.f32.vlgmr.msra.gmra.mxu1 %vm17538_vm6, %v15892_v49  ;;  %vm17546_vm2 = vmmov %vm17533_vm0 }
 0x7ec   : > { %vm17547_vm6 = vmmov %vm17533_vm0 }
 0x7fb   : > { %v5321_v40 = vpop.f32.mrf.mxu2  ;;  %v5341_v55 = vpop.f32.mrf.mxu3 }
 0x7fc   : > { %v5346_v21 = vmul.f32 0.03125, %v5321_v40  ;;  %v5347_v4 = vmul.f32 0.03125, %v5341_v55 }
 0x7fe   : > { %v5450_v61 = vmul.f32 %v5346_v21, %v5346_v21  ;;  %v5451_v57 = vmul.f32 %v5347_v4, %v5347_v4  ;;  %v5462_v16 = vperm.slane %v5346_v21, 0  ;;  %v5463_v34 = vperm.slane %v5347_v4, 0 }
 0x800   : > { %v5478_v23 = vsub.f32 %v14247_v32, %v5462_v16  ;;  %v5474_v6 = vsub.f32 %v14255_v50, %v5462_v16  ;;  %v5470_v59 = vsub.f32 %v14263_v41, %v5462_v16  ;;  %v5479_v31 = vsub.f32 %v14250_v14, %v5463_v34 }
 0x801   : > { %v5475_v62 = vsub.f32 %v14258_v58, %v5463_v34  ;;  %v5471_v3 = vsub.f32 %v14266_v29, %v5463_v34  ;;  %v5466_v32 = vsub.f32 %v14271_v2, %v5462_v16  ;;  %v5467_v50 = vsub.f32 %v14274_v60, %v5463_v34  ;;  %v14480_v16 = vld [vmem:[%s15135_s1 + $0xc8] sm:$0xff] }
 0x803   : > { %v5421_v36 = vpop.f32.mrf.mxu2  ;;  %v5441_v22 = vpop.f32.mrf.mxu3 }
 0x804   : > { %v5446_v44 = vmul.f32 0.03125, %v5421_v36  ;;  %v5447_v9 = vmul.f32 0.03125, %v5441_v22  ;;  %v14394_v22 = vpop.permute.xlu2 %5546 }
 0x806   : > { %v5454_v24 = vsub.f32 %v5446_v44, %v5450_v61  ;;  %v5455_v33 = vsub.f32 %v5447_v9, %v5451_v57 }
 0x808   : > { %v5458_v47 = vmax.f32 %v5454_v24, 0.0  ;;  %v5459_v45 = vmax.f32 %v5455_v33, 0.0  ;;  %v14405_v33 = vpop.permute.xlu1 %5587 }
 0x80a   : > { %v5482_v39 = vadd.f32 1e-06, %v5458_v47  ;;  %v5483_v20 = vadd.f32 1e-06, %v5459_v45 }
 0x80c   : > { %7237 = vrsqrt.f32 %v5482_v39  ;;  %vm5510_vm13 = vweird.f32 %v5482_v39  ;;  %vm5520_vm9 = vweird.f32 %v5483_v20 }
 0x80d   : > { %7239 = vrsqrt.f32 %v5483_v20 }
 0x812   : > { %v7238_v25 = vpop.eup %7237 }
 0x813   : > { %v7240_v53 = vpop.eup %7239  ;;  %v5505_v43 = vmul.f32 %v7238_v25, %v5482_v39  ;;  %vm5511_vm8 = vweird.f32 %v7238_v25 }
 0x814   : > { %v5515_v38 = vmul.f32 %v7240_v53, %v5483_v20  ;;  %vm5521_vm7 = vweird.f32 %v7240_v53  ;;  %vm5512_vm15 = vmor %vm5510_vm13, %vm5511_vm8  ;;  %v14416_v20 = vpop.permute.xlu0 %5582 }
 0x815   : > { %v5506_v5 = vmul.f32 %v7238_v25, %v5505_v43  ;;  %vm5522_vm12 = vmor %vm5520_vm9, %vm5521_vm7  ;;  %v14429_v43 = vld [vmem:[%s15135_s1 + $0xa0] sm:$0xff] }
 0x816   : > { %v5516_v54 = vmul.f32 %v7240_v53, %v5515_v38  ;;  %vm17548_vm13 = vmmov %vm17533_vm0 }
 0x817   : > { %v5507_v63 = vmul.f32 0.5, %v5506_v5  ;;  %v14444_v5 = vld [vmem:[%s15135_s1 + $0xa8] sm:$0xff]  ;;  %vm17549_vm8 = vmmov %vm17533_vm0 }
 0x818   : > { %v5517_v1 = vmul.f32 0.5, %v5516_v54  ;;  %v14453_v54 = vld [vmem:[%s15135_s1 + $0xb0] sm:$0xff]  ;;  %vm17550_vm9 = vmmov %vm17533_vm0 }
 0x819   : > { %v5508_v12 = vsub.f32 1.5, %v5507_v63  ;;  %v14462_v63 = vld [vmem:[%s15135_s1 + $0xb8] sm:$0xff]  ;;  %vm17551_vm7 = vmmov %vm17533_vm0 }
 0x81a   : > { %v5518_v8 = vsub.f32 1.5, %v5517_v1  ;;  %v14471_v1 = vld [vmem:[%s15135_s1 + $0xc0] sm:$0xff] }
 0x81b   : > { %v5509_v37 = vmul.f32 %v7238_v25, %v5508_v12  ;;  %v14489_v12 = vld [vmem:[%s15135_s1 + $0xd0] sm:$0xff] }
 0x81c   : > { %v5519_v51 = vmul.f32 %v7240_v53, %v5518_v8 }
 0x81d   : > { %v5513_v10 = vsel %vm5512_vm15, %v7238_v25, %v5509_v37  ;;  %v14498_v37 = vld [vmem:[%s15135_s1 + $0xd8] sm:$0xff]  ;;  %vm17552_vm15 = vmmov %vm17533_vm0 }
 0x81e   : > { %v5526_v28 = vperm.slane %v5513_v10, 0  ;;  %v5523_v15 = vsel %vm5522_vm12, %v7240_v53, %v5519_v51  ;;  %vm17553_vm12 = vmmov %vm17533_vm0 }
 0x81f   : > { %v5527_v13 = vperm.slane %v5523_v15, 0 }
 0x820   : > { %v5542_v17 = vmul.f32 %v5526_v28, %v5478_v23  ;;  %v5538_v27 = vmul.f32 %v5526_v28, %v5474_v6  ;;  %v5534_v40 = vmul.f32 %v5526_v28, %v5470_v59  ;;  %v5530_v14 = vmul.f32 %v5526_v28, %v5466_v32 }
 0x821   : > { %v5543_v55 = vmul.f32 %v5527_v13, %v5479_v31  ;;  %v5539_v21 = vmul.f32 %v5527_v13, %v5475_v62  ;;  %v5535_v4 = vmul.f32 %v5527_v13, %v5471_v3  ;;  %v5531_v29 = vmul.f32 %v5527_v13, %v5467_v50 }
 0x822   : > { %v5578_v41 = vmul.f32 %v14368_v0, %v5542_v17  ;;  %v5574_v61 = vmul.f32 %v14370_v42, %v5538_v27  ;;  %v5570_v2 = vmul.f32 %v14374_v30, %v5534_v40  ;;  %v5566_v24 = vmul.f32 %v14394_v22, %v5530_v14 }
 0x823   : > { %v5579_v57 = vmul.f32 %v14368_v0, %v5543_v55  ;;  %v5575_v58 = vmul.f32 %v14370_v42, %v5539_v21  ;;  %v5571_v60 = vmul.f32 %v14374_v30, %v5535_v4  ;;  %v5567_v45 = vmul.f32 %v14394_v22, %v5531_v29 }
 0x824   : > { %v14391_v36 = vadd.f32 %v14372_v52, %v5578_v41  ;;  %v14402_v9 = vadd.f32 %v14379_v35, %v5574_v61  ;;  %v14414_v39 = vadd.f32 %v14405_v33, %v5570_v2  ;;  %v14424_v53 = vadd.f32 %v14416_v20, %v5566_v24 }
 0x825   : > { %v14397_v44 = vadd.f32 %v14372_v52, %v5579_v57  ;;  %v14409_v47 = vadd.f32 %v14379_v35, %v5575_v58  ;;  %v14420_v25 = vadd.f32 %v14405_v33, %v5571_v60  ;;  %v14433_v38 = vadd.f32 %v14416_v20, %v5567_v45 }
 0x826   : > { %5782 = vmatpush.msrb.mxu2 %v14391_v36 }
 0x827   : > { %5823 = vmatpush.msrb.mxu3 %v14397_v44 }
 0x828   : > { %5783 = vmatpush.msrb.mxu2 %v14402_v9 }
 0x829   : > { %5824 = vmatpush.msrb.mxu3 %v14409_v47 }
 0x82a   : > { %5784 = vmatpush.msrb.mxu2 %v14414_v39 }
 0x82b   : > { %5825 = vmatpush.msrb.mxu3 %v14420_v25 }
 0x82c   : > { %5785 = vmatpush.msrb.mxu2 %v14424_v53 }
 0x82d   : > { %5826 = vmatpush.msrb.mxu3 %v14433_v38  ;;  %6996 = vmatmul.msk.f32.vlgmr.msrb.gmra.mxu2 %vm17539_vm4, %v14429_v43 }
 0x82e   : > { %7004 = vmatmul.msk.f32.vlgmr.msrb.gmra.mxu3 %vm17540_vm11, %v14429_v43 }
 0x835   : > { %6997 = vmatmul.msk.f32.gmra.mxu2 %vm17541_vm10, %v14444_v5 }
 0x836   : > { %7005 = vmatmul.msk.f32.gmra.mxu3 %vm17542_vm1, %v14444_v5 }
 0x83d   : > { %6998 = vmatmul.msk.f32.gmra.mxu2 %vm17533_vm0, %v14453_v54 }
 0x83e   : > { %7006 = vmatmul.msk.f32.gmra.mxu3 %vm17543_vm5, %v14453_v54 }
 0x845   : > { %6999 = vmatmul.msk.f32.gmra.mxu2 %vm17544_vm14, %v14462_v63  ;;  %vm17558_vm14 = vmmov %vm17546_vm2 }
 0x846   : > { %7007 = vmatmul.msk.f32.gmra.mxu3 %vm17545_vm3, %v14462_v63  ;;  %vm17559_vm3 = vmmov %vm17546_vm2 }
 0x84d   : > { %7000 = vmatmul.msk.f32.gmra.mxu2 %vm17546_vm2, %v14471_v1 }
 0x84e   : > { %7008 = vmatmul.msk.f32.gmra.mxu3 %vm17547_vm6, %v14471_v1  ;;  %vm17560_vm6 = vmmov %vm17546_vm2 }
 0x855   : > { %7001 = vmatmul.msk.f32.gmra.mxu2 %vm17548_vm13, %v14480_v16  ;;  %vm17561_vm13 = vmmov %vm17546_vm2 }
 0x856   : > { %7009 = vmatmul.msk.f32.gmra.mxu3 %vm17549_vm8, %v14480_v16  ;;  %vm17562_vm8 = vmmov %vm17546_vm2 }
 0x85d   : > { %7002 = vmatmul.msk.f32.gmra.mxu2 %vm17550_vm9, %v14489_v12  ;;  %vm17563_vm9 = vmmov %vm17546_vm2 }
 0x85e   : > { %7010 = vmatmul.msk.f32.gmra.mxu3 %vm17551_vm7, %v14489_v12  ;;  %vm17564_vm7 = vmmov %vm17546_vm2 }
 0x860   : > { %v5281_v8 = vpop.f32.mrf.mxu0  ;;  %v5301_v34 = vpop.f32.mrf.mxu1 }
 0x861   : > { %v5344_v51 = vmul.f32 0.03125, %v5281_v8  ;;  %v5345_v23 = vmul.f32 0.03125, %v5301_v34 }
 0x863   : > { %v5448_v15 = vmul.f32 %v5344_v51, %v5344_v51  ;;  %v5449_v6 = vmul.f32 %v5345_v23, %v5345_v23  ;;  %v5460_v57 = vperm.slane %v5344_v51, 0  ;;  %v5461_v2 = vperm.slane %v5345_v23, 0 }
 0x865   : > { %7003 = vmatmul.msk.f32.gmra.mxu2 %vm17552_vm15, %v14498_v37  ;;  %v5476_v45 = vsub.f32 %v14311_v7, %v5460_v57  ;;  %v5468_v51 = vsub.f32 %v14327_v18, %v5460_v57  ;;  %v5473_v23 = vsub.f32 %v14322_v19, %v5461_v2  ;;  %v5464_v7 = vsub.f32 %v14335_v48, %v5460_v57  ;;  %vm17565_vm15 = vmmov %vm17546_vm2 }
 0x866   : > { %7011 = vmatmul.msk.f32.gmra.mxu3 %vm17553_vm12, %v14498_v37  ;;  %vm17566_vm12 = vmmov %vm17546_vm2 }
 0x868   : > { %v5381_v10 = vpop.f32.mrf.mxu0  ;;  %v5401_v28 = vpop.f32.mrf.mxu1 }
 0x869   : > { %v5444_v59 = vmul.f32 0.03125, %v5381_v10  ;;  %v5445_v31 = vmul.f32 0.03125, %v5401_v28  ;;  %v5472_v28 = vsub.f32 %v14319_v56, %v5460_v57  ;;  %v14588_v57 = vpop.permute.xlu2 %5661 }
 0x86b   : > { %v5452_v13 = vsub.f32 %v5444_v59, %v5448_v15  ;;  %v5453_v62 = vsub.f32 %v5445_v31, %v5449_v6  ;;  %v5477_v15 = vsub.f32 %v14314_v11, %v5461_v2  ;;  %v5469_v59 = vsub.f32 %v14330_v46, %v5461_v2 }
 0x86d   : > { %v5456_v3 = vmax.f32 %v5452_v13, 0.0  ;;  %v5457_v17 = vmax.f32 %v5453_v62, 0.0 }
 0x86f   : > { %v5480_v27 = vadd.f32 1e-06, %v5456_v3  ;;  %v5481_v40 = vadd.f32 1e-06, %v5457_v17 }
 0x871   : > { %7241 = vrsqrt.f32 %v5480_v27  ;;  %vm5490_vm10 = vweird.f32 %v5480_v27  ;;  %vm5500_vm0 = vweird.f32 %v5481_v40 }
 0x872   : > { %7243 = vrsqrt.f32 %v5481_v40 }
 0x877   : > { %v7242_v32 = vpop.eup %7241 }
 0x878   : > { %v7244_v55 = vpop.eup %7243  ;;  %v5485_v21 = vmul.f32 %v7242_v32, %v5480_v27  ;;  %vm5491_vm4 = vweird.f32 %v7242_v32 }
 0x879   : > { %v5495_v4 = vmul.f32 %v7244_v55, %v5481_v40  ;;  %vm5501_vm11 = vweird.f32 %v7244_v55  ;;  %vm5492_vm1 = vmor %vm5490_vm10, %vm5491_vm4  ;;  %v5465_v40 = vsub.f32 %v14338_v26, %v5461_v2  ;;  %v14592_v2 = vpop.permute.xlu0 %5651 }
 0x87a   : > { %v5486_v50 = vmul.f32 %v7242_v32, %v5485_v21  ;;  %vm5502_vm5 = vmor %vm5500_vm0, %vm5501_vm11 }
 0x87b   : > { %v5496_v41 = vmul.f32 %v7244_v55, %v5495_v4  ;;  %vm17567_vm4 = vmmov %vm17546_vm2 }
 0x87c   : > { %v5487_v61 = vmul.f32 0.5, %v5486_v50  ;;  %vm17568_vm11 = vmmov %vm17546_vm2 }
 0x87d   : > { %v5497_v14 = vmul.f32 0.5, %v5496_v41  ;;  %vm17569_vm10 = vmmov %vm17546_vm2 }
 0x87e   : > { %v5488_v58 = vsub.f32 1.5, %v5487_v61 }
 0x87f   : > { %v5498_v29 = vsub.f32 1.5, %v5497_v14 }
 0x880   : > { %v5489_v60 = vmul.f32 %v7242_v32, %v5488_v58 }
 0x881   : > { %v5499_v24 = vmul.f32 %v7244_v55, %v5498_v29 }
 0x882   : > { %v5493_v8 = vsel %vm5492_vm1, %v7242_v32, %v5489_v60  ;;  %vm17570_vm1 = vmmov %vm17546_vm2  ;;  %v14597_v60 = vpop.permute.xlu2 %5646 }
 0x883   : > { %v5524_v34 = vperm.slane %v5493_v8, 0  ;;  %v5503_v10 = vsel %vm5502_vm5, %v7244_v55, %v5499_v24  ;;  %vm17571_vm0 = vmmov %vm17570_vm1 }
 0x884   : > { %v5525_v6 = vperm.slane %v5503_v10, 0  ;;  %vm17572_vm5 = vmmov %vm17571_vm0 }
 0x885   : > { %v5540_v31 = vmul.f32 %v5524_v34, %v5476_v45  ;;  %v5536_v13 = vmul.f32 %v5524_v34, %v5472_v28  ;;  %v5532_v62 = vmul.f32 %v5524_v34, %v5468_v51  ;;  %v5528_v11 = vmul.f32 %v5524_v34, %v5464_v7 }
 0x886   : > { %v5541_v3 = vmul.f32 %v5525_v6, %v5477_v15  ;;  %v5537_v17 = vmul.f32 %v5525_v6, %v5473_v23  ;;  %v5533_v27 = vmul.f32 %v5525_v6, %v5469_v59  ;;  %v5529_v46 = vmul.f32 %v5525_v6, %v5465_v40 }
 0x887   : > { %v5576_v56 = vmul.f32 %v14368_v0, %v5540_v31  ;;  %v5572_v18 = vmul.f32 %v14370_v42, %v5536_v13  ;;  %v5568_v48 = vmul.f32 %v14374_v30, %v5532_v62 }
 0x888   : > { %v5577_v32 = vmul.f32 %v14368_v0, %v5541_v3  ;;  %v5573_v19 = vmul.f32 %v14370_v42, %v5537_v17  ;;  %v5569_v26 = vmul.f32 %v14374_v30, %v5533_v27  ;;  %v5564_v0 = vmul.f32 %v14394_v22, %v5528_v11 }
 0x889   : > { %v14517_v55 = vadd.f32 %v14372_v52, %v5576_v56  ;;  %v14526_v4 = vadd.f32 %v14379_v35, %v5572_v18  ;;  %v5565_v50 = vmul.f32 %v14394_v22, %v5529_v46 }
 0x88a   : > { %v14521_v21 = vadd.f32 %v14372_v52, %v5577_v32  ;;  %v14531_v42 = vadd.f32 %v14379_v35, %v5573_v19  ;;  %v14536_v52 = vadd.f32 %v14405_v33, %v5568_v48  ;;  %v14540_v30 = vadd.f32 %v14405_v33, %v5569_v26  ;;  %v14634_v19 = vpop.permute.xlu0 %5636 }
 0x88b   : > { %5700 = vmatpush.msrb.mxu0 %v14517_v55  ;;  %v14544_v41 = vadd.f32 %v14416_v20, %v5564_v0  ;;  %v14548_v35 = vadd.f32 %v14416_v20, %v5565_v50 }
 0x88c   : > { %5741 = vmatpush.msrb.mxu1 %v14521_v21  ;;  %17554 = vst [vmem:[#allocation152_spill] sm:$0xff] %v14531_v42 }
 0x88d   : > { %5701 = vmatpush.msrb.mxu0 %v14526_v4  ;;  %17555 = vst [vmem:[#allocation21_spill] sm:$0xff] %v14540_v30 }
 0x88e   : > { %5742 = vmatpush.msrb.mxu1 %v14531_v42  ;;  %17556 = vst [vmem:[#allocation6_spill] sm:$0xff] %v14544_v41 }
 0x88f   : > { %5702 = vmatpush.msrb.mxu0 %v14536_v52  ;;  %17557 = vst [vmem:[#allocation99_spill] sm:$0xff] %v14548_v35 }
 0x890   : > { %5743 = vmatpush.msrb.mxu1 %v14540_v30 }
 0x891   : > { %5703 = vmatpush.msrb.mxu0 %v14544_v41 }
 0x892   : > { %5744 = vmatpush.msrb.mxu1 %v14548_v35  ;;  %6980 = vmatmul.msk.f32.vlgmr.msrb.gmra.mxu0 %vm17558_vm14, %v14429_v43  ;;  %vm17573_vm14 = vcmask 523264  }
 0x893   : > { %6988 = vmatmul.msk.f32.vlgmr.msrb.gmra.mxu1 %vm17559_vm3, %v14429_v43  ;;  %vm17574_vm3 = vmmov %vm17573_vm14 }
 0x89a   : > { %6981 = vmatmul.msk.f32.gmra.mxu0 %vm17546_vm2, %v14444_v5  ;;  %vm17575_vm2 = vmmov %vm17574_vm3 }
 0x89b   : > { %6989 = vmatmul.msk.f32.gmra.mxu1 %vm17560_vm6, %v14444_v5  ;;  %vm17576_vm6 = vmmov %vm17575_vm2 }
 0x8a2   : > { %6982 = vmatmul.msk.f32.gmra.mxu0 %vm17561_vm13, %v14453_v54  ;;  %vm17577_vm13 = vmmov %vm17575_vm2 }
 0x8a3   : > { %6990 = vmatmul.msk.f32.gmra.mxu1 %vm17562_vm8, %v14453_v54  ;;  %vm17578_vm8 = vmmov %vm17575_vm2 }
 0x8aa   : > { %6983 = vmatmul.msk.f32.gmra.mxu0 %vm17563_vm9, %v14462_v63  ;;  %vm17579_vm9 = vmmov %vm17575_vm2 }
 0x8ab   : > { %6991 = vmatmul.msk.f32.gmra.mxu1 %vm17564_vm7, %v14462_v63  ;;  %vm17580_vm7 = vmmov %vm17575_vm2 }
 0x8b0   : > { %v5787_v22 = vpop.f32.mrf.mxu2 }
 0x8b1   : > { %v5828_v33 = vpop.f32.mrf.mxu3 }
 0x8b2   : > { %6984 = vmatmul.msk.f32.gmra.mxu0 %vm17565_vm15, %v14471_v1  ;;  %vm17581_vm15 = vmmov %vm17575_vm2 }
 0x8b3   : > { %6992 = vmatmul.msk.f32.gmra.mxu1 %vm17566_vm12, %v14471_v1  ;;  %vm17582_vm12 = vmmov %vm17575_vm2 }
 0x8b8   : > { %v14572_v20 = vpop.f32.mrf.mxu2 }
 0x8b9   : > { %v14574_v43 = vpop.f32.mrf.mxu3 }
 0x8ba   : > { %6985 = vmatmul.msk.f32.gmra.mxu0 %vm17567_vm4, %v14480_v16  ;;  %vm17583_vm4 = vmmov %vm17575_vm2 }
 0x8bb   : > { %6993 = vmatmul.msk.f32.gmra.mxu1 %vm17568_vm11, %v14480_v16  ;;  %v14590_v16 = vpop.permute.xlu1 %5656  ;;  %vm17584_vm11 = vmmov %vm17575_vm2 }
 0x8c0   : > { %v5793_v5 = vpop.f32.mrf.mxu2 }
 0x8c1   : > { %v5834_v54 = vpop.f32.mrf.mxu3 }
 0x8c2   : > { %6986 = vmatmul.msk.f32.gmra.mxu0 %vm17569_vm10, %v14489_v12  ;;  %vm17585_vm10 = vmmov %vm17575_vm2 }
 0x8c3   : > { %6994 = vmatmul.msk.f32.gmra.mxu1 %vm17570_vm1, %v14489_v12  ;;  %v14602_v45 = vpop.permute.xlu1 %5641  ;;  %vm17586_vm1 = vmmov %vm17575_vm2 }
 0x8c8   : > { %v5796_v63 = vpop.f32.mrf.mxu2 }
 0x8c9   : > { %v5837_v1 = vpop.f32.mrf.mxu3  ;;  %v14617_v23 = vadd.f32 %v5796_v63, %v14602_v45  ;;  %v14647_v63 = vadd.f32 %v5793_v5, %v14634_v19 }
 0x8ca   : > { %6987 = vmatmul.msk.f32.gmra.mxu0 %vm17571_vm0, %v14498_v37  ;;  %v14639_v48 = vadd.f32 %v5837_v1, %v14602_v45  ;;  %v14655_v1 = vadd.f32 %v5834_v54, %v14634_v19  ;;  %vm17587_vm0 = vmmov %vm17586_vm1 }
 0x8cb   : > { %6995 = vmatmul.msk.f32.gmra.mxu1 %vm17572_vm5, %v14498_v37  ;;  %v5898_v56 = vmul.f32 0.044715, %v14617_v23  ;;  %v14636_v46 = vpop.permute.xlu1 %5626  ;;  %vm17588_vm5 = vmmov %vm17587_vm0 }
 0x8cc   : > { %v14644_v50 = vadd.f32 %v5787_v22, %v14636_v46  ;;  %v5899_v54 = vmul.f32 0.044715, %v14639_v48 }
 0x8d0   : > { %v5799_v61 = vpop.f32.mrf.mxu2 }
 0x8d1   : > { %v5840_v14 = vpop.f32.mrf.mxu3  ;;  %v14605_v37 = vadd.f32 %v5799_v61, %v14597_v60 }
 0x8d2   : > { %v14608_v8 = vadd.f32 %v5840_v14, %v14597_v60 }
 0x8d3   : > { %v5902_v51 = vmul.f32 0.044715, %v14605_v37 }
 0x8d4   : > { %v5903_v59 = vmul.f32 0.044715, %v14608_v8 }
 0x8d5   : > { %v5934_v40 = vmul.f32 %v5902_v51, %v14605_v37 }
 0x8d6   : > { %v5935_v32 = vmul.f32 %v5903_v59, %v14608_v8 }
 0x8d8   : > { %v5802_v58 = vpop.f32.mrf.mxu2  ;;  %v5967_v51 = vmul.f32 %v5935_v32, %v14608_v8 }
 0x8d9   : > { %v5843_v29 = vpop.f32.mrf.mxu3  ;;  %v14595_v12 = vadd.f32 %v5802_v58, %v14592_v2  ;;  %v5966_v58 = vmul.f32 %v5934_v40, %v14605_v37 }
 0x8da   : > { %v14600_v24 = vadd.f32 %v5843_v29, %v14592_v2  ;;  %v14652_v29 = vadd.f32 %v5828_v33, %v14636_v46  ;;  %v14667_v33 = vpop.permute.xlu2 %5631 }
 0x8db   : > { %v5906_v34 = vmul.f32 0.044715, %v14595_v12  ;;  %v14681_v40 = vadd.f32 %v14574_v43, %v14667_v33 }
 0x8dc   : > { %v5907_v10 = vmul.f32 0.044715, %v14600_v24 }
 0x8dd   : > { %v5938_v62 = vmul.f32 %v5906_v34, %v14595_v12 }
 0x8de   : > { %v5939_v3 = vmul.f32 %v5907_v10, %v14600_v24 }
 0x8df   : > { %v5970_v27 = vmul.f32 %v5938_v62, %v14595_v12 }
 0x8e0   : > { %v5805_v28 = vpop.f32.mrf.mxu2  ;;  %v5971_v11 = vmul.f32 %v5939_v3, %v14600_v24  ;;  %v5894_v3 = vmul.f32 0.044715, %v14647_v63 }
 0x8e1   : > { %v14614_v15 = vadd.f32 %v5805_v28, %v14590_v16  ;;  %v5846_v6 = vpop.f32.mrf.mxu3  ;;  %v6002_v0 = vadd.f32 %v5970_v27, %v14595_v12  ;;  %v5998_v27 = vadd.f32 %v5966_v58, %v14605_v37  ;;  %v5931_v58 = vmul.f32 %v5899_v54, %v14639_v48 }
 0x8e2   : > { %v14621_v31 = vadd.f32 %v5846_v6, %v14590_v16  ;;  %v6003_v22 = vadd.f32 %v5971_v11, %v14600_v24  ;;  %v5930_v6 = vmul.f32 %v5898_v56, %v14617_v23  ;;  %v5895_v56 = vmul.f32 0.044715, %v14655_v1 }
 0x8e3   : > { %v5910_v13 = vmul.f32 0.044715, %v14614_v15  ;;  %v6034_v62 = vmul.f32 0.7978846, %v6002_v0 }
 0x8e4   : > { %v5911_v7 = vmul.f32 0.044715, %v14621_v31  ;;  %v6035_v11 = vmul.f32 0.7978846, %v6003_v22  ;;  %v5962_v0 = vmul.f32 %v5930_v6, %v14617_v23  ;;  %v5926_v22 = vmul.f32 %v5894_v3, %v14647_v63 }
 0x8e5   : > { %v5942_v17 = vmul.f32 %v5910_v13, %v14614_v15  ;;  %7245 = vtanh.f32 %v6034_v62 }
 0x8e6   : > { %v5943_v18 = vmul.f32 %v5911_v7, %v14621_v31  ;;  %v14674_v7 = vadd.f32 %v14572_v20, %v14667_v33  ;;  %v5999_v20 = vadd.f32 %v5967_v51, %v14608_v8  ;;  %v5994_v49 = vadd.f32 %v5962_v0, %v14617_v23 }
 0x8e7   : > { %v5974_v26 = vmul.f32 %v5942_v17, %v14614_v15  ;;  %7247 = vtanh.f32 %v6035_v11  ;;  %v5927_v51 = vmul.f32 %v5895_v56, %v14655_v1  ;;  %v5958_v54 = vmul.f32 %v5926_v22, %v14647_v63 }
 0x8e8   : > { %v5808_v61 = vpop.f32.mrf.mxu2  ;;  %v5975_v14 = vmul.f32 %v5943_v18, %v14621_v31  ;;  %v5890_v3 = vmul.f32 0.044715, %v14674_v7  ;;  %v6026_v11 = vmul.f32 0.7978846, %v5994_v49  ;;  %v5891_v56 = vmul.f32 0.044715, %v14681_v40 }
 0x8e9   : > { %v14658_v34 = vadd.f32 %v5808_v61, %v14588_v57  ;;  %v5849_v10 = vpop.f32.mrf.mxu3  ;;  %v6006_v28 = vadd.f32 %v5974_v26, %v14614_v15  ;;  %v5874_v49 = vmul.f32 0.5, %v14595_v12 }
 0x8ea   : > { %v14662_v5 = vadd.f32 %v5849_v10, %v14588_v57  ;;  %v6007_v13 = vadd.f32 %v5975_v14, %v14621_v31  ;;  %v6030_v10 = vmul.f32 0.7978846, %v5998_v27  ;;  %v5959_v27 = vmul.f32 %v5927_v51, %v14655_v1 }
 0x8eb   : > { %v5914_v59 = vmul.f32 0.044715, %v14658_v34  ;;  %v6038_v26 = vmul.f32 0.7978846, %v6006_v28  ;;  %v5963_v28 = vmul.f32 %v5931_v58, %v14639_v48  ;;  %v5878_v58 = vmul.f32 0.5, %v14614_v15 }
 0x8ec   : > { %v5915_v17 = vmul.f32 0.044715, %v14662_v5  ;;  %v6039_v14 = vmul.f32 0.7978846, %v6007_v13  ;;  %v6031_v13 = vmul.f32 0.7978846, %v5999_v20  ;;  %v5990_v20 = vadd.f32 %v5958_v54, %v14647_v63 }
 0x8ed   : > { %v5946_v18 = vmul.f32 %v5914_v59, %v14658_v34  ;;  %7249 = vtanh.f32 %v6038_v26  ;;  %v5886_v26 = vmul.f32 0.044715, %v14644_v50  ;;  %v5879_v51 = vmul.f32 0.5, %v14621_v31 }
 0x8ee   : > { %v5947_v32 = vmul.f32 %v5915_v17, %v14662_v5  ;;  %7251 = vtanh.f32 %v6039_v14  ;;  %v5995_v17 = vadd.f32 %v5963_v28, %v14639_v48  ;;  %v5887_v14 = vmul.f32 0.044715, %v14652_v29 }
 0x8ef   : > { %v5978_v61 = vmul.f32 %v5946_v18, %v14658_v34  ;;  %7253 = vtanh.f32 %v6030_v10  ;;  %v6022_v22 = vmul.f32 0.7978846, %v5990_v20  ;;  %v5923_v54 = vmul.f32 %v5891_v56, %v14681_v40 }
 0x8f0   : > { %v5979_v43 = vmul.f32 %v5947_v32, %v14662_v5  ;;  %v7246_v32 = vpop.eup %7245  ;;  %v6027_v0 = vmul.f32 0.7978846, %v5995_v17  ;;  %v5875_v15 = vmul.f32 0.5, %v14600_v24  ;;  %v5918_v17 = vmul.f32 %v5886_v26, %v14644_v50 }
 0x8f1   : > { %v6010_v59 = vadd.f32 %v5978_v61, %v14658_v34  ;;  %v7248_v61 = vpop.eup %7247  ;;  %v5919_v24 = vmul.f32 %v5887_v14, %v14652_v29 }
 0x8f2   : > { %v6011_v6 = vadd.f32 %v5979_v43, %v14662_v5  ;;  %v5991_v43 = vadd.f32 %v5959_v27, %v14655_v1  ;;  %v5882_v27 = vmul.f32 0.5, %v14658_v34  ;;  %v5950_v56 = vmul.f32 %v5918_v17, %v14644_v50 }
 0x8f3   : > { %v6042_v62 = vmul.f32 0.7978846, %v6010_v59  ;;  %v7250_v10 = vpop.eup %7249  ;;  %v5922_v59 = vmul.f32 %v5890_v3, %v14674_v7  ;;  %v5955_v3 = vmul.f32 %v5923_v54, %v14681_v40  ;;  %v5951_v17 = vmul.f32 %v5919_v24, %v14652_v29 }
 0x8f4   : > { %v6043_v18 = vmul.f32 0.7978846, %v6011_v6  ;;  %v7252_v28 = vpop.eup %7251  ;;  %v6023_v6 = vmul.f32 0.7978846, %v5991_v43  ;;  %v5883_v43 = vmul.f32 0.5, %v14662_v5  ;;  %v5982_v54 = vadd.f32 %v5950_v56, %v14644_v50 }
 0x8f5   : > { %7255 = vtanh.f32 %v6042_v62  ;;  %v7254_v62 = vpop.eup %7253  ;;  %v6103_v26 = vadd.f32 1.0, %v7252_v28 }
 0x8f6   : > { %7257 = vtanh.f32 %v6043_v18  ;;  %v6102_v18 = vadd.f32 1.0, %v7250_v10  ;;  %v6094_v5 = vadd.f32 1.0, %v7254_v62  ;;  %v6014_v28 = vmul.f32 0.7978846, %v5982_v54 }
 0x8f7   : > { %7259 = vtanh.f32 %v6031_v13  ;;  %v5954_v13 = vmul.f32 %v5922_v59, %v14674_v7  ;;  %v5987_v59 = vadd.f32 %v5955_v3, %v14681_v40  ;;  %v6135_v3 = vmul.f32 %v6103_v26, %v5879_v51 }
 0x8f8   : > { %7261 = vtanh.f32 %v6026_v11  ;;  %v6134_v42 = vmul.f32 %v6102_v18, %v5878_v58  ;;  %v5871_v58 = vmul.f32 0.5, %v14608_v8 }
 0x8f9   : > { %7263 = vtanh.f32 %v6027_v0  ;;  %v5986_v0 = vadd.f32 %v5954_v13, %v14674_v7  ;;  %v6099_v13 = vadd.f32 1.0, %v7248_v61  ;;  %v6019_v41 = vmul.f32 0.7978846, %v5987_v59 }
 0x8fa   : > { %7265 = vtanh.f32 %v6022_v22  ;;  %v5870_v61 = vmul.f32 0.5, %v14605_v37  ;;  %v5858_v59 = vmul.f32 0.5, %v14674_v7  ;;  %v14737_v7 = vld [vmem:[%s15136_s2] sm:$0xff] }
 0x8fb   : > { %v7256_v12 = vpop.eup %7255  ;;  %7267 = vtanh.f32 %v6023_v6  ;;  %v6098_v6 = vadd.f32 1.0, %v7246_v32  ;;  %v6018_v35 = vmul.f32 0.7978846, %v5986_v0  ;;  %v5983_v32 = vadd.f32 %v5951_v17, %v14652_v29 }
 0x8fc   : > { %v7258_v31 = vpop.eup %7257  ;;  %v6106_v11 = vadd.f32 1.0, %v7256_v12  ;;  %v6131_v56 = vmul.f32 %v6099_v13, %v5875_v15  ;;  %v6126_v18 = vmul.f32 %v6094_v5, %v5870_v61  ;;  %v5862_v15 = vmul.f32 0.5, %v14647_v63 }
 0x8fd   : > { %v7260_v20 = vpop.eup %7259  ;;  %v6107_v22 = vadd.f32 1.0, %v7258_v31  ;;  %7269 = vtanh.f32 %v6018_v35  ;;  %v6015_v35 = vmul.f32 0.7978846, %v5983_v32  ;;  %v5854_v63 = vmul.f32 0.5, %v14644_v50 }
 0x8fe   : > { %v7262_v34 = vpop.eup %7261  ;;  %v6138_v10 = vmul.f32 %v6106_v11, %v5882_v27  ;;  %v6095_v27 = vadd.f32 1.0, %v7260_v20  ;;  %7271 = vtanh.f32 %v6019_v41  ;;  %v6130_v11 = vmul.f32 %v6098_v6, %v5874_v49 }
 0x8ff   : > { %v7264_v12 = vpop.eup %7263  ;;  %v6139_v30 = vmul.f32 %v6107_v22, %v5883_v43  ;;  %v6090_v0 = vadd.f32 1.0, %v7262_v34  ;;  %7273 = vtanh.f32 %v6014_v28  ;;  %v5863_v43 = vmul.f32 0.5, %v14655_v1 }
 0x900   : > { %v7266_v14 = vpop.eup %7265  ;;  %6242 = vmatpush.msra.mxu2 %v6138_v10  ;;  %v6091_v62 = vadd.f32 1.0, %v7264_v12  ;;  %v6127_v41 = vmul.f32 %v6095_v27, %v5871_v58  ;;  %7275 = vtanh.f32 %v6015_v35  ;;  %v5859_v10 = vmul.f32 0.5, %v14681_v40 }
 0x901   : > { %v7268_v31 = vpop.eup %7267  ;;  %6271 = vmatpush.msra.mxu3 %v6139_v30  ;;  %v5866_v30 = vmul.f32 0.5, %v14617_v23  ;;  %v6086_v51 = vadd.f32 1.0, %v7266_v14  ;;  %v5855_v17 = vmul.f32 0.5, %v14652_v29  ;;  %v14746_v29 = vld [vmem:[%s15136_s2 + $0x8] sm:$0xff] }
 0x902   : > { %6243 = vmatpush.msra.mxu2 %v6134_v42  ;;  %v5867_v42 = vmul.f32 0.5, %v14639_v48  ;;  %v6087_v49 = vadd.f32 1.0, %v7268_v31 }
 0x903   : > { %6272 = vmatpush.msra.mxu3 %v6135_v3  ;;  %v7270_v37 = vpop.eup %7269  ;;  %v6122_v24 = vmul.f32 %v6090_v0, %v5866_v30  ;;  %v6118_v23 = vmul.f32 %v6086_v51, %v5862_v15  ;;  %v14759_v3 = vld [vmem:[%s15136_s2 + $0x10] sm:$0xff] }
 0x904   : > { %6244 = vmatpush.msra.mxu2 %v6130_v11  ;;  %v7272_v20 = vpop.eup %7271  ;;  %v6123_v8 = vmul.f32 %v6091_v62, %v5867_v42  ;;  %v6082_v22 = vadd.f32 1.0, %v7270_v37  ;;  %v6119_v48 = vmul.f32 %v6087_v49, %v5863_v43  ;;  %v14768_v11 = vld [vmem:[%s15136_s2 + $0x18] sm:$0xff] }
 0x905   : > { %6273 = vmatpush.msra.mxu3 %v6131_v56  ;;  %v7274_v26 = vpop.eup %7273  ;;  %v6083_v34 = vadd.f32 1.0, %v7272_v20 }
 0x906   : > { %6245 = vmatpush.msra.mxu2 %v6126_v18  ;;  %v6078_v6 = vadd.f32 1.0, %v7274_v26  ;;  %v6114_v54 = vmul.f32 %v6082_v22, %v5858_v59  ;;  %v7276_v12 = vpop.eup %7275 }
 0x907   : > { %6274 = vmatpush.msra.mxu3 %v6127_v41  ;;  %v6115_v13 = vmul.f32 %v6083_v34, %v5859_v10  ;;  %v6079_v14 = vadd.f32 1.0, %v7276_v12 }
 0x908   : > { %6246 = vmatpush.msra.mxu2 %v6122_v24  ;;  %v6110_v1 = vmul.f32 %v6078_v6, %v5854_v63 }
 0x909   : > { %6275 = vmatpush.msra.mxu3 %v6123_v8  ;;  %v6111_v40 = vmul.f32 %v6079_v14, %v5855_v17 }
 0x90a   : > { %6247 = vmatpush.msra.mxu2 %v6118_v23 }
 0x90b   : > { %6276 = vmatpush.msra.mxu3 %v6119_v48 }
 0x90c   : > { %6248 = vmatpush.msra.mxu2 %v6114_v54 }
 0x90d   : > { %6277 = vmatpush.msra.mxu3 %v6115_v13 }
 0x90e   : > { %6249 = vmatpush.msra.mxu2 %v6110_v1 }
 0x90f   : > { %v5705_v5 = vpop.f32.mrf.mxu0  ;;  %7020 = vmatmul.msk.f32.vlgmr.msra.gmra.mxu2 %vm17573_vm14, %v14737_v7  ;;  %6278 = vmatpush.msra.mxu3 %v6111_v40  ;;  %vm17590_vm14 = vcmask 261120  }
 0x910   : > { %v5746_v50 = vpop.f32.mrf.mxu1  ;;  %7024 = vmatmul.msk.f32.vlgmr.msra.gmra.mxu3 %vm17574_vm3, %v14737_v7  ;;  %v14816_v1 = vadd.f32 %v5705_v5, %v14636_v46  ;;  %vm17591_vm3 = vmmov %vm17590_vm14 }
 0x917   : > { %v14748_v28 = vpop.f32.mrf.mxu0  ;;  %7021 = vmatmul.msk.f32.gmra.mxu2 %vm17575_vm2, %v14746_v29  ;;  %vm17592_vm2 = vmmov %vm17591_vm3 }
 0x918   : > { %v14752_v31 = vpop.f32.mrf.mxu1  ;;  %7025 = vmatmul.msk.f32.gmra.mxu3 %vm17576_vm6, %v14746_v29  ;;  %vm17593_vm6 = vmmov %vm17592_vm2 }
 0x91f   : > { %v5711_v27 = vpop.f32.mrf.mxu0  ;;  %7022 = vmatmul.msk.f32.gmra.mxu2 %vm17577_vm13, %v14759_v3  ;;  %vm17598_vm13 = vmmov %vm17592_vm2 }
 0x920   : > { %v5752_v32 = vpop.f32.mrf.mxu1  ;;  %7026 = vmatmul.msk.f32.gmra.mxu3 %vm17578_vm8, %v14759_v3  ;;  %v14819_v17 = vadd.f32 %v5711_v27, %v14634_v19  ;;  %vm17599_vm8 = vmmov %vm17592_vm2 }
 0x927   : > { %v5714_v61 = vpop.f32.mrf.mxu0  ;;  %7023 = vmatmul.msk.f32.gmra.mxu2 %vm17579_vm9, %v14768_v11  ;;  %vm17600_vm9 = vmmov %vm17592_vm2 }
 0x928   : > { %v5755_v0 = vpop.f32.mrf.mxu1  ;;  %7027 = vmatmul.msk.f32.gmra.mxu3 %vm17580_vm7, %v14768_v11  ;;  %vm17601_vm7 = vmmov %vm17592_vm2 }
 0x929   : > { %v14811_v63 = vadd.f32 %v5755_v0, %v14602_v45 }
 0x92f   : > { %v5717_v56 = vpop.f32.mrf.mxu0 }
 0x930   : > { %v5758_v58 = vpop.f32.mrf.mxu1  ;;  %v14781_v51 = vadd.f32 %v5717_v56, %v14597_v60  ;;  %v14824_v56 = vadd.f32 %v5746_v50, %v14636_v46  ;;  %v5897_v46 = vmul.f32 0.044715, %v14811_v63 }
 0x931   : > { %v14784_v41 = vadd.f32 %v5758_v58, %v14597_v60 }
 0x932   : > { %v5900_v24 = vmul.f32 0.044715, %v14781_v51 }
 0x933   : > { %v5901_v8 = vmul.f32 0.044715, %v14784_v41 }
 0x934   : > { %v5932_v48 = vmul.f32 %v5900_v24, %v14781_v51 }
 0x935   : > { %v5933_v54 = vmul.f32 %v5901_v8, %v14784_v41 }
 0x937   : > { %v5720_v62 = vpop.f32.mrf.mxu0 }
 0x938   : > { %v5761_v35 = vpop.f32.mrf.mxu1  ;;  %v14775_v18 = vadd.f32 %v5720_v62, %v14592_v2 }
 0x939   : > { %v14778_v30 = vadd.f32 %v5761_v35, %v14592_v2  ;;  %v14793_v2 = vadd.f32 %v5714_v61, %v14602_v45  ;;  %v5964_v61 = vmul.f32 %v5932_v48, %v14781_v51  ;;  %v14827_v45 = vadd.f32 %v5752_v32, %v14634_v19 }
 0x93a   : > { %v5904_v42 = vmul.f32 0.044715, %v14775_v18  ;;  %v5965_v35 = vmul.f32 %v5933_v54, %v14784_v41 }
 0x93b   : > { %v5905_v49 = vmul.f32 0.044715, %v14778_v30  ;;  %v5896_v10 = vmul.f32 0.044715, %v14793_v2  ;;  %v5996_v24 = vadd.f32 %v5964_v61, %v14781_v51  ;;  %v5893_v8 = vmul.f32 0.044715, %v14827_v45 }
 0x93c   : > { %v5936_v22 = vmul.f32 %v5904_v42, %v14775_v18 }
 0x93d   : > { %v5937_v23 = vmul.f32 %v5905_v49, %v14778_v30  ;;  %v5928_v42 = vmul.f32 %v5896_v10, %v14793_v2  ;;  %v14844_v49 = vadd.f32 %v14748_v28, %v14667_v33  ;;  %v5997_v28 = vadd.f32 %v5965_v35, %v14784_v41 }
 0x93e   : > { %v5968_v34 = vmul.f32 %v5936_v22, %v14775_v18  ;;  %v5929_v10 = vmul.f32 %v5897_v46, %v14811_v63 }
 0x93f   : > { %v5723_v37 = vpop.f32.mrf.mxu0  ;;  %v5888_v35 = vmul.f32 0.044715, %v14844_v49 }
 0x940   : > { %v14790_v15 = vadd.f32 %v5723_v37, %v14590_v16  ;;  %v5764_v20 = vpop.f32.mrf.mxu1  ;;  %v6000_v13 = vadd.f32 %v5968_v34, %v14775_v18 }
 0x941   : > { %v14797_v43 = vadd.f32 %v5764_v20, %v14590_v16  ;;  %v5969_v16 = vmul.f32 %v5937_v23, %v14778_v30  ;;  %v14851_v20 = vadd.f32 %v14752_v31, %v14667_v33  ;;  %v6028_v31 = vmul.f32 0.7978846, %v5996_v24 }
 0x942   : > { %v5908_v60 = vmul.f32 0.044715, %v14790_v15  ;;  %v6032_v32 = vmul.f32 0.7978846, %v6000_v13  ;;  %v5925_v13 = vmul.f32 %v5893_v8, %v14827_v45  ;;  %v5885_v8 = vmul.f32 0.044715, %v14824_v56 }
 0x943   : > { %v5909_v26 = vmul.f32 0.044715, %v14797_v43  ;;  %v6001_v5 = vadd.f32 %v5969_v16, %v14778_v30 }
 0x944   : > { %v5940_v59 = vmul.f32 %v5908_v60, %v14790_v15  ;;  %7277 = vtanh.f32 %v6032_v32 }
 0x945   : > { %v5941_v6 = vmul.f32 %v5909_v26, %v14797_v43  ;;  %v6033_v22 = vmul.f32 0.7978846, %v6001_v5 }
 0x946   : > { %v5972_v12 = vmul.f32 %v5940_v59, %v14790_v15  ;;  %v5960_v59 = vmul.f32 %v5928_v42, %v14793_v2 }
 0x947   : > { %v5726_v14 = vpop.f32.mrf.mxu0  ;;  %v5973_v40 = vmul.f32 %v5941_v6, %v14797_v43  ;;  %7279 = vtanh.f32 %v6033_v22 }
 0x948   : > { %v14830_v0 = vadd.f32 %v5726_v14, %v14588_v57  ;;  %v5767_v58 = vpop.f32.mrf.mxu1  ;;  %v6004_v62 = vadd.f32 %v5972_v12, %v14790_v15  ;;  %v5992_v6 = vadd.f32 %v5960_v59, %v14793_v2  ;;  %v5961_v12 = vmul.f32 %v5929_v10, %v14811_v63 }
 0x949   : > { %v14834_v27 = vadd.f32 %v5767_v58, %v14588_v57  ;;  %v6005_v50 = vadd.f32 %v5973_v40, %v14797_v43  ;;  %v5892_v57 = vmul.f32 0.044715, %v14819_v17  ;;  %v6029_v40 = vmul.f32 0.7978846, %v5997_v28 }
 0x94a   : > { %v5912_v19 = vmul.f32 0.044715, %v14830_v0  ;;  %v6036_v23 = vmul.f32 0.7978846, %v6004_v62  ;;  %v5993_v5 = vadd.f32 %v5961_v12, %v14811_v63  ;;  %v5957_v62 = vmul.f32 %v5925_v13, %v14827_v45 }
 0x94b   : > { %v5913_v37 = vmul.f32 0.044715, %v14834_v27  ;;  %v6037_v48 = vmul.f32 0.7978846, %v6005_v50  ;;  %v5924_v16 = vmul.f32 %v5892_v57, %v14819_v17  ;;  %v6024_v46 = vmul.f32 0.7978846, %v5992_v6 }
 0x94c   : > { %v5944_v60 = vmul.f32 %v5912_v19, %v14830_v0  ;;  %7281 = vtanh.f32 %v6036_v23  ;;  %v7278_v19 = vpop.eup %7277  ;;  %v5889_v50 = vmul.f32 0.044715, %v14851_v20  ;;  %v6025_v32 = vmul.f32 0.7978846, %v5993_v5 }
 0x94d   : > { %v5945_v26 = vmul.f32 %v5913_v37, %v14834_v27  ;;  %v5956_v61 = vmul.f32 %v5924_v16, %v14819_v17  ;;  %7283 = vtanh.f32 %v6037_v48  ;;  %v5884_v57 = vmul.f32 0.044715, %v14816_v1  ;;  %v7280_v24 = vpop.eup %7279 }
 0x94e   : > { %v5976_v34 = vmul.f32 %v5944_v60, %v14830_v0  ;;  %7285 = vtanh.f32 %v6028_v31  ;;  %v5876_v60 = vmul.f32 0.5, %v14790_v15  ;;  %v5989_v22 = vadd.f32 %v5957_v62, %v14827_v45 }
 0x94f   : > { %v5977_v33 = vmul.f32 %v5945_v26, %v14834_v27  ;;  %v5988_v37 = vadd.f32 %v5956_v61, %v14819_v17  ;;  %v5872_v23 = vmul.f32 0.5, %v14775_v18  ;;  %v5920_v59 = vmul.f32 %v5888_v35, %v14844_v49 }
 0x950   : > { %v6008_v54 = vadd.f32 %v5976_v34, %v14830_v0  ;;  %v5877_v48 = vmul.f32 0.5, %v14797_v43  ;;  %v6021_v10 = vmul.f32 0.7978846, %v5989_v22  ;;  %v5873_v15 = vmul.f32 0.5, %v14778_v30 }
 0x951   : > { %v6009_v14 = vadd.f32 %v5977_v33, %v14834_v27  ;;  %v6020_v28 = vmul.f32 0.7978846, %v5988_v37  ;;  %v5921_v33 = vmul.f32 %v5889_v50, %v14851_v20  ;;  %v5952_v6 = vmul.f32 %v5920_v59, %v14844_v49 }
 0x952   : > { %v6040_v58 = vmul.f32 0.7978846, %v6008_v54  ;;  %v7282_v26 = vpop.eup %7281  ;;  %v5916_v16 = vmul.f32 %v5884_v57, %v14816_v1  ;;  %v5880_v54 = vmul.f32 0.5, %v14830_v0  ;;  %v5917_v30 = vmul.f32 %v5885_v8, %v14824_v56 }
 0x953   : > { %v6041_v42 = vmul.f32 0.7978846, %v6009_v14  ;;  %v7284_v34 = vpop.eup %7283  ;;  %v6100_v12 = vadd.f32 1.0, %v7282_v26  ;;  %v5953_v13 = vmul.f32 %v5921_v33, %v14851_v20  ;;  %v5881_v5 = vmul.f32 0.5, %v14834_v27 }
 0x954   : > { %7287 = vtanh.f32 %v6040_v58  ;;  %v7286_v31 = vpop.eup %7285  ;;  %v5948_v61 = vmul.f32 %v5916_v16, %v14816_v1  ;;  %v6101_v35 = vadd.f32 1.0, %v7284_v34  ;;  %v6096_v50 = vadd.f32 1.0, %v7278_v19 }
 0x955   : > { %7289 = vtanh.f32 %v6041_v42  ;;  %v5985_v42 = vadd.f32 %v5953_v13, %v14851_v20  ;;  %v6097_v26 = vadd.f32 1.0, %v7280_v24  ;;  %v5949_v59 = vmul.f32 %v5917_v30, %v14824_v56 }
 0x956   : > { %7291 = vtanh.f32 %v6029_v40  ;;  %v5984_v40 = vadd.f32 %v5952_v6, %v14844_v49  ;;  %v5980_v57 = vadd.f32 %v5948_v61, %v14816_v1  ;;  %v6092_v27 = vadd.f32 1.0, %v7286_v31 }
 0x957   : > { %7293 = vtanh.f32 %v6024_v46  ;;  %v6133_v6 = vmul.f32 %v6101_v35, %v5877_v48  ;;  %v5981_v19 = vadd.f32 %v5949_v59, %v14824_v56  ;;  %v5868_v24 = vmul.f32 0.5, %v14781_v51  ;;  %v14920_v59 = vpop.permute.xlu0 %6161 }
 0x958   : > { %7295 = vtanh.f32 %v6025_v32  ;;  %v6016_v32 = vmul.f32 0.7978846, %v5984_v40  ;;  %v6012_v34 = vmul.f32 0.7978846, %v5980_v57  ;;  %v6129_v13 = vmul.f32 %v6097_v26, %v5873_v15 }
 0x959   : > { %7297 = vtanh.f32 %v6020_v28  ;;  %v6017_v28 = vmul.f32 0.7978846, %v5985_v42  ;;  %v5864_v48 = vmul.f32 0.5, %v14793_v2  ;;  %v5865_v61 = vmul.f32 0.5, %v14811_v63 }
 0x95a   : > { %v7288_v18 = vpop.eup %7287  ;;  %7299 = vtanh.f32 %v6021_v10  ;;  %v6132_v10 = vmul.f32 %v6100_v12, %v5876_v60  ;;  %v5869_v60 = vmul.f32 0.5, %v14784_v41  ;;  %v6013_v12 = vmul.f32 0.7978846, %v5981_v19 }
 0x95b   : > { %v7290_v43 = vpop.eup %7289  ;;  %v6104_v14 = vadd.f32 1.0, %v7288_v18  ;;  %7301 = vtanh.f32 %v6016_v32  ;;  %v6128_v18 = vmul.f32 %v6096_v50, %v5872_v23  ;;  %v5860_v15 = vmul.f32 0.5, %v14819_v17 }
 0x95c   : > { %v7292_v58 = vpop.eup %7291  ;;  %v6105_v62 = vadd.f32 1.0, %v7290_v43  ;;  %7303 = vtanh.f32 %v6017_v28  ;;  %v6124_v43 = vmul.f32 %v6092_v27, %v5868_v24  ;;  %v5856_v42 = vmul.f32 0.5, %v14844_v49 }
 0x95d   : > { %v7294_v0 = vpop.eup %7293  ;;  %v6136_v46 = vmul.f32 %v6104_v14, %v5880_v54  ;;  %v6093_v16 = vadd.f32 1.0, %v7292_v58  ;;  %7305 = vtanh.f32 %v6012_v34  ;;  %v5852_v17 = vmul.f32 0.5, %v14816_v1 }
 0x95e   : > { %v7296_v37 = vpop.eup %7295  ;;  %v6137_v22 = vmul.f32 %v6105_v62, %v5881_v5  ;;  %v6088_v54 = vadd.f32 1.0, %v7294_v0  ;;  %7307 = vtanh.f32 %v6013_v12  ;;  %v5861_v5 = vmul.f32 0.5, %v14827_v45 }
 0x95f   : > { %v7298_v8 = vpop.eup %7297  ;;  %6184 = vmatpush.msra.mxu0 %v6136_v46  ;;  %v6089_v31 = vadd.f32 1.0, %v7296_v37  ;;  %v6125_v40 = vmul.f32 %v6093_v16, %v5869_v60  ;;  %v5857_v46 = vmul.f32 0.5, %v14851_v20 }
 0x960   : > { %v7300_v33 = vpop.eup %7299  ;;  %6213 = vmatpush.msra.mxu1 %v6137_v22  ;;  %v6084_v14 = vadd.f32 1.0, %v7298_v8  ;;  %v6120_v30 = vmul.f32 %v6088_v54, %v5864_v48  ;;  %v5853_v22 = vmul.f32 0.5, %v14824_v56  ;;  %v6157_v8 = vpop.permute.xlu2 %6156 }
 0x961   : > { %6185 = vmatpush.msra.mxu0 %v6132_v10  ;;  %v6085_v23 = vadd.f32 1.0, %v7300_v33  ;;  %v7302_v51 = vpop.eup %7301  ;;  %v6121_v41 = vmul.f32 %v6089_v31, %v5865_v61 }
 0x962   : > { %6214 = vmatpush.msra.mxu1 %v6133_v6  ;;  %v7304_v58 = vpop.eup %7303  ;;  %v6080_v62 = vadd.f32 1.0, %v7302_v51  ;;  %v6116_v2 = vmul.f32 %v6084_v14, %v5860_v15 }
 0x963   : > { %6186 = vmatpush.msra.mxu0 %v6128_v18  ;;  %v7306_v35 = vpop.eup %7305  ;;  %v6081_v0 = vadd.f32 1.0, %v7304_v58  ;;  %v6117_v63 = vmul.f32 %v6085_v23, %v5861_v5  ;;  %v6147_v18 = vpop.permute.xlu0 %6146 }
 0x964   : > { %6215 = vmatpush.msra.mxu1 %v6129_v13  ;;  %v6076_v50 = vadd.f32 1.0, %v7306_v35  ;;  %v6112_v32 = vmul.f32 %v6080_v62, %v5856_v42  ;;  %v7308_v57 = vpop.eup %7307 }
 0x965   : > { %6187 = vmatpush.msra.mxu0 %v6124_v43  ;;  %v6113_v37 = vmul.f32 %v6081_v0, %v5857_v46  ;;  %v6077_v26 = vadd.f32 1.0, %v7308_v57 }
 0x966   : > { %6216 = vmatpush.msra.mxu1 %v6125_v40  ;;  %v6108_v45 = vmul.f32 %v6076_v50, %v5852_v17 }
 0x967   : > { %6188 = vmatpush.msra.mxu0 %v6120_v30  ;;  %v6109_v49 = vmul.f32 %v6077_v26, %v5853_v22  ;;  %v17594_v22 = vld [vmem:[#allocation152_spill] sm:$0xff] }
 0x968   : > { %6217 = vmatpush.msra.mxu1 %v6121_v41 }
 0x969   : > { %6189 = vmatpush.msra.mxu0 %v6116_v2 }
 0x96a   : > { %6218 = vmatpush.msra.mxu1 %v6117_v63 }
 0x96b   : > { %6190 = vmatpush.msra.mxu0 %v6112_v32 }
 0x96c   : > { %6219 = vmatpush.msra.mxu1 %v6113_v37 }
 0x96d   : > { %6191 = vmatpush.msra.mxu0 %v6108_v45 }
 0x96e   : > { %7012 = vmatmul.msk.f32.vlgmr.msra.gmra.mxu0 %vm17581_vm15, %v14737_v7  ;;  %6220 = vmatpush.msra.mxu1 %v6109_v49 }
 0x96f   : > { %7016 = vmatmul.msk.f32.vlgmr.msra.gmra.mxu1 %vm17582_vm12, %v14737_v7 }
 0x976   : > { %7013 = vmatmul.msk.f32.gmra.mxu0 %vm17583_vm4, %v14746_v29 }
 0x977   : > { %7017 = vmatmul.msk.f32.gmra.mxu1 %vm17584_vm11, %v14746_v29 }
 0x97e   : > { %7014 = vmatmul.msk.f32.gmra.mxu0 %vm17585_vm10, %v14759_v3 }
 0x97f   : > { %7018 = vmatmul.msk.f32.gmra.mxu1 %vm17586_vm1, %v14759_v3  ;;  %v6152_v3 = vpop.permute.xlu1 %6151 }
 0x986   : > { %7015 = vmatmul.msk.f32.gmra.mxu0 %vm17587_vm0, %v14768_v11 }
 0x987   : > { %7019 = vmatmul.msk.f32.gmra.mxu1 %vm17588_vm5, %v14768_v11 }
 0x992   : > { %v6251_v1 = vpop.f32.mrf.mxu2 }
 0x993   : > { %v6280_v7 = vpop.f32.mrf.mxu3  ;;  %v6252_v24 = vadd.f32 %v6251_v1, %v6147_v18 }
 0x994   : > { %v6281_v31 = vadd.f32 %v6280_v7, %v6147_v18 }
 0x995   : > { %v14943_v43 = vadd.f32 %v6252_v24, %v14424_v53 }
 0x997   : > { %v6394_v40 = vmul.f32 %v14943_v43, %v14943_v43 }
 0x99a   : > { %v6254_v56 = vpop.f32.mrf.mxu2 }
 0x99b   : > { %v6283_v20 = vpop.f32.mrf.mxu3  ;;  %v6255_v6 = vadd.f32 %v6254_v56, %v6152_v3 }
 0x99c   : > { %v6284_v54 = vadd.f32 %v6283_v20, %v6152_v3 }
 0x99d   : > { %v14935_v12 = vadd.f32 %v6255_v6, %v14414_v39  ;;  %v17589_v39 = vmov 1.0  }
 0x99f   : > { %v6398_v48 = vmul.f32 %v14935_v12, %v14935_v12 }
 0x9a2   : > { %v6257_v28 = vpop.f32.mrf.mxu2 }
 0x9a3   : > { %v6286_v29 = vpop.f32.mrf.mxu3  ;;  %v6258_v27 = vadd.f32 %v6257_v28, %v6157_v8 }
 0x9a4   : > { %v6287_v16 = vadd.f32 %v6286_v29, %v6157_v8 }
 0x9a5   : > { %v14928_v13 = vadd.f32 %v6258_v27, %v14402_v9  ;;  %v14946_v9 = vadd.f32 %v6284_v54, %v14420_v25 }
 0x9a7   : > { %v6402_v53 = vmul.f32 %v14928_v13, %v14928_v13  ;;  %v6399_v14 = vmul.f32 %v14946_v9, %v14946_v9 }
 0x9aa   : > { %v6260_v10 = vpop.f32.mrf.mxu2 }
 0x9ab   : > { %v6261_v34 = vadd.f32 %v6260_v10, %v14920_v59  ;;  %v6289_v33 = vpop.f32.mrf.mxu3 }
 0x9ac   : > { %v6290_v11 = vadd.f32 %v6289_v33, %v14920_v59 }
 0x9ad   : > { %v14924_v19 = vadd.f32 %v6261_v34, %v14391_v36  ;;  %v14938_v36 = vadd.f32 %v6287_v16, %v14409_v47 }
 0x9ae   : > { %v14931_v60 = vadd.f32 %v6290_v11, %v14397_v44  ;;  %v14951_v44 = vadd.f32 %v6281_v31, %v14433_v38 }
 0x9af   : > { %6360 = vmatpush.msrb.mxu2 %v14924_v19  ;;  %v6406_v47 = vmul.f32 %v14924_v19, %v14924_v19  ;;  %v6403_v38 = vmul.f32 %v14938_v36, %v14938_v36 }
 0x9b0   : > { %6380 = vmatpush.msrb.mxu3 %v14931_v60  ;;  %v6407_v25 = vmul.f32 %v14931_v60, %v14931_v60  ;;  %v6395_v61 = vmul.f32 %v14951_v44, %v14951_v44 }
 0x9b1   : > { %6361 = vmatpush.msrb.mxu2 %v14928_v13 }
 0x9b2   : > { %6381 = vmatpush.msrb.mxu3 %v14938_v36 }
 0x9b3   : > { %6362 = vmatpush.msrb.mxu2 %v14935_v12 }
 0x9b4   : > { %6382 = vmatpush.msrb.mxu3 %v14946_v9 }
 0x9b5   : > { %6363 = vmatpush.msrb.mxu2 %v14943_v43 }
 0x9b6   : > { %7030 = vmatmul.msk.f32.vlgmr.msrb.gmra.mxu2 %vm17590_vm14, %v17589_v39  ;;  %6383 = vmatpush.msrb.mxu3 %v14951_v44 }
 0x9b7   : > { %6460 = vmatpush.msra.mxu2 %v6406_v47  ;;  %7031 = vmatmul.msk.f32.vlgmr.msrb.gmra.mxu3 %vm17591_vm3, %v17589_v39 }
 0x9b8   : > { %6480 = vmatpush.msra.mxu3 %v6407_v25 }
 0x9b9   : > { %6461 = vmatpush.msra.mxu2 %v6402_v53 }
 0x9ba   : > { %6481 = vmatpush.msra.mxu3 %v6403_v38 }
 0x9bb   : > { %6462 = vmatpush.msra.mxu2 %v6398_v48  ;;  %v15038_v48 = vpop.permute.xlu2 %6590 }
 0x9bc   : > { %6482 = vmatpush.msra.mxu3 %v6399_v14  ;;  %v15040_v14 = vpop.permute.xlu1 %6595 }
 0x9bd   : > { %6463 = vmatpush.msra.mxu2 %v6394_v40 }
 0x9be   : > { %7034 = vmatmul.msk.f32.vlgmr.msra.gmra.mxu2 %vm17592_vm2, %v17589_v39  ;;  %6483 = vmatpush.msra.mxu3 %v6395_v61 }
 0x9bf   : > { %7035 = vmatmul.msk.f32.vlgmr.msra.gmra.mxu3 %vm17593_vm6, %v17589_v39 }
 0x9eb   : > { %v6193_v23 = vpop.f32.mrf.mxu0 }
 0x9ec   : > { %v6222_v51 = vpop.f32.mrf.mxu1  ;;  %v6194_v50 = vadd.f32 %v6193_v23, %v6147_v18 }
 0x9ed   : > { %v6223_v37 = vadd.f32 %v6222_v51, %v6147_v18 }
 0x9f3   : > { %v6196_v30 = vpop.f32.mrf.mxu0 }
 0x9f4   : > { %v6225_v15 = vpop.f32.mrf.mxu1  ;;  %v6197_v42 = vadd.f32 %v6196_v30, %v6152_v3 }
 0x9f5   : > { %v6226_v32 = vadd.f32 %v6225_v15, %v6152_v3 }
 0x9f6   : > { %v14993_v45 = vadd.f32 %v6197_v42, %v14536_v52 }
 0x9fb   : > { %v6199_v58 = vpop.f32.mrf.mxu0 }
 0x9fc   : > { %v6228_v41 = vpop.f32.mrf.mxu1  ;;  %v6200_v62 = vadd.f32 %v6199_v58, %v6157_v8  ;;  %v15042_v58 = vpop.permute.xlu0 %6600 }
 0x9fd   : > { %v6229_v0 = vadd.f32 %v6228_v41, %v6157_v8  ;;  %v15044_v41 = vpop.permute.xlu2 %6605 }
 0x9fe   : > { %v14986_v17 = vadd.f32 %v6200_v62, %v14526_v4  ;;  %v17596_v4 = vld [vmem:[#allocation21_spill] sm:$0xff] }
 0x9ff   : > { %v14996_v26 = vadd.f32 %v6229_v0, %v17594_v22  ;;  %v15004_v1 = vadd.f32 %v6226_v32, %v17596_v4 }
 0xa00   : > { %v6400_v20 = vmul.f32 %v14986_v17, %v14986_v17 }
 0xa01   : > { %v6401_v28 = vmul.f32 %v14996_v26, %v14996_v26  ;;  %v6397_v29 = vmul.f32 %v15004_v1, %v15004_v1 }
 0xa03   : > { %v6202_v5 = vpop.f32.mrf.mxu0 }
 0xa04   : > { %v6203_v35 = vadd.f32 %v6202_v5, %v14920_v59  ;;  %v6231_v2 = vpop.f32.mrf.mxu1 }
 0xa05   : > { %v6232_v46 = vadd.f32 %v6231_v2, %v14920_v59  ;;  %v6396_v59 = vmul.f32 %v14993_v45, %v14993_v45 }
 0xa06   : > { %v14982_v63 = vadd.f32 %v6203_v35, %v14517_v55  ;;  %v17595_v55 = vld [vmem:[#allocation6_spill] sm:$0xff]  ;;  %v15046_v35 = vpop.permute.xlu1 %6626 }
 0xa07   : > { %v14989_v57 = vadd.f32 %v6232_v46, %v14521_v21  ;;  %v15001_v49 = vadd.f32 %v6194_v50, %v17595_v55  ;;  %v17597_v21 = vld [vmem:[#allocation99_spill] sm:$0xff] }
 0xa08   : > { %6320 = vmatpush.msrb.mxu0 %v14982_v63  ;;  %v15009_v52 = vadd.f32 %v6223_v37, %v17597_v21  ;;  %v6404_v7 = vmul.f32 %v14982_v63, %v14982_v63 }
 0xa09   : > { %6340 = vmatpush.msrb.mxu1 %v14989_v57  ;;  %v6405_v56 = vmul.f32 %v14989_v57, %v14989_v57  ;;  %v6392_v8 = vmul.f32 %v15001_v49, %v15001_v49 }
 0xa0a   : > { %6321 = vmatpush.msrb.mxu0 %v14986_v17  ;;  %v6393_v10 = vmul.f32 %v15009_v52, %v15009_v52 }
 0xa0b   : > { %6341 = vmatpush.msrb.mxu1 %v14996_v26 }
 0xa0c   : > { %6322 = vmatpush.msrb.mxu0 %v14993_v45 }
 0xa0d   : > { %6342 = vmatpush.msrb.mxu1 %v15004_v1 }
 0xa0e   : > { %6323 = vmatpush.msrb.mxu0 %v15001_v49 }
 0xa0f   : > { %7028 = vmatmul.msk.f32.vlgmr.msrb.gmra.mxu0 %vm17598_vm13, %v17589_v39  ;;  %6343 = vmatpush.msrb.mxu1 %v15009_v52 }
 0xa10   : > { %6420 = vmatpush.msra.mxu0 %v6404_v7  ;;  %7029 = vmatmul.msk.f32.vlgmr.msrb.gmra.mxu1 %vm17599_vm8, %v17589_v39 }
 0xa11   : > { %6440 = vmatpush.msra.mxu1 %v6405_v56 }
 0xa12   : > { %6421 = vmatpush.msra.mxu0 %v6400_v20 }
 0xa13   : > { %6441 = vmatpush.msra.mxu1 %v6401_v28 }
 0xa14   : > { %6422 = vmatpush.msra.mxu0 %v6396_v59 }
 0xa15   : > { %6442 = vmatpush.msra.mxu1 %v6397_v29 }
 0xa16   : > { %6423 = vmatpush.msra.mxu0 %v6392_v8  ;;  %v15067_v8 = vpop.permute.xlu0 %6631 }
 0xa17   : > { %7032 = vmatmul.msk.f32.vlgmr.msra.gmra.mxu0 %vm17600_vm9, %v17589_v39  ;;  %6443 = vmatpush.msra.mxu1 %v6393_v10  ;;  %v15069_v10 = vpop.permute.xlu2 %6636 }
 0xa18   : > { %7033 = vmatmul.msk.f32.vlgmr.msra.gmra.mxu1 %vm17601_vm7, %v17589_v39 }
 0xa39   : > { %v6365_v27 = vpop.f32.mrf.mxu2 }
 0xa3a   : > { %v6385_v34 = vpop.f32.mrf.mxu3  ;;  %v6390_v3 = vmul.f32 0.03125, %v6365_v27 }
 0xa3b   : > { %v6391_v11 = vmul.f32 0.03125, %v6385_v34 }
 0xa3c   : > { %v6494_v33 = vmul.f32 %v6390_v3, %v6390_v3  ;;  %v6506_v15 = vperm.slane %v6390_v3, 0  ;;  %v15074_v3 = vpop.permute.xlu1 %6641 }
 0xa3d   : > { %v6495_v24 = vmul.f32 %v6391_v11, %v6391_v11  ;;  %v6507_v4 = vperm.slane %v6391_v11, 0 }
 0xa3e   : > { %v6510_v0 = vsub.f32 %v14943_v43, %v6506_v15  ;;  %v6514_v32 = vsub.f32 %v14935_v12, %v6506_v15  ;;  %v6518_v37 = vsub.f32 %v14928_v13, %v6506_v15  ;;  %v6522_v22 = vsub.f32 %v14924_v19, %v6506_v15 }
 0xa3f   : > { %v6511_v27 = vsub.f32 %v14951_v44, %v6507_v4 }
 0xa41   : > { %v6465_v6 = vpop.f32.mrf.mxu2 }
 0xa42   : > { %v6490_v16 = vmul.f32 0.03125, %v6465_v6  ;;  %v6485_v31 = vpop.f32.mrf.mxu3 }
 0xa43   : > { %v6491_v25 = vmul.f32 0.03125, %v6485_v31 }
 0xa44   : > { %v6498_v18 = vsub.f32 %v6490_v16, %v6494_v33  ;;  %v6515_v33 = vsub.f32 %v14946_v9, %v6507_v4 }
 0xa45   : > { %v6499_v53 = vsub.f32 %v6491_v25, %v6495_v24  ;;  %v6523_v24 = vsub.f32 %v14931_v60, %v6507_v4 }
 0xa46   : > { %v6502_v54 = vmax.f32 %v6498_v18, 0.0  ;;  %v6519_v18 = vsub.f32 %v14938_v36, %v6507_v4 }
 0xa47   : > { %v6503_v38 = vmax.f32 %v6499_v53, 0.0 }
 0xa48   : > { %v6526_v47 = vadd.f32 1e-06, %v6502_v54 }
 0xa49   : > { %v6527_v39 = vadd.f32 1e-06, %v6503_v38 }
 0xa4a   : > { %7309 = vrsqrt.f32 %v6526_v47  ;;  %vm6554_vm15 = vweird.f32 %v6526_v47 }
 0xa4b   : > { %7311 = vrsqrt.f32 %v6527_v39  ;;  %vm6564_vm11 = vweird.f32 %v6527_v39 }
 0xa50   : > { %v7310_v40 = vpop.eup %7309 }
 0xa51   : > { %v6549_v61 = vmul.f32 %v7310_v40, %v6526_v47  ;;  %vm6555_vm12 = vweird.f32 %v7310_v40  ;;  %v7312_v30 = vpop.eup %7311 }
 0xa52   : > { %v6559_v62 = vmul.f32 %v7312_v30, %v6527_v39  ;;  %vm6556_vm4 = vmor %vm6554_vm15, %vm6555_vm12  ;;  %vm6565_vm10 = vweird.f32 %v7312_v30 }
 0xa53   : > { %v6550_v23 = vmul.f32 %v7310_v40, %v6549_v61  ;;  %vm15052_vm1 = vmor %vm6564_vm11, %vm6565_vm10 }
 0xa54   : > { %v6560_v42 = vmul.f32 %v7312_v30, %v6559_v62 }
 0xa55   : > { %v6551_v51 = vmul.f32 0.5, %v6550_v23 }
 0xa56   : > { %v6561_v50 = vmul.f32 0.5, %v6560_v42 }
 0xa57   : > { %v6552_v5 = vsub.f32 1.5, %v6551_v51 }
 0xa58   : > { %v6562_v21 = vsub.f32 1.5, %v6561_v50 }
 0xa59   : > { %v6553_v2 = vmul.f32 %v7310_v40, %v6552_v5 }
 0xa5a   : > { %v6563_v59 = vmul.f32 %v7312_v30, %v6562_v21 }
 0xa5b   : > { %v6557_v46 = vsel %vm6556_vm4, %v7310_v40, %v6553_v2 }
 0xa5c   : > { %v6570_v55 = vperm.slane %v6557_v46, 0  ;;  %v6567_v34 = vsel %vm15052_vm1, %v7312_v30, %v6563_v59 }
 0xa5d   : > { %v6571_v54 = vperm.slane %v6567_v34, 0 }
 0xa5e   : > { %v6574_v7 = vmul.f32 %v6570_v55, %v6510_v0  ;;  %v6578_v56 = vmul.f32 %v6570_v55, %v6514_v32  ;;  %v6582_v20 = vmul.f32 %v6570_v55, %v6518_v37  ;;  %v6586_v28 = vmul.f32 %v6570_v55, %v6522_v22 }
 0xa5f   : > { %v6575_v31 = vmul.f32 %v6571_v54, %v6511_v27  ;;  %v6579_v9 = vmul.f32 %v6571_v54, %v6515_v33  ;;  %v6583_v47 = vmul.f32 %v6571_v54, %v6519_v18  ;;  %v6587_v25 = vmul.f32 %v6571_v54, %v6523_v24 }
 0xa60   : > { %v6610_v29 = vmul.f32 %v15038_v48, %v6574_v7  ;;  %v6614_v12 = vmul.f32 %v15040_v14, %v6578_v56  ;;  %v6618_v13 = vmul.f32 %v15042_v58, %v6582_v20  ;;  %v6622_v19 = vmul.f32 %v15044_v41, %v6586_v28 }
 0xa61   : > { %v6611_v53 = vmul.f32 %v15038_v48, %v6575_v31  ;;  %v6615_v36 = vmul.f32 %v15040_v14, %v6579_v9  ;;  %v6619_v60 = vmul.f32 %v15042_v58, %v6583_v47  ;;  %v6623_v38 = vmul.f32 %v15044_v41, %v6587_v25 }
 0xa62   : > { %v6646_v6 = vadd.f32 %v15046_v35, %v6610_v29  ;;  %v6650_v16 = vadd.f32 %v15067_v8, %v6614_v12  ;;  %v6654_v11 = vadd.f32 %v15069_v10, %v6618_v13  ;;  %v6658_v44 = vadd.f32 %v15074_v3, %v6622_v19 }
 0xa63   : > { %v6647_v39 = vadd.f32 %v15046_v35, %v6611_v53  ;;  %v6651_v40 = vadd.f32 %v15067_v8, %v6615_v36  ;;  %v6655_v61 = vadd.f32 %v15069_v10, %v6619_v60  ;;  %v6659_v23 = vadd.f32 %v15074_v3, %v6623_v38 }
 0xa64   : > { %6662 = vst [vmem:[%s15065_s30 + $0x10] sm:$0xff] %v6646_v6 }
 0xa65   : > { %6666 = vst [vmem:[%s15065_s30 + $0x30] sm:$0xff] %v6650_v16 }
 0xa66   : > { %6670 = vst [vmem:[%s15065_s30 + $0x50] sm:$0xff] %v6654_v11 }
 0xa67   : > { %6674 = vst [vmem:[%s15065_s30 + $0x70] sm:$0xff] %v6658_v44 }
 0xa68   : > { %6663 = vst [vmem:[%s15065_s30 + $0x18] sm:$0xff] %v6647_v39 }
 0xa69   : > { %6667 = vst [vmem:[%s15065_s30 + $0x38] sm:$0xff] %v6651_v40 }
 0xa6a   : > { %6671 = vst [vmem:[%s15065_s30 + $0x58] sm:$0xff] %v6655_v61 }
 0xa6b   : > { %6675 = vst [vmem:[%s15065_s30 + $0x78] sm:$0xff] %v6659_v23 }
 0xa8c   : > { %v6325_v51 = vpop.f32.mrf.mxu0 }
 0xa8d   : > { %v6345_v30 = vpop.f32.mrf.mxu1  ;;  %v6388_v15 = vmul.f32 0.03125, %v6325_v51 }
 0xa8e   : > { %v6389_v42 = vmul.f32 0.03125, %v6345_v30 }
 0xa8f   : > { %v6492_v62 = vmul.f32 %v6388_v15, %v6388_v15  ;;  %v6504_v59 = vperm.slane %v6388_v15, 0 }
 0xa90   : > { %v6493_v32 = vmul.f32 %v6389_v42, %v6389_v42  ;;  %v6505_v24 = vperm.slane %v6389_v42, 0 }
 0xa91   : > { %v6508_v27 = vsub.f32 %v15001_v49, %v6504_v59  ;;  %v6512_v6 = vsub.f32 %v14993_v45, %v6504_v59  ;;  %v6516_v16 = vsub.f32 %v14986_v17, %v6504_v59  ;;  %v6520_v11 = vsub.f32 %v14982_v63, %v6504_v59 }
 0xa92   : > { %v6509_v53 = vsub.f32 %v15009_v52, %v6505_v24  ;;  %v6513_v60 = vsub.f32 %v15004_v1, %v6505_v24  ;;  %v6517_v61 = vsub.f32 %v14996_v26, %v6505_v24  ;;  %v6521_v23 = vsub.f32 %v14989_v57, %v6505_v24 }
 0xa94   : > { %v6425_v5 = vpop.f32.mrf.mxu0 }
 0xa95   : > { %v6488_v2 = vmul.f32 0.03125, %v6425_v5  ;;  %v6445_v50 = vpop.f32.mrf.mxu1 }
 0xa96   : > { %v6489_v22 = vmul.f32 0.03125, %v6445_v50 }
 0xa97   : > { %v6496_v0 = vsub.f32 %v6488_v2, %v6492_v62 }
 0xa98   : > { %v6497_v55 = vsub.f32 %v6489_v22, %v6493_v32 }
 0xa99   : > { %v6500_v46 = vmax.f32 %v6496_v0, 0.0 }
 0xa9a   : > { %v6501_v4 = vmax.f32 %v6497_v55, 0.0 }
 0xa9b   : > { %v6524_v37 = vadd.f32 1e-06, %v6500_v46 }
 0xa9c   : > { %v6525_v21 = vadd.f32 1e-06, %v6501_v4 }
 0xa9d   : > { %7313 = vrsqrt.f32 %v6524_v37  ;;  %vm6534_vm5 = vweird.f32 %v6524_v37 }
 0xa9e   : > { %7315 = vrsqrt.f32 %v6525_v21  ;;  %vm6544_vm2 = vweird.f32 %v6525_v21 }
 0xaa3   : > { %v7314_v7 = vpop.eup %7313 }
 0xaa4   : > { %v6529_v56 = vmul.f32 %v7314_v7, %v6524_v37  ;;  %v7316_v43 = vpop.eup %7315  ;;  %vm6535_vm0 = vweird.f32 %v7314_v7 }
 0xaa5   : > { %v6539_v12 = vmul.f32 %v7316_v43, %v6525_v21  ;;  %vm6536_vm14 = vmor %vm6534_vm5, %vm6535_vm0  ;;  %vm6545_vm3 = vweird.f32 %v7316_v43 }
 0xaa6   : > { %v6530_v20 = vmul.f32 %v7314_v7, %v6529_v56  ;;  %vm6546_vm6 = vmor %vm6544_vm2, %vm6545_vm3 }
 0xaa7   : > { %v6540_v19 = vmul.f32 %v7316_v43, %v6539_v12 }
 0xaa8   : > { %v6531_v28 = vmul.f32 0.5, %v6530_v20 }
 0xaa9   : > { %v6541_v33 = vmul.f32 0.5, %v6540_v19 }
 0xaaa   : > { %v6532_v29 = vsub.f32 1.5, %v6531_v28 }
 0xaab   : > { %v6542_v44 = vsub.f32 1.5, %v6541_v33 }
 0xaac   : > { %v6533_v13 = vmul.f32 %v7314_v7, %v6532_v29 }
 0xaad   : > { %v6543_v25 = vmul.f32 %v7316_v43, %v6542_v44 }
 0xaae   : > { %v6537_v34 = vsel %vm6536_vm14, %v7314_v7, %v6533_v13 }
 0xaaf   : > { %v6568_v18 = vperm.slane %v6537_v34, 0  ;;  %v6547_v36 = vsel %vm6546_vm6, %v7316_v43, %v6543_v25 }
 0xab0   : > { %v6569_v30 = vperm.slane %v6547_v36, 0 }
 0xab1   : > { %v6572_v54 = vmul.f32 %v6568_v18, %v6508_v27  ;;  %v6576_v31 = vmul.f32 %v6568_v18, %v6512_v6  ;;  %v6580_v9 = vmul.f32 %v6568_v18, %v6516_v16  ;;  %v6584_v47 = vmul.f32 %v6568_v18, %v6520_v11 }
 0xab2   : > { %v6573_v52 = vmul.f32 %v6569_v30, %v6509_v53  ;;  %v6577_v1 = vmul.f32 %v6569_v30, %v6513_v60  ;;  %v6581_v15 = vmul.f32 %v6569_v30, %v6517_v61  ;;  %v6585_v5 = vmul.f32 %v6569_v30, %v6521_v23 }
 0xab3   : > { %v6608_v49 = vmul.f32 %v15038_v48, %v6572_v54  ;;  %v6612_v45 = vmul.f32 %v15040_v14, %v6576_v31  ;;  %v6616_v17 = vmul.f32 %v15042_v58, %v6580_v9  ;;  %v6620_v63 = vmul.f32 %v15044_v41, %v6584_v47 }
 0xab4   : > { %v6609_v62 = vmul.f32 %v15038_v48, %v6573_v52  ;;  %v6613_v26 = vmul.f32 %v15040_v14, %v6577_v1  ;;  %v6617_v57 = vmul.f32 %v15042_v58, %v6581_v15  ;;  %v6621_v2 = vmul.f32 %v15044_v41, %v6585_v5 }
 0xab5   : > { %v6644_v38 = vadd.f32 %v15046_v35, %v6608_v49  ;;  %v6648_v39 = vadd.f32 %v15067_v8, %v6612_v45  ;;  %v6652_v40 = vadd.f32 %v15069_v10, %v6616_v17  ;;  %v6656_v51 = vadd.f32 %v15074_v3, %v6620_v63 }
 0xab6   : > { %v6645_v42 = vadd.f32 %v15046_v35, %v6609_v62  ;;  %v6649_v0 = vadd.f32 %v15067_v8, %v6613_v26  ;;  %v6653_v46 = vadd.f32 %v15069_v10, %v6617_v57  ;;  %v6657_v50 = vadd.f32 %v15074_v3, %v6621_v2 }
 0xab7   : > { %6660 = vst [vmem:[%s15065_s30] sm:$0xff] %v6644_v38 }
 0xab8   : > { %6664 = vst [vmem:[%s15065_s30 + $0x20] sm:$0xff] %v6648_v39 }
 0xab9   : > { %6668 = vst [vmem:[%s15065_s30 + $0x40] sm:$0xff] %v6652_v40 }
 0xaba   : > { %6672 = vst [vmem:[%s15065_s30 + $0x60] sm:$0xff] %v6656_v51 }
 0xabb   : > { %6661 = vst [vmem:[%s15065_s30 + $0x8] sm:$0xff] %v6645_v42 }
 0xabc   : > { %6665 = vst [vmem:[%s15065_s30 + $0x28] sm:$0xff] %v6649_v0 }
 0xabd   : > { %6669 = vst [vmem:[%s15065_s30 + $0x48] sm:$0xff] %v6653_v46 }
 0xabe   : > { %6673 = vst [vmem:[%s15065_s30 + $0x68] sm:$0xff] %v6657_v50 }
 0xabf PF: > { %s17_s24 = sadd.s32 1, %s7359_s24  }
 0xac0   : > { %p14_p4 = scmp.ge.s32.totalorder %s17_s24, 4  }
 0xac2   :  { %16 = sbr.rel (!%p14_p4) target bundleno = 1 (0x1), region = 102 }

</bundles_post_ra>
